<compile_context>
chip_gen: v7x
topology: tpu7x:2x2x1
jax: 0.10.0
libtpu: 0.0.40
codegen_flags: <defaults>
</compile_context>

<pallas_src>
import jax
import jax.numpy as jnp
from jax.experimental import pallas as pl
from jax.experimental.pallas import tpu as pltpu

EPS = 1e-5  # nn.BatchNorm2d default


# ----------------------------- kernels -----------------------------

def conv1_stats_kernel(xp_ref, w_ref, b_ref, y_ref, st_ref):
    # xp_ref: (H+2, W+2, Cin) bf16 zero-padded input (one sample)
    # w_ref : (9, Cin, Cout) bf16 (tap index = kh*3 + kw), b_ref: (1, Cout) f32
    # y_ref : (H, W, Cout) f32 raw conv output; st_ref: (2, Cout) [sum; sumsq] over H*W
    Hp, Wp, Cin = xp_ref.shape
    H, W = Hp - 2, Wp - 2
    Cout = w_ref.shape[-1]

    acc = jnp.zeros((H * W, Cout), jnp.float32)
    for idx in range(9):
        kh, kw = idx // 3, idx % 3
        tap = xp_ref[kh:kh + H, kw:kw + W, :].reshape(H * W, Cin)
        acc = acc + jnp.dot(tap, w_ref[idx], preferred_element_type=jnp.float32)
    y = acc + b_ref[...]

    y_ref[...] = y.reshape(H, W, Cout)
    st_ref[0:1, :] = jnp.sum(y, axis=0, keepdims=True)
    st_ref[1:2, :] = jnp.sum(y * y, axis=0, keepdims=True)


def bn_relu_conv2_stats_kernel(y1_ref, sc_ref, sh_ref, w_ref, b_ref,
                               y2_ref, st_ref, pad_ref):
    # y1_ref: (H, W, C) f32 raw conv1 output.  sc/sh: (1, C) fused BN1 scale/shift (f32).
    # w_ref : (9, C, Cout) bf16, b_ref: (1, Cout) f32.
    # pad_ref: (H+2, W+2, C) bf16 scratch = zero-padded BN1+ReLU activation (per sample).
    H, W, C = y1_ref.shape
    Cout = w_ref.shape[-1]

    # BN1 (affine, f32) + ReLU.
    a = jnp.maximum(y1_ref[...] * sc_ref[...] + sh_ref[...], 0.0)

    # Zero the (tiny) padded scratch every step, then write the interior in bf16.
    pad_ref[...] = jnp.zeros_like(pad_ref)
    pad_ref[1:H + 1, 1:W + 1, :] = a.astype(pad_ref.dtype)

    acc = jnp.zeros((H * W, Cout), jnp.float32)
    for idx in range(9):
        kh, kw = idx // 3, idx % 3
        tap = pad_ref[kh:kh + H, kw:kw + W, :].reshape(H * W, C)
        acc = acc + jnp.dot(tap, w_ref[idx], preferred_element_type=jnp.float32)
    y = acc + b_ref[...]

    y2_ref[...] = y.reshape(H, W, Cout)
    st_ref[0:1, :] = jnp.sum(y, axis=0, keepdims=True)
    st_ref[1:2, :] = jnp.sum(y * y, axis=0, keepdims=True)


def bn_relu_kernel(y_ref, sc_ref, sh_ref, o_ref):
    # Final BN2 (affine) + ReLU, elementwise on a lane-dense (H, W*C) slab.
    o_ref[...] = jnp.maximum(y_ref[...] * sc_ref[...] + sh_ref[...], 0.0)


# ----------------------------- wrapper -----------------------------

def _fold_weight(w):
    """HWIO (3,3,I,O) -> (9, I, O) bf16; tap index = kh*3 + kw."""
    kh, kw, i, o = w.shape
    return w.reshape(kh * kw, i, o).astype(jnp.bfloat16)


def _bn_scale_shift(stats_sum, count, gamma, beta):
    """Training-mode BatchNorm folded into per-channel scale/shift (all f32)."""
    mean = stats_sum[0:1, :] / count
    var = jnp.maximum(stats_sum[1:2, :] / count - mean * mean, 0.0)   # biased variance
    scale = gamma * jax.lax.rsqrt(var + EPS)
    shift = beta - mean * scale
    return scale, shift


@jax.jit
def double_conv(x_nchw, params):
    """Pallas DoubleConv. x_nchw: (N, Cin, H, W) f32 -> (N, Cout, H, W) f32."""
    N, Cin, H, W = x_nchw.shape
    Cout = params["w1"].shape[-1]
    Hp, Wp = H + 2, W + 2
    count = float(N * H * W)

    # TODO(synk): fold NCHW<->NHWC transposes / pad into BlockSpecs, add H row-block (halo)
    # tiling on top of the batch grid for large spatial sizes, and store the conv
    # intermediates lane-dense as well when Cout < 128.
    x = jnp.transpose(x_nchw, (0, 2, 3, 1))                      # NCHW -> NHWC
    xp = jnp.pad(x, ((0, 0), (1, 1), (1, 1), (0, 0))).astype(jnp.bfloat16)

    w1 = _fold_weight(params["w1"])
    w2 = _fold_weight(params["w2"])
    b1 = params["b1"].astype(jnp.float32)
    b2 = params["b2"].astype(jnp.float32)

    cparams = pltpu.CompilerParams(
        dimension_semantics=("parallel",),           # batch grid -> both TCs on v7x
        vmem_limit_bytes=32 * 1024 * 1024)

    vec_spec = pl.BlockSpec((1, Cout), lambda n: (0, 0))

    # ---- pass A: conv1 + bias, per-sample batch-stat partials ----
    ce1 = pl.CostEstimate(
        flops=2 * N * H * W * 9 * Cin * Cout,
        transcendentals=0,
        bytes_accessed=xp.size * 2 + w1.size * 2 + b1.size * 4
                       + N * H * W * Cout * 4 + N * 2 * Cout * 4)
    y1, st1 = pl.pallas_call(
        conv1_stats_kernel,
        grid=(N,),
        in_specs=[
            pl.BlockSpec((None, Hp, Wp, Cin), lambda n: (n, 0, 0, 0)),
            pl.BlockSpec((9, Cin, Cout), lambda n: (0, 0, 0)),
            vec_spec,
        ],
        out_specs=(
            pl.BlockSpec((None, H, W, Cout), lambda n: (n, 0, 0, 0)),
            pl.BlockSpec((None, 2, Cout), lambda n: (n, 0, 0)),
        ),
        out_shape=(jax.ShapeDtypeStruct((N, H, W, Cout), jnp.float32),
                   jax.ShapeDtypeStruct((N, 2, Cout), jnp.float32)),
        compiler_params=cparams,
        cost_estimate=ce1,
    )(xp, w1, b1)

    sc1, sh1 = _bn_scale_shift(jnp.sum(st1, axis=0), count, params["g1"], params["be1"])

    # ---- pass B: BN1 + ReLU + conv2 + bias, per-sample batch-stat partials ----
    ce2 = pl.CostEstimate(
        flops=2 * N * H * W * 9 * Cout * Cout + 3 * N * H * W * Cout,
        transcendentals=0,
        bytes_accessed=2 * N * H * W * Cout * 4 + w2.size * 2
                       + (b2.size + 2 * Cout) * 4 + N * 2 * Cout * 4)
    y2, st2 = pl.pallas_call(
        bn_relu_conv2_stats_kernel,
        grid=(N,),
        in_specs=[
            pl.BlockSpec((None, H, W, Cout), lambda n: (n, 0, 0, 0)),
            vec_spec, vec_spec,
            pl.BlockSpec((9, Cout, Cout), lambda n: (0, 0, 0)),
            vec_spec,
        ],
        out_specs=(
            pl.BlockSpec((None, H, W, Cout), lambda n: (n, 0, 0, 0)),
            pl.BlockSpec((None, 2, Cout), lambda n: (n, 0, 0)),
        ),
        out_shape=(jax.ShapeDtypeStruct((N, H, W, Cout), jnp.float32),
                   jax.ShapeDtypeStruct((N, 2, Cout), jnp.float32)),
        scratch_shapes=[pltpu.VMEM((Hp, Wp, Cout), jnp.bfloat16)],
        compiler_params=cparams,
        cost_estimate=ce2,
    )(y1, sc1, sh1, w2, b2)

    sc2, sh2 = _bn_scale_shift(jnp.sum(st2, axis=0), count, params["g2"], params["be2"])

    # ---- pass C: BN2 + ReLU (lane-dense: fold W into the last dim -> W*Cout lanes) ----
    WC = W * Cout
    y2_flat = y2.reshape(N, H, WC)                 # row-major reshape; free in XLA
    sc2_t = jnp.tile(sc2, (1, W))                  # (1, W*Cout): index w*Cout+c -> sc2[c]
    sh2_t = jnp.tile(sh2, (1, W))
    flat_vec_spec = pl.BlockSpec((1, WC), lambda n: (0, 0))
    out_flat = pl.pallas_call(
        bn_relu_kernel,
        grid=(N,),
        in_specs=[
            pl.BlockSpec((None, H, WC), lambda n: (n, 0, 0)),
            flat_vec_spec, flat_vec_spec,
        ],
        out_specs=pl.BlockSpec((None, H, WC), lambda n: (n, 0, 0)),
        out_shape=jax.ShapeDtypeStruct((N, H, WC), jnp.float32),
        compiler_params=cparams,
    )(y2_flat, sc2_t, sh2_t)

    out = out_flat.reshape(N, H, W, Cout)
    # TODO(synk): PyTorch BatchNorm2d train mode also updates running_mean/running_var as a
    # side effect; only the forward activation is produced here.
    return jnp.transpose(out, (0, 3, 1, 2))                      # NHWC -> NCHW


# ----------------------------- reference -----------------------------

def ref_double_conv(x_nchw, p, matmul_dtype=jnp.float32):
    """Pure-JAX reference (NCHW) mirroring the PyTorch module in train mode.
    matmul_dtype=bfloat16 rounds the conv operands exactly like the kernel's MXU path
    (products and accumulation remain f32)."""
    def rnd(a):
        return a.astype(matmul_dtype).astype(jnp.float32)

    def conv(x, w, b):
        y = jax.lax.conv_general_dilated(
            rnd(x), rnd(w), window_strides=(1, 1), padding="SAME",
            dimension_numbers=("NCHW", "HWIO", "NCHW"))
        return y + b.reshape(1, -1, 1, 1)

    def bn_relu(y, g, b):
        mean = jnp.mean(y, axis=(0, 2, 3), keepdims=True)
        var = jnp.mean((y - mean) ** 2, axis=(0, 2, 3), keepdims=True)
        yhat = (y - mean) * jax.lax.rsqrt(var + EPS)
        return jnp.maximum(yhat * g.reshape(1, -1, 1, 1) + b.reshape(1, -1, 1, 1), 0.0)

    y = bn_relu(conv(x_nchw, p["w1"], p["b1"].reshape(-1)),
                p["g1"].reshape(-1), p["be1"].reshape(-1))
    y = bn_relu(conv(y, p["w2"], p["b2"].reshape(-1)),
                p["g2"].reshape(-1), p["be2"].reshape(-1))
    return y


def init_params(key, cin, cout):
    k1, k2, k3, k4 = jax.random.split(key, 4)
    bound1 = 1.0 / jnp.sqrt(cin * 9.0)
    bound2 = 1.0 / jnp.sqrt(cout * 9.0)
    return {
        # conv weights stored HWIO: (kh, kw, Cin, Cout)
        "w1": jax.random.uniform(k1, (3, 3, cin, cout), jnp.float32, -bound1, bound1),
        "b1": jax.random.uniform(k2, (1, cout), jnp.float32, -bound1, bound1),
        "g1": jnp.ones((1, cout), jnp.float32),
        "be1": jnp.zeros((1, cout), jnp.float32),
        "w2": jax.random.uniform(k3, (3, 3, cout, cout), jnp.float32, -bound2, bound2),
        "b2": jax.random.uniform(k4, (1, cout), jnp.float32, -bound2, bound2),
        "g2": jnp.ones((1, cout), jnp.float32),
        "be2": jnp.zeros((1, cout), jnp.float32),
    }


if __name__ == "__main__":
    key = jax.random.PRNGKey(0)
    kx, kp = jax.random.split(key)

    N, Cin, Cout, H, W = 2, 4, 8, 16, 16
    x = jax.random.normal(kx, (N, Cin, H, W), jnp.float32)        # NCHW, like PyTorch
    params = init_params(kp, Cin, Cout)

    out = jax.block_until_ready(double_conv(x, params))
    assert out.shape == (N, Cout, H, W), out.shape

    # Tight check vs a reference with the same bf16 operand rounding as the MXU path.
    ref_matched = jax.block_until_ready(ref_double_conv(x, params, jnp.bfloat16))
    err_matched = float(jnp.max(jnp.abs(out - ref_matched)))
    assert err_matched < 1e-2, f"mismatch vs bf16-matched reference: {err_matched}"

    # Loose sanity check vs the full-f32 reference (covers bf16 matmul-operand rounding).
    ref_f32 = jax.block_until_ready(ref_double_conv(x, params, jnp.float32))
    err_f32 = float(jnp.max(jnp.abs(out - ref_f32)))
    assert err_f32 < 1e-1, f"mismatch vs f32 reference: {err_f32}"

    print("KERNEL_OK")
</pallas_src>

<mosaic_0001>
module attributes {stable_mosaic.version = 11 : i64} {
  func.func @conv1_stats_kernel(%arg0: i32, %arg1: memref<1x18x18x4xbf16, #tpu.memory_space<vmem>>, %arg2: memref<9x4x8xbf16, #tpu.memory_space<vmem>>, %arg3: memref<1x8xf32, #tpu.memory_space<vmem>>, %arg4: memref<1x16x16x8xf32, #tpu.memory_space<vmem>>, %arg5: memref<1x2x8xf32, #tpu.memory_space<vmem>>) attributes {dimension_semantics = [#tpu.dimension_semantics<parallel>], iteration_bounds = array<i64: 2>, scalar_prefetch = 0 : i64, scratch_operands = 0 : i64, tpu.core_type = #tpu.core_type<tc>, window_params = [{transform_indices = @transform_0, window_bounds = array<i64: 1, 18, 18, 4>}, {pipeline_mode = #tpu.pipeline_mode<synchronous>, transform_indices = @transform_1, window_bounds = array<i64: 9, 4, 8>}, {pipeline_mode = #tpu.pipeline_mode<synchronous>, transform_indices = @transform_2, window_bounds = array<i64: 1, 8>}, {transform_indices = @transform_3, window_bounds = array<i64: 1, 16, 16, 8>}, {transform_indices = @transform_4, window_bounds = array<i64: 1, 2, 8>}]} {
    %cst = arith.constant 0.000000e+00 : f32
    %0 = vector.broadcast %cst : f32 to vector<256x8xf32>
    %c0 = arith.constant 0 : index
    %c0_0 = arith.constant 0 : index
    %c0_1 = arith.constant 0 : index
    %c0_2 = arith.constant 0 : index
    %1 = vector.load %arg1[%c0, %c0_0, %c0_1, %c0_2] : memref<1x18x18x4xbf16, #tpu.memory_space<vmem>>, vector<1x16x16x4xbf16>
    %2 = vector.shape_cast %1 : vector<1x16x16x4xbf16> to vector<16x16x4xbf16>
    %3 = vector.shape_cast %2 : vector<16x16x4xbf16> to vector<256x4xbf16>
    %c0_3 = arith.constant 0 : index
    %c0_4 = arith.constant 0 : index
    %c0_5 = arith.constant 0 : index
    %4 = vector.load %arg2[%c0_3, %c0_4, %c0_5] : memref<9x4x8xbf16, #tpu.memory_space<vmem>>, vector<1x4x8xbf16>
    %5 = vector.shape_cast %4 : vector<1x4x8xbf16> to vector<4x8xbf16>
    %cst_6 = arith.constant dense<0.000000e+00> : vector<256x8xf32>
    %6 = tpu.matmul %3, %5, %cst_6 {dimension_numbers = #tpu.dot_dimension_numbers<[1], [0], [0], [1], [0, 0, 1, 1], [], []>} : vector<256x4xbf16>, vector<4x8xbf16>, vector<256x8xf32> -> vector<256x8xf32>
    %7 = arith.addf %0, %6 : vector<256x8xf32>
    %c0_7 = arith.constant 0 : index
    %c0_8 = arith.constant 0 : index
    %c1 = arith.constant 1 : index
    %c0_9 = arith.constant 0 : index
    %8 = vector.load %arg1[%c0_7, %c0_8, %c1, %c0_9] : memref<1x18x18x4xbf16, #tpu.memory_space<vmem>>, vector<1x16x16x4xbf16>
    %9 = vector.shape_cast %8 : vector<1x16x16x4xbf16> to vector<16x16x4xbf16>
    %10 = vector.shape_cast %9 : vector<16x16x4xbf16> to vector<256x4xbf16>
    %c1_10 = arith.constant 1 : index
    %c0_11 = arith.constant 0 : index
    %c0_12 = arith.constant 0 : index
    %11 = vector.load %arg2[%c1_10, %c0_11, %c0_12] : memref<9x4x8xbf16, #tpu.memory_space<vmem>>, vector<1x4x8xbf16>
    %12 = vector.shape_cast %11 : vector<1x4x8xbf16> to vector<4x8xbf16>
    %cst_13 = arith.constant dense<0.000000e+00> : vector<256x8xf32>
    %13 = tpu.matmul %10, %12, %cst_13 {dimension_numbers = #tpu.dot_dimension_numbers<[1], [0], [0], [1], [0, 0, 1, 1], [], []>} : vector<256x4xbf16>, vector<4x8xbf16>, vector<256x8xf32> -> vector<256x8xf32>
    %14 = arith.addf %7, %13 : vector<256x8xf32>
    %c0_14 = arith.constant 0 : index
    %c0_15 = arith.constant 0 : index
    %c2 = arith.constant 2 : index
    %c0_16 = arith.constant 0 : index
    %15 = vector.load %arg1[%c0_14, %c0_15, %c2, %c0_16] : memref<1x18x18x4xbf16, #tpu.memory_space<vmem>>, vector<1x16x16x4xbf16>
    %16 = vector.shape_cast %15 : vector<1x16x16x4xbf16> to vector<16x16x4xbf16>
    %17 = vector.shape_cast %16 : vector<16x16x4xbf16> to vector<256x4xbf16>
    %c2_17 = arith.constant 2 : index
    %c0_18 = arith.constant 0 : index
    %c0_19 = arith.constant 0 : index
    %18 = vector.load %arg2[%c2_17, %c0_18, %c0_19] : memref<9x4x8xbf16, #tpu.memory_space<vmem>>, vector<1x4x8xbf16>
    %19 = vector.shape_cast %18 : vector<1x4x8xbf16> to vector<4x8xbf16>
    %cst_20 = arith.constant dense<0.000000e+00> : vector<256x8xf32>
    %20 = tpu.matmul %17, %19, %cst_20 {dimension_numbers = #tpu.dot_dimension_numbers<[1], [0], [0], [1], [0, 0, 1, 1], [], []>} : vector<256x4xbf16>, vector<4x8xbf16>, vector<256x8xf32> -> vector<256x8xf32>
    %21 = arith.addf %14, %20 : vector<256x8xf32>
    %c0_21 = arith.constant 0 : index
    %c1_22 = arith.constant 1 : index
    %c0_23 = arith.constant 0 : index
    %c0_24 = arith.constant 0 : index
    %22 = vector.load %arg1[%c0_21, %c1_22, %c0_23, %c0_24] : memref<1x18x18x4xbf16, #tpu.memory_space<vmem>>, vector<1x16x16x4xbf16>
    %23 = vector.shape_cast %22 : vector<1x16x16x4xbf16> to vector<16x16x4xbf16>
    %24 = vector.shape_cast %23 : vector<16x16x4xbf16> to vector<256x4xbf16>
    %c3 = arith.constant 3 : index
    %c0_25 = arith.constant 0 : index
    %c0_26 = arith.constant 0 : index
    %25 = vector.load %arg2[%c3, %c0_25, %c0_26] : memref<9x4x8xbf16, #tpu.memory_space<vmem>>, vector<1x4x8xbf16>
    %26 = vector.shape_cast %25 : vector<1x4x8xbf16> to vector<4x8xbf16>
    %cst_27 = arith.constant dense<0.000000e+00> : vector<256x8xf32>
    %27 = tpu.matmul %24, %26, %cst_27 {dimension_numbers = #tpu.dot_dimension_numbers<[1], [0], [0], [1], [0, 0, 1, 1], [], []>} : vector<256x4xbf16>, vector<4x8xbf16>, vector<256x8xf32> -> vector<256x8xf32>
    %28 = arith.addf %21, %27 : vector<256x8xf32>
    %c0_28 = arith.constant 0 : index
    %c1_29 = arith.constant 1 : index
    %c1_30 = arith.constant 1 : index
    %c0_31 = arith.constant 0 : index
    %29 = vector.load %arg1[%c0_28, %c1_29, %c1_30, %c0_31] : memref<1x18x18x4xbf16, #tpu.memory_space<vmem>>, vector<1x16x16x4xbf16>
    %30 = vector.shape_cast %29 : vector<1x16x16x4xbf16> to vector<16x16x4xbf16>
    %31 = vector.shape_cast %30 : vector<16x16x4xbf16> to vector<256x4xbf16>
    %c4 = arith.constant 4 : index
    %c0_32 = arith.constant 0 : index
    %c0_33 = arith.constant 0 : index
    %32 = vector.load %arg2[%c4, %c0_32, %c0_33] : memref<9x4x8xbf16, #tpu.memory_space<vmem>>, vector<1x4x8xbf16>
    %33 = vector.shape_cast %32 : vector<1x4x8xbf16> to vector<4x8xbf16>
    %cst_34 = arith.constant dense<0.000000e+00> : vector<256x8xf32>
    %34 = tpu.matmul %31, %33, %cst_34 {dimension_numbers = #tpu.dot_dimension_numbers<[1], [0], [0], [1], [0, 0, 1, 1], [], []>} : vector<256x4xbf16>, vector<4x8xbf16>, vector<256x8xf32> -> vector<256x8xf32>
    %35 = arith.addf %28, %34 : vector<256x8xf32>
    %c0_35 = arith.constant 0 : index
    %c1_36 = arith.constant 1 : index
    %c2_37 = arith.constant 2 : index
    %c0_38 = arith.constant 0 : index
    %36 = vector.load %arg1[%c0_35, %c1_36, %c2_37, %c0_38] : memref<1x18x18x4xbf16, #tpu.memory_space<vmem>>, vector<1x16x16x4xbf16>
    %37 = vector.shape_cast %36 : vector<1x16x16x4xbf16> to vector<16x16x4xbf16>
    %38 = vector.shape_cast %37 : vector<16x16x4xbf16> to vector<256x4xbf16>
    %c5 = arith.constant 5 : index
    %c0_39 = arith.constant 0 : index
    %c0_40 = arith.constant 0 : index
    %39 = vector.load %arg2[%c5, %c0_39, %c0_40] : memref<9x4x8xbf16, #tpu.memory_space<vmem>>, vector<1x4x8xbf16>
    %40 = vector.shape_cast %39 : vector<1x4x8xbf16> to vector<4x8xbf16>
    %cst_41 = arith.constant dense<0.000000e+00> : vector<256x8xf32>
    %41 = tpu.matmul %38, %40, %cst_41 {dimension_numbers = #tpu.dot_dimension_numbers<[1], [0], [0], [1], [0, 0, 1, 1], [], []>} : vector<256x4xbf16>, vector<4x8xbf16>, vector<256x8xf32> -> vector<256x8xf32>
    %42 = arith.addf %35, %41 : vector<256x8xf32>
    %c0_42 = arith.constant 0 : index
    %c2_43 = arith.constant 2 : index
    %c0_44 = arith.constant 0 : index
    %c0_45 = arith.constant 0 : index
    %43 = vector.load %arg1[%c0_42, %c2_43, %c0_44, %c0_45] : memref<1x18x18x4xbf16, #tpu.memory_space<vmem>>, vector<1x16x16x4xbf16>
    %44 = vector.shape_cast %43 : vector<1x16x16x4xbf16> to vector<16x16x4xbf16>
    %45 = vector.shape_cast %44 : vector<16x16x4xbf16> to vector<256x4xbf16>
    %c6 = arith.constant 6 : index
    %c0_46 = arith.constant 0 : index
    %c0_47 = arith.constant 0 : index
    %46 = vector.load %arg2[%c6, %c0_46, %c0_47] : memref<9x4x8xbf16, #tpu.memory_space<vmem>>, vector<1x4x8xbf16>
    %47 = vector.shape_cast %46 : vector<1x4x8xbf16> to vector<4x8xbf16>
    %cst_48 = arith.constant dense<0.000000e+00> : vector<256x8xf32>
    %48 = tpu.matmul %45, %47, %cst_48 {dimension_numbers = #tpu.dot_dimension_numbers<[1], [0], [0], [1], [0, 0, 1, 1], [], []>} : vector<256x4xbf16>, vector<4x8xbf16>, vector<256x8xf32> -> vector<256x8xf32>
    %49 = arith.addf %42, %48 : vector<256x8xf32>
    %c0_49 = arith.constant 0 : index
    %c2_50 = arith.constant 2 : index
    %c1_51 = arith.constant 1 : index
    %c0_52 = arith.constant 0 : index
    %50 = vector.load %arg1[%c0_49, %c2_50, %c1_51, %c0_52] : memref<1x18x18x4xbf16, #tpu.memory_space<vmem>>, vector<1x16x16x4xbf16>
    %51 = vector.shape_cast %50 : vector<1x16x16x4xbf16> to vector<16x16x4xbf16>
    %52 = vector.shape_cast %51 : vector<16x16x4xbf16> to vector<256x4xbf16>
    %c7 = arith.constant 7 : index
    %c0_53 = arith.constant 0 : index
    %c0_54 = arith.constant 0 : index
    %53 = vector.load %arg2[%c7, %c0_53, %c0_54] : memref<9x4x8xbf16, #tpu.memory_space<vmem>>, vector<1x4x8xbf16>
    %54 = vector.shape_cast %53 : vector<1x4x8xbf16> to vector<4x8xbf16>
    %cst_55 = arith.constant dense<0.000000e+00> : vector<256x8xf32>
    %55 = tpu.matmul %52, %54, %cst_55 {dimension_numbers = #tpu.dot_dimension_numbers<[1], [0], [0], [1], [0, 0, 1, 1], [], []>} : vector<256x4xbf16>, vector<4x8xbf16>, vector<256x8xf32> -> vector<256x8xf32>
    %56 = arith.addf %49, %55 : vector<256x8xf32>
    %c0_56 = arith.constant 0 : index
    %c2_57 = arith.constant 2 : index
    %c2_58 = arith.constant 2 : index
    %c0_59 = arith.constant 0 : index
    %57 = vector.load %arg1[%c0_56, %c2_57, %c2_58, %c0_59] : memref<1x18x18x4xbf16, #tpu.memory_space<vmem>>, vector<1x16x16x4xbf16>
    %58 = vector.shape_cast %57 : vector<1x16x16x4xbf16> to vector<16x16x4xbf16>
    %59 = vector.shape_cast %58 : vector<16x16x4xbf16> to vector<256x4xbf16>
    %c8 = arith.constant 8 : index
    %c0_60 = arith.constant 0 : index
    %c0_61 = arith.constant 0 : index
    %60 = vector.load %arg2[%c8, %c0_60, %c0_61] : memref<9x4x8xbf16, #tpu.memory_space<vmem>>, vector<1x4x8xbf16>
    %61 = vector.shape_cast %60 : vector<1x4x8xbf16> to vector<4x8xbf16>
    %cst_62 = arith.constant dense<0.000000e+00> : vector<256x8xf32>
    %62 = tpu.matmul %59, %61, %cst_62 {dimension_numbers = #tpu.dot_dimension_numbers<[1], [0], [0], [1], [0, 0, 1, 1], [], []>} : vector<256x4xbf16>, vector<4x8xbf16>, vector<256x8xf32> -> vector<256x8xf32>
    %63 = arith.addf %56, %62 : vector<256x8xf32>
    %c0_63 = arith.constant 0 : index
    %c0_64 = arith.constant 0 : index
    %64 = vector.load %arg3[%c0_63, %c0_64] : memref<1x8xf32, #tpu.memory_space<vmem>>, vector<1x8xf32>
    %65 = vector.broadcast %64 : vector<1x8xf32> to vector<256x8xf32>
    %66 = arith.addf %63, %65 : vector<256x8xf32>
    %67 = vector.shape_cast %66 : vector<256x8xf32> to vector<16x16x8xf32>
    %c0_65 = arith.constant 0 : index
    %c0_66 = arith.constant 0 : index
    %c0_67 = arith.constant 0 : index
    %c0_68 = arith.constant 0 : index
    %68 = vector.load %arg4[%c0_65, %c0_66, %c0_67, %c0_68] : memref<1x16x16x8xf32, #tpu.memory_space<vmem>>, vector<1x16x16x8xf32>
    %69 = vector.shape_cast %68 : vector<1x16x16x8xf32> to vector<16x16x8xf32>
    %70 = vector.shape_cast %67 : vector<16x16x8xf32> to vector<1x16x16x8xf32>
    tpu.vector_store %arg4[%c0_65, %c0_66, %c0_67, %c0_68], %70 {strides = array<i32>} : memref<1x16x16x8xf32, #tpu.memory_space<vmem>>, vector<1x16x16x8xf32>,
    %cst_69 = arith.constant dense<0.000000e+00> : vector<8xf32>
    %71 = vector.multi_reduction <add>, %66, %cst_69 [0] : vector<256x8xf32> to vector<8xf32>
    %72 = vector.shape_cast %71 : vector<8xf32> to vector<1x8xf32>
    %c0_70 = arith.constant 0 : index
    %c0_71 = arith.constant 0 : index
    %c0_72 = arith.constant 0 : index
    %73 = vector.load %arg5[%c0_70, %c0_71, %c0_72] : memref<1x2x8xf32, #tpu.memory_space<vmem>>, vector<1x1x8xf32>
    %74 = vector.shape_cast %73 : vector<1x1x8xf32> to vector<1x8xf32>
    %75 = vector.shape_cast %72 : vector<1x8xf32> to vector<1x1x8xf32>
    tpu.vector_store %arg5[%c0_70, %c0_71, %c0_72], %75 {strides = array<i32>} : memref<1x2x8xf32, #tpu.memory_space<vmem>>, vector<1x1x8xf32>,
    %76 = arith.mulf %66, %66 : vector<256x8xf32>
    %cst_73 = arith.constant dense<0.000000e+00> : vector<8xf32>
    %77 = vector.multi_reduction <add>, %76, %cst_73 [0] : vector<256x8xf32> to vector<8xf32>
    %78 = vector.shape_cast %77 : vector<8xf32> to vector<1x8xf32>
    %c0_74 = arith.constant 0 : index
    %c1_75 = arith.constant 1 : index
    %c0_76 = arith.constant 0 : index
    %79 = vector.load %arg5[%c0_74, %c1_75, %c0_76] : memref<1x2x8xf32, #tpu.memory_space<vmem>>, vector<1x1x8xf32>
    %80 = vector.shape_cast %79 : vector<1x1x8xf32> to vector<1x8xf32>
    %81 = vector.shape_cast %78 : vector<1x8xf32> to vector<1x1x8xf32>
    tpu.vector_store %arg5[%c0_74, %c1_75, %c0_76], %81 {strides = array<i32>} : memref<1x2x8xf32, #tpu.memory_space<vmem>>, vector<1x1x8xf32>,
    return
  }
  func.func @transform_0(%arg0: i32) -> (i32, i32, i32, i32) {
    %c0_i32 = arith.constant 0 : i32
    %c0_i32_0 = arith.constant 0 : i32
    %c0_i32_1 = arith.constant 0 : i32
    %c0_i32_2 = arith.constant 0 : i32
    return %arg0, %c0_i32, %c0_i32_0, %c0_i32_1 : i32, i32, i32, i32
  }
  func.func @transform_1(%arg0: i32) -> (i32, i32, i32) {
    %c0_i32 = arith.constant 0 : i32
    %c0_i32_0 = arith.constant 0 : i32
    %c0_i32_1 = arith.constant 0 : i32
    %c0_i32_2 = arith.constant 0 : i32
    return %c0_i32, %c0_i32_0, %c0_i32_1 : i32, i32, i32
  }
  func.func @transform_2(%arg0: i32) -> (i32, i32) {
    %c0_i32 = arith.constant 0 : i32
    %c0_i32_0 = arith.constant 0 : i32
    %c0_i32_1 = arith.constant 0 : i32
    return %c0_i32, %c0_i32_0 : i32, i32
  }
  func.func @transform_3(%arg0: i32) -> (i32, i32, i32, i32) {
    %c0_i32 = arith.constant 0 : i32
    %c0_i32_0 = arith.constant 0 : i32
    %c0_i32_1 = arith.constant 0 : i32
    %c0_i32_2 = arith.constant 0 : i32
    return %arg0, %c0_i32, %c0_i32_0, %c0_i32_1 : i32, i32, i32, i32
  }
  func.func @transform_4(%arg0: i32) -> (i32, i32, i32) {
    %c0_i32 = arith.constant 0 : i32
    %c0_i32_0 = arith.constant 0 : i32
    %c0_i32_1 = arith.constant 0 : i32
    return %arg0, %c0_i32, %c0_i32_0 : i32, i32, i32
  }
}

module attributes {stable_mosaic.version = 11 : i64} {
  func.func @bn_relu_conv2_stats_kernel(%arg0: i32, %arg1: memref<1x16x16x8xf32, #tpu.memory_space<vmem>>, %arg2: memref<1x8xf32, #tpu.memory_space<vmem>>, %arg3: memref<1x8xf32, #tpu.memory_space<vmem>>, %arg4: memref<9x8x8xbf16, #tpu.memory_space<vmem>>, %arg5: memref<1x8xf32, #tpu.memory_space<vmem>>, %arg6: memref<1x16x16x8xf32, #tpu.memory_space<vmem>>, %arg7: memref<1x2x8xf32, #tpu.memory_space<vmem>>, %arg8: memref<18x18x8xbf16, #tpu.memory_space<vmem>>) attributes {dimension_semantics = [#tpu.dimension_semantics<parallel>], iteration_bounds = array<i64: 2>, scalar_prefetch = 0 : i64, scratch_operands = 1 : i64, tpu.core_type = #tpu.core_type<tc>, window_params = [{transform_indices = @transform_0, window_bounds = array<i64: 1, 16, 16, 8>}, {pipeline_mode = #tpu.pipeline_mode<synchronous>, transform_indices = @transform_1, window_bounds = array<i64: 1, 8>}, {pipeline_mode = #tpu.pipeline_mode<synchronous>, transform_indices = @transform_2, window_bounds = array<i64: 1, 8>}, {pipeline_mode = #tpu.pipeline_mode<synchronous>, transform_indices = @transform_3, window_bounds = array<i64: 9, 8, 8>}, {pipeline_mode = #tpu.pipeline_mode<synchronous>, transform_indices = @transform_4, window_bounds = array<i64: 1, 8>}, {transform_indices = @transform_5, window_bounds = array<i64: 1, 16, 16, 8>}, {transform_indices = @transform_6, window_bounds = array<i64: 1, 2, 8>}]} {
    %c0 = arith.constant 0 : index
    %c0_0 = arith.constant 0 : index
    %c0_1 = arith.constant 0 : index
    %c0_2 = arith.constant 0 : index
    %0 = vector.load %arg1[%c0, %c0_0, %c0_1, %c0_2] : memref<1x16x16x8xf32, #tpu.memory_space<vmem>>, vector<1x16x16x8xf32>
    %1 = vector.shape_cast %0 : vector<1x16x16x8xf32> to vector<16x16x8xf32>
    %c0_3 = arith.constant 0 : index
    %c0_4 = arith.constant 0 : index
    %2 = vector.load %arg2[%c0_3, %c0_4] : memref<1x8xf32, #tpu.memory_space<vmem>>, vector<1x8xf32>
    %3 = vector.shape_cast %2 : vector<1x8xf32> to vector<1x1x8xf32>
    %4 = vector.broadcast %3 : vector<1x1x8xf32> to vector<16x16x8xf32>
    %5 = arith.mulf %1, %4 : vector<16x16x8xf32>
    %c0_5 = arith.constant 0 : index
    %c0_6 = arith.constant 0 : index
    %6 = vector.load %arg3[%c0_5, %c0_6] : memref<1x8xf32, #tpu.memory_space<vmem>>, vector<1x8xf32>
    %7 = vector.shape_cast %6 : vector<1x8xf32> to vector<1x1x8xf32>
    %8 = vector.broadcast %7 : vector<1x1x8xf32> to vector<16x16x8xf32>
    %9 = arith.addf %5, %8 : vector<16x16x8xf32>
    %cst = arith.constant 0.000000e+00 : f32
    %10 = vector.broadcast %cst : f32 to vector<16x16x8xf32>
    %11 = arith.maximumf %9, %10 : vector<16x16x8xf32>
    %cst_7 = arith.constant 0.000000e+00 : bf16
    %12 = vector.broadcast %cst_7 : bf16 to vector<18x18x8xbf16>
    %c0_8 = arith.constant 0 : index
    %c0_9 = arith.constant 0 : index
    %c0_10 = arith.constant 0 : index
    %13 = vector.load %arg8[%c0_8, %c0_9, %c0_10] : memref<18x18x8xbf16, #tpu.memory_space<vmem>>, vector<18x18x8xbf16>
    tpu.vector_store %arg8[%c0_8, %c0_9, %c0_10], %12 {strides = array<i32>} : memref<18x18x8xbf16, #tpu.memory_space<vmem>>, vector<18x18x8xbf16>,
    %14 = arith.truncf %11 : vector<16x16x8xf32> to vector<16x16x8xbf16>
    %c1 = arith.constant 1 : index
    %c1_11 = arith.constant 1 : index
    %c0_12 = arith.constant 0 : index
    %15 = vector.load %arg8[%c1, %c1_11, %c0_12] : memref<18x18x8xbf16, #tpu.memory_space<vmem>>, vector<16x16x8xbf16>
    tpu.vector_store %arg8[%c1, %c1_11, %c0_12], %14 {strides = array<i32>} : memref<18x18x8xbf16, #tpu.memory_space<vmem>>, vector<16x16x8xbf16>,
    %cst_13 = arith.constant 0.000000e+00 : f32
    %16 = vector.broadcast %cst_13 : f32 to vector<256x8xf32>
    %c0_14 = arith.constant 0 : index
    %c0_15 = arith.constant 0 : index
    %c0_16 = arith.constant 0 : index
    %17 = vector.load %arg8[%c0_14, %c0_15, %c0_16] : memref<18x18x8xbf16, #tpu.memory_space<vmem>>, vector<16x16x8xbf16>
    %18 = vector.shape_cast %17 : vector<16x16x8xbf16> to vector<256x8xbf16>
    %c0_17 = arith.constant 0 : index
    %c0_18 = arith.constant 0 : index
    %c0_19 = arith.constant 0 : index
    %19 = vector.load %arg4[%c0_17, %c0_18, %c0_19] : memref<9x8x8xbf16, #tpu.memory_space<vmem>>, vector<1x8x8xbf16>
    %20 = vector.shape_cast %19 : vector<1x8x8xbf16> to vector<8x8xbf16>
    %cst_20 = arith.constant dense<0.000000e+00> : vector<256x8xf32>
    %21 = tpu.matmul %18, %20, %cst_20 {dimension_numbers = #tpu.dot_dimension_numbers<[1], [0], [0], [1], [0, 0, 1, 1], [], []>} : vector<256x8xbf16>, vector<8x8xbf16>, vector<256x8xf32> -> vector<256x8xf32>
    %22 = arith.addf %16, %21 : vector<256x8xf32>
    %c0_21 = arith.constant 0 : index
    %c1_22 = arith.constant 1 : index
    %c0_23 = arith.constant 0 : index
    %23 = vector.load %arg8[%c0_21, %c1_22, %c0_23] : memref<18x18x8xbf16, #tpu.memory_space<vmem>>, vector<16x16x8xbf16>
    %24 = vector.shape_cast %23 : vector<16x16x8xbf16> to vector<256x8xbf16>
    %c1_24 = arith.constant 1 : index
    %c0_25 = arith.constant 0 : index
    %c0_26 = arith.constant 0 : index
    %25 = vector.load %arg4[%c1_24, %c0_25, %c0_26] : memref<9x8x8xbf16, #tpu.memory_space<vmem>>, vector<1x8x8xbf16>
    %26 = vector.shape_cast %25 : vector<1x8x8xbf16> to vector<8x8xbf16>
    %cst_27 = arith.constant dense<0.000000e+00> : vector<256x8xf32>
    %27 = tpu.matmul %24, %26, %cst_27 {dimension_numbers = #tpu.dot_dimension_numbers<[1], [0], [0], [1], [0, 0, 1, 1], [], []>} : vector<256x8xbf16>, vector<8x8xbf16>, vector<256x8xf32> -> vector<256x8xf32>
    %28 = arith.addf %22, %27 : vector<256x8xf32>
    %c0_28 = arith.constant 0 : index
    %c2 = arith.constant 2 : index
    %c0_29 = arith.constant 0 : index
    %29 = vector.load %arg8[%c0_28, %c2, %c0_29] : memref<18x18x8xbf16, #tpu.memory_space<vmem>>, vector<16x16x8xbf16>
    %30 = vector.shape_cast %29 : vector<16x16x8xbf16> to vector<256x8xbf16>
    %c2_30 = arith.constant 2 : index
    %c0_31 = arith.constant 0 : index
    %c0_32 = arith.constant 0 : index
    %31 = vector.load %arg4[%c2_30, %c0_31, %c0_32] : memref<9x8x8xbf16, #tpu.memory_space<vmem>>, vector<1x8x8xbf16>
    %32 = vector.shape_cast %31 : vector<1x8x8xbf16> to vector<8x8xbf16>
    %cst_33 = arith.constant dense<0.000000e+00> : vector<256x8xf32>
    %33 = tpu.matmul %30, %32, %cst_33 {dimension_numbers = #tpu.dot_dimension_numbers<[1], [0], [0], [1], [0, 0, 1, 1], [], []>} : vector<256x8xbf16>, vector<8x8xbf16>, vector<256x8xf32> -> vector<256x8xf32>
    %34 = arith.addf %28, %33 : vector<256x8xf32>
    %c1_34 = arith.constant 1 : index
    %c0_35 = arith.constant 0 : index
    %c0_36 = arith.constant 0 : index
    %35 = vector.load %arg8[%c1_34, %c0_35, %c0_36] : memref<18x18x8xbf16, #tpu.memory_space<vmem>>, vector<16x16x8xbf16>
    %36 = vector.shape_cast %35 : vector<16x16x8xbf16> to vector<256x8xbf16>
    %c3 = arith.constant 3 : index
    %c0_37 = arith.constant 0 : index
    %c0_38 = arith.constant 0 : index
    %37 = vector.load %arg4[%c3, %c0_37, %c0_38] : memref<9x8x8xbf16, #tpu.memory_space<vmem>>, vector<1x8x8xbf16>
    %38 = vector.shape_cast %37 : vector<1x8x8xbf16> to vector<8x8xbf16>
    %cst_39 = arith.constant dense<0.000000e+00> : vector<256x8xf32>
    %39 = tpu.matmul %36, %38, %cst_39 {dimension_numbers = #tpu.dot_dimension_numbers<[1], [0], [0], [1], [0, 0, 1, 1], [], []>} : vector<256x8xbf16>, vector<8x8xbf16>, vector<256x8xf32> -> vector<256x8xf32>
    %40 = arith.addf %34, %39 : vector<256x8xf32>
    %c1_40 = arith.constant 1 : index
    %c1_41 = arith.constant 1 : index
    %c0_42 = arith.constant 0 : index
    %41 = vector.load %arg8[%c1_40, %c1_41, %c0_42] : memref<18x18x8xbf16, #tpu.memory_space<vmem>>, vector<16x16x8xbf16>
    %42 = vector.shape_cast %41 : vector<16x16x8xbf16> to vector<256x8xbf16>
    %c4 = arith.constant 4 : index
    %c0_43 = arith.constant 0 : index
    %c0_44 = arith.constant 0 : index
    %43 = vector.load %arg4[%c4, %c0_43, %c0_44] : memref<9x8x8xbf16, #tpu.memory_space<vmem>>, vector<1x8x8xbf16>
    %44 = vector.shape_cast %43 : vector<1x8x8xbf16> to vector<8x8xbf16>
    %cst_45 = arith.constant dense<0.000000e+00> : vector<256x8xf32>
    %45 = tpu.matmul %42, %44, %cst_45 {dimension_numbers = #tpu.dot_dimension_numbers<[1], [0], [0], [1], [0, 0, 1, 1], [], []>} : vector<256x8xbf16>, vector<8x8xbf16>, vector<256x8xf32> -> vector<256x8xf32>
    %46 = arith.addf %40, %45 : vector<256x8xf32>
    %c1_46 = arith.constant 1 : index
    %c2_47 = arith.constant 2 : index
    %c0_48 = arith.constant 0 : index
    %47 = vector.load %arg8[%c1_46, %c2_47, %c0_48] : memref<18x18x8xbf16, #tpu.memory_space<vmem>>, vector<16x16x8xbf16>
    %48 = vector.shape_cast %47 : vector<16x16x8xbf16> to vector<256x8xbf16>
    %c5 = arith.constant 5 : index
    %c0_49 = arith.constant 0 : index
    %c0_50 = arith.constant 0 : index
    %49 = vector.load %arg4[%c5, %c0_49, %c0_50] : memref<9x8x8xbf16, #tpu.memory_space<vmem>>, vector<1x8x8xbf16>
    %50 = vector.shape_cast %49 : vector<1x8x8xbf16> to vector<8x8xbf16>
    %cst_51 = arith.constant dense<0.000000e+00> : vector<256x8xf32>
    %51 = tpu.matmul %48, %50, %cst_51 {dimension_numbers = #tpu.dot_dimension_numbers<[1], [0], [0], [1], [0, 0, 1, 1], [], []>} : vector<256x8xbf16>, vector<8x8xbf16>, vector<256x8xf32> -> vector<256x8xf32>
    %52 = arith.addf %46, %51 : vector<256x8xf32>
    %c2_52 = arith.constant 2 : index
    %c0_53 = arith.constant 0 : index
    %c0_54 = arith.constant 0 : index
    %53 = vector.load %arg8[%c2_52, %c0_53, %c0_54] : memref<18x18x8xbf16, #tpu.memory_space<vmem>>, vector<16x16x8xbf16>
    %54 = vector.shape_cast %53 : vector<16x16x8xbf16> to vector<256x8xbf16>
    %c6 = arith.constant 6 : index
    %c0_55 = arith.constant 0 : index
    %c0_56 = arith.constant 0 : index
    %55 = vector.load %arg4[%c6, %c0_55, %c0_56] : memref<9x8x8xbf16, #tpu.memory_space<vmem>>, vector<1x8x8xbf16>
    %56 = vector.shape_cast %55 : vector<1x8x8xbf16> to vector<8x8xbf16>
    %cst_57 = arith.constant dense<0.000000e+00> : vector<256x8xf32>
    %57 = tpu.matmul %54, %56, %cst_57 {dimension_numbers = #tpu.dot_dimension_numbers<[1], [0], [0], [1], [0, 0, 1, 1], [], []>} : vector<256x8xbf16>, vector<8x8xbf16>, vector<256x8xf32> -> vector<256x8xf32>
    %58 = arith.addf %52, %57 : vector<256x8xf32>
    %c2_58 = arith.constant 2 : index
    %c1_59 = arith.constant 1 : index
    %c0_60 = arith.constant 0 : index
    %59 = vector.load %arg8[%c2_58, %c1_59, %c0_60] : memref<18x18x8xbf16, #tpu.memory_space<vmem>>, vector<16x16x8xbf16>
    %60 = vector.shape_cast %59 : vector<16x16x8xbf16> to vector<256x8xbf16>
    %c7 = arith.constant 7 : index
    %c0_61 = arith.constant 0 : index
    %c0_62 = arith.constant 0 : index
    %61 = vector.load %arg4[%c7, %c0_61, %c0_62] : memref<9x8x8xbf16, #tpu.memory_space<vmem>>, vector<1x8x8xbf16>
    %62 = vector.shape_cast %61 : vector<1x8x8xbf16> to vector<8x8xbf16>
    %cst_63 = arith.constant dense<0.000000e+00> : vector<256x8xf32>
    %63 = tpu.matmul %60, %62, %cst_63 {dimension_numbers = #tpu.dot_dimension_numbers<[1], [0], [0], [1], [0, 0, 1, 1], [], []>} : vector<256x8xbf16>, vector<8x8xbf16>, vector<256x8xf32> -> vector<256x8xf32>
    %64 = arith.addf %58, %63 : vector<256x8xf32>
    %c2_64 = arith.constant 2 : index
    %c2_65 = arith.constant 2 : index
    %c0_66 = arith.constant 0 : index
    %65 = vector.load %arg8[%c2_64, %c2_65, %c0_66] : memref<18x18x8xbf16, #tpu.memory_space<vmem>>, vector<16x16x8xbf16>
    %66 = vector.shape_cast %65 : vector<16x16x8xbf16> to vector<256x8xbf16>
    %c8 = arith.constant 8 : index
    %c0_67 = arith.constant 0 : index
    %c0_68 = arith.constant 0 : index
    %67 = vector.load %arg4[%c8, %c0_67, %c0_68] : memref<9x8x8xbf16, #tpu.memory_space<vmem>>, vector<1x8x8xbf16>
    %68 = vector.shape_cast %67 : vector<1x8x8xbf16> to vector<8x8xbf16>
    %cst_69 = arith.constant dense<0.000000e+00> : vector<256x8xf32>
    %69 = tpu.matmul %66, %68, %cst_69 {dimension_numbers = #tpu.dot_dimension_numbers<[1], [0], [0], [1], [0, 0, 1, 1], [], []>} : vector<256x8xbf16>, vector<8x8xbf16>, vector<256x8xf32> -> vector<256x8xf32>
    %70 = arith.addf %64, %69 : vector<256x8xf32>
    %c0_70 = arith.constant 0 : index
    %c0_71 = arith.constant 0 : index
    %71 = vector.load %arg5[%c0_70, %c0_71] : memref<1x8xf32, #tpu.memory_space<vmem>>, vector<1x8xf32>
    %72 = vector.broadcast %71 : vector<1x8xf32> to vector<256x8xf32>
    %73 = arith.addf %70, %72 : vector<256x8xf32>
    %74 = vector.shape_cast %73 : vector<256x8xf32> to vector<16x16x8xf32>
    %c0_72 = arith.constant 0 : index
    %c0_73 = arith.constant 0 : index
    %c0_74 = arith.constant 0 : index
    %c0_75 = arith.constant 0 : index
    %75 = vector.load %arg6[%c0_72, %c0_73, %c0_74, %c0_75] : memref<1x16x16x8xf32, #tpu.memory_space<vmem>>, vector<1x16x16x8xf32>
    %76 = vector.shape_cast %75 : vector<1x16x16x8xf32> to vector<16x16x8xf32>
    %77 = vector.shape_cast %74 : vector<16x16x8xf32> to vector<1x16x16x8xf32>
    tpu.vector_store %arg6[%c0_72, %c0_73, %c0_74, %c0_75], %77 {strides = array<i32>} : memref<1x16x16x8xf32, #tpu.memory_space<vmem>>, vector<1x16x16x8xf32>,
    %cst_76 = arith.constant dense<0.000000e+00> : vector<8xf32>
    %78 = vector.multi_reduction <add>, %73, %cst_76 [0] : vector<256x8xf32> to vector<8xf32>
    %79 = vector.shape_cast %78 : vector<8xf32> to vector<1x8xf32>
    %c0_77 = arith.constant 0 : index
    %c0_78 = arith.constant 0 : index
    %c0_79 = arith.constant 0 : index
    %80 = vector.load %arg7[%c0_77, %c0_78, %c0_79] : memref<1x2x8xf32, #tpu.memory_space<vmem>>, vector<1x1x8xf32>
    %81 = vector.shape_cast %80 : vector<1x1x8xf32> to vector<1x8xf32>
    %82 = vector.shape_cast %79 : vector<1x8xf32> to vector<1x1x8xf32>
    tpu.vector_store %arg7[%c0_77, %c0_78, %c0_79], %82 {strides = array<i32>} : memref<1x2x8xf32, #tpu.memory_space<vmem>>, vector<1x1x8xf32>,
    %83 = arith.mulf %73, %73 : vector<256x8xf32>
    %cst_80 = arith.constant dense<0.000000e+00> : vector<8xf32>
    %84 = vector.multi_reduction <add>, %83, %cst_80 [0] : vector<256x8xf32> to vector<8xf32>
    %85 = vector.shape_cast %84 : vector<8xf32> to vector<1x8xf32>
    %c0_81 = arith.constant 0 : index
    %c1_82 = arith.constant 1 : index
    %c0_83 = arith.constant 0 : index
    %86 = vector.load %arg7[%c0_81, %c1_82, %c0_83] : memref<1x2x8xf32, #tpu.memory_space<vmem>>, vector<1x1x8xf32>
    %87 = vector.shape_cast %86 : vector<1x1x8xf32> to vector<1x8xf32>
    %88 = vector.shape_cast %85 : vector<1x8xf32> to vector<1x1x8xf32>
    tpu.vector_store %arg7[%c0_81, %c1_82, %c0_83], %88 {strides = array<i32>} : memref<1x2x8xf32, #tpu.memory_space<vmem>>, vector<1x1x8xf32>,
    return
  }
  func.func @transform_0(%arg0: i32) -> (i32, i32, i32, i32) {
    %c0_i32 = arith.constant 0 : i32
    %c0_i32_0 = arith.constant 0 : i32
    %c0_i32_1 = arith.constant 0 : i32
    %c0_i32_2 = arith.constant 0 : i32
    return %arg0, %c0_i32, %c0_i32_0, %c0_i32_1 : i32, i32, i32, i32
  }
  func.func @transform_1(%arg0: i32) -> (i32, i32) {
    %c0_i32 = arith.constant 0 : i32
    %c0_i32_0 = arith.constant 0 : i32
    %c0_i32_1 = arith.constant 0 : i32
    return %c0_i32, %c0_i32_0 : i32, i32
  }
  func.func @transform_2(%arg0: i32) -> (i32, i32) {
    %c0_i32 = arith.constant 0 : i32
    %c0_i32_0 = arith.constant 0 : i32
    %c0_i32_1 = arith.constant 0 : i32
    return %c0_i32, %c0_i32_0 : i32, i32
  }
  func.func @transform_3(%arg0: i32) -> (i32, i32, i32) {
    %c0_i32 = arith.constant 0 : i32
    %c0_i32_0 = arith.constant 0 : i32
    %c0_i32_1 = arith.constant 0 : i32
    %c0_i32_2 = arith.constant 0 : i32
    return %c0_i32, %c0_i32_0, %c0_i32_1 : i32, i32, i32
  }
  func.func @transform_4(%arg0: i32) -> (i32, i32) {
    %c0_i32 = arith.constant 0 : i32
    %c0_i32_0 = arith.constant 0 : i32
    %c0_i32_1 = arith.constant 0 : i32
    return %c0_i32, %c0_i32_0 : i32, i32
  }
  func.func @transform_5(%arg0: i32) -> (i32, i32, i32, i32) {
    %c0_i32 = arith.constant 0 : i32
    %c0_i32_0 = arith.constant 0 : i32
    %c0_i32_1 = arith.constant 0 : i32
    %c0_i32_2 = arith.constant 0 : i32
    return %arg0, %c0_i32, %c0_i32_0, %c0_i32_1 : i32, i32, i32, i32
  }
  func.func @transform_6(%arg0: i32) -> (i32, i32, i32) {
    %c0_i32 = arith.constant 0 : i32
    %c0_i32_0 = arith.constant 0 : i32
    %c0_i32_1 = arith.constant 0 : i32
    return %arg0, %c0_i32, %c0_i32_0 : i32, i32, i32
  }
}

module attributes {stable_mosaic.version = 11 : i64} {
  func.func @bn_relu_kernel(%arg0: i32, %arg1: memref<1x16x128xf32, #tpu.memory_space<vmem>>, %arg2: memref<1x128xf32, #tpu.memory_space<vmem>>, %arg3: memref<1x128xf32, #tpu.memory_space<vmem>>, %arg4: memref<1x16x128xf32, #tpu.memory_space<vmem>>) attributes {dimension_semantics = [#tpu.dimension_semantics<parallel>], iteration_bounds = array<i64: 2>, scalar_prefetch = 0 : i64, scratch_operands = 0 : i64, tpu.core_type = #tpu.core_type<tc>, window_params = [{transform_indices = @transform_0, window_bounds = array<i64: 1, 16, 128>}, {pipeline_mode = #tpu.pipeline_mode<synchronous>, transform_indices = @transform_1, window_bounds = array<i64: 1, 128>}, {pipeline_mode = #tpu.pipeline_mode<synchronous>, transform_indices = @transform_2, window_bounds = array<i64: 1, 128>}, {transform_indices = @transform_3, window_bounds = array<i64: 1, 16, 128>}]} {
    %c0 = arith.constant 0 : index
    %c0_0 = arith.constant 0 : index
    %c0_1 = arith.constant 0 : index
    %0 = vector.load %arg1[%c0, %c0_0, %c0_1] : memref<1x16x128xf32, #tpu.memory_space<vmem>>, vector<1x16x128xf32>
    %1 = vector.shape_cast %0 : vector<1x16x128xf32> to vector<16x128xf32>
    %c0_2 = arith.constant 0 : index
    %c0_3 = arith.constant 0 : index
    %2 = vector.load %arg2[%c0_2, %c0_3] : memref<1x128xf32, #tpu.memory_space<vmem>>, vector<1x128xf32>
    %3 = vector.broadcast %2 : vector<1x128xf32> to vector<16x128xf32>
    %4 = arith.mulf %1, %3 : vector<16x128xf32>
    %c0_4 = arith.constant 0 : index
    %c0_5 = arith.constant 0 : index
    %5 = vector.load %arg3[%c0_4, %c0_5] : memref<1x128xf32, #tpu.memory_space<vmem>>, vector<1x128xf32>
    %6 = vector.broadcast %5 : vector<1x128xf32> to vector<16x128xf32>
    %7 = arith.addf %4, %6 : vector<16x128xf32>
    %cst = arith.constant 0.000000e+00 : f32
    %8 = vector.broadcast %cst : f32 to vector<16x128xf32>
    %9 = arith.maximumf %7, %8 : vector<16x128xf32>
    %c0_6 = arith.constant 0 : index
    %c0_7 = arith.constant 0 : index
    %c0_8 = arith.constant 0 : index
    %10 = vector.load %arg4[%c0_6, %c0_7, %c0_8] : memref<1x16x128xf32, #tpu.memory_space<vmem>>, vector<1x16x128xf32>
    %11 = vector.shape_cast %10 : vector<1x16x128xf32> to vector<16x128xf32>
    %12 = vector.shape_cast %9 : vector<16x128xf32> to vector<1x16x128xf32>
    tpu.vector_store %arg4[%c0_6, %c0_7, %c0_8], %12 {strides = array<i32>} : memref<1x16x128xf32, #tpu.memory_space<vmem>>, vector<1x16x128xf32>,
    return
  }
  func.func @transform_0(%arg0: i32) -> (i32, i32, i32) {
    %c0_i32 = arith.constant 0 : i32
    %c0_i32_0 = arith.constant 0 : i32
    %c0_i32_1 = arith.constant 0 : i32
    return %arg0, %c0_i32, %c0_i32_0 : i32, i32, i32
  }
  func.func @transform_1(%arg0: i32) -> (i32, i32) {
    %c0_i32 = arith.constant 0 : i32
    %c0_i32_0 = arith.constant 0 : i32
    %c0_i32_1 = arith.constant 0 : i32
    return %c0_i32, %c0_i32_0 : i32, i32
  }
  func.func @transform_2(%arg0: i32) -> (i32, i32) {
    %c0_i32 = arith.constant 0 : i32
    %c0_i32_0 = arith.constant 0 : i32
    %c0_i32_1 = arith.constant 0 : i32
    return %c0_i32, %c0_i32_0 : i32, i32
  }
  func.func @transform_3(%arg0: i32) -> (i32, i32, i32) {
    %c0_i32 = arith.constant 0 : i32
    %c0_i32_0 = arith.constant 0 : i32
    %c0_i32_1 = arith.constant 0 : i32
    return %arg0, %c0_i32, %c0_i32_0 : i32, i32, i32
  }
}

</mosaic_0001>

<bundles_post_ra>
// kernel: double_conv.5
= control target key start
LH: loop header
LB: loop body
LE: loop exit
PB: predicated region body
PF: predicated region fallthrough
CT: control target
= control target key end

     0   :  { %s301_s12 = smov 0   ;;  %s318_s0 = inlined_call_operand.vmem [shape: f32[2,16,128], index: 0, kind: input, shape index: {}]   ;;  %s319_s1 = inlined_call_operand.vmem [shape: f32[1,128], index: 1, kind: input, shape index: {}]   ;;  %s320_s2 = inlined_call_operand.vmem [shape: f32[1,128], index: 2, kind: input, shape index: {}]   ;;  %s321_s3 = inlined_call_operand.vmem [shape: f32[2,16,128], index: 3, kind: output, shape index: {}]  }
   0x1 LB: > { %s250_s13 = sadd.s32 4294967295, %s279_s12   ;;  %p254_p0 = scmp.ge.s32.totalorder %s279_s12, 1  ;;  %s279_s12 = sphi %s301_s12, %s13_s12  }
   0x2   : > { %p137_p1 = scmp.lt.s32.totalorder %s279_s12, 3 }
   0x4   : > { %p138_p2 = pnand %p254_p0, %p137_p1 }
   0x5   : > { %p161_p3 = scmp.lt.s32.totalorder (!%p138_p2), %s250_s13, 1  ;;  %v259_v0 = vld [vmem:[%s319_s1] ss:$0 sm:$0xff] (!%p138_p2) }
   0x6   : > { %141 = sbr.rel (%p138_p2) target bundleno = 24 (0x18), region = 32  ;;  %v260_v3 = vld [vmem:[%s320_s2] ss:$0 sm:$0xff] (!%p138_p2) }
   0xd   : > { %s323_s13 = smov (!%p161_p3, %s250_s13), 1 }
   0xe   : > { %s263_s14 = sshll.u32 %s323_s13, 4 }
   0xf   : > { %s165_s19 = scalar_lea.vmem %s318_s0, %s263_s14  ;;  %s170_s24 = scalar_lea.vmem %s321_s3, %s263_s14 }
  0x10   : > { %v171_v1 = vld [vmem:[%s165_s19] sm:$0xff]  ;;  %v172_v2 = vld [vmem:[%s165_s19 + $0x8] sm:$0xff] }
  0x11   : > { %v180_v4 = vmul.f32 %v259_v0, %v171_v1  ;;  %v181_v5 = vmul.f32 %v259_v0, %v172_v2 }
  0x13   : > { %v189_v6 = vadd.f32 %v260_v3, %v180_v4  ;;  %v190_v7 = vadd.f32 %v260_v3, %v181_v5 }
  0x15   : > { %v191_v8 = vmax.f32 %v189_v6, 0.0  ;;  %v192_v9 = vmax.f32 %v190_v7, 0.0 }
  0x17   : > { %193 = vst [vmem:[%s170_s24] sm:$0xff] %v191_v8  ;;  %194 = vst [vmem:[%s170_s24 + $0x8] sm:$0xff] %v192_v9 }
  0x18 PF: > { %s13_s12 = sadd.s32 1, %s279_s12  }
  0x19   : > { %p10_p4 = scmp.ge.s32.totalorder %s13_s12, 4  }
  0x1b   :  { %12 = sbr.rel (!%p10_p4) target bundleno = 1 (0x1), region = 62 }

// kernel: double_conv.3
= control target key start
LH: loop header
LB: loop body
LE: loop exit
PB: predicated region body
PF: predicated region fallthrough
CT: control target
= control target key end

     0   :  { %s6523_s15 = smov 0   ;;  %s8436_s0 = inlined_call_operand.vmem [shape: bf16[2,18,18,4], index: 0, kind: input, shape index: {}]   ;;  %s8437_s1 = inlined_call_operand.vmem [shape: bf16[9,4,8], index: 1, kind: input, shape index: {}]   ;;  %s8438_s2 = inlined_call_operand.vmem [shape: f32[1,8], index: 2, kind: input, shape index: {}]   ;;  %s8439_s3 = inlined_call_operand.vmem [shape: f32[2,16,16,8], index: 3, kind: output, shape index: {0}]   ;;  %s8440_s4 = inlined_call_operand.vmem [shape: f32[2,2,8], index: 4, kind: output, shape index: {1}]  }
   0x1 LB: > { %s5100_s16 = sadd.s32 4294967295, %s6496_s15   ;;  %p5104_p0 = scmp.ge.s32.totalorder %s6496_s15, 1  ;;  %s6496_s15 = sphi %s6523_s15, %s15_s15  }
   0x2   : > { %p165_p1 = scmp.lt.s32.totalorder %s6496_s15, 3 }
   0x4   : > { %p166_p2 = pnand %p5104_p0, %p165_p1 }
   0x6   : > { %169 = sbr.rel (%p166_p2) target bundleno = 607 (0x25f), region = 32 }
   0xd   : > { %v5109_v0 = vld [vmem:[%s8437_s1 + $0x2] sm:$0x3]  ;;  %vm745_vm0 = vcmask 1041408   ;;  %v5336_v1 = vld [vmem:[%s8437_s1 + $0x8] sm:$0x3]  ;;  %p195_p3 = scmp.lt.s32.totalorder %s5100_s16, 1 }
   0xe   : > { %6366 = vmatprep.subr.msk.bf16.mxu1 %vm745_vm0, %v5109_v0  ;;  %6370 = vmatprep.subr.msk.bf16.mxu0 %vm745_vm0, %v5336_v1  ;;  %v747_v2 = vsel %vm745_vm0, %v5109_v0, 0  ;;  %v6541_v3 = vsel %vm745_vm0, %v5336_v1, 0  ;;  %v242_v4 = vld [vmem:[%s8437_s1] sm:$0x3]  ;;  %v5401_v5 = vld [vmem:[%s8437_s1 + $0xa] sm:$0x3] }
   0xf   : > { %8454 = vst [vmem:[#allocation2_spill] sm:$0xff] %v6541_v3  ;;  %5803 = vmatpush3.bf16.msra.mxu1 %v747_v2  ;;  %5939 = vmatpush3.bf16.msra.mxu0 %v6541_v3  ;;  %s8509_s16 = smov (!%p195_p3, %s5100_s16), 1  ;;  %vm259_vm1 = vsmask.f32 3328  ;;  %vm260_vm2 = vsmask.f32 7440 }
  0x10   : > { %6367 = vmatprep.subr.msk.bf16.mxu1 %vm745_vm0, %v242_v4  ;;  %6372 = vmatprep.subr.msk.bf16.mxu0 %vm745_vm0, %v5401_v5  ;;  %s6376_s25 = smul.u32 216, %s8509_s16  ;;  %vm696_vm3 = vcmask 31744   ;;  %v6571_v17 = vsel %vm745_vm0, %v242_v4, 0  ;;  %v6577_v26 = vld [vmem:[%s8437_s1 + $0xc] sm:$0x3]  ;;  %vm6584_vm4 = vmor %vm259_vm1, %vm260_vm2  ;;  %v6590_v37 = vsel %vm745_vm0, %v5401_v5, 0 }
  0x11   : > { %v6594_v41 = vsel %vm745_vm0, %v6577_v26, 0  ;;  %vm1250_vm5 = vcmask 1042432   ;;  %vm1251_vm6 = vcmask 1046532   ;;  %s5648_s19 = sshll.u32 %s8509_s16, 8  ;;  %vm4808_vm8 = vcmask 64512  }
  0x12   : > { %s6558_s28 = scalar_lea.vmem %s8436_s0, %s6376_s25  ;;  %vm6810_vm7 = vmor %vm1250_vm5, %vm1251_vm6  ;;  %s8259_s24 = scalar_lea.vmem %s8439_s3, %s5648_s19  ;;  %vm4910_vm9 = vcmask 57344  }
  0x13   : > { %v210_v6 = vld [vmem:[%s6558_s28] sm:$0xf]  ;;  %v211_v7 = vld [vmem:[%s6558_s28 + $0x4] sm:$0xf]  ;;  %v243_v8 = vld [vmem:[%s6558_s28 + $0x8] sm:$0x1] }
  0x14   : > { %v263_v9 = vshrl.u32 %v210_v6, 16  ;;  %v266_v10 = vshll.u32 %v210_v6, 16  ;;  %v272_v11 = vshll.u32 %v211_v7, 16  ;;  %v276_v12 = vshrl.u32 %v211_v7, 16  ;;  %v5288_v13 = vld [vmem:[%s6558_s28 + $0xc] sm:$0xf] }
  0x15   : > { %v282_v14 = vshll.u32 %v243_v8, 16  ;;  %v6565_v15 = vld [vmem:[%s6558_s28 + $0x10] sm:$0xf]  ;;  %v6568_v16 = vld [vmem:[%s6558_s28 + $0x14] sm:$0x1]  ;;  %v2067_v23 = vshrl.u32 %v5288_v13, 16 }
  0x16   : > { %v265_v18 = vrot.slane %v263_v9, 4  ;;  %v268_v19 = vrot.slane %v266_v10, 5  ;;  %v274_v20 = vrot.slane %v272_v11, 5  ;;  %v278_v21 = vrot.slane %v276_v12, 4  ;;  %v212_v31 = vld [vmem:[%s6558_s28 + $0xc] sm:$0xf] }
  0x17   : > { %v284_v22 = vrot.slane %v282_v14, 5  ;;  %v2070_v24 = vshll.u32 %v5288_v13, 16  ;;  %v2076_v25 = vshll.u32 %v6565_v15, 16  ;;  %v2080_v29 = vshrl.u32 %v6565_v15, 16  ;;  %v213_v36 = vld [vmem:[%s6558_s28 + $0x10] sm:$0xf] }
  0x18   : > { %v269_v27 = vor.u32 %v268_v19, %v265_v18  ;;  %v279_v28 = vor.u32 %v278_v21, %v274_v20  ;;  %v2086_v30 = vshll.u32 %v6568_v16, 16  ;;  %v2069_v33 = vrot.slane %v2067_v23, 4  ;;  %v244_v44 = vld [vmem:[%s6558_s28 + $0x14] sm:$0x1]  ;;  %v5291_v55 = vld [vmem:[%s6558_s28 + $0x18] sm:$0xf] }
  0x19   : > { %v2072_v34 = vrot.slane %v2070_v24, 5  ;;  %v2078_v35 = vrot.slane %v2076_v25, 5  ;;  %v2082_v40 = vrot.slane %v2080_v29, 4  ;;  %v287_v45 = vshrl.u32 %v212_v31, 16  ;;  %v6603_v60 = vld [vmem:[%s6558_s28 + $0x1c] sm:$0xf] }
  0x1a   : > { %v270_v38 = vrot.slane %v269_v27, 4  ;;  %v280_v39 = vrot.slane %v279_v28, 4  ;;  %v2088_v43 = vrot.slane %v2086_v30, 5  ;;  %v290_v46 = vshll.u32 %v212_v31, 16  ;;  %v6611_v1 = vld [vmem:[%s6558_s28 + $0x20] sm:$0x1] }
  0x1b   : > { %v2073_v42 = vor.u32 %v2072_v34, %v2069_v33  ;;  %v2083_v49 = vor.u32 %v2082_v40, %v2078_v35  ;;  %v296_v50 = vshll.u32 %v213_v36, 16  ;;  %v289_v53 = vrot.slane %v287_v45, 4  ;;  %v214_v18 = vld [vmem:[%s6558_s28 + $0x18] sm:$0xf]  ;;  %v215_v23 = vld [vmem:[%s6558_s28 + $0x1c] sm:$0xf] }
  0x1c   : > { %v275_v47 = vsel %vm6584_vm4, %v270_v38, %v274_v20  ;;  %v285_v48 = vsel %vm6584_vm4, %v280_v39, %v284_v22  ;;  %v292_v54 = vrot.slane %v290_v46, 5  ;;  %v300_v58 = vshrl.u32 %v213_v36, 16  ;;  %v245_v31 = vld [vmem:[%s6558_s28 + $0x20] sm:$0x1]  ;;  %v5294_v40 = vld [vmem:[%s6558_s28 + $0x24] sm:$0xf] }
  0x1d   : > { %v5110_v51 = vcombine.low %v275_v47, %v285_v48  ;;  %v2074_v52 = vrot.slane %v2073_v42, 4  ;;  %v2084_v56 = vrot.slane %v2083_v49, 4  ;;  %v298_v57 = vrot.slane %v296_v50, 5  ;;  %v6634_v46 = vld [vmem:[%s6558_s28 + $0x28] sm:$0xf]  ;;  %s5108_s25 = sshll.u32 %s8509_s16, 1 }
  0x1e   : > { %v306_v59 = vshll.u32 %v244_v44, 16  ;;  %v2810_v62 = vrot.slane %v6565_v15, 5  ;;  %v2813_v63 = vrot.slane %v6568_v16, 5  ;;  %v293_v0 = vor.u32 %v292_v54, %v289_v53  ;;  %v6643_v54 = vld [vmem:[%s6558_s28 + $0x2c] sm:$0x1] }
  0x1f   : > { %5804 = vmatprep.mubr.msk.bf16.mxu1 %vm696_vm3, %v5110_v51  ;;  %v2079_v61 = vsel %vm6584_vm4, %v2074_v52, %v2078_v35  ;;  %v2089_v2 = vsel %vm6584_vm4, %v2084_v56, %v2088_v43  ;;  %v302_v4 = vrot.slane %v300_v58, 4  ;;  %v2091_v6 = vshrl.u32 %v5291_v55, 16  ;;  %v5190_v51 = vld [vmem:[%s8437_s1 + $0x4] sm:$0x3]  ;;  %v6843_v16 = vld [vmem:[%s6558_s28 + $0x7c] sm:$0xf] }
  0x20   : > { %v308_v5 = vrot.slane %v306_v59, 5  ;;  %v5337_v7 = vcombine.low %v2079_v61, %v2089_v2  ;;  %v294_v8 = vrot.slane %v293_v0, 4  ;;  %v2094_v9 = vshll.u32 %v5291_v55, 16  ;;  %v216_v0 = vld [vmem:[%s6558_s28 + $0x24] sm:$0xf] }
  0x21   : > { %v2100_v10 = vshll.u32 %v6603_v60, 16  ;;  %v303_v11 = vor.u32 %v302_v4, %v298_v57  ;;  %v2093_v12 = vrot.slane %v2091_v6, 4  ;;  %v2104_v13 = vshrl.u32 %v6603_v60, 16 }
  0x22   : > { %v2110_v14 = vshll.u32 %v6611_v1, 16  ;;  %5940 = vmatprep.mubr.msk.bf16.mxu0 %vm696_vm3, %v5337_v7  ;;  %v299_v19 = vsel %vm6584_vm4, %v294_v8, %v298_v57  ;;  %v2096_v20 = vrot.slane %v2094_v9, 5  ;;  %v2817_v22 = vrot.slane %v6603_v60, 5  ;;  %v217_v7 = vld [vmem:[%s6558_s28 + $0x28] sm:$0xf] }
  0x23   : > { %v2102_v21 = vrot.slane %v2100_v10, 5  ;;  %v304_v24 = vrot.slane %v303_v11, 4  ;;  %v2106_v25 = vrot.slane %v2104_v13, 4  ;;  %v2820_v28 = vrot.slane %v6611_v1, 5  ;;  %v246_v13 = vld [vmem:[%s6558_s28 + $0x2c] sm:$0x1] }
  0x24   : > { %v2112_v27 = vrot.slane %v2110_v14, 5  ;;  %v2097_v29 = vor.u32 %v2096_v20, %v2093_v12  ;;  %v6627_v30 = vrot.slane %v2817_v22, 4  ;;  %v311_v33 = vshrl.u32 %v214_v18, 16 }
  0x25   : > { %v314_v34 = vshll.u32 %v214_v18, 16  ;;  %v309_v35 = vsel %vm6584_vm4, %v304_v24, %v308_v5  ;;  %v2107_v36 = vor.u32 %v2106_v25, %v2102_v21  ;;  %v320_v38 = vshll.u32 %v215_v23, 16  ;;  %v5297_v24 = vld [vmem:[%s6558_s28 + $0x30] sm:$0xf] }
  0x26   : > { %v324_v39 = vshrl.u32 %v215_v23, 16  ;;  %v5111_v42 = vcombine.low %v299_v19, %v309_v35  ;;  %v2098_v43 = vrot.slane %v2097_v29, 4  ;;  %v313_v44 = vrot.slane %v311_v33, 4  ;;  %v6663_v33 = vld [vmem:[%s6558_s28 + $0x34] sm:$0xf] }
  0x27   : > { %v316_v45 = vrot.slane %v314_v34, 5  ;;  %v2108_v47 = vrot.slane %v2107_v36, 4  ;;  %v322_v48 = vrot.slane %v320_v38, 5  ;;  %v330_v50 = vshll.u32 %v245_v31, 16 }
  0x28   : > { %v326_v49 = vrot.slane %v324_v39, 4  ;;  %5805 = vmatmul.mubr.msk.bf16.vlgmr.msra.gmra.mrb[0].mxu1 %vm696_vm3, %v5111_v42  ;;  %v2103_v52 = vsel %vm6584_vm4, %v2098_v43, %v2102_v21  ;;  %v2115_v55 = vshrl.u32 %v5294_v40, 16  ;;  %v2118_v56 = vshll.u32 %v5294_v40, 16  ;;  %v6671_v40 = vld [vmem:[%s6558_s28 + $0x38] sm:$0x1] }
  0x29   : > { %v317_v53 = vor.u32 %v316_v45, %v313_v44  ;;  %5837 = vmatpush3.bf16.msra.mxu1 %v6571_v17  ;;  %v2113_v57 = vsel %vm6584_vm4, %v2108_v47, %v2112_v27  ;;  %v332_v59 = vrot.slane %v330_v50, 5  ;;  %v2124_v61 = vshll.u32 %v6634_v46, 16 }
  0x2a   : > { %v327_v58 = vor.u32 %v326_v49, %v322_v48  ;;  %v5338_v2 = vcombine.low %v2103_v52, %v2113_v57  ;;  %v2117_v5 = vrot.slane %v2115_v55, 4  ;;  %v2120_v6 = vrot.slane %v2118_v56, 5  ;;  %6368 = vmatprep.subr.msk.bf16.mxu1 %vm745_vm0, %v5190_v51  ;;  %v218_v52 = vld [vmem:[%s6558_s28 + $0x30] sm:$0xf] }
  0x2b   : > { %v318_v4 = vrot.slane %v317_v53, 4  ;;  %v2126_v9 = vrot.slane %v2124_v61, 5  ;;  %v2128_v17 = vshrl.u32 %v6634_v46, 16  ;;  %v2134_v10 = vshll.u32 %v6643_v54, 16 }
  0x2c   : > { %v328_v8 = vrot.slane %v327_v58, 4  ;;  %5941 = vmatmul.mubr.msk.bf16.vlgmr.msra.gmra.mrb[0].mxu0 %vm696_vm3, %v5338_v2  ;;  %v2121_v12 = vor.u32 %v2120_v6, %v2117_v5  ;;  %v335_v14 = vshrl.u32 %v216_v0, 16  ;;  %v338_v18 = vshll.u32 %v216_v0, 16  ;;  %v219_v58 = vld [vmem:[%s6558_s28 + $0x34] sm:$0xf] }
  0x2d   : > { %v323_v11 = vsel %vm6584_vm4, %v318_v4, %v322_v48  ;;  %5973 = vmatpush3.bf16.msra.mxu0 %v6590_v37  ;;  %v2130_v20 = vrot.slane %v2128_v17, 4  ;;  %v2136_v21 = vrot.slane %v2134_v10, 5  ;;  %v344_v23 = vshll.u32 %v217_v7, 16  ;;  %v247_v4 = vld [vmem:[%s6558_s28 + $0x38] sm:$0x1] }
  0x2e   : > { %v333_v19 = vsel %vm6584_vm4, %v328_v8, %v332_v59  ;;  %v2122_v27 = vrot.slane %v2121_v12, 4  ;;  %v337_v29 = vrot.slane %v335_v14, 4  ;;  %v340_v31 = vrot.slane %v338_v18, 5  ;;  %6373 = vmatprep.subr.msk.bf16.mxu0 %vm745_vm0, %v6577_v26  ;;  %v5300_v12 = vld [vmem:[%s6558_s28 + $0x3c] sm:$0xf] }
  0x2f   : > { %v5112_v25 = vcombine.low %v323_v11, %v333_v19  ;;  %v2131_v34 = vor.u32 %v2130_v20, %v2126_v9  ;;  %v346_v35 = vrot.slane %v344_v23, 5  ;;  %v348_v37 = vshrl.u32 %v217_v7, 16  ;;  %v6688_v20 = vld [vmem:[%s6558_s28 + $0x40] sm:$0xf] }
  0x30   : > { %v354_v36 = vshll.u32 %v246_v13, 16  ;;  %v2127_v38 = vsel %vm6584_vm4, %v2122_v27, %v2126_v9  ;;  %v341_v39 = vor.u32 %v340_v31, %v337_v29  ;;  %v2139_v42 = vshrl.u32 %v5297_v24, 16 }
  0x31   : > { %5808 = vmatprep.mubr.msk.bf16.mxu1 %vm696_vm3, %v5112_v25  ;;  %v2142_v43 = vshll.u32 %v5297_v24, 16  ;;  %v2132_v44 = vrot.slane %v2131_v34, 4  ;;  %v350_v45 = vrot.slane %v348_v37, 4  ;;  %v2148_v26 = vshll.u32 %v6663_v33, 16  ;;  %v6693_v34 = vld [vmem:[%s6558_s28 + $0x44] sm:$0x1] }
  0x32   : > { %v356_v47 = vrot.slane %v354_v36, 5  ;;  %v342_v48 = vrot.slane %v341_v39, 4  ;;  %v2141_v49 = vrot.slane %v2139_v42, 4  ;;  %v2152_v51 = vshrl.u32 %v6663_v33, 16  ;;  %v220_v42 = vld [vmem:[%s6558_s28 + $0x3c] sm:$0xf] }
  0x33   : > { %v2144_v50 = vrot.slane %v2142_v43, 5  ;;  %v2137_v53 = vsel %vm6584_vm4, %v2132_v44, %v2136_v21  ;;  %v351_v55 = vor.u32 %v350_v45, %v346_v35  ;;  %v2150_v56 = vrot.slane %v2148_v26, 5  ;;  %v221_v26 = vld [vmem:[%s6558_s28 + $0x40] sm:$0xf] }
  0x34   : > { %v2158_v57 = vshll.u32 %v6671_v40, 16  ;;  %v5339_v59 = vcombine.low %v2127_v38, %v2137_v53  ;;  %v347_v61 = vsel %vm6584_vm4, %v342_v48, %v346_v35  ;;  %v2154_v2 = vrot.slane %v2152_v51, 4 }
  0x35   : > { %v2145_v0 = vor.u32 %v2144_v50, %v2141_v49  ;;  %v352_v5 = vrot.slane %v351_v55, 4  ;;  %v359_v7 = vshrl.u32 %v218_v52, 16  ;;  %v362_v8 = vshll.u32 %v218_v52, 16 }
  0x36   : > { %v2160_v6 = vrot.slane %v2158_v57, 5  ;;  %5944 = vmatprep.mubr.msk.bf16.mxu0 %vm696_vm3, %v5339_v59  ;;  %v2155_v17 = vor.u32 %v2154_v2, %v2150_v56  ;;  %v368_v10 = vshll.u32 %v219_v58, 16  ;;  %v372_v11 = vshrl.u32 %v219_v58, 16  ;;  %v5303_v2 = vld [vmem:[%s6558_s28 + $0x48] sm:$0xf] }
  0x37   : > { %v2146_v9 = vrot.slane %v2145_v0, 4  ;;  %v357_v13 = vsel %vm6584_vm4, %v352_v5, %v356_v47  ;;  %v361_v14 = vrot.slane %v359_v7, 4  ;;  %v364_v18 = vrot.slane %v362_v8, 5  ;;  %v6711_v8 = vld [vmem:[%s6558_s28 + $0x4c] sm:$0xf] }
  0x38   : > { %v378_v19 = vshll.u32 %v247_v4, 16  ;;  %v5113_v21 = vcombine.low %v347_v61, %v357_v13  ;;  %v2156_v24 = vrot.slane %v2155_v17, 4  ;;  %v370_v25 = vrot.slane %v368_v10, 5  ;;  %v248_v61 = vld [vmem:[%s6558_s28 + $0x44] sm:$0x1] }
  0x39   : > { %v2151_v23 = vsel %vm6584_vm4, %v2146_v9, %v2150_v56  ;;  %v365_v27 = vor.u32 %v364_v18, %v361_v14  ;;  %v374_v29 = vrot.slane %v372_v11, 4  ;;  %v2163_v35 = vshrl.u32 %v5300_v12, 16 }
  0x3a   : > { %v380_v31 = vrot.slane %v378_v19, 5  ;;  %5809 = vmatmul.mubr.msk.bf16.gmra.mrb[4].mxu1 %vm696_vm3, %v5113_v21  ;;  %v2161_v37 = vsel %vm6584_vm4, %v2156_v24, %v2160_v6  ;;  %v2166_v36 = vshll.u32 %v5300_v12, 16  ;;  %v2172_v38 = vshll.u32 %v6688_v20, 16 }
  0x3b   : > { %v2176_v39 = vshrl.u32 %v6688_v20, 16  ;;  %v5340_v43 = vcombine.low %v2151_v23, %v2161_v37  ;;  %v366_v44 = vrot.slane %v365_v27, 4  ;;  %v375_v45 = vor.u32 %v374_v29, %v370_v25  ;;  %v6719_v23 = vld [vmem:[%s6558_s28 + $0x50] sm:$0x1]  ;;  %v6723_v27 = vld [vmem:[%s6558_s28 + $0x48] sm:$0xf] }
  0x3c   : > { %v2165_v47 = vrot.slane %v2163_v35, 4  ;;  %v2168_v48 = vrot.slane %v2166_v36, 5  ;;  %v2174_v49 = vrot.slane %v2172_v38, 5  ;;  %v2182_v51 = vshll.u32 %v6693_v34, 16  ;;  %v6726_v36 = vld [vmem:[%s6558_s28 + $0x4c] sm:$0xf] }
  0x3d   : > { %v2178_v50 = vrot.slane %v2176_v39, 4  ;;  %5945 = vmatmul.mubr.msk.bf16.gmra.mrb[4].mxu0 %vm696_vm3, %v5340_v43  ;;  %v371_v52 = vsel %vm6584_vm4, %v366_v44, %v370_v25  ;;  %v376_v53 = vrot.slane %v375_v45, 4  ;;  %v383_v55 = vshrl.u32 %v220_v42, 16 }
  0x3e   : > { %v386_v56 = vshll.u32 %v220_v42, 16  ;;  %v2169_v57 = vor.u32 %v2168_v48, %v2165_v47  ;;  %v2184_v59 = vrot.slane %v2182_v51, 5  ;;  %v392_v0 = vshll.u32 %v221_v26, 16 }
  0x3f   : > { %v2179_v58 = vor.u32 %v2178_v50, %v2174_v49  ;;  %v381_v4 = vsel %vm6584_vm4, %v376_v53, %v380_v31  ;;  %v385_v5 = vrot.slane %v383_v55, 4  ;;  %v396_v7 = vshrl.u32 %v221_v26, 16  ;;  %v249_v26 = vld [vmem:[%s6558_s28 + $0x50] sm:$0x1]  ;;  %v5306_v53 = vld [vmem:[%s6558_s28 + $0x54] sm:$0xf] }
  0x40   : > { %v388_v6 = vrot.slane %v386_v56, 5  ;;  %v5114_v9 = vcombine.low %v371_v52, %v381_v4  ;;  %v2170_v17 = vrot.slane %v2169_v57, 4  ;;  %v394_v11 = vrot.slane %v392_v0, 5  ;;  %v6742_v4 = vld [vmem:[%s6558_s28 + $0x58] sm:$0xf] }
  0x41   : > { %v2180_v10 = vrot.slane %v2179_v58, 4  ;;  %v398_v13 = vrot.slane %v396_v7, 4  ;;  %v402_v14 = vshll.u32 %v248_v61, 16  ;;  %v2187_v18 = vshrl.u32 %v5303_v2, 16 }
  0x42   : > { %v389_v12 = vor.u32 %v388_v6, %v385_v5  ;;  %5812 = vmatprep.mubr.msk.bf16.mxu1 %vm696_vm3, %v5114_v9  ;;  %v2175_v19 = vsel %vm6584_vm4, %v2170_v17, %v2174_v49  ;;  %v2190_v24 = vshll.u32 %v5303_v2, 16  ;;  %v2196_v25 = vshll.u32 %v6711_v8, 16 }
  0x43   : > { %v2185_v21 = vsel %vm6584_vm4, %v2180_v10, %v2184_v59  ;;  %v399_v35 = vor.u32 %v398_v13, %v394_v11  ;;  %v404_v37 = vrot.slane %v402_v14, 5  ;;  %v2189_v38 = vrot.slane %v2187_v18, 4 }
  0x44   : > { %v5341_v29 = vcombine.low %v2175_v19, %v2185_v21  ;;  %v390_v31 = vrot.slane %v389_v12, 4  ;;  %v2192_v39 = vrot.slane %v2190_v24, 5  ;;  %v2198_v42 = vrot.slane %v2196_v25, 5  ;;  %v6748_v12 = vld [vmem:[%s6558_s28 + $0x5c] sm:$0x1] }
  0x45   : > { %v2200_v43 = vshrl.u32 %v6711_v8, 16  ;;  %v400_v45 = vrot.slane %v399_v35, 4  ;;  %v2206_v47 = vshll.u32 %v6719_v23, 16  ;;  %v407_v48 = vshrl.u32 %v6723_v27, 16  ;;  %v6752_v24 = vld [vmem:[%s6558_s28 + $0x54] sm:$0xf] }
  0x46   : > { %5948 = vmatprep.mubr.msk.bf16.mxu0 %vm696_vm3, %v5341_v29  ;;  %v395_v44 = vsel %vm6584_vm4, %v390_v31, %v394_v11  ;;  %v2193_v49 = vor.u32 %v2192_v39, %v2189_v38  ;;  %v410_v51 = vshll.u32 %v6723_v27, 16  ;;  %v416_v52 = vshll.u32 %v6726_v36, 16 }
  0x47   : > { %v2202_v50 = vrot.slane %v2200_v43, 4  ;;  %v405_v55 = vsel %vm6584_vm4, %v400_v45, %v404_v37  ;;  %v2208_v56 = vrot.slane %v2206_v47, 5  ;;  %v409_v57 = vrot.slane %v407_v48, 4  ;;  %v6758_v37 = vld [vmem:[%s6558_s28 + $0x58] sm:$0xf] }
  0x48   : > { %v420_v58 = vshrl.u32 %v6726_v36, 16  ;;  %v5115_v59 = vcombine.low %v395_v44, %v405_v55  ;;  %v2194_v61 = vrot.slane %v2193_v49, 4  ;;  %v412_v2 = vrot.slane %v410_v51, 5 }
  0x49   : > { %v2203_v0 = vor.u32 %v2202_v50, %v2198_v42  ;;  %v418_v5 = vrot.slane %v416_v52, 5  ;;  %v426_v7 = vshll.u32 %v249_v26, 16  ;;  %v2211_v9 = vshrl.u32 %v5306_v53, 16  ;;  %v250_v26 = vld [vmem:[%s6558_s28 + $0x5c] sm:$0x1] }
  0x4a   : > { %v422_v6 = vrot.slane %v420_v58, 4  ;;  %5813 = vmatmul.mubr.msk.bf16.gmra.mrb[8].mxu1 %vm696_vm3, %v5115_v59  ;;  %v2199_v17 = vsel %vm6584_vm4, %v2194_v61, %v2198_v42  ;;  %v413_v11 = vor.u32 %v412_v2, %v409_v57  ;;  %v2214_v13 = vshll.u32 %v5306_v53, 16  ;;  %v5309_v53 = vld [vmem:[%s6558_s28 + $0x60] sm:$0xf]  ;;  %v6772_v59 = vld [vmem:[%s6558_s28 + $0x64] sm:$0xf] }
  0x4b   : > { %v2204_v10 = vrot.slane %v2203_v0, 4  ;;  %v428_v18 = vrot.slane %v426_v7, 5  ;;  %v2213_v19 = vrot.slane %v2211_v9, 4  ;;  %v2220_v21 = vshll.u32 %v6742_v4, 16  ;;  %v6779_v9 = vld [vmem:[%s6558_s28 + $0x68] sm:$0x1] }
  0x4c   : > { %v423_v14 = vor.u32 %v422_v6, %v418_v5  ;;  %v414_v29 = vrot.slane %v413_v11, 4  ;;  %v2216_v31 = vrot.slane %v2214_v13, 5  ;;  %v2224_v35 = vshrl.u32 %v6742_v4, 16 }
  0x4d   : > { %v2209_v25 = vsel %vm6584_vm4, %v2204_v10, %v2208_v56  ;;  %v2222_v42 = vrot.slane %v2220_v21, 5  ;;  %v2230_v43 = vshll.u32 %v6748_v12, 16  ;;  %v431_v48 = vshrl.u32 %v6752_v24, 16 }
  0x4e   : > { %v5342_v38 = vcombine.low %v2199_v17, %v2209_v25  ;;  %v424_v39 = vrot.slane %v423_v14, 4  ;;  %v419_v44 = vsel %vm6584_vm4, %v414_v29, %v418_v5  ;;  %v2217_v45 = vor.u32 %v2216_v31, %v2213_v19  ;;  %v6783_v19 = vld [vmem:[%s6558_s28 + $0x60] sm:$0xf] }
  0x4f   : > { %v2226_v47 = vrot.slane %v2224_v35, 4  ;;  %v2232_v50 = vrot.slane %v2230_v43, 5  ;;  %v434_v51 = vshll.u32 %v6752_v24, 16  ;;  %v440_v52 = vshll.u32 %v6758_v37, 16  ;;  %v6789_v35 = vld [vmem:[%s6558_s28 + $0x64] sm:$0xf] }
  0x50   : > { %5949 = vmatmul.mubr.msk.bf16.gmra.mrb[8].mxu0 %vm696_vm3, %v5342_v38  ;;  %v429_v49 = vsel %vm6584_vm4, %v424_v39, %v428_v18  ;;  %v2218_v56 = vrot.slane %v2217_v45, 4  ;;  %v433_v58 = vrot.slane %v431_v48, 4  ;;  %v444_v2 = vshrl.u32 %v6758_v37, 16 }
  0x51   : > { %v5116_v55 = vcombine.low %v419_v44, %v429_v49  ;;  %v2227_v57 = vor.u32 %v2226_v47, %v2222_v42  ;;  %v436_v61 = vrot.slane %v434_v51, 5  ;;  %v442_v0 = vrot.slane %v440_v52, 5 }
  0x52   : > { %v450_v5 = vshll.u32 %v250_v26, 16  ;;  %v2223_v6 = vsel %vm6584_vm4, %v2218_v56, %v2222_v42  ;;  %v2235_v17 = vshrl.u32 %v5309_v53, 16  ;;  %v2238_v10 = vshll.u32 %v5309_v53, 16 }
  0x53   : > { %5816 = vmatprep.mubr.msk.bf16.mxu1 %vm696_vm3, %v5116_v55  ;;  %v2228_v7 = vrot.slane %v2227_v57, 4  ;;  %v437_v11 = vor.u32 %v436_v61, %v433_v58  ;;  %v446_v13 = vrot.slane %v444_v2, 4  ;;  %v2244_v18 = vshll.u32 %v6772_v59, 16  ;;  %v5369_v58 = vld [vmem:[%s6558_s28 + $0xc] sm:$0xe] }
  0x54   : > { %v452_v14 = vrot.slane %v450_v5, 5  ;;  %v2237_v25 = vrot.slane %v2235_v17, 4  ;;  %v2240_v29 = vrot.slane %v2238_v10, 5  ;;  %v2248_v31 = vshrl.u32 %v6772_v59, 16 }
  0x55   : > { %v2233_v21 = vsel %vm6584_vm4, %v2228_v7, %v2232_v50  ;;  %v438_v39 = vrot.slane %v437_v11, 4  ;;  %v447_v42 = vor.u32 %v446_v13, %v442_v0  ;;  %v2246_v43 = vrot.slane %v2244_v18, 5  ;;  %v251_v50 = vld [vmem:[%s6558_s28 + $0x68] sm:$0x1] }
  0x56   : > { %v5343_v38 = vcombine.low %v2223_v6, %v2233_v21  ;;  %v2241_v44 = vor.u32 %v2240_v29, %v2237_v25  ;;  %v2250_v45 = vrot.slane %v2248_v31, 4  ;;  %v2254_v47 = vshll.u32 %v6779_v9, 16  ;;  %v6817_v29 = vld [vmem:[%s6558_s28 + $0x70] sm:$0xf] }
  0x57   : > { %v455_v26 = vshrl.u32 %v6783_v19, 16  ;;  %v443_v48 = vsel %vm6584_vm4, %v438_v39, %v442_v0  ;;  %v448_v49 = vrot.slane %v447_v42, 4  ;;  %v458_v51 = vshll.u32 %v6783_v19, 16  ;;  %v6804_v0 = vld [vmem:[%s6558_s28 + $0x6c] sm:$0xf] }
  0x58   : > { %5952 = vmatprep.mubr.msk.bf16.mxu0 %vm696_vm3, %v5343_v38  ;;  %v464_v52 = vshll.u32 %v6789_v35, 16  ;;  %v2242_v53 = vrot.slane %v2241_v44, 4  ;;  %v2251_v55 = vor.u32 %v2250_v45, %v2246_v43  ;;  %v2256_v56 = vrot.slane %v2254_v47, 5 }
  0x59   : > { %v457_v57 = vrot.slane %v455_v26, 4  ;;  %v453_v61 = vsel %vm6584_vm4, %v448_v49, %v452_v14  ;;  %v460_v2 = vrot.slane %v458_v51, 5  ;;  %v468_v6 = vshrl.u32 %v6789_v35, 16  ;;  %v252_v26 = vld [vmem:[%s6558_s28 + $0x74] sm:$0x1] }
  0x5a   : > { %v466_v5 = vrot.slane %v464_v52, 5  ;;  %v5117_v7 = vcombine.low %v443_v48, %v453_v61  ;;  %v2247_v17 = vsel %vm6584_vm4, %v2242_v53, %v2246_v43  ;;  %v2252_v10 = vrot.slane %v2251_v55, 4  ;;  %v5370_v48 = vld [vmem:[%s6558_s28 + $0x18] sm:$0xe] }
  0x5b   : > { %v474_v11 = vshll.u32 %v251_v50, 16  ;;  %v461_v14 = vor.u32 %v460_v2, %v457_v57  ;;  %v470_v18 = vrot.slane %v468_v6, 4  ;;  %v5385_v21 = vrot.slane %v5369_v58, 9  ;;  %v6836_v53 = vld [vmem:[%s6558_s28 + $0x78] sm:$0xf] }
  0x5c   : > { %v2812_v25 = vrot.slane %v2810_v62, 4  ;;  %5817 = vmatmul.mubr.msk.bf16.gmra.mrb[12].mxu1 %vm696_vm3, %v5117_v7  ;;  %v2257_v31 = vsel %vm6584_vm4, %v2252_v10, %v2256_v56  ;;  %v479_v39 = vshrl.u32 %v6804_v0, 16  ;;  %v482_v42 = vshll.u32 %v6804_v0, 16  ;;  %v253_v57 = vld [vmem:[%s6558_s28 + $0x80] sm:$0x1] }
  0x5d   : > { %v476_v38 = vrot.slane %v474_v11, 5  ;;  %v5344_v43 = vcombine.low %v2247_v17, %v2257_v31  ;;  %v462_v44 = vrot.slane %v461_v14, 4  ;;  %v471_v45 = vor.u32 %v470_v18, %v466_v5  ;;  %v5371_v10 = vld [vmem:[%s6558_s28 + $0x24] sm:$0xe] }
  0x5e   : > { %v2811_v47 = vsel %vm6810_vm7, %v5385_v21, %v2810_v62  ;;  %v2814_v49 = vsel %vm6810_vm7, %v2812_v25, %v2813_v63  ;;  %v481_v50 = vrot.slane %v479_v39, 4  ;;  %v484_v51 = vrot.slane %v482_v42, 5  ;;  %v6862_v39 = vld [vmem:[%s6558_s28 + $0x84] sm:$0xf] }
  0x5f   : > { %v488_v52 = vshll.u32 %v6817_v29, 16  ;;  %5953 = vmatmul.mubr.msk.bf16.gmra.mrb[12].mxu0 %vm696_vm3, %v5344_v43  ;;  %v467_v15 = vsel %vm6584_vm4, %v462_v44, %v466_v5  ;;  %v472_v62 = vrot.slane %v471_v45, 4  ;;  %v5402_v55 = vcombine.low %v2811_v47, %v2814_v49  ;;  %v6870_v43 = vld [vmem:[%s6558_s28 + $0x88] sm:$0xf] }
  0x60   : > { %v492_v56 = vshrl.u32 %v6817_v29, 16  ;;  %v485_v63 = vor.u32 %v484_v51, %v481_v50  ;;  %v498_v61 = vshll.u32 %v252_v26, 16  ;;  %v5386_v2 = vrot.slane %v5370_v48, 9 }
  0x61   : > { %v490_v58 = vrot.slane %v488_v52, 5  ;;  %v477_v6 = vsel %vm6584_vm4, %v472_v62, %v476_v38  ;;  %5974 = vmatprep.mubr.msk.bf16.mxu0 %vm696_vm3, %v5402_v55  ;;  %v2821_v5 = vsel %vm6810_vm7, %v6627_v30, %v2820_v28  ;;  %v503_v17 = vshrl.u32 %v6836_v53, 16  ;;  %v254_v52 = vld [vmem:[%s6558_s28 + $0x8c] sm:$0x1] }
  0x62   : > { %v494_v7 = vrot.slane %v492_v56, 4  ;;  %v5118_v11 = vcombine.low %v467_v15, %v477_v6  ;;  %v486_v14 = vrot.slane %v485_v63, 4  ;;  %v500_v18 = vrot.slane %v498_v61, 5 }
  0x63   : > { %v2818_v21 = vsel %vm6810_vm7, %v5386_v2, %v2817_v22  ;;  %v505_v38 = vrot.slane %v503_v17, 4  ;;  %v506_v1 = vshll.u32 %v6836_v53, 16  ;;  %v512_v30 = vshll.u32 %v6843_v16, 16  ;;  %v6875_v22 = vld [vmem:[%s8437_s1 + $0xe] sm:$0x3] }
  0x64   : > { %v495_v25 = vor.u32 %v494_v7, %v490_v58  ;;  %v5403_v31 = vcombine.low %v2818_v21, %v2821_v5  ;;  %5820 = vmatprep.mubr.msk.bf16.mxu1 %vm696_vm3, %v5118_v11  ;;  %v491_v28 = vsel %vm6584_vm4, %v486_v14, %v490_v58  ;;  %v516_v60 = vshrl.u32 %v6843_v16, 16  ;;  %v6894_v5 = vld [vmem:[%s6558_s28 + $0x90] sm:$0xf] }
  0x65   : > { %v522_v42 = vshll.u32 %v253_v57, 16  ;;  %v508_v45 = vrot.slane %v506_v1, 5  ;;  %v5387_v47 = vrot.slane %v5371_v10, 9  ;;  %v2824_v26 = vrot.slane %v6634_v46, 5  ;;  %v5372_v57 = vld [vmem:[%s6558_s28 + $0x30] sm:$0xe] }
  0x66   : > { %v496_v44 = vrot.slane %v495_v25, 4  ;;  %v514_v48 = vrot.slane %v512_v30, 5  ;;  %v518_v49 = vrot.slane %v516_v60, 4  ;;  %v2827_v51 = vrot.slane %v6643_v54, 5  ;;  %v6906_v30 = vld [vmem:[%s6558_s28 + $0x94] sm:$0xf] }
  0x67   : > { %v524_v50 = vrot.slane %v522_v42, 5  ;;  %5975 = vmatmul.mubr.msk.bf16.vlgmr.msra.gmra.mrb[0].mxu0 %vm696_vm3, %v5403_v31  ;;  %v509_v62 = vor.u32 %v508_v45, %v505_v38  ;;  %v2825_v55 = vsel %vm6810_vm7, %v5387_v47, %v2824_v26  ;;  %v2826_v56 = vrot.slane %v2824_v26, 4  ;;  %v255_v60 = vld [vmem:[%s6558_s28 + $0x98] sm:$0x1]  ;;  %v5373_v26 = vld [vmem:[%s6558_s28 + $0x3c] sm:$0xe] }
  0x68   : > { %v501_v15 = vsel %vm6584_vm4, %v496_v44, %v500_v18  ;;  %6007 = vmatpush3.bf16.msra.mxu0 %v6594_v41  ;;  %v519_v46 = vor.u32 %v518_v49, %v514_v48  ;;  %v527_v58 = vshrl.u32 %v6862_v39, 16  ;;  %v530_v54 = vshll.u32 %v6862_v39, 16 }
  0x69   : > { %v5119_v63 = vcombine.low %v491_v28, %v501_v15  ;;  %v510_v61 = vrot.slane %v509_v62, 4  ;;  %v2828_v2 = vsel %vm6810_vm7, %v2826_v56, %v2827_v51  ;;  %v536_v6 = vshll.u32 %v6870_v43, 16  ;;  %6374 = vmatprep.subr.msk.bf16.mxu0 %vm745_vm0, %v6875_v22 }
  0x6a   : > { %v540_v7 = vshrl.u32 %v6870_v43, 16  ;;  %v520_v41 = vrot.slane %v519_v46, 4  ;;  %v5404_v17 = vcombine.low %v2825_v55, %v2828_v2  ;;  %v529_v10 = vrot.slane %v527_v58, 4  ;;  %v6926_v46 = vld [vmem:[%s6558_s28 + $0xa0] sm:$0xf] }
  0x6b   : > { %5821 = vmatmul.mubr.msk.bf16.gmra.mrb[16].mxu1 %vm696_vm3, %v5119_v63  ;;  %v532_v11 = vrot.slane %v530_v54, 5  ;;  %v515_v14 = vsel %vm6584_vm4, %v510_v61, %v514_v48  ;;  %v538_v18 = vrot.slane %v536_v6, 5  ;;  %v546_v25 = vshll.u32 %v254_v52, 16  ;;  %v6915_v52 = vld [vmem:[%s6558_s28 + $0x9c] sm:$0xf] }
  0x6c   : > { %v542_v21 = vrot.slane %v540_v7, 4  ;;  %v525_v31 = vsel %vm6584_vm4, %v520_v41, %v524_v50  ;;  %5978 = vmatprep.mubr.msk.bf16.mxu0 %vm696_vm3, %v5404_v17  ;;  %v5388_v1 = vrot.slane %v5372_v57, 9  ;;  %v2831_v28 = vrot.slane %v6663_v33, 5 }
  0x6d   : > { %v533_v38 = vor.u32 %v532_v11, %v529_v10  ;;  %v5120_v42 = vcombine.low %v515_v14, %v525_v31  ;;  %v548_v45 = vrot.slane %v546_v25, 5  ;;  %v2834_v47 = vrot.slane %v6671_v40, 5  ;;  %v256_v10 = vld [vmem:[%s6558_s28 + $0xa4] sm:$0x1]  ;;  %v5374_v11 = vld [vmem:[%s6558_s28 + $0x48] sm:$0xe] }
  0x6e   : > { %v543_v44 = vor.u32 %v542_v21, %v538_v18  ;;  %v2832_v49 = vsel %vm6810_vm7, %v5388_v1, %v2831_v28  ;;  %v2833_v50 = vrot.slane %v2831_v28, 4  ;;  %v551_v51 = vshrl.u32 %v6894_v5, 16 }
  0x6f   : > { %v534_v48 = vrot.slane %v533_v38, 4  ;;  %5824 = vmatprep.mubr.msk.bf16.mxu1 %vm696_vm3, %v5120_v42  ;;  %v554_v15 = vshll.u32 %v6894_v5, 16  ;;  %v560_v62 = vshll.u32 %v6906_v30, 16  ;;  %v564_v40 = vshrl.u32 %v6906_v30, 16 }
  0x70   : > { %v544_v33 = vrot.slane %v543_v44, 4  ;;  %v2835_v56 = vsel %vm6810_vm7, %v2833_v50, %v2834_v47  ;;  %v553_v57 = vrot.slane %v551_v51, 4  ;;  %v570_v63 = vshll.u32 %v255_v60, 16 }
  0x71   : > { %v539_v55 = vsel %vm6584_vm4, %v534_v48, %v538_v18  ;;  %v5405_v54 = vcombine.low %v2832_v49, %v2835_v56  ;;  %v556_v61 = vrot.slane %v554_v15, 5  ;;  %v562_v2 = vrot.slane %v560_v62, 5  ;;  %v6952_v56 = vld [vmem:[%s6558_s28 + $0xac] sm:$0xf] }
  0x72   : > { %v549_v58 = vsel %vm6584_vm4, %v544_v33, %v548_v45  ;;  %v566_v7 = vrot.slane %v564_v40, 4  ;;  %v572_v41 = vrot.slane %v570_v63, 5  ;;  %v5389_v17 = vrot.slane %v5373_v26, 9  ;;  %v6947_v33 = vld [vmem:[%s6558_s28 + $0xa8] sm:$0xf] }
  0x73   : > { %v5121_v6 = vcombine.low %v539_v55, %v549_v58  ;;  %5979 = vmatmul.mubr.msk.bf16.gmra.mrb[4].mxu0 %vm696_vm3, %v5405_v54  ;;  %v557_v14 = vor.u32 %v556_v61, %v553_v57  ;;  %v2838_v18 = vrot.slane %v6688_v20, 5  ;;  %v2841_v21 = vrot.slane %v6693_v34, 5  ;;  %v257_v61 = vld [vmem:[%s6558_s28 + $0xb0] sm:$0x1] }
  0x74   : > { %v575_v25 = vshrl.u32 %v6915_v52, 16  ;;  %v567_v31 = vor.u32 %v566_v7, %v562_v2  ;;  %v578_v38 = vshll.u32 %v6915_v52, 16  ;;  %v584_v1 = vshll.u32 %v6926_v46, 16 }
  0x75   : > { %5825 = vmatmul.mubr.msk.bf16.gmra.mrb[20].mxu1 %vm696_vm3, %v5121_v6  ;;  %v588_v28 = vshrl.u32 %v6926_v46, 16  ;;  %v558_v60 = vrot.slane %v557_v14, 4  ;;  %v2839_v42 = vsel %vm6810_vm7, %v5389_v17, %v2838_v18  ;;  %v2840_v20 = vrot.slane %v2838_v18, 4  ;;  %v6967_v14 = vld [vmem:[%s6558_s28 + $0xb4] sm:$0xf] }
  0x76   : > { %v577_v44 = vrot.slane %v575_v25, 4  ;;  %v568_v34 = vrot.slane %v567_v31, 4  ;;  %v580_v45 = vrot.slane %v578_v38, 5  ;;  %v586_v47 = vrot.slane %v584_v1, 5 }
  0x77   : > { %v590_v26 = vrot.slane %v588_v28, 4  ;;  %v563_v48 = vsel %vm6584_vm4, %v558_v60, %v562_v2  ;;  %v2842_v49 = vsel %vm6810_vm7, %v2840_v20, %v2841_v21  ;;  %v594_v50 = vshll.u32 %v256_v10, 16  ;;  %v5375_v2 = vld [vmem:[%s6558_s28 + $0x54] sm:$0xe] }
  0x78   : > { %v5390_v51 = vrot.slane %v5374_v11, 9  ;;  %v573_v15 = vsel %vm6584_vm4, %v568_v34, %v572_v41  ;;  %v5406_v62 = vcombine.low %v2839_v42, %v2842_v49  ;;  %v581_v40 = vor.u32 %v580_v45, %v577_v44  ;;  %v6976_v42 = vld [vmem:[%s6558_s28 + $0xb8] sm:$0xf]  ;;  %v258_v49 = vld [vmem:[%s6558_s28 + $0xbc] sm:$0x1] }
  0x79   : > { %v591_v55 = vor.u32 %v590_v26, %v586_v47  ;;  %v5122_v57 = vcombine.low %v563_v48, %v573_v15  ;;  %v596_v63 = vrot.slane %v594_v50, 5  ;;  %v2845_v58 = vrot.slane %v6711_v8, 5 }
  0x7a   : > { %v2848_v54 = vrot.slane %v6719_v23, 5  ;;  %5982 = vmatprep.mubr.msk.bf16.mxu0 %vm696_vm3, %v5406_v62  ;;  %v582_v6 = vrot.slane %v581_v40, 4  ;;  %v599_v41 = vshrl.u32 %v6947_v33, 16  ;;  %v602_v17 = vshll.u32 %v6947_v33, 16 }
  0x7b   : > { %v592_v7 = vrot.slane %v591_v55, 4  ;;  %5828 = vmatprep.mubr.msk.bf16.mxu1 %vm696_vm3, %v5122_v57  ;;  %v2846_v10 = vsel %vm6810_vm7, %v5390_v51, %v2845_v58  ;;  %v2847_v11 = vrot.slane %v2845_v58, 4  ;;  %v608_v8 = vshll.u32 %v6952_v56, 16  ;;  %v5376_v55 = vld [vmem:[%s6558_s28 + $0x60] sm:$0xe] }
  0x7c   : > { %v612_v23 = vshrl.u32 %v6952_v56, 16  ;;  %v587_v18 = vsel %vm6584_vm4, %v582_v6, %v586_v47  ;;  %v601_v25 = vrot.slane %v599_v41, 4  ;;  %v604_v31 = vrot.slane %v602_v17, 5  ;;  %v5377_v6 = vld [vmem:[%s6558_s28 + $0x6c] sm:$0xe] }
  0x7d   : > { %v597_v21 = vsel %vm6584_vm4, %v592_v7, %v596_v63  ;;  %v2849_v1 = vsel %vm6810_vm7, %v2847_v11, %v2848_v54  ;;  %v610_v28 = vrot.slane %v608_v8, 5  ;;  %v618_v34 = vshll.u32 %v257_v61, 16  ;;  %v5313_v11 = vld [vmem:[%s6558_s28 + $0x70] sm:$0xf]  ;;  %v5314_v8 = vld [vmem:[%s6558_s28 + $0x74] sm:$0x1] }
  0x7e   : > { %v5123_v38 = vcombine.low %v587_v18, %v597_v21  ;;  %v614_v60 = vrot.slane %v612_v23, 4  ;;  %v5407_v20 = vcombine.low %v2846_v10, %v2849_v1  ;;  %v605_v44 = vor.u32 %v604_v31, %v601_v25 }
  0x7f   : > { %v5391_v45 = vrot.slane %v5375_v2, 9  ;;  %v2852_v26 = vrot.slane %v6742_v4, 5  ;;  %v2855_v48 = vrot.slane %v6748_v12, 5  ;;  %v623_v50 = vshrl.u32 %v6967_v14, 16 }
  0x80   : > { %5829 = vmatmul.mubr.msk.bf16.gmra.mrb[24].mxu1 %vm696_vm3, %v5123_v38  ;;  %v615_v47 = vor.u32 %v614_v60, %v610_v28  ;;  %5983 = vmatmul.mubr.msk.bf16.gmra.mrb[8].mxu0 %vm696_vm3, %v5407_v20  ;;  %v606_v51 = vrot.slane %v605_v44, 4  ;;  %v620_v15 = vrot.slane %v618_v34, 5  ;;  %v626_v62 = vshll.u32 %v6967_v14, 16 }
  0x81   : > { %v632_v40 = vshll.u32 %v6976_v42, 16  ;;  %v2853_v4 = vsel %vm6810_vm7, %v5391_v45, %v2852_v26  ;;  %v2854_v12 = vrot.slane %v2852_v26, 4  ;;  %v625_v63 = vrot.slane %v623_v50, 4 }
  0x82   : > { %v616_v57 = vrot.slane %v615_v47, 4  ;;  %v611_v58 = vsel %vm6584_vm4, %v606_v51, %v610_v28  ;;  %v628_v54 = vrot.slane %v626_v62, 5  ;;  %v636_v2 = vshrl.u32 %v6976_v42, 16  ;;  %v5378_v47 = vld [vmem:[%s6558_s28 + $0x78] sm:$0xe] }
  0x83   : > { %v634_v61 = vrot.slane %v632_v40, 5  ;;  %v2856_v41 = vsel %vm6810_vm7, %v2854_v12, %v2855_v48  ;;  %v642_v17 = vshll.u32 %v258_v49, 16  ;;  %v5392_v10 = vrot.slane %v5376_v55, 9  ;;  %v6433_v51 = vld [vmem:[%s6558_s28] sm:$0xf] }
  0x84   : > { %v621_v7 = vsel %vm6584_vm4, %v616_v57, %v620_v15  ;;  %v5408_v18 = vcombine.low %v2853_v4, %v2856_v41  ;;  %v629_v21 = vor.u32 %v628_v54, %v625_v63  ;;  %v638_v25 = vrot.slane %v636_v2, 4  ;;  %v7014_v15 = vld [vmem:[%s6558_s28 + $0x4] sm:$0xf]  ;;  %v7018_v40 = vld [vmem:[%s6558_s28 + $0x7c] sm:$0xf] }
  0x85   : > { %v5124_v23 = vcombine.low %v611_v58, %v621_v7  ;;  %v644_v31 = vrot.slane %v642_v17, 5  ;;  %v2859_v38 = vrot.slane %v6772_v59, 5  ;;  %v2862_v1 = vrot.slane %v6779_v9, 5  ;;  %v7021_v55 = vld [vmem:[%s6558_s28 + $0x80] sm:$0x1] }
  0x86   : > { %v5393_v28 = vrot.slane %v5377_v6, 9  ;;  %5986 = vmatprep.mubr.msk.bf16.mxu0 %vm696_vm3, %v5408_v18  ;;  %v630_v60 = vrot.slane %v629_v21, 4  ;;  %v639_v20 = vor.u32 %v638_v25, %v634_v61  ;;  %v2866_v44 = vrot.slane %v5313_v11, 5  ;;  %v5319_v57 = vld [vmem:[%s6558_s28 + $0x88] sm:$0xf] }
  0x87   : > { %5832 = vmatprep.mubr.msk.bf16.mxu1 %vm696_vm3, %v5124_v23  ;;  %v2869_v34 = vrot.slane %v5314_v8, 5  ;;  %v2860_v45 = vsel %vm6810_vm7, %v5392_v10, %v2859_v38  ;;  %v2861_v59 = vrot.slane %v2859_v38, 4  ;;  %v5142_v62 = vcombine.low %v6433_v51, %v7014_v15  ;;  %v5320_v54 = vld [vmem:[%s6558_s28 + $0x8c] sm:$0x1]  ;;  %v5322_v17 = vld [vmem:[%s6558_s28 + $0x94] sm:$0xf] }
  0x88   : > { %v635_v9 = vsel %vm6584_vm4, %v630_v60, %v634_v61  ;;  %v640_v26 = vrot.slane %v639_v20, 4  ;;  %v2867_v48 = vsel %vm6810_vm7, %v5393_v28, %v2866_v44  ;;  %v2868_v49 = vrot.slane %v2866_v44, 4  ;;  %v5379_v61 = vld [vmem:[%s6558_s28 + $0x84] sm:$0xe]  ;;  %v5380_v23 = vld [vmem:[%s6558_s28 + $0x90] sm:$0xe] }
  0x89   : > { %v2863_v50 = vsel %vm6810_vm7, %v2861_v59, %v2862_v1  ;;  %v5394_v58 = vrot.slane %v5378_v47, 9  ;;  %v2873_v7 = vrot.slane %v7018_v40, 5  ;;  %v2876_v41 = vrot.slane %v7021_v55, 5  ;;  %v5323_v25 = vld [vmem:[%s6558_s28 + $0x98] sm:$0x1] }
  0x8a   : > { %v645_v4 = vsel %vm6584_vm4, %v640_v26, %v644_v31  ;;  %v5409_v12 = vcombine.low %v2860_v45, %v2863_v50  ;;  %v2870_v63 = vsel %vm6810_vm7, %v2868_v49, %v2869_v34  ;;  %v5395_v10 = vrot.slane %v5379_v61, 9  ;;  %v5325_v31 = vld [vmem:[%s6558_s28 + $0xa0] sm:$0xf]  ;;  %v5326_v60 = vld [vmem:[%s6558_s28 + $0xa4] sm:$0x1] }
  0x8b   : > { %v5125_v2 = vcombine.low %v635_v9, %v645_v4  ;;  %v5410_v6 = vcombine.low %v2867_v48, %v2870_v63  ;;  %v2880_v11 = vrot.slane %v5319_v57, 5  ;;  %v2883_v8 = vrot.slane %v5320_v54, 5  ;;  %v5381_v20 = vld [vmem:[%s6558_s28 + $0x9c] sm:$0xe]  ;;  %v6435_v44 = vld [vmem:[%s6558_s28 + $0xc] sm:$0xf] }
  0x8c   : > { %5987 = vmatmul.mubr.msk.bf16.gmra.mrb[12].mxu0 %vm696_vm3, %v5409_v12  ;;  %v2874_v18 = vsel %vm6810_vm7, %v5394_v58, %v2873_v7  ;;  %v2875_v21 = vrot.slane %v2873_v7, 4  ;;  %v2887_v28 = vrot.slane %v5322_v17, 5  ;;  %v7048_v34 = vld [vmem:[%s6558_s28 + $0x10] sm:$0xf]  ;;  %v6437_v47 = vld [vmem:[%s6558_s28 + $0x18] sm:$0xf] }
  0x8d   : > { %5833 = vmatmul.mubr.msk.bf16.gmra.mrb[28].mxu1 %vm696_vm3, %v5125_v2  ;;  %5990 = vmatprep.mubr.msk.bf16.mxu0 %vm696_vm3, %v5410_v6  ;;  %v2881_v38 = vsel %vm6810_vm7, %v5395_v10, %v2880_v11  ;;  %v2882_v1 = vrot.slane %v2880_v11, 4  ;;  %v5143_v45 = vcombine.low %v6435_v44, %v7048_v34  ;;  %v7055_v9 = vld [vmem:[%s6558_s28 + $0x1c] sm:$0xf]  ;;  %v5396_v48 = vrot.slane %v5380_v23, 9  ;;  %v5328_v57 = vld [vmem:[%s6558_s28 + $0xac] sm:$0xf] }
  0x8e   : > { %5838 = vmatprep.mubr.msk.bf16.mxu1 %vm696_vm3, %v5142_v62  ;;  %v2877_v59 = vsel %vm6810_vm7, %v2875_v21, %v2876_v41  ;;  %v5144_v26 = vcombine.low %v6437_v47, %v7055_v9  ;;  %v2889_v51 = vrot.slane %v2887_v28, 4  ;;  %v2890_v62 = vrot.slane %v5323_v25, 5  ;;  %v6439_v54 = vld [vmem:[%s8437_s1 + $0x4] sm:$0x3]  ;;  %v5331_v2 = vld [vmem:[%s6558_s28 + $0xb8] sm:$0xf] }
  0x8f   : > { %v5411_v49 = vcombine.low %v2874_v18, %v2877_v59  ;;  %v2884_v50 = vsel %vm6810_vm7, %v2882_v1, %v2883_v8  ;;  %v5397_v12 = vrot.slane %v5381_v20, 9  ;;  %v2894_v63 = vrot.slane %v5325_v31, 5  ;;  %v7070_v7 = vld [vmem:[%s8437_s1 + $0x6] sm:$0x3]  ;;  %v5329_v10 = vld [vmem:[%s6558_s28 + $0xb0] sm:$0x1] }
  0x90   : > { %v5412_v4 = vcombine.low %v2881_v38, %v2884_v50  ;;  %v2897_v58 = vrot.slane %v5326_v60, 5  ;;  %v1464_v61 = vsel %vm745_vm0, %v6439_v54, 0  ;;  %v2888_v41 = vsel %vm6810_vm7, %v5396_v48, %v2887_v28  ;;  %v5382_v11 = vld [vmem:[%s6558_s28 + $0xa8] sm:$0xe]  ;;  %v5332_v25 = vld [vmem:[%s6558_s28 + $0xbc] sm:$0x1] }
  0x91   : > { %v2896_v6 = vrot.slane %v2894_v63, 4  ;;  %v2891_v17 = vsel %vm6810_vm7, %v2889_v51, %v2890_v62  ;;  %v2901_v8 = vrot.slane %v5328_v57, 5  ;;  %v2895_v23 = vsel %vm6810_vm7, %v5397_v12, %v2894_v63  ;;  %v5383_v31 = vld [vmem:[%s6558_s28 + $0xb4] sm:$0xe]  ;;  %v6440_v38 = vld [vmem:[%s6558_s28 + $0x24] sm:$0xf] }
  0x92   : > { %v2908_v21 = vrot.slane %v5331_v2, 5  ;;  %v7091_v1 = vld [vmem:[%s6558_s28 + $0x28] sm:$0xf]  ;;  %v5413_v60 = vcombine.low %v2888_v41, %v2891_v17  ;;  %v5398_v44 = vrot.slane %v5382_v11, 9  ;;  %v2904_v59 = vrot.slane %v5329_v10, 5 }
  0x93   : > { %v2898_v18 = vsel %vm6810_vm7, %v2896_v6, %v2897_v58  ;;  %v5145_v28 = vcombine.low %v6440_v38, %v7091_v1  ;;  %v6442_v47 = vld [vmem:[%s6558_s28 + $0x30] sm:$0xf]  ;;  %v2911_v51 = vrot.slane %v5332_v25, 5  ;;  %v5334_v62 = vld [vmem:[%s6558_s28 + $0xc4] sm:$0xf]  ;;  %v2296_v25 = vshrl.u32 %v7018_v40, 16 }
  0x94   : > { %5991 = vmatmul.mubr.msk.bf16.gmra.mrb[16].mxu0 %vm696_vm3, %v5411_v49  ;;  %v5414_v20 = vcombine.low %v2895_v23, %v2898_v18  ;;  %v5399_v49 = vrot.slane %v5383_v31, 9  ;;  %v2910_v50 = vrot.slane %v2908_v21, 4  ;;  %v2902_v57 = vsel %vm6810_vm7, %v5398_v44, %v2901_v8  ;;  %v5384_v12 = vld [vmem:[%s6558_s28 + $0xc0] sm:$0xe]  ;;  %v6444_v41 = vld [vmem:[%s6558_s28 + $0x3c] sm:$0xf] }
  0x95   : > { %5839 = vmatmul.mubr.msk.bf16.vlgmr.msra.gmra.mrb[0].mxu1 %vm696_vm3, %v5143_v45  ;;  %5994 = vmatprep.mubr.msk.bf16.mxu0 %vm696_vm3, %v5412_v4  ;;  %v2903_v45 = vrot.slane %v2901_v8, 4  ;;  %v2915_v63 = vrot.slane %v5334_v62, 5  ;;  %v5400_v6 = vrot.slane %v5384_v12, 9  ;;  %v7116_v17 = vld [vmem:[%s6558_s28 + $0x40] sm:$0xf]  ;;  %v5148_v18 = vcombine.low %v6723_v27, %v6726_v36  ;;  %v6396_v62 = vld [vmem:[%s6558_s28 + $0x24] sm:$0xff]  }
  0x96   : > { %5871 = vmatpush3.bf16.msra.mxu1 %v1464_v61  ;;  %5842 = vmatprep.mubr.msk.bf16.mxu1 %vm696_vm3, %v5144_v26  ;;  %v7096_v26 = vld [vmem:[%s6558_s28 + $0x34] sm:$0xf]  ;;  %v2909_v58 = vsel %vm6810_vm7, %v5399_v49, %v2908_v21  ;;  %v2912_v54 = vsel %vm6810_vm7, %v2910_v50, %v2911_v51  ;;  %v5335_v61 = vld [vmem:[%s6558_s28 + $0xc8] sm:$0x1]  ;;  %v5147_v10 = vcombine.low %v6444_v41, %v7116_v17  ;;  %v2292_v21 = vshll.u32 %v7018_v40, 16 }
  0x97   : > { %6369 = vmatprep.subr.msk.bf16.mxu1 %vm745_vm0, %v7070_v7  ;;  %v5146_v48 = vcombine.low %v6442_v47, %v7096_v26  ;;  %v2905_v4 = vsel %vm6810_vm7, %v2903_v45, %v2904_v59  ;;  %v5416_v11 = vcombine.low %v2909_v58, %v2912_v54  ;;  %v2917_v8 = vrot.slane %v2915_v63, 4  ;;  %v1202_v45 = vld [vmem:[%s6558_s28] sm:$0xe]  ;;  %v1203_v59 = vld [vmem:[%s6558_s28 + $0xc] sm:$0xe] }
  0x98   : > { %v5415_v2 = vcombine.low %v2902_v57, %v2905_v4  ;;  %v2918_v23 = vrot.slane %v5335_v61, 5  ;;  %v2916_v31 = vsel %vm6810_vm7, %v5400_v6, %v2915_v63  ;;  %v7131_v27 = vrot.slane %v2292_v21, 5  ;;  %v1206_v41 = vld [vmem:[%s6558_s28 + $0x30] sm:$0xe] }
  0x99   : > { %v2298_v36 = vrot.slane %v2296_v25, 4  ;;  %v5150_v44 = vcombine.low %v6783_v19, %v6789_v35  ;;  %v2302_v47 = vshll.u32 %v7021_v55, 16  ;;  %v5174_v19 = vrot.slane %v1202_v45, 9 }
  0x9a   : > { %v2919_v38 = vsel %vm6810_vm7, %v2917_v8, %v2918_v23  ;;  %8459 = vst [vmem:[#allocation3_spill] sm:$0xff] %v7131_v27  ;;  %v5175_v35 = vrot.slane %v1203_v59, 9  ;;  %v1269_v4 = vrot.slane %v7055_v9, 5  ;;  %v1276_v12 = vrot.slane %v7091_v1, 5  ;;  %v1207_v8 = vld [vmem:[%s6558_s28 + $0x3c] sm:$0xe] }
  0x9b   : > { %v5417_v40 = vcombine.low %v2916_v31, %v2919_v38  ;;  %v2299_v49 = vor.u32 %v2298_v36, %v7131_v27  ;;  %v7151_v51 = vrot.slane %v2302_v47, 5  ;;  %v5151_v58 = vcombine.low %v6804_v0, %v6817_v29  ;;  %v1208_v31 = vld [vmem:[%s6558_s28 + $0x48] sm:$0xe]  ;;  %v6450_v59 = vld [vmem:[%s6558_s28 + $0x38] sm:$0x1] }
  0x9c   : > { %5995 = vmatmul.mubr.msk.bf16.gmra.mrb[20].mxu0 %vm696_vm3, %v5413_v60  ;;  %v5149_v60 = vcombine.low %v6752_v24, %v6758_v37  ;;  %v6447_v24 = vld [vmem:[%s6558_s28 + $0x14] sm:$0x1]  ;;  %v4104_v54 = vsel %vm745_vm0, %v6875_v22, 0  ;;  %v5152_v61 = vcombine.low %v6836_v53, %v6843_v16  ;;  %v5153_v6 = vcombine.low %v6862_v39, %v6870_v43  ;;  %v6448_v16 = vld [vmem:[%s6558_s28 + $0x20] sm:$0x1] }
  0x9d   : > { %5843 = vmatmul.mubr.msk.bf16.gmra.mrb[4].mxu1 %vm696_vm3, %v5145_v28  ;;  %5998 = vmatprep.mubr.msk.bf16.mxu0 %vm696_vm3, %v5414_v20  ;;  %v1262_v28 = vrot.slane %v7048_v34, 5  ;;  %v6394_v20 = vld [vmem:[%s6558_s28 + $0x18] sm:$0xff]   ;;  %v6446_v34 = vld [vmem:[%s6558_s28 + $0x8] sm:$0x1]  ;;  %v1265_v37 = vrot.slane %v6447_v24, 5  ;;  %8460 = vst [vmem:[#allocation4_spill] sm:$0xff] %v7151_v51  ;;  %v5154_v9 = vcombine.low %v6894_v5, %v6906_v30 }
  0x9e   : > { %5846 = vmatprep.mubr.msk.bf16.mxu1 %vm696_vm3, %v5146_v48  ;;  %v1255_v48 = vrot.slane %v7014_v15, 5  ;;  %v1258_v50 = vrot.slane %v6446_v34, 5  ;;  %v1204_v15 = vld [vmem:[%s6558_s28 + $0x18] sm:$0xe]  ;;  %v7156_v63 = vrot.slane %v2299_v49, 4  ;;  %v1272_v22 = vrot.slane %v6448_v16, 5 }
  0x9f   : > { %v1264_v55 = vrot.slane %v1262_v28, 4  ;;  %v5176_v1 = vrot.slane %v1204_v15, 9  ;;  %v7178_v29 = vsel %vm6810_vm7, %v5175_v35, %v1262_v28  ;;  %v1278_v25 = vrot.slane %v1276_v12, 4  ;;  %v5499_v24 = vld [vmem:[%s6558_s28 + $0x18] sm:$0xf] }
  0xa0   : > { %v1257_v57 = vrot.slane %v1255_v48, 4  ;;  %8461 = vst [vmem:[#allocation5_spill] sm:$0xff] %v7156_v63  ;;  %v7174_v0 = vsel %vm6810_vm7, %v5174_v19, %v1255_v48  ;;  %v1286_v47 = vrot.slane %v6450_v59, 5  ;;  %v7215_v49 = vsel %vm745_vm0, %v7070_v7, 0  ;;  %v5500_v7 = vld [vmem:[%s6558_s28 + $0x1c] sm:$0xf] }
  0xa1   : > { %v7182_v53 = vsel %vm6810_vm7, %v1264_v55, %v1265_v37  ;;  %v7219_v34 = vsel %vm6810_vm7, %v5176_v1, %v1269_v4  ;;  %v6400_v37 = vld [vmem:[%s6558_s28 + $0x3c] sm:$0xff]   ;;  %v5179_v35 = vrot.slane %v1207_v8, 9  ;;  %v6451_v55 = vld [vmem:[%s6558_s28 + $0x44] sm:$0x1]  ;;  %v3625_v8 = vshll.u32 %v5499_v24, 16 }
  0xa2   : > { %v7193_v23 = vsel %vm6810_vm7, %v1257_v57, %v1258_v50  ;;  %v1209_v50 = vld [vmem:[%s6558_s28 + $0x54] sm:$0xe]  ;;  %v1293_v15 = vrot.slane %v6451_v55, 5  ;;  %v5503_v39 = vld [vmem:[%s6558_s28 + $0x28] sm:$0xf] }
  0xa3   : > { %v6458_v5 = vld [vmem:[%s6558_s28 + $0x70] sm:$0xf] }
  0xa4   : > { %5999 = vmatmul.mubr.msk.bf16.gmra.mrb[24].mxu0 %vm696_vm3, %v5415_v2  ;;  %v1205_v2 = vld [vmem:[%s6558_s28 + $0x24] sm:$0xe]  ;;  %v1318_v30 = vrot.slane %v6458_v5, 5 }
  0xa5   : > { %5847 = vmatmul.mubr.msk.bf16.gmra.mrb[8].mxu1 %vm696_vm3, %v5147_v10  ;;  %6002 = vmatprep.mubr.msk.bf16.mxu0 %vm696_vm3, %v5416_v11  ;;  %v1283_v10 = vrot.slane %v7096_v26, 5  ;;  %v6398_v11 = vld [vmem:[%s6558_s28 + $0x30] sm:$0xff]   ;;  %v5177_v21 = vrot.slane %v1205_v2, 9 }
  0xa6   : > { %5850 = vmatprep.mubr.msk.bf16.mxu1 %vm696_vm3, %v5148_v18  ;;  %v7189_v26 = vld [vmem:[%s8437_s1 + $0x10] sm:$0x3]  ;;  %v1271_v18 = vrot.slane %v1269_v4, 4  ;;  %v1320_v48 = vrot.slane %v1318_v30, 4 }
  0xa7   : > { %v1285_v45 = vrot.slane %v1283_v10, 4  ;;  %v7226_v19 = vsel %vm6810_vm7, %v5177_v21, %v1276_v12  ;;  %v3635_v21 = vshrl.u32 %v5500_v7, 16 }
  0xa8   : > { %v7235_v4 = vsel %vm6810_vm7, %v1271_v18, %v1272_v22  ;;  %v3622_v22 = vshrl.u32 %v5499_v24, 16  ;;  %v3631_v18 = vshll.u32 %v5500_v7, 16  ;;  %v5502_v24 = vld [vmem:[%s6558_s28 + $0x24] sm:$0xf] }
  0xa9   : > { %v7248_v1 = vsel %vm6810_vm7, %v1285_v45, %v1286_v47 }
  0xaa   : > { %v3624_v43 = vrot.slane %v3622_v22, 4  ;;  %v7290_v7 = vrot.slane %v3631_v18, 5  ;;  %v3649_v22 = vshll.u32 %v5502_v24, 16  ;;  %v3659_v18 = vshrl.u32 %v5503_v39, 16 }
  0xac   : > { %6003 = vmatmul.mubr.msk.bf16.gmra.mrb[28].mxu0 %vm696_vm3, %v5417_v40  ;;  %v6449_v40 = vld [vmem:[%s6558_s28 + $0x2c] sm:$0x1]  ;;  %v3651_v27 = vrot.slane %v3649_v22, 5 }
  0xad   : > { %5851 = vmatmul.mubr.msk.bf16.gmra.mrb[12].mxu1 %vm696_vm3, %v5149_v60  ;;  %6008 = vmatprep.mubr.msk.bf16.mxu0 %vm696_vm3, %v6394_v20  ;;  %v1279_v28 = vrot.slane %v6449_v40, 5  ;;  %v1290_v60 = vrot.slane %v7116_v17, 5  ;;  %v6454_v40 = vld [vmem:[%s6558_s28 + $0x50] sm:$0x1]  ;;  %v6459_v17 = vld [vmem:[%s6558_s28 + $0x74] sm:$0x1] }
  0xae   : > { %5854 = vmatprep.mubr.msk.bf16.mxu1 %vm696_vm3, %v5150_v44  ;;  %v5178_v44 = vrot.slane %v1206_v41, 9  ;;  %v5181_v41 = vrot.slane %v1209_v50, 9  ;;  %v1210_v50 = vld [vmem:[%s6558_s28 + $0x60] sm:$0xe]  ;;  %v5504_v20 = vld [vmem:[%s6558_s28 + $0x2c] sm:$0x1] }
  0xaf   : > { %v1292_v12 = vrot.slane %v1290_v60, 4  ;;  %v7261_v45 = vsel %vm6810_vm7, %v5179_v35, %v1290_v60  ;;  %v6455_v35 = vld [vmem:[%s6558_s28 + $0x5c] sm:$0x1] }
  0xb0   : > { %v7244_v2 = vsel %vm6810_vm7, %v5178_v44, %v1283_v10  ;;  %v1307_v55 = vrot.slane %v6455_v35, 5  ;;  %v1211_v35 = vld [vmem:[%s6558_s28 + $0x6c] sm:$0xe] }
  0xb1   : > { %v7265_v59 = vsel %vm6810_vm7, %v1292_v12, %v1293_v15  ;;  %v6456_v15 = vld [vmem:[%s6558_s28 + $0x64] sm:$0xf]  ;;  %v3637_v12 = vrot.slane %v3635_v21, 4  ;;  %v5183_v5 = vrot.slane %v1211_v35, 9 }
  0xb2   : > { %v6406_v21 = vld [vmem:[%s6558_s28 + $0x60] sm:$0xff]  }
  0xb4   : > { %6009 = vmatmul.mubr.msk.bf16.vlgmr.msra.gmra.mrb[0].mxu0 %vm696_vm3, %v6396_v62  ;;  %v6452_v62 = vld [vmem:[%s6558_s28 + $0x4c] sm:$0xf] }
  0xb5   : > { %5855 = vmatmul.mubr.msk.bf16.gmra.mrb[16].mxu1 %vm696_vm3, %v5151_v58  ;;  %6041 = vmatpush3.bf16.msra.mxu0 %v4104_v54  ;;  %v1297_v57 = vrot.slane %v6452_v62, 5  ;;  %v7239_v58 = vsel %vm6810_vm7, %v1278_v25, %v1279_v28  ;;  %v5180_v54 = vrot.slane %v1208_v31, 9  ;;  %v1300_v28 = vrot.slane %v6454_v40, 5 }
  0xb6   : > { %5858 = vmatprep.mubr.msk.bf16.mxu1 %vm696_vm3, %v5152_v61  ;;  %6012 = vmatprep.mubr.msk.bf16.mxu0 %vm696_vm3, %v6398_v11  ;;  %v6402_v61 = vld [vmem:[%s6558_s28 + $0x48] sm:$0xff]   ;;  %v6453_v11 = vld [vmem:[%s6558_s28 + $0x58] sm:$0xf]  ;;  %v1311_v62 = vrot.slane %v6456_v15, 5  ;;  %v5506_v15 = vld [vmem:[%s6558_s28 + $0x34] sm:$0xf] }
  0xb7   : > { %6375 = vmatprep.subr.msk.bf16.mxu0 %vm745_vm0, %v7189_v26  ;;  %v1304_v16 = vrot.slane %v6453_v11, 5  ;;  %v1299_v31 = vrot.slane %v1297_v57, 4  ;;  %v7269_v47 = vsel %vm6810_vm7, %v5180_v54, %v1297_v57  ;;  %v5501_v57 = vld [vmem:[%s6558_s28 + $0x20] sm:$0x1]  ;;  %v5505_v54 = vld [vmem:[%s6558_s28 + $0x30] sm:$0xf] }
  0xb8   : > { %v5182_v11 = vrot.slane %v1210_v50, 9  ;;  %v3673_v50 = vshll.u32 %v5505_v54, 16  ;;  %v3641_v25 = vshll.u32 %v5501_v57, 16  ;;  %v3679_v36 = vshll.u32 %v5506_v15, 16 }
  0xb9   : > { %v7280_v60 = vsel %vm6810_vm7, %v5181_v41, %v1304_v16  ;;  %v7296_v41 = vsel %vm6810_vm7, %v1299_v31, %v1300_v28  ;;  %v1313_v31 = vrot.slane %v1311_v62, 4  ;;  %v3670_v28 = vshrl.u32 %v5505_v54, 16 }
  0xba   : > { %v7338_v35 = vrot.slane %v3679_v36, 5 }
  0xbc   : > { %6013 = vmatmul.mubr.msk.bf16.gmra.mrb[4].mxu0 %vm696_vm3, %v6400_v37  ;;  %v1306_v37 = vrot.slane %v1304_v16, 4  ;;  %v6457_v16 = vld [vmem:[%s6558_s28 + $0x68] sm:$0x1] }
  0xbd   : > { %5859 = vmatmul.mubr.msk.bf16.gmra.mrb[20].mxu1 %vm696_vm3, %v5153_v6  ;;  %6016 = vmatprep.mubr.msk.bf16.mxu0 %vm696_vm3, %v6402_v61  ;;  %v3627_v6 = vrot.slane %v3625_v8, 5  ;;  %v6404_v61 = vld [vmem:[%s6558_s28 + $0x54] sm:$0xff]   ;;  %v1314_v40 = vrot.slane %v6457_v16, 5  ;;  %v3655_v8 = vshll.u32 %v5503_v39, 16  ;;  %v3638_v16 = vor.u32 %v3637_v12, %v7290_v7 }
  0xbe   : > { %5862 = vmatprep.mubr.msk.bf16.mxu1 %vm696_vm3, %v5154_v9  ;;  %v3646_v9 = vshrl.u32 %v5502_v24, 16  ;;  %v7305_v44 = vsel %vm6810_vm7, %v1306_v37, %v1307_v55  ;;  %v1321_v24 = vrot.slane %v6459_v17, 5  ;;  %v3683_v39 = vshrl.u32 %v5506_v15, 16 }
  0xbf   : > { %v3628_v10 = vor.u32 %v3627_v6, %v3624_v43  ;;  %v7311_v37 = vrot.slane %v3655_v8, 5  ;;  %v3661_v55 = vrot.slane %v3659_v18, 4  ;;  %v8462_v43 = vcombine.low %v6915_v52, %v6926_v46  ;;  %v6460_v8 = vld [vmem:[%s6558_s28 + $0x7c] sm:$0xf]  ;;  %v7347_v18 = vld [vmem:[%s6558_s28 + $0x38] sm:$0x1] }
  0xc0   : > { %v3648_v38 = vrot.slane %v3646_v9, 4  ;;  %v7320_v17 = vsel %vm6810_vm7, %v5182_v11, %v1311_v62  ;;  %v7324_v57 = vsel %vm6810_vm7, %v1313_v31, %v1314_v40  ;;  %v3672_v6 = vrot.slane %v3670_v28, 4  ;;  %8464 = vst [vmem:[#allocation6_spill] sm:$0xff] %v7347_v18 }
  0xc1   : > { %v3675_v12 = vrot.slane %v3673_v50, 5  ;;  %v8463_v52 = vcombine.low %v6947_v33, %v6952_v56  ;;  %v3629_v46 = vrot.slane %v3628_v10, 4  ;;  %v3639_v54 = vrot.slane %v3638_v16, 4  ;;  %v6408_v33 = vld [vmem:[%s6558_s28 + $0x6c] sm:$0xff]   ;;  %v1213_v16 = vld [vmem:[%s6558_s28 + $0x84] sm:$0xe] }
  0xc2   : > { %v3665_v62 = vshll.u32 %v5504_v20, 16  ;;  %v7332_v11 = vsel %vm6810_vm7, %v5183_v5, %v1318_v30  ;;  %v7336_v40 = vsel %vm6810_vm7, %v1320_v48, %v1321_v24  ;;  %v3685_v9 = vrot.slane %v3683_v39, 4  ;;  %v6409_v48 = vld [vmem:[%s6558_s28 + $0x78] sm:$0xff]  }
  0xc3   : > { %v3652_v10 = vor.u32 %v3651_v27, %v3648_v38  ;;  %v3662_v20 = vor.u32 %v3661_v55, %v7311_v37  ;;  %v1325_v30 = vrot.slane %v6460_v8, 5  ;;  %v3676_v38 = vor.u32 %v3675_v12, %v3672_v6  ;;  %v5508_v5 = vld [vmem:[%s6558_s28 + $0x3c] sm:$0xf] }
  0xc4   : > { %6017 = vmatmul.mubr.msk.bf16.gmra.mrb[8].mxu0 %vm696_vm3, %v6404_v61  ;;  %v3643_v61 = vrot.slane %v3641_v25, 5  ;;  %v1212_v25 = vld [vmem:[%s6558_s28 + $0x78] sm:$0xe]  ;;  %v7363_v50 = vrot.slane %v3665_v62, 5  ;;  %v3686_v39 = vor.u32 %v3685_v9, %v7338_v35  ;;  %v3689_v55 = vshll.u32 %v7347_v18, 16 }
  0xc5   : > { %5863 = vmatmul.mubr.msk.bf16.gmra.mrb[24].mxu1 %vm696_vm3, %v8462_v43  ;;  %6020 = vmatprep.mubr.msk.bf16.mxu0 %vm696_vm3, %v6406_v21  ;;  %v3634_v21 = vsel %vm6584_vm4, %v3629_v46, %v7290_v7  ;;  %v5184_v24 = vrot.slane %v1212_v25, 9  ;;  %v6461_v43 = vld [vmem:[%s6558_s28 + $0x88] sm:$0xf]  ;;  %v7371_v7 = vld [vmem:[%s6558_s28 + $0x40] sm:$0xf]  ;;  %v3653_v12 = vrot.slane %v3652_v10, 4  ;;  %v8466_v62 = vcombine.low %v6967_v14, %v6976_v42 }
  0xc6   : > { %5866 = vmatprep.mubr.msk.bf16.mxu1 %vm696_vm3, %v8463_v52  ;;  %v3644_v31 = vsel %vm6584_vm4, %v3639_v54, %v3643_v61  ;;  %v1332_v6 = vrot.slane %v6461_v43, 5  ;;  %8465 = vst [vmem:[#allocation7_spill] sm:$0xff] %v7371_v7  ;;  %v3663_v52 = vrot.slane %v3662_v20, 4  ;;  %v1327_v46 = vrot.slane %v1325_v30, 4  ;;  %v6462_v54 = vld [vmem:[%s6558_s28 + $0x80] sm:$0x1] }
  0xc7   : > { %v1328_v61 = vrot.slane %v6462_v54, 5  ;;  %v3677_v9 = vrot.slane %v3676_v38, 4  ;;  %v5185_v25 = vrot.slane %v1213_v16, 9  ;;  %v3694_v8 = vshrl.u32 %v5508_v5, 16  ;;  %v6410_v10 = vld [vmem:[%s6558_s28 + $0x84] sm:$0xff]  }
  0xc8   : > { %v3697_v43 = vshll.u32 %v5508_v5, 16  ;;  %v7385_v20 = vcombine.low %v3634_v21, %v3644_v31  ;;  %v7389_v14 = vsel %vm745_vm0, %v7189_v26, 0  ;;  %v3707_v38 = vshrl.u32 %v7371_v7, 16  ;;  %v6411_v21 = vld [vmem:[%s6558_s28 + $0x90] sm:$0xff]   ;;  %v6467_v18 = vld [vmem:[%s6558_s28 + $0xa0] sm:$0xf] }
  0xc9   : > { %v3687_v16 = vrot.slane %v3686_v39, 4  ;;  %v3691_v5 = vrot.slane %v3689_v55, 5  ;;  %v1334_v54 = vrot.slane %v1332_v6, 4  ;;  %v3658_v31 = vsel %vm6584_vm4, %v3653_v12, %v7311_v37 }
  0xca   : > { %v3668_v26 = vsel %vm6584_vm4, %v3663_v52, %v7363_v50  ;;  %v7404_v39 = vsel %vm6810_vm7, %v5184_v24, %v1325_v30  ;;  %v7408_v55 = vsel %vm6810_vm7, %v1327_v46, %v1328_v61  ;;  %v3682_v37 = vsel %vm6584_vm4, %v3677_v9, %v7338_v35  ;;  %v5514_v30 = vld [vmem:[%s6558_s28 + $0x54] sm:$0xf]  ;;  %v7425_v24 = vld [vmem:[%s6558_s28 + $0x58] sm:$0xf]  ;;  %v7430_v61 = vld [vmem:[%s6558_s28 + $0x90] sm:$0xe] }
  0xcb   : > { %v7421_v12 = vsel %vm6810_vm7, %v5185_v25, %v1332_v6  ;;  %v3696_v50 = vrot.slane %v3694_v8, 4  ;;  %v3699_v52 = vrot.slane %v3697_v43, 5  ;;  %v3709_v46 = vrot.slane %v3707_v38, 4 }
  0xcc   : > { %6021 = vmatmul.mubr.msk.bf16.gmra.mrb[12].mxu0 %vm696_vm3, %v6408_v33  ;;  %v8467_v33 = vcombine.low %v7174_v0, %v7193_v23  ;;  %v6463_v0 = vld [vmem:[%s6558_s28 + $0x8c] sm:$0x1]  ;;  %v3692_v36 = vsel %vm6584_vm4, %v3687_v16, %v3691_v5  ;;  %v3742_v25 = vshrl.u32 %v5514_v30, 16  ;;  %v3745_v8 = vshll.u32 %v5514_v30, 16 }
  0xcd   : > { %5867 = vmatmul.mubr.msk.bf16.gmra.mrb[28].mxu1 %vm696_vm3, %v8466_v62  ;;  %6024 = vmatprep.mubr.msk.bf16.mxu0 %vm696_vm3, %v6409_v48  ;;  %v3703_v48 = vshll.u32 %v7371_v7, 16  ;;  %v1335_v23 = vrot.slane %v6463_v0, 5  ;;  %v5511_v62 = vld [vmem:[%s6558_s28 + $0x48] sm:$0xf]  ;;  %v7414_v0 = vld [vmem:[%s6558_s28 + $0x4c] sm:$0xf]  ;;  %v8469_v38 = vcombine.low %v7178_v29, %v7182_v53  ;;  %v7448_v16 = vcombine.low %v3658_v31, %v3668_v26 }
  0xce   : > { %5872 = vmatprep.mubr.msk.bf16.mxu1 %vm696_vm3, %v8467_v33  ;;  %v7411_v33 = vld [vmem:[%s6558_s28 + $0x44] sm:$0x1]  ;;  %v3718_v27 = vshrl.u32 %v5511_v62, 16  ;;  %v3721_v15 = vshll.u32 %v5511_v62, 16  ;;  %v3727_v6 = vshll.u32 %v7414_v0, 16  ;;  %v3731_v9 = vshrl.u32 %v7414_v0, 16 }
  0xcf   : > { %8468 = vst [vmem:[#allocation8_spill] sm:$0xff] %v7411_v33  ;;  %v7427_v28 = vrot.slane %v3703_v48, 5  ;;  %v7436_v35 = vsel %vm6810_vm7, %v1334_v54, %v1335_v23  ;;  %v3751_v43 = vshll.u32 %v7425_v24, 16  ;;  %v3755_v48 = vshrl.u32 %v7425_v24, 16  ;;  %v5517_v31 = vld [vmem:[%s6558_s28 + $0x60] sm:$0xf] }
  0xd0   : > { %v3713_v5 = vshll.u32 %v7411_v33, 16  ;;  %v5186_v54 = vrot.slane %v7430_v61, 9  ;;  %v8470_v23 = vcombine.low %v7219_v34, %v7235_v4  ;;  %v7459_v29 = vcombine.low %v3682_v37, %v3692_v36  ;;  %v6412_v26 = vld [vmem:[%s6558_s28 + $0x9c] sm:$0xff]   ;;  %v6413_v30 = vld [vmem:[%s6558_s28 + $0xa8] sm:$0xff]  }
  0xd1   : > { %v3700_v53 = vor.u32 %v3699_v52, %v3696_v50  ;;  %v3720_v62 = vrot.slane %v3718_v27, 4  ;;  %v7470_v34 = vrot.slane %v3727_v6, 5  ;;  %v3733_v4 = vrot.slane %v3731_v9, 4  ;;  %v6464_v36 = vld [vmem:[%s8437_s1 + $0x8] sm:$0x3] }
  0xd2   : > { %v3744_v27 = vrot.slane %v3742_v25, 4  ;;  %v3747_v37 = vrot.slane %v3745_v8, 5  ;;  %v7479_v50 = vrot.slane %v3751_v43, 5  ;;  %v3757_v52 = vrot.slane %v3755_v48, 4  ;;  %v6465_v6 = vld [vmem:[%s6558_s28 + $0x94] sm:$0xf] }
  0xd3   : > { %v7485_v9 = vld [vmem:[%s6558_s28 + $0x64] sm:$0xf]  ;;  %v3766_v61 = vshrl.u32 %v5517_v31, 16  ;;  %v7487_v22 = vrot.slane %v3700_v53, 4  ;;  %v1346_v25 = vrot.slane %v6467_v18, 5  ;;  %v3734_v43 = vor.u32 %v3733_v4, %v7470_v34 }
  0xd4   : > { %6025 = vmatmul.mubr.msk.bf16.gmra.mrb[16].mxu0 %vm696_vm3, %v6410_v10  ;;  %8471 = vst [vmem:[#allocation9_spill] sm:$0xff] %v7485_v9  ;;  %v3769_v10 = vshll.u32 %v5517_v31, 16  ;;  %v3748_v31 = vor.u32 %v3747_v37, %v3744_v27  ;;  %v3758_v53 = vor.u32 %v3757_v52, %v7479_v50  ;;  %v8472_v18 = vcombine.low %v7226_v19, %v7239_v58  ;;  %v6414_v37 = vld [vmem:[%s6558_s28 + $0xb4] sm:$0xff]  }
  0xd5   : > { %5873 = vmatmul.mubr.msk.bf16.vlgmr.msra.gmra.mrb[0].mxu1 %vm696_vm3, %v8469_v38  ;;  %6028 = vmatprep.mubr.msk.bf16.mxu0 %vm696_vm3, %v6411_v21  ;;  %v3723_v21 = vrot.slane %v3721_v15, 5  ;;  %v7468_v38 = vld [vmem:[%s6558_s28 + $0x50] sm:$0x1]  ;;  %v7477_v15 = vld [vmem:[%s6558_s28 + $0x5c] sm:$0x1]  ;;  %v8473_v27 = vcombine.low %v7244_v2, %v7248_v1  ;;  %v1348_v52 = vrot.slane %v1346_v25, 4 }
  0xd6   : > { %5905 = vmatpush3.bf16.msra.mxu1 %v7215_v49  ;;  %5876 = vmatprep.mubr.msk.bf16.mxu1 %vm696_vm3, %v8470_v23  ;;  %v3710_v49 = vor.u32 %v3709_v46, %v7427_v28  ;;  %v7481_v46 = vrot.slane %v3713_v5, 5  ;;  %v1339_v23 = vrot.slane %v6465_v6, 5  ;;  %v3737_v48 = vshll.u32 %v7468_v38, 16  ;;  %v1215_v5 = vld [vmem:[%s6558_s28 + $0x9c] sm:$0xe] }
  0xd7   : > { %6371 = vmatprep.subr.msk.bf16.mxu1 %vm745_vm0, %v6464_v36  ;;  %v6466_v36 = vld [vmem:[%s6558_s28 + $0x98] sm:$0x1]  ;;  %v3724_v7 = vor.u32 %v3723_v21, %v3720_v62  ;;  %v3761_v6 = vshll.u32 %v7477_v15, 16  ;;  %v3779_v62 = vshrl.u32 %v7485_v9, 16  ;;  %v3771_v4 = vrot.slane %v3769_v10, 5 }
  0xd8   : > { %v1342_v33 = vrot.slane %v6466_v36, 5  ;;  %v3711_v8 = vrot.slane %v3710_v49, 4  ;;  %v3775_v36 = vshll.u32 %v7485_v9, 16  ;;  %v7506_v21 = vsel %vm6810_vm7, %v5186_v54, %v1339_v23  ;;  %v7517_v2 = vld [vmem:[%s6558_s28 + $0x68] sm:$0x1] }
  0xd9   : > { %v3768_v49 = vrot.slane %v3766_v61, 4  ;;  %v3725_v19 = vrot.slane %v3724_v7, 4  ;;  %v5187_v58 = vrot.slane %v1215_v5, 9  ;;  %v3735_v3 = vrot.slane %v3734_v43, 4  ;;  %8474 = vst [vmem:[#allocation10_spill] sm:$0xff] %v7517_v2  ;;  %v6415_v5 = vld [vmem:[%s6558_s28 + $0xc0] sm:$0xff]  }
  0xda   : > { %v3739_v54 = vrot.slane %v3737_v48, 5  ;;  %v3763_v63 = vrot.slane %v3761_v6, 5  ;;  %v1353_v61 = vrot.slane %v6952_v56, 5  ;;  %v3749_v10 = vrot.slane %v3748_v31, 4  ;;  %v1217_v31 = vld [vmem:[%s6558_s28 + $0xb4] sm:$0xe] }
  0xdb   : > { %v3759_v51 = vrot.slane %v3758_v53, 4  ;;  %v7519_v1 = vrot.slane %v3775_v36, 5  ;;  %v3781_v7 = vrot.slane %v3779_v62, 4  ;;  %v3706_v43 = vsel %vm6584_vm4, %v7487_v22, %v7427_v28  ;;  %v6469_v62 = vld [vmem:[%s6558_s28 + $0xb0] sm:$0x1] }
  0xdc   : > { %6029 = vmatmul.mubr.msk.bf16.gmra.mrb[20].mxu0 %vm696_vm3, %v6412_v26  ;;  %v1341_v26 = vrot.slane %v1339_v23, 4  ;;  %v1216_v23 = vld [vmem:[%s6558_s28 + $0xa8] sm:$0xe]  ;;  %v3716_v48 = vsel %vm6584_vm4, %v3711_v8, %v7481_v46  ;;  %v3772_v6 = vor.u32 %v3771_v4, %v3768_v49  ;;  %v3730_v53 = vsel %vm6584_vm4, %v3725_v19, %v7470_v34  ;;  %v5520_v46 = vld [vmem:[%s6558_s28 + $0x6c] sm:$0xf] }
  0xdd   : > { %5877 = vmatmul.mubr.msk.bf16.gmra.mrb[4].mxu1 %vm696_vm3, %v8472_v18  ;;  %6032 = vmatprep.mubr.msk.bf16.mxu0 %vm696_vm3, %v6413_v30  ;;  %v6468_v18 = vld [vmem:[%s6558_s28 + $0xa4] sm:$0x1]  ;;  %v7539_v36 = vsel %vm6810_vm7, %v5187_v58, %v1346_v25  ;;  %v5188_v28 = vrot.slane %v1216_v23, 9  ;;  %v1355_v8 = vrot.slane %v1353_v61, 4  ;;  %v3785_v49 = vshll.u32 %v7517_v2, 16 }
  0xde   : > { %5880 = vmatprep.mubr.msk.bf16.mxu1 %vm696_vm3, %v8473_v27  ;;  %v1349_v30 = vrot.slane %v6468_v18, 5  ;;  %v7531_v56 = vsel %vm6810_vm7, %v1341_v26, %v1342_v33  ;;  %v3740_v33 = vsel %vm6584_vm4, %v3735_v3, %v3739_v54  ;;  %v1356_v26 = vrot.slane %v6469_v62, 5  ;;  %v5523_v18 = vld [vmem:[%s6558_s28 + $0x78] sm:$0xf]  ;;  %v7594_v54 = vld [vmem:[%s6558_s28 + $0xbc] sm:$0x1] }
  0xdf   : > { %v3754_v34 = vsel %vm6584_vm4, %v3749_v10, %v7479_v50  ;;  %v3764_v25 = vsel %vm6584_vm4, %v3759_v51, %v3763_v63  ;;  %v3782_v4 = vor.u32 %v3781_v7, %v7519_v1  ;;  %v5189_v27 = vrot.slane %v1217_v31, 9  ;;  %v7568_v51 = vld [vmem:[%s6558_s28 + $0x70] sm:$0xf]  ;;  %v7598_v10 = vld [vmem:[%s6558_s28 + $0x7c] sm:$0xf] }
  0xe0   : > { %v7543_v22 = vsel %vm6810_vm7, %v1348_v52, %v1349_v30  ;;  %v8476_v3 = vcombine.low %v7261_v45, %v7265_v59  ;;  %v7564_v19 = vrot.slane %v3772_v6, 4  ;;  %v1360_v50 = vrot.slane %v6976_v42, 5  ;;  %8477 = vst [vmem:[#allocation12_spill] sm:$0xff] %v7568_v51  ;;  %8479 = vst [vmem:[#allocation13_spill] sm:$0xff] %v7598_v10  ;;  %v5526_v7 = vld [vmem:[%s6558_s28 + $0x84] sm:$0xf] }
  0xe1   : > { %8475 = vst [vmem:[#allocation11_spill] sm:$0xff] %v7543_v22  ;;  %v3790_v63 = vshrl.u32 %v5520_v46, 16  ;;  %v8478_v45 = vcombine.low %v7269_v47, %v7296_v41  ;;  %v7576_v58 = vcombine.low %v3730_v53, %v3740_v33  ;;  %v7582_v42 = vsel %vm6810_vm7, %v5188_v28, %v1353_v61  ;;  %v6416_v61 = vld [vmem:[%s6558_s28 + $0xcc] sm:$0xff]   ;;  %v7610_v31 = vld [vmem:[%s6558_s28 + $0x88] sm:$0xf] }
  0xe2   : > { %v7585_v30 = vcombine.low %v3754_v34, %v3764_v25  ;;  %v7589_v47 = vsel %vm6810_vm7, %v1355_v8, %v1356_v26  ;;  %v7591_v41 = vrot.slane %v3785_v49, 5  ;;  %v3799_v6 = vshll.u32 %v7568_v51, 16  ;;  %8480 = vst [vmem:[#allocation14_spill] sm:$0xff] %v7610_v31  ;;  %v5529_v62 = vld [vmem:[%s6558_s28 + $0x90] sm:$0xf] }
  0xe3   : > { %v7616_v28 = vrot.slane %v1360_v50, 4  ;;  %v7618_v33 = vrot.slane %v3790_v63, 4  ;;  %v3803_v8 = vshrl.u32 %v7568_v51, 16  ;;  %v3814_v26 = vshrl.u32 %v5523_v18, 16  ;;  %v7625_v25 = vld [vmem:[%s6558_s28 + $0x94] sm:$0xf] }
  0xe4   : > { %6033 = vmatmul.mubr.msk.bf16.gmra.mrb[24].mxu0 %vm696_vm3, %v6414_v37  ;;  %v7562_v37 = vcombine.low %v3706_v43, %v3716_v48  ;;  %v7606_v43 = vsel %vm6810_vm7, %v5189_v27, %v1360_v50  ;;  %v3793_v48 = vshll.u32 %v5520_v46, 16  ;;  %v3817_v49 = vshll.u32 %v5523_v18, 16  ;;  %8481 = vst [vmem:[#allocation15_spill] sm:$0xff] %v7625_v25  ;;  %v7663_v2 = vld [vmem:[%s6558_s28 + $0x8c] sm:$0x1] }
  0xe5   : > { %5881 = vmatmul.mubr.msk.bf16.gmra.mrb[8].mxu1 %vm696_vm3, %v8476_v3  ;;  %6036 = vmatprep.mubr.msk.bf16.mxu0 %vm696_vm3, %v6415_v5  ;;  %v7602_v5 = vrot.slane %v3782_v4, 4  ;;  %v3823_v46 = vshll.u32 %v7598_v10, 16  ;;  %v3827_v34 = vshrl.u32 %v7598_v10, 16  ;;  %v3838_v4 = vshrl.u32 %v5526_v7, 16 }
  0xe6   : > { %5884 = vmatprep.mubr.msk.bf16.mxu1 %vm696_vm3, %v8478_v45  ;;  %v3841_v27 = vshll.u32 %v5526_v7, 16  ;;  %v3847_v3 = vshll.u32 %v7610_v31, 16  ;;  %v3851_v50 = vshrl.u32 %v7610_v31, 16  ;;  %v7635_v45 = vld [vmem:[%s6558_s28 + $0x74] sm:$0x1]  ;;  %v3795_v18 = vrot.slane %v3793_v48, 5 }
  0xe7   : > { %v3862_v52 = vshrl.u32 %v5529_v62, 16  ;;  %v3865_v53 = vshll.u32 %v5529_v62, 16  ;;  %v8482_v7 = vcombine.low %v7280_v60, %v7305_v44  ;;  %v3805_v59 = vrot.slane %v3803_v8, 4  ;;  %v5532_v48 = vld [vmem:[%s6558_s28 + $0x9c] sm:$0xf] }
  0xe8   : > { %v3871_v63 = vshll.u32 %v7625_v25, 16  ;;  %v3875_v23 = vshrl.u32 %v7625_v25, 16  ;;  %v8483_v62 = vcombine.low %v7320_v17, %v7324_v57  ;;  %v7653_v44 = vld [vmem:[%s6558_s28 + $0x80] sm:$0x1]  ;;  %v3816_v60 = vrot.slane %v3814_v26, 4 }
  0xe9   : > { %8484 = vst [vmem:[#allocation16_spill] sm:$0xff] %v7653_v44  ;;  %v3840_v31 = vrot.slane %v3838_v4, 4  ;;  %v3843_v8 = vrot.slane %v3841_v27, 5  ;;  %v7657_v10 = vrot.slane %v3847_v3, 5  ;;  %v3853_v51 = vrot.slane %v3851_v50, 4 }
  0xea   : > { %v7660_v25 = vld [vmem:[%s6558_s28 + $0xa0] sm:$0xf]  ;;  %v3864_v17 = vrot.slane %v3862_v52, 4  ;;  %v3867_v57 = vrot.slane %v3865_v53, 5  ;;  %v3889_v9 = vshll.u32 %v5532_v48, 16  ;;  %v3796_v26 = vor.u32 %v3795_v18, %v7618_v33 }
  0xeb   : > { %v3833_v27 = vshll.u32 %v7653_v44, 16  ;;  %v7672_v3 = vld [vmem:[%s6558_s28 + $0x98] sm:$0x1]  ;;  %v3895_v50 = vshll.u32 %v7660_v25, 16  ;;  %v3899_v52 = vshrl.u32 %v7660_v25, 16  ;;  %v3844_v22 = vor.u32 %v3843_v8, %v3840_v31 }
  0xec   : > { %6037 = vmatmul.mubr.msk.bf16.gmra.mrb[28].mxu0 %vm696_vm3, %v6416_v61  ;;  %v7643_v61 = vrot.slane %v3799_v6, 5  ;;  %v3829_v6 = vrot.slane %v3827_v34, 4  ;;  %v3877_v34 = vrot.slane %v3875_v23, 4  ;;  %v3857_v33 = vshll.u32 %v7663_v2, 16 }
  0xed   : > { %5885 = vmatmul.mubr.msk.bf16.gmra.mrb[12].mxu1 %vm696_vm3, %v8482_v7  ;;  %6042 = vmatprep.mubr.msk.bf16.mxu0 %vm696_vm3, %v7385_v20  ;;  %v3819_v7 = vrot.slane %v3817_v49, 5  ;;  %v7655_v20 = vrot.slane %v3823_v46, 5  ;;  %v3809_v49 = vshll.u32 %v7635_v45, 16  ;;  %v7667_v46 = vrot.slane %v3871_v63, 5 }
  0xee   : > { %5888 = vmatprep.mubr.msk.bf16.mxu1 %vm696_vm3, %v8483_v62  ;;  %v3886_v62 = vshrl.u32 %v5532_v48, 16  ;;  %v3806_v4 = vor.u32 %v3805_v59, %v7643_v61  ;;  %v3854_v23 = vor.u32 %v3853_v51, %v7657_v10  ;;  %v3868_v59 = vor.u32 %v3867_v57, %v3864_v17  ;;  %v7705_v57 = vld [vmem:[%s6558_s28 + $0xa4] sm:$0x1] }
  0xef   : > { %v3820_v53 = vor.u32 %v3819_v7, %v3816_v60  ;;  %v3830_v48 = vor.u32 %v3829_v6, %v7655_v20  ;;  %v3891_v18 = vrot.slane %v3889_v9, 5  ;;  %v8485_v44 = vcombine.low %v7332_v11, %v7336_v40 }
  0xf0   : > { %v3888_v63 = vrot.slane %v3886_v62, 4  ;;  %v8486_v31 = vrot.slane %v7594_v54, 5  ;;  %v3811_v51 = vrot.slane %v3809_v49, 5  ;;  %v3878_v60 = vor.u32 %v3877_v34, %v7667_v46  ;;  %v7708_v34 = vld [vmem:[%s6558_s28 + $0xac] sm:$0xf] }
  0xf1   : > { %v3881_v9 = vshll.u32 %v7672_v3, 16  ;;  %v8487_v11 = vcombine.low %v7404_v39, %v7408_v55  ;;  %v3797_v40 = vrot.slane %v3796_v26, 4  ;;  %v7701_v54 = vrot.slane %v3895_v50, 5 }
  0xf2   : > { %v3821_v7 = vrot.slane %v3820_v53, 4  ;;  %v3831_v6 = vrot.slane %v3830_v48, 4  ;;  %v3835_v8 = vrot.slane %v3833_v27, 5  ;;  %v3859_v17 = vrot.slane %v3857_v33, 5  ;;  %v7718_v48 = vld [vmem:[%s6558_s28 + $0xb0] sm:$0x1] }
  0xf3   : > { %v3845_v39 = vrot.slane %v3844_v22, 4  ;;  %v3855_v55 = vrot.slane %v3854_v23, 4  ;;  %v3869_v62 = vrot.slane %v3868_v59, 4  ;;  %v3892_v49 = vor.u32 %v3891_v18, %v3888_v63 }
  0xf4   : > { %6043 = vmatmul.mubr.msk.bf16.vlgmr.msra.gmra.mrb[0].mxu0 %vm696_vm3, %v7448_v16  ;;  %v7691_v16 = vsel %vm6810_vm7, %v7616_v28, %v8486_v31  ;;  %v3901_v28 = vrot.slane %v3899_v52, 4  ;;  %v3883_v26 = vrot.slane %v3881_v9, 5  ;;  %v3802_v52 = vsel %vm6584_vm4, %v3797_v40, %v7643_v61 }
  0xf5   : > { %5889 = vmatmul.mubr.msk.bf16.gmra.mrb[16].mxu1 %vm696_vm3, %v8485_v44  ;;  %6075 = vmatpush3.bf16.msra.mxu0 %v7389_v14  ;;  %v3807_v14 = vrot.slane %v3806_v4, 4  ;;  %v5535_v44 = vld [vmem:[%s6558_s28 + $0xa8] sm:$0xf]  ;;  %v3905_v22 = vshll.u32 %v7705_v57, 16  ;;  %v3826_v33 = vsel %vm6584_vm4, %v3821_v7, %v7655_v20  ;;  %v3836_v23 = vsel %vm6584_vm4, %v3831_v6, %v3835_v8 }
  0xf6   : > { %5892 = vmatprep.mubr.msk.bf16.mxu1 %vm696_vm3, %v8487_v11  ;;  %6046 = vmatprep.mubr.msk.bf16.mxu0 %vm696_vm3, %v7459_v29  ;;  %v3879_v29 = vrot.slane %v3878_v60, 4  ;;  %v3910_v4 = vshrl.u32 %v5535_v44, 16  ;;  %v3913_v50 = vshll.u32 %v5535_v44, 16  ;;  %v3902_v53 = vor.u32 %v3901_v28, %v7701_v54  ;;  %v5584_v11 = vld [vmem:[%s6558_s28 + $0x48] sm:$0xe] }
  0xf7   : > { %v3812_v27 = vsel %vm6584_vm4, %v3807_v14, %v3811_v51  ;;  %v3919_v59 = vshll.u32 %v7708_v34, 16  ;;  %v3923_v61 = vshrl.u32 %v7708_v34, 16  ;;  %v3850_v63 = vsel %vm6584_vm4, %v3845_v39, %v7657_v10  ;;  %v7783_v39 = vld [vmem:[%s6558_s28 + $0xb8] sm:$0xf] }
  0xf8   : > { %v3860_v18 = vsel %vm6584_vm4, %v3855_v55, %v3859_v17  ;;  %v3874_v20 = vsel %vm6584_vm4, %v3869_v62, %v7667_v46  ;;  %v3893_v31 = vrot.slane %v3892_v49, 4  ;;  %v8488_v51 = vcombine.low %v7421_v12, %v7436_v35 }
  0xf9   : > { %v3912_v10 = vrot.slane %v3910_v4, 4  ;;  %v3915_v60 = vrot.slane %v3913_v50, 5  ;;  %v3929_v9 = vshll.u32 %v7718_v48, 16  ;;  %v8489_v46 = vcombine.low %v7506_v21, %v7531_v56  ;;  %v5538_v21 = vld [vmem:[%s6558_s28 + $0xb4] sm:$0xf] }
  0xfa   : > { %v5205_v12 = vcombine.low %v7582_v42, %v7589_v47  ;;  %v8490_v35 = vsel %vm6584_vm4, %v7602_v5, %v7591_v41  ;;  %v3903_v14 = vrot.slane %v3902_v53, 4  ;;  %v3907_v28 = vrot.slane %v3905_v22, 5  ;;  %v5586_v4 = vld [vmem:[%s6558_s28 + $0x60] sm:$0xe]  ;;  %v5587_v53 = vld [vmem:[%s6558_s28 + $0x6c] sm:$0xe] }
  0xfb   : > { %v5206_v56 = vcombine.low %v7606_v43, %v7691_v16  ;;  %v7766_v44 = vcombine.low %v3802_v52, %v3812_v27  ;;  %v7768_v42 = vrot.slane %v3919_v59, 5  ;;  %v3925_v47 = vrot.slane %v3923_v61, 4  ;;  %v8499_v16 = vld [vmem:[#allocation4_spill] sm:$0xff] }
  0xfc   : > { %6047 = vmatmul.mubr.msk.bf16.gmra.mrb[4].mxu0 %vm696_vm3, %v7562_v37  ;;  %v3884_v37 = vsel %vm6584_vm4, %v3879_v29, %v3883_v26  ;;  %v7770_v41 = vcombine.low %v3826_v33, %v3836_v23  ;;  %v7772_v5 = vcombine.low %v3850_v63, %v3860_v18  ;;  %v3898_v6 = vsel %vm6584_vm4, %v3893_v31, %v7701_v54  ;;  %v8492_v23 = vld [vmem:[#allocation11_spill] sm:$0xff]  ;;  %v5541_v63 = vld [vmem:[%s6558_s28 + $0xc0] sm:$0xf]  ;;  %v8494_v18 = vld [vmem:[#allocation9_spill] sm:$0xff] }
  0xfd   : > { %5893 = vmatmul.mubr.msk.bf16.gmra.mrb[20].mxu1 %vm696_vm3, %v8488_v51  ;;  %6050 = vmatprep.mubr.msk.bf16.mxu0 %vm696_vm3, %v7576_v58  ;;  %v8491_v58 = vsel %vm6584_vm4, %v7564_v19, %v7519_v1  ;;  %v7774_v7 = vcombine.low %v3874_v20, %v3884_v37  ;;  %v5600_v1 = vrot.slane %v5584_v11, 9  ;;  %v5585_v19 = vld [vmem:[%s6558_s28 + $0x54] sm:$0xe]  ;;  %v3916_v8 = vor.u32 %v3915_v60, %v3912_v10  ;;  %v8495_v31 = vld [vmem:[#allocation10_spill] sm:$0xff] }
  0xfe   : > { %5896 = vmatprep.mubr.msk.bf16.mxu1 %vm696_vm3, %v8489_v46  ;;  %v5554_v40 = vcombine.low %v8491_v58, %v8490_v35  ;;  %v7780_v17 = vrot.slane %v3929_v9, 5  ;;  %v3934_v55 = vshrl.u32 %v5538_v21, 16  ;;  %v3908_v62 = vsel %vm6584_vm4, %v3903_v14, %v3907_v28  ;;  %v8496_v9 = vld [vmem:[#allocation12_spill] sm:$0xff]  ;;  %v7832_v35 = vld [vmem:[%s6558_s28 + $0xbc] sm:$0x1] }
  0xff   : > { %v3937_v49 = vshll.u32 %v5538_v21, 16  ;;  %v4393_v29 = vrot.slane %v7414_v0, 5  ;;  %v4396_v26 = vrot.slane %v7468_v38, 5  ;;  %v3926_v50 = vor.u32 %v3925_v47, %v7768_v42  ;;  %v7835_v58 = vld [vmem:[%s6558_s28 + $0xc4] sm:$0xf] }
 0x100   : > { %v5601_v52 = vrot.slane %v5585_v19, 9  ;;  %v4400_v54 = vrot.slane %v7425_v24, 5  ;;  %v4403_v27 = vrot.slane %v7477_v15, 5  ;;  %v3943_v22 = vshll.u32 %v7783_v39, 16  ;;  %v5588_v19 = vld [vmem:[%s6558_s28 + $0x78] sm:$0xe] }
 0x101   : > { %v3947_v33 = vshrl.u32 %v7783_v39, 16  ;;  %v7800_v0 = vsel %vm6810_vm7, %v5600_v1, %v4393_v29  ;;  %v4395_v38 = vrot.slane %v4393_v29, 4  ;;  %v8493_v59 = vcombine.low %v7539_v36, %v8492_v23  ;;  %v8497_v23 = vld [vmem:[#allocation13_spill] sm:$0xff] }
 0x102   : > { %v7807_v24 = vcombine.low %v3898_v6, %v3908_v62  ;;  %v7811_v15 = vsel %vm6810_vm7, %v5601_v52, %v4400_v54  ;;  %v5602_v61 = vrot.slane %v5586_v4, 9  ;;  %v4407_v20 = vrot.slane %v8494_v18, 5  ;;  %v6417_v6 = vld [vmem:[%s6558_s28 + $0xc] sm:$0xff]  }
 0x103   : > { %v7817_v36 = vsel %vm6810_vm7, %v4395_v38, %v4396_v26  ;;  %v4410_v51 = vrot.slane %v8495_v31, 5  ;;  %v5603_v37 = vrot.slane %v5587_v53, 9  ;;  %v4414_v11 = vrot.slane %v8496_v9, 5 }
 0x104   : > { %6051 = vmatmul.mubr.msk.bf16.gmra.mrb[8].mxu0 %vm696_vm3, %v7585_v30  ;;  %v4402_v30 = vrot.slane %v4400_v54, 4  ;;  %v5617_v10 = vcombine.low %v7800_v0, %v7817_v36  ;;  %v4417_v46 = vrot.slane %v7635_v45, 5  ;;  %v7841_v14 = vsel %vm6810_vm7, %v5602_v61, %v4407_v20 }
 0x105   : > { %5897 = vmatmul.mubr.msk.bf16.gmra.mrb[24].mxu1 %vm696_vm3, %v8493_v59  ;;  %6054 = vmatprep.mubr.msk.bf16.mxu0 %vm696_vm3, %v5554_v40  ;;  %v4409_v28 = vrot.slane %v4407_v20, 4  ;;  %v7843_v21 = vrot.slane %v3934_v55, 4  ;;  %v3958_v47 = vshrl.u32 %v5541_v63, 16  ;;  %v7847_v45 = vsel %vm6810_vm7, %v5603_v37, %v4414_v11  ;;  %v5315_v55 = vld [vmem:[%s6558_s28 + $0x78] sm:$0xf]  ;;  %v8498_v59 = vld [vmem:[#allocation16_spill] sm:$0xff] }
 0x106   : > { %5900 = vmatprep.mubr.msk.bf16.mxu1 %vm696_vm3, %v5205_v12  ;;  %v7825_v60 = vsel %vm6810_vm7, %v4402_v30, %v4403_v27  ;;  %v7829_v12 = vrot.slane %v3916_v8, 4  ;;  %v4416_v1 = vrot.slane %v4414_v11, 4  ;;  %v7851_v8 = vrot.slane %v3926_v50, 4 }
 0x107   : > { %v5618_v40 = vcombine.low %v7811_v15, %v7825_v60  ;;  %v7853_v62 = vrot.slane %v3937_v49, 5  ;;  %v3961_v29 = vshll.u32 %v5541_v63, 16  ;;  %v7857_v26 = vsel %vm6810_vm7, %v4409_v28, %v4410_v51  ;;  %v8501_v28 = vld [vmem:[#allocation14_spill] sm:$0xff] }
 0x108   : > { %v7860_v4 = vrot.slane %v3943_v22, 5  ;;  %v7862_v52 = vrot.slane %v3947_v33, 4  ;;  %v5619_v54 = vcombine.low %v7841_v14, %v7857_v26  ;;  %v7868_v27 = vsel %vm6810_vm7, %v4416_v1, %v4417_v46  ;;  %v5589_v33 = vld [vmem:[%s6558_s28 + $0x84] sm:$0xe]  ;;  %v6418_v1 = vld [vmem:[%s6558_s28 + $0x18] sm:$0xff]  }
 0x109   : > { %v3953_v49 = vshll.u32 %v7832_v35, 16  ;;  %v3967_v50 = vshll.u32 %v7835_v58, 16  ;;  %v5620_v53 = vcombine.low %v7847_v45, %v7868_v27  ;;  %v5604_v22 = vrot.slane %v5588_v19, 9  ;;  %v6480_v60 = vld [vmem:[%s6558_s28 + $0xa0] sm:$0xf] }
 0x10a   : > { %v3960_v38 = vrot.slane %v3958_v47, 4  ;;  %v4424_v30 = vrot.slane %v8498_v59, 5  ;;  %v2283_v61 = vshrl.u32 %v5315_v55, 16  ;;  %v3963_v63 = vrot.slane %v3961_v29, 5  ;;  %v5544_v29 = vld [vmem:[%s6558_s28 + $0xcc] sm:$0xf] }
 0x10b   : > { %v3971_v18 = vshrl.u32 %v7835_v58, 16  ;;  %v2286_v43 = vshll.u32 %v5315_v55, 16  ;;  %v5605_v37 = vrot.slane %v5589_v33, 9  ;;  %v3922_v9 = vsel %vm6584_vm4, %v7829_v12, %v7768_v42  ;;  %v7911_v55 = vld [vmem:[%s6558_s28 + $0xd0] sm:$0xf] }
 0x10c   : > { %6055 = vmatmul.mubr.msk.bf16.gmra.mrb[12].mxu0 %vm696_vm3, %v7766_v44  ;;  %v4421_v44 = vrot.slane %v8497_v23, 5  ;;  %v2285_v51 = vrot.slane %v2283_v61, 4  ;;  %v3940_v11 = vor.u32 %v7853_v62, %v7843_v21  ;;  %v4428_v47 = vrot.slane %v8501_v28, 5  ;;  %v6419_v21 = vld [vmem:[%s6558_s28 + $0x24] sm:$0xff]   ;;  %v6484_v27 = vld [vmem:[%s6558_s28 + $0xac] sm:$0xf] }
 0x10d   : > { %5901 = vmatmul.mubr.msk.bf16.gmra.mrb[28].mxu1 %vm696_vm3, %v5206_v56  ;;  %6058 = vmatprep.mubr.msk.bf16.mxu0 %vm696_vm3, %v7770_v41  ;;  %v8500_v56 = vld [vmem:[#allocation5_spill] sm:$0xff]  ;;  %v2288_v46 = vrot.slane %v2286_v43, 5  ;;  %v3932_v19 = vsel %vm6584_vm4, %v7851_v8, %v7780_v17  ;;  %v4431_v12 = vrot.slane %v7663_v2, 5  ;;  %v7919_v62 = vrot.slane %v3967_v50, 5  ;;  %v5590_v8 = vld [vmem:[%s6558_s28 + $0x90] sm:$0xe] }
 0x10e   : > { %5906 = vmatprep.mubr.msk.bf16.mxu1 %vm696_vm3, %v6417_v6  ;;  %v2305_v41 = vsel %vm6584_vm4, %v8500_v56, %v8499_v16  ;;  %v7893_v20 = vsel %vm6810_vm7, %v5604_v22, %v4421_v44  ;;  %v4423_v31 = vrot.slane %v4421_v44, 4  ;;  %v3950_v6 = vor.u32 %v7862_v52, %v7860_v4  ;;  %v7925_v52 = vld [vmem:[%s6558_s28 + $0xc8] sm:$0x1]  ;;  %v8503_v16 = vld [vmem:[#allocation2_spill] sm:$0xff] }
 0x10f   : > { %v3973_v22 = vrot.slane %v3971_v18, 4  ;;  %v2289_v17 = vor.u32 %v2288_v46, %v2285_v51  ;;  %v3955_v23 = vrot.slane %v3953_v49, 5  ;;  %v3964_v44 = vor.u32 %v3963_v63, %v3960_v38  ;;  %v8504_v51 = vld [vmem:[#allocation3_spill] sm:$0xff] }
 0x110   : > { %v7915_v42 = vsel %vm6810_vm7, %v4423_v31, %v4424_v30  ;;  %v7929_v59 = vsel %vm6810_vm7, %v5605_v37, %v4428_v47  ;;  %v4430_v30 = vrot.slane %v4428_v47, 4  ;;  %v3982_v2 = vshrl.u32 %v5544_v29, 16 }
 0x111   : > { %v5621_v33 = vcombine.low %v7893_v20, %v7915_v42  ;;  %v3985_v50 = vshll.u32 %v5544_v29, 16  ;;  %v3991_v61 = vshll.u32 %v7911_v55, 16  ;;  %v2290_v18 = vrot.slane %v2289_v17, 4  ;;  %v6420_v29 = vld [vmem:[%s6558_s28 + $0x30] sm:$0xff]  }
 0x112   : > { %v3995_v49 = vshrl.u32 %v7911_v55, 16  ;;  %v7940_v38 = vsel %vm6810_vm7, %v4430_v30, %v4431_v12  ;;  %v5606_v63 = vrot.slane %v5590_v8, 9  ;;  %v3974_v56 = vor.u32 %v3973_v22, %v7919_v62 }
 0x113   : > { %v3977_v31 = vshll.u32 %v7925_v52, 16  ;;  %v5622_v37 = vcombine.low %v7929_v59, %v7940_v38  ;;  %v5560_v46 = vcombine.low %v3922_v9, %v3932_v19  ;;  %v3941_v28 = vrot.slane %v3940_v11, 4  ;;  %v5591_v11 = vld [vmem:[%s6558_s28 + $0x9c] sm:$0xe] }
 0x114   : > { %6059 = vmatmul.mubr.msk.bf16.gmra.mrb[16].mxu0 %vm696_vm3, %v7772_v5  ;;  %v8502_v5 = vld [vmem:[#allocation15_spill] sm:$0xff]  ;;  %v3951_v47 = vrot.slane %v3950_v6, 4  ;;  %v3965_v12 = vrot.slane %v3964_v44, 4  ;;  %v4438_v8 = vrot.slane %v7672_v3, 5  ;;  %v3984_v30 = vrot.slane %v3982_v2, 4  ;;  %v6421_v19 = vld [vmem:[%s6558_s28 + $0x3c] sm:$0xff]  }
 0x115   : > { %5907 = vmatmul.mubr.msk.bf16.vlgmr.msra.gmra.mrb[0].mxu1 %vm696_vm3, %v6418_v1  ;;  %6062 = vmatprep.mubr.msk.bf16.mxu0 %vm696_vm3, %v7774_v7  ;;  %v4435_v43 = vrot.slane %v8502_v5, 5  ;;  %v2295_v7 = vsel %vm6584_vm4, %v2290_v18, %v8504_v51  ;;  %v3987_v18 = vrot.slane %v3985_v50, 5  ;;  %v7963_v5 = vrot.slane %v3991_v61, 5 }
 0x116   : > { %6109 = vmatpush3.bf16.msra.mxu1 %v8503_v16  ;;  %5910 = vmatprep.mubr.msk.bf16.mxu1 %vm696_vm3, %v6419_v21  ;;  %v7952_v1 = vcombine.low %v2295_v7, %v2305_v41  ;;  %v7956_v21 = vld [vmem:[%s6558_s28 + $0xd4] sm:$0x1]  ;;  %v3997_v9 = vrot.slane %v3995_v49, 4  ;;  %v3975_v41 = vrot.slane %v3974_v56, 4  ;;  %v3979_v6 = vrot.slane %v3977_v31, 5 }
 0x117   : > { %v7960_v22 = vsel %vm6810_vm7, %v5606_v63, %v4435_v43  ;;  %v4437_v17 = vrot.slane %v4435_v43, 4  ;;  %v3946_v63 = vsel %vm6584_vm4, %v3941_v28, %v7860_v4  ;;  %v3956_v2 = vsel %vm6584_vm4, %v3951_v47, %v3955_v23  ;;  %v6471_v16 = vld [vmem:[%s6558_s28 + $0x1c] sm:$0xf]  ;;  %v5592_v28 = vld [vmem:[%s6558_s28 + $0xa8] sm:$0xe] }
 0x118   : > { %v4001_v50 = vshll.u32 %v7956_v21, 16  ;;  %v5607_v61 = vrot.slane %v5591_v11, 9  ;;  %v4442_v49 = vrot.slane %v7660_v25, 5  ;;  %v3970_v4 = vsel %vm6584_vm4, %v3965_v12, %v7919_v62  ;;  %v5580_v62 = vld [vmem:[%s6558_s28 + $0x18] sm:$0xe]  ;;  %v6422_v47 = vld [vmem:[%s6558_s28 + $0x48] sm:$0xff]  }
 0x119   : > { %v7969_v44 = vsel %vm6810_vm7, %v4437_v17, %v4438_v8  ;;  %v3998_v43 = vor.u32 %v3997_v9, %v7963_v5  ;;  %v4445_v23 = vrot.slane %v7705_v57, 5  ;;  %v3980_v25 = vsel %vm6584_vm4, %v3975_v41, %v3979_v6  ;;  %v6472_v11 = vld [vmem:[%s6558_s28 + $0x20] sm:$0x1] }
 0x11a   : > { %v5623_v3 = vcombine.low %v7960_v22, %v7969_v44  ;;  %v4365_v56 = vrot.slane %v6471_v16, 5  ;;  %v7995_v31 = vsel %vm6810_vm7, %v5607_v61, %v4442_v49  ;;  %v4444_v51 = vrot.slane %v4442_v49, 4  ;;  %v5593_v49 = vld [vmem:[%s6558_s28 + $0xb4] sm:$0xe] }
 0x11b   : > { %v5561_v7 = vcombine.low %v3946_v63, %v3956_v2  ;;  %v3999_v17 = vrot.slane %v3998_v43, 4  ;;  %v5608_v41 = vrot.slane %v5592_v28, 9  ;;  %v4449_v6 = vrot.slane %v7708_v34, 5  ;;  %v5581_v2 = vld [vmem:[%s6558_s28 + $0x24] sm:$0xe] }
 0x11c   : > { %6063 = vmatmul.mubr.msk.bf16.gmra.mrb[20].mxu0 %vm696_vm3, %v7807_v24  ;;  %v3988_v24 = vor.u32 %v3987_v18, %v3984_v30  ;;  %v8000_v57 = vsel %vm6810_vm7, %v4444_v51, %v4445_v23  ;;  %v6423_v30 = vld [vmem:[%s6558_s28 + $0x54] sm:$0xff]   ;;  %v5596_v18 = vrot.slane %v5580_v62, 9  ;;  %v4367_v9 = vrot.slane %v4365_v56, 4  ;;  %v6475_v28 = vld [vmem:[%s6558_s28 + $0x2c] sm:$0x1] }
 0x11d   : > { %5911 = vmatmul.mubr.msk.bf16.gmra.mrb[4].mxu1 %vm696_vm3, %v6420_v29  ;;  %6066 = vmatprep.mubr.msk.bf16.mxu0 %vm696_vm3, %v5560_v46  ;;  %v4003_v46 = vrot.slane %v4001_v50, 5  ;;  %v5562_v29 = vcombine.low %v3970_v4, %v3980_v25  ;;  %v5624_v8 = vcombine.low %v7995_v31, %v8000_v57  ;;  %v4452_v63 = vrot.slane %v7718_v48, 5  ;;  %v6473_v50 = vld [vmem:[%s6558_s28 + $0x28] sm:$0xf]  ;;  %v5582_v25 = vld [vmem:[%s6558_s28 + $0x30] sm:$0xe] }
 0x11e   : > { %5914 = vmatprep.mubr.msk.bf16.mxu1 %vm696_vm3, %v6421_v19  ;;  %v3989_v12 = vrot.slane %v3988_v24, 4  ;;  %v4368_v19 = vrot.slane %v6472_v11, 5  ;;  %v4372_v61 = vrot.slane %v6473_v50, 5  ;;  %v8023_v48 = vsel %vm6810_vm7, %v5608_v41, %v4449_v6  ;;  %v6425_v11 = vld [vmem:[%s6558_s28 + $0x6c] sm:$0xff]   ;;  %v8505_v41 = vld [vmem:[#allocation6_spill] sm:$0xff] }
 0x11f   : > { %v4004_v34 = vsel %vm6584_vm4, %v3999_v17, %v4003_v46  ;;  %v4451_v24 = vrot.slane %v4449_v6, 4  ;;  %v4366_v43 = vsel %vm6810_vm7, %v5596_v18, %v4365_v56  ;;  %v5597_v51 = vrot.slane %v5581_v2, 9  ;;  %v5594_v50 = vld [vmem:[%s6558_s28 + $0xc0] sm:$0xe]  ;;  %v6489_v31 = vld [vmem:[%s6558_s28 + $0xc8] sm:$0x1] }
 0x120   : > { %v3994_v4 = vsel %vm6584_vm4, %v3989_v12, %v7963_v5  ;;  %v4369_v23 = vsel %vm6810_vm7, %v4367_v9, %v4368_v19  ;;  %v6474_v5 = vld [vmem:[%s6558_s28 + $0x34] sm:$0xf]  ;;  %v6424_v12 = vld [vmem:[%s6558_s28 + $0x60] sm:$0xff]   ;;  %v5598_v18 = vrot.slane %v5582_v25, 9  ;;  %v4459_v9 = vrot.slane %v7832_v35, 5 }
 0x121   : > { %v4379_v16 = vrot.slane %v6474_v5, 5  ;;  %v8034_v62 = vsel %vm6810_vm7, %v4451_v24, %v4452_v63  ;;  %v5563_v46 = vcombine.low %v3994_v4, %v4004_v34  ;;  %v5613_v17 = vcombine.low %v4366_v43, %v4369_v23  ;;  %v5583_v24 = vld [vmem:[%s6558_s28 + $0x3c] sm:$0xe] }
 0x122   : > { %v5625_v56 = vcombine.low %v8023_v48, %v8034_v62  ;;  %v4382_v6 = vrot.slane %v8505_v41, 5  ;;  %v4373_v35 = vsel %vm6810_vm7, %v5597_v51, %v4372_v61  ;;  %v5610_v5 = vrot.slane %v5594_v50, 9 }
 0x123   : > { %v4381_v19 = vrot.slane %v4379_v16, 4  ;;  %v4380_v23 = vsel %vm6810_vm7, %v5598_v18, %v4379_v16  ;;  %v4466_v51 = vrot.slane %v7925_v52, 5  ;;  %v2446_v57 = vshll.u32 %v6489_v31, 16 }
 0x124   : > { %6067 = vmatmul.mubr.msk.bf16.gmra.mrb[24].mxu0 %vm696_vm3, %v5561_v7  ;;  %v5609_v7 = vrot.slane %v5593_v49, 9 }
 0x125   : > { %5915 = vmatmul.mubr.msk.bf16.gmra.mrb[8].mxu1 %vm696_vm3, %v6422_v47  ;;  %6070 = vmatprep.mubr.msk.bf16.mxu0 %vm696_vm3, %v5562_v29  ;;  %v4375_v47 = vrot.slane %v6475_v28, 5  ;;  %v4456_v29 = vrot.slane %v7783_v39, 5  ;;  %v8506_v39 = vld [vmem:[#allocation7_spill] sm:$0xff]  ;;  %v4383_v25 = vsel %vm6810_vm7, %v4381_v19, %v4382_v6  ;;  %v5599_v28 = vrot.slane %v5583_v24, 9 }
 0x126   : > { %5918 = vmatprep.mubr.msk.bf16.mxu1 %vm696_vm3, %v6423_v30  ;;  %v4374_v30 = vrot.slane %v4372_v61, 4  ;;  %v4386_v49 = vrot.slane %v8506_v39, 5  ;;  %v4463_v61 = vrot.slane %v7835_v58, 5  ;;  %v6476_v39 = vld [vmem:[%s6558_s28 + $0x70] sm:$0xf]  ;;  %v4470_v24 = vrot.slane %v7911_v55, 5 }
 0x127   : > { %v8046_v63 = vsel %vm6810_vm7, %v5609_v7, %v4456_v29  ;;  %v4458_v2 = vrot.slane %v4456_v29, 4  ;;  %v5312_v7 = vld [vmem:[%s6558_s28 + $0x6c] sm:$0xf]  ;;  %v8507_v29 = vld [vmem:[#allocation8_spill] sm:$0xff] }
 0x128   : > { %v4376_v34 = vsel %vm6810_vm7, %v4374_v30, %v4375_v47  ;;  %v4388_v47 = vrot.slane %v4386_v49, 4  ;;  %v6426_v30 = vld [vmem:[%s6558_s28 + $0x78] sm:$0xff]   ;;  %v8077_v16 = vsel %vm6810_vm7, %v5610_v5, %v4463_v61  ;;  %v4465_v18 = vrot.slane %v4463_v61, 4 }
 0x129   : > { %v8053_v4 = vsel %vm6810_vm7, %v4458_v2, %v4459_v9  ;;  %v5615_v9 = vcombine.low %v4380_v23, %v4383_v25  ;;  %v2259_v19 = vshrl.u32 %v5312_v7, 16  ;;  %v2262_v41 = vshll.u32 %v5312_v7, 16 }
 0x12a   : > { %v5626_v43 = vcombine.low %v8046_v63, %v8053_v4  ;;  %v8082_v58 = vsel %vm6810_vm7, %v4465_v18, %v4466_v51  ;;  %v4387_v6 = vsel %vm6810_vm7, %v5599_v28, %v4386_v49  ;;  %v4473_v49 = vrot.slane %v7956_v21, 5  ;;  %v6428_v51 = vld [vmem:[%s6558_s28 + $0x90] sm:$0xff]   ;;  %v6429_v21 = vld [vmem:[%s6558_s28 + $0x9c] sm:$0xff]  }
 0x12b   : > { %v5627_v50 = vcombine.low %v8077_v16, %v8082_v58  ;;  %v2261_v23 = vrot.slane %v2259_v19, 4  ;;  %v2264_v25 = vrot.slane %v2262_v41, 5  ;;  %v4472_v7 = vrot.slane %v4470_v24, 4 }
 0x12c   : > { %6071 = vmatmul.mubr.msk.bf16.gmra.mrb[28].mxu0 %vm696_vm3, %v5563_v46  ;;  %v5614_v46 = vcombine.low %v4373_v35, %v4376_v34  ;;  %v2268_v35 = vshll.u32 %v6476_v39, 16  ;;  %v2272_v34 = vshrl.u32 %v6476_v39, 16 }
 0x12d   : > { %5919 = vmatmul.mubr.msk.bf16.gmra.mrb[12].mxu1 %vm696_vm3, %v6424_v12  ;;  %6076 = vmatprep.mubr.msk.bf16.mxu0 %vm696_vm3, %v5613_v17  ;;  %v4389_v12 = vrot.slane %v8507_v29, 5  ;;  %v5595_v17 = vld [vmem:[%s6558_s28 + $0xcc] sm:$0xe]  ;;  %v8104_v55 = vsel %vm6810_vm7, %v4472_v7, %v4473_v49 }
 0x12e   : > { %5922 = vmatprep.mubr.msk.bf16.mxu1 %vm696_vm3, %v6425_v11  ;;  %v6427_v11 = vld [vmem:[%s6558_s28 + $0x84] sm:$0xff]   ;;  %v5611_v52 = vrot.slane %v5595_v17, 9  ;;  %v2274_v28 = vrot.slane %v2272_v34, 4  ;;  %v6477_v17 = vld [vmem:[%s6558_s28 + $0x74] sm:$0x1] }
 0x12f   : > { %v4390_v2 = vsel %vm6810_vm7, %v4388_v47, %v4389_v12  ;;  %v5318_v47 = vld [vmem:[%s6558_s28 + $0x84] sm:$0xf]  ;;  %v2265_v12 = vor.u32 %v2264_v25, %v2261_v23  ;;  %v6431_v34 = vld [vmem:[%s6558_s28 + $0xb4] sm:$0xff]  }
 0x130   : > { %v8099_v5 = vsel %vm6810_vm7, %v5611_v52, %v4470_v24  ;;  %v5616_v61 = vcombine.low %v4387_v6, %v4390_v2  ;;  %v2310_v18 = vshll.u32 %v5318_v47, 16  ;;  %v5321_v6 = vld [vmem:[%s6558_s28 + $0x90] sm:$0xf]  ;;  %v6430_v2 = vld [vmem:[%s6558_s28 + $0xa8] sm:$0xff]  }
 0x131   : > { %v5628_v29 = vcombine.low %v8099_v5, %v8104_v55  ;;  %v2266_v52 = vrot.slane %v2265_v12, 4  ;;  %v2331_v23 = vshrl.u32 %v5321_v6, 16  ;;  %v2334_v25 = vshll.u32 %v5321_v6, 16 }
 0x132   : > { %v2364_v12 = vshll.u32 %v6480_v60, 16 }
 0x133   : > { %v2336_v14 = vrot.slane %v2334_v25, 5  ;;  %v6483_v25 = vld [vmem:[%s6558_s28 + $0xa4] sm:$0x1] }
 0x134   : > { %6077 = vmatmul.mubr.msk.bf16.vlgmr.msra.gmra.mrb[0].mxu0 %vm696_vm3, %v5614_v46  ;;  %v2270_v46 = vrot.slane %v2268_v35, 5  ;;  %v5324_v35 = vld [vmem:[%s6558_s28 + $0x9c] sm:$0xf]  ;;  %v8146_v6 = vrot.slane %v2364_v12, 5 }
 0x135   : > { %5923 = vmatmul.mubr.msk.bf16.gmra.mrb[16].mxu1 %vm696_vm3, %v6426_v30  ;;  %6080 = vmatprep.mubr.msk.bf16.mxu0 %vm696_vm3, %v5615_v9  ;;  %v2278_v30 = vshll.u32 %v6477_v17, 16  ;;  %v2307_v9 = vshrl.u32 %v5318_v47, 16  ;;  %v2358_v47 = vshll.u32 %v5324_v35, 16  ;;  %v6481_v17 = vld [vmem:[%s6558_s28 + $0x8c] sm:$0x1] }
 0x136   : > { %5926 = vmatprep.mubr.msk.bf16.mxu1 %vm696_vm3, %v6427_v11  ;;  %v2275_v13 = vor.u32 %v2274_v28, %v2270_v46  ;;  %v6478_v11 = vld [vmem:[%s6558_s28 + $0x88] sm:$0xf]  ;;  %v2271_v7 = vsel %vm6584_vm4, %v2266_v52, %v2270_v46 }
 0x137   : > { %v2316_v19 = vshll.u32 %v6478_v11, 16  ;;  %v2320_v41 = vshrl.u32 %v6478_v11, 16  ;;  %v2280_v0 = vrot.slane %v2278_v30, 5  ;;  %v2309_v36 = vrot.slane %v2307_v9, 4 }
 0x138   : > { %v2276_v39 = vrot.slane %v2275_v13, 4  ;;  %v2326_v30 = vshll.u32 %v6481_v17, 16  ;;  %v2333_v9 = vrot.slane %v2331_v23, 4  ;;  %v2360_v11 = vrot.slane %v2358_v47, 5 }
 0x139   : > { %v8123_v24 = vrot.slane %v2316_v19, 5  ;;  %v2322_v49 = vrot.slane %v2320_v41, 4  ;;  %v6432_v19 = vld [vmem:[%s6558_s28 + $0xc0] sm:$0xff]  }
 0x13a   : > { %v2281_v46 = vsel %vm6584_vm4, %v2276_v39, %v2280_v0  ;;  %v5327_v39 = vld [vmem:[%s6558_s28 + $0xa8] sm:$0xf] }
 0x13b   : > { %v2323_v13 = vor.u32 %v2322_v49, %v8123_v24  ;;  %v5345_v41 = vcombine.low %v2271_v7, %v2281_v46  ;;  %v2374_v7 = vshll.u32 %v6483_v25, 16  ;;  %v2382_v45 = vshll.u32 %v5327_v39, 16 }
 0x13c   : > { %6081 = vmatmul.mubr.msk.bf16.gmra.mrb[4].mxu0 %vm696_vm3, %v5616_v61  ;;  %v6479_v61 = vld [vmem:[%s6558_s28 + $0x94] sm:$0xf] }
 0x13d   : > { %5927 = vmatmul.mubr.msk.bf16.gmra.mrb[20].mxu1 %vm696_vm3, %v6428_v51  ;;  %6084 = vmatprep.mubr.msk.bf16.mxu0 %vm696_vm3, %v5617_v10  ;;  %v2312_v10 = vrot.slane %v2310_v18, 5  ;;  %v2340_v51 = vshll.u32 %v6479_v61, 16  ;;  %v2344_v28 = vshrl.u32 %v6479_v61, 16  ;;  %v2324_v0 = vrot.slane %v2323_v13, 4 }
 0x13e   : > { %5930 = vmatprep.mubr.msk.bf16.mxu1 %vm696_vm3, %v6429_v21  ;;  %v2355_v21 = vshrl.u32 %v5324_v35, 16  ;;  %v6482_v35 = vld [vmem:[%s6558_s28 + $0x98] sm:$0x1]  ;;  %v2379_v61 = vshrl.u32 %v5327_v39, 16  ;;  %v5333_v39 = vld [vmem:[%s6558_s28 + $0xc0] sm:$0xf] }
 0x13f   : > { %v2313_v15 = vor.u32 %v2312_v10, %v2309_v36  ;;  %v8143_v26 = vrot.slane %v2340_v51, 5  ;;  %v2328_v36 = vrot.slane %v2326_v30, 5  ;;  %v2337_v10 = vor.u32 %v2336_v14, %v2333_v9  ;;  %v5330_v51 = vld [vmem:[%s6558_s28 + $0xb4] sm:$0xf] }
 0x140   : > { %v2357_v18 = vrot.slane %v2355_v21, 4  ;;  %v2392_v21 = vshrl.u32 %v6484_v27, 16  ;;  %v2403_v20 = vshrl.u32 %v5330_v51, 16  ;;  %v2406_v42 = vshll.u32 %v5330_v51, 16 }
 0x141   : > { %v2314_v52 = vrot.slane %v2313_v15, 4  ;;  %v2329_v46 = vsel %vm6584_vm4, %v2324_v0, %v2328_v36  ;;  %v2338_v15 = vrot.slane %v2337_v10, 4  ;;  %v2376_v30 = vrot.slane %v2374_v7, 5 }
 0x142   : > { %v2361_v23 = vor.u32 %v2360_v11, %v2357_v18  ;;  %v2381_v9 = vrot.slane %v2379_v61, 4  ;;  %v2394_v11 = vrot.slane %v2392_v21, 4  ;;  %v6488_v61 = vld [vmem:[%s6558_s28 + $0xbc] sm:$0x1] }
 0x143   : > { %v2319_v47 = vsel %vm6584_vm4, %v2314_v52, %v8123_v24  ;;  %v2343_v0 = vsel %vm6584_vm4, %v2338_v15, %v8143_v26  ;;  %v2422_v22 = vshll.u32 %v6488_v61, 16 }
 0x144   : > { %6085 = vmatmul.mubr.msk.bf16.gmra.mrb[8].mxu0 %vm696_vm3, %v5618_v40  ;;  %v2368_v40 = vshrl.u32 %v6480_v60, 16  ;;  %v2362_v17 = vrot.slane %v2361_v23, 4  ;;  %v5347_v24 = vcombine.low %v2319_v47, %v2329_v46 }
 0x145   : > { %5931 = vmatmul.mubr.msk.bf16.gmra.mrb[24].mxu1 %vm696_vm3, %v6430_v2  ;;  %6088 = vmatprep.mubr.msk.bf16.mxu0 %vm696_vm3, %v5619_v54  ;;  %v2346_v54 = vrot.slane %v2344_v28, 4 }
 0x146   : > { %5934 = vmatprep.mubr.msk.bf16.mxu1 %vm696_vm3, %v6431_v34  ;;  %v2370_v2 = vrot.slane %v2368_v40, 4  ;;  %v2350_v34 = vshll.u32 %v6482_v35, 16  ;;  %v2367_v10 = vsel %vm6584_vm4, %v2362_v17, %v8146_v6  ;;  %v2448_v17 = vrot.slane %v2446_v57, 5 }
 0x147   : > { %v2347_v49 = vor.u32 %v2346_v54, %v8143_v26  ;;  %v2384_v54 = vrot.slane %v2382_v45, 5  ;;  %v6486_v26 = vld [vmem:[%s6558_s28 + $0xb0] sm:$0x1] }
 0x148   : > { %v2371_v28 = vor.u32 %v2370_v2, %v8146_v6  ;;  %v2352_v60 = vrot.slane %v2350_v34, 5  ;;  %v2398_v35 = vshll.u32 %v6486_v26, 16  ;;  %v2427_v34 = vshrl.u32 %v5333_v39, 16 }
 0x149   : > { %v2348_v13 = vrot.slane %v2347_v49, 4  ;;  %v2385_v38 = vor.u32 %v2384_v54, %v2381_v9  ;;  %v2430_v6 = vshll.u32 %v5333_v39, 16  ;;  %v6487_v49 = vld [vmem:[%s6558_s28 + $0xc4] sm:$0xf] }
 0x14a   : > { %v2372_v14 = vrot.slane %v2371_v28, 4  ;;  %v2436_v23 = vshll.u32 %v6487_v49, 16  ;;  %v2440_v25 = vshrl.u32 %v6487_v49, 16  ;;  %v2400_v45 = vrot.slane %v2398_v35, 5 }
 0x14b   : > { %v2353_v36 = vsel %vm6584_vm4, %v2348_v13, %v2352_v60  ;;  %v2386_v51 = vrot.slane %v2385_v38, 4  ;;  %v2424_v60 = vrot.slane %v2422_v22, 5 }
 0x14c   : > { %6089 = vmatmul.mubr.msk.bf16.gmra.mrb[12].mxu0 %vm696_vm3, %v5620_v53  ;;  %v2388_v53 = vshll.u32 %v6484_v27, 16  ;;  %v2377_v59 = vsel %vm6584_vm4, %v2372_v14, %v2376_v30  ;;  %v5348_v44 = vcombine.low %v2343_v0, %v2353_v36  ;;  %v2429_v27 = vrot.slane %v2427_v34, 4 }
 0x14d   : > { %5935 = vmatmul.mubr.msk.bf16.gmra.mrb[28].mxu1 %vm696_vm3, %v6432_v19  ;;  %6092 = vmatprep.mubr.msk.bf16.mxu0 %vm696_vm3, %v5621_v33  ;;  %v6485_v33 = vld [vmem:[%s6558_s28 + $0xb8] sm:$0xf]  ;;  %v2405_v19 = vrot.slane %v2403_v20, 4  ;;  %v2438_v21 = vrot.slane %v2436_v23, 5  ;;  %v2442_v47 = vrot.slane %v2440_v25, 4  ;;  %s208_s28 = scalar_lea.vmem %s8440_s4, %s5108_s25 }
 0x14e   : > { %5956 = vmatprep.mubr.msk.bf16.mxu1 %vm696_vm3, %v5345_v41  ;;  %v2412_v12 = vshll.u32 %v6485_v33, 16  ;;  %v2416_v40 = vshrl.u32 %v6485_v33, 16  ;;  %v2390_v18 = vrot.slane %v2388_v53, 5  ;;  %v2408_v41 = vrot.slane %v2406_v42, 5 }
 0x14f   : > { %v2432_v53 = vrot.slane %v2430_v6, 5 }
 0x150   : > { %v2414_v52 = vrot.slane %v2412_v12, 5  ;;  %v2418_v2 = vrot.slane %v2416_v40, 4  ;;  %v2391_v20 = vsel %vm6584_vm4, %v2386_v51, %v2390_v18  ;;  %v2443_v12 = vor.u32 %v2442_v47, %v2438_v21 }
 0x151   : > { %v2433_v33 = vor.u32 %v2432_v53, %v2429_v27 }
 0x152   : > { %v2419_v7 = vor.u32 %v2418_v2, %v2414_v52  ;;  %v2444_v13 = vrot.slane %v2443_v12, 4  ;;  %v8254_v2 = vld [vmem:[%s8438_s2] ss:$0 sm:$0xff] }
 0x153   : > { %v2434_v40 = vrot.slane %v2433_v33, 4 }
 0x154   : > { %6093 = vmatmul.mubr.msk.bf16.gmra.mrb[16].mxu0 %vm696_vm3, %v5622_v37  ;;  %v2395_v37 = vor.u32 %v2394_v11, %v2390_v18  ;;  %v2420_v15 = vrot.slane %v2419_v7, 4  ;;  %v2449_v9 = vsel %vm6584_vm4, %v2444_v13, %v2448_v17 }
 0x155   : > { %5957 = vmatmul.mubr.msk.bf16.vlgmr.msra.gmra.mrb[16].mxu1 %vm696_vm3, %v7952_v1  ;;  %6096 = vmatprep.mubr.msk.bf16.mxu0 %vm696_vm3, %v5623_v3  ;;  %v2409_v1 = vor.u32 %v2408_v41, %v2405_v19  ;;  %v5349_v3 = vcombine.low %v2367_v10, %v2377_v59  ;;  %v2439_v30 = vsel %vm6584_vm4, %v2434_v40, %v2438_v21 }
 0x156   : > { %5960 = vmatprep.mubr.msk.bf16.mxu1 %vm696_vm3, %v5347_v24  ;;  %v2396_v28 = vrot.slane %v2395_v37, 4  ;;  %v2425_v48 = vsel %vm6584_vm4, %v2420_v15, %v2424_v60  ;;  %v5352_v14 = vcombine.low %v2439_v30, %v2449_v9 }
 0x157   : > { %v2410_v46 = vrot.slane %v2409_v1, 4 }
 0x158   : > { %v2401_v42 = vsel %vm6584_vm4, %v2396_v28, %v2400_v45 }
 0x159   : > { %v5350_v62 = vcombine.low %v2391_v20, %v2401_v42 }
 0x15c   : > { %6097 = vmatmul.mubr.msk.bf16.gmra.mrb[20].mxu0 %vm696_vm3, %v5624_v8  ;;  %v2415_v8 = vsel %vm6584_vm4, %v2410_v46, %v2414_v52 }
 0x15d   : > { %5961 = vmatmul.mubr.msk.bf16.gmra.mrb[20].mxu1 %vm696_vm3, %v5348_v44  ;;  %6100 = vmatprep.mubr.msk.bf16.mxu0 %vm696_vm3, %v5625_v56  ;;  %v5351_v56 = vcombine.low %v2415_v8, %v2425_v48 }
 0x15e   : > { %5964 = vmatprep.mubr.msk.bf16.mxu1 %vm696_vm3, %v5349_v3 }
 0x164   : > { %6101 = vmatmul.mubr.msk.bf16.gmra.mrb[24].mxu0 %vm696_vm3, %v5626_v43 }
 0x165   : > { %5965 = vmatmul.mubr.msk.bf16.gmra.mrb[24].mxu1 %vm696_vm3, %v5350_v62  ;;  %6104 = vmatprep.mubr.msk.bf16.mxu0 %vm696_vm3, %v5627_v50 }
 0x166   : > { %5968 = vmatprep.mubr.msk.bf16.mxu1 %vm696_vm3, %v5351_v56 }
 0x16c   : > { %6105 = vmatmul.mubr.msk.bf16.gmra.mrb[28].mxu0 %vm696_vm3, %v5628_v29 }
 0x16d   : > { %5969 = vmatmul.mubr.msk.bf16.gmra.mrb[28].mxu1 %vm696_vm3, %v5352_v14 }
 0x1e8   : > { %v5908_v63 = vpop.f32.mrb[0].mxu1 }
 0x1e9   : > { %v1859_v4 = vpop.f32.mrb[1].mxu1 }
 0x1ea   : > { %v5909_v43 = vpop.f32.mrb[2].mxu1 }
 0x1eb   : > { %v1862_v16 = vpop.f32.mrb[3].mxu1 }
 0x1f0   : > { %v5912_v58 = vpop.f32.mrb[4].mxu1 }
 0x1f1   : > { %v1875_v50 = vpop.f32.mrb[5].mxu1 }
 0x1f2   : > { %v5913_v54 = vpop.f32.mrb[6].mxu1 }
 0x1f3   : > { %v1878_v18 = vpop.f32.mrb[7].mxu1 }
 0x1f8   : > { %v8234_v11 = vpop.f32.mrb[8].mxu1 }
 0x1f9   : > { %v8236_v32 = vpop.f32.mrb[9].mxu1 }
 0x1fa   : > { %v8238_v24 = vpop.f32.mrb[10].mxu1 }
 0x1fb   : > { %v8240_v5 = vpop.f32.mrb[11].mxu1 }
 0x200   : > { %v8242_v55 = vpop.f32.mrb[12].mxu1 }
 0x201   : > { %v8244_v29 = vpop.f32.mrb[13].mxu1 }
 0x202   : > { %v8246_v19 = vpop.f32.mrb[14].mxu1 }
 0x203   : > { %v8248_v41 = vpop.f32.mrb[15].mxu1 }
 0x207   : > { %v6078_v52 = vpop.f32.mrb[0].mxu0 }
 0x208   : > { %v6110_v39 = vadd.f32 %v6078_v52, %v5908_v63  ;;  %v4610_v0 = vpop.f32.mrb[1].mxu0 }
 0x209   : > { %v6111_v36 = vadd.f32 %v4610_v0, %v1859_v4  ;;  %v6079_v10 = vpop.f32.mrb[2].mxu0 }
 0x20a   : > { %v4778_v59 = vadd.f32 %v6110_v39, %v8254_v2  ;;  %v6112_v38 = vadd.f32 %v6079_v10, %v5909_v43  ;;  %v4613_v37 = vpop.f32.mrb[3].mxu0 }
 0x20b   : > { %v4776_v26 = vadd.f32 %v6111_v36, %v8254_v2  ;;  %v6113_v35 = vadd.f32 %v4613_v37, %v1862_v16 }
 0x20c   : > { %4811 = vst.msk [vmem:[%s8259_s24 + $0x10] sm:$0xff] %vm4808_vm8, %v4778_v59  ;;  %v4779_v34 = vadd.f32 %v6112_v38, %v8254_v2  ;;  %v4914_v23 = vmul.f32 %v4778_v59, %v4778_v59  ;;  %v4844_v28 = vsel %vm4808_vm8, %v4778_v59, 0.0 }
 0x20d   : > { %4809 = vst.msk [vmem:[%s8259_s24] sm:$0xff] %vm4808_vm8, %v4776_v26  ;;  %v4912_v6 = vmul.f32 %v4776_v26, %v4776_v26  ;;  %v4777_v49 = vadd.f32 %v6113_v35, %v8254_v2  ;;  %v4841_v25 = vsel %vm4808_vm8, %v4776_v26, 0.0 }
 0x20e   : > { %4812 = vst.msk [vmem:[%s8259_s24 + $0x18] sm:$0xff] %vm4808_vm8, %v4779_v34  ;;  %v4915_v22 = vmul.f32 %v4779_v34, %v4779_v34  ;;  %v4947_v42 = vsel %vm4808_vm8, %v4914_v23, 0.0  ;;  %v4846_v33 = vsel %vm4808_vm8, %v4779_v34, 0.0 }
 0x20f   : > { %4810 = vst.msk [vmem:[%s8259_s24 + $0x8] sm:$0xff] %vm4808_vm8, %v4777_v49  ;;  %v4842_v1 = vsel %vm4808_vm8, %v4777_v49, 0.0  ;;  %v4913_v7 = vmul.f32 %v4777_v49, %v4777_v49  ;;  %v6082_v61 = vpop.f32.mrb[4].mxu0  ;;  %v4944_v45 = vsel %vm4808_vm8, %v4912_v6, 0.0 }
 0x210   : > { %v4843_v44 = vadd.f32 %v4842_v1, %v4841_v25  ;;  %v6114_v3 = vadd.f32 %v6082_v61, %v5912_v58  ;;  %v4626_v51 = vpop.f32.mrb[5].mxu0  ;;  %v4949_v57 = vsel %vm4808_vm8, %v4915_v22, 0.0 }
 0x211   : > { %v4945_v27 = vsel %vm4808_vm8, %v4913_v7, 0.0  ;;  %v6115_v53 = vadd.f32 %v4626_v51, %v1875_v50  ;;  %v6083_v21 = vpop.f32.mrb[6].mxu0 }
 0x212   : > { %v4845_v47 = vadd.f32 %v4844_v28, %v4843_v44  ;;  %v4946_v46 = vadd.f32 %v4945_v27, %v4944_v45  ;;  %v4782_v15 = vadd.f32 %v6114_v3, %v8254_v2  ;;  %v6116_v60 = vadd.f32 %v6083_v21, %v5913_v54  ;;  %v4629_v20 = vpop.f32.mrb[7].mxu0 }
 0x213   : > { %v4780_v12 = vadd.f32 %v6115_v53, %v8254_v2  ;;  %v6117_v31 = vadd.f32 %v4629_v20, %v1878_v18 }
 0x214   : > { %v4948_v8 = vadd.f32 %v4947_v42, %v4946_v46  ;;  %4815 = vst.msk [vmem:[%s8259_s24 + $0x30] sm:$0xff] %vm4808_vm8, %v4782_v15  ;;  %v4847_v48 = vadd.f32 %v4846_v33, %v4845_v47  ;;  %v4783_v40 = vadd.f32 %v6116_v60, %v8254_v2  ;;  %v4918_v9 = vmul.f32 %v4782_v15, %v4782_v15 }
 0x215   : > { %4813 = vst.msk [vmem:[%s8259_s24 + $0x20] sm:$0xff] %vm4808_vm8, %v4780_v12  ;;  %v4848_v62 = vsel %vm4808_vm8, %v4780_v12, 0.0  ;;  %v4916_v56 = vmul.f32 %v4780_v12, %v4780_v12  ;;  %v4781_v13 = vadd.f32 %v6117_v31, %v8254_v2  ;;  %v4852_v18 = vsel %vm4808_vm8, %v4782_v15, 0.0 }
 0x216   : > { %v4849_v17 = vadd.f32 %v4848_v62, %v4847_v48  ;;  %v4950_v30 = vadd.f32 %v4949_v57, %v4948_v8  ;;  %4816 = vst.msk [vmem:[%s8259_s24 + $0x38] sm:$0xff] %vm4808_vm8, %v4783_v40  ;;  %v4919_v52 = vmul.f32 %v4783_v40, %v4783_v40 }
 0x217   : > { %v4951_v14 = vsel %vm4808_vm8, %v4916_v56, 0.0  ;;  %4814 = vst.msk [vmem:[%s8259_s24 + $0x28] sm:$0xff] %vm4808_vm8, %v4781_v13  ;;  %v4850_v63 = vsel %vm4808_vm8, %v4781_v13, 0.0  ;;  %v6086_v4 = vpop.f32.mrb[8].mxu0  ;;  %v4917_v58 = vmul.f32 %v4781_v13, %v4781_v13 }
 0x218   : > { %v4952_v43 = vadd.f32 %v4951_v14, %v4950_v30  ;;  %v4851_v16 = vadd.f32 %v4850_v63, %v4849_v17  ;;  %v6118_v50 = vadd.f32 %v6086_v4, %v8234_v11  ;;  %v4642_v54 = vpop.f32.mrb[9].mxu0  ;;  %v4854_v11 = vsel %vm4808_vm8, %v4783_v40, 0.0 }
 0x219   : > { %v6119_v39 = vadd.f32 %v4642_v54, %v8236_v32  ;;  %v6087_v0 = vpop.f32.mrb[10].mxu0  ;;  %v4953_v10 = vsel %vm4808_vm8, %v4917_v58, 0.0  ;;  %v4955_v32 = vsel %vm4808_vm8, %v4918_v9, 0.0  ;;  %v4957_v7 = vsel %vm4808_vm8, %v4919_v52, 0.0 }
 0x21a   : > { %v4853_v36 = vadd.f32 %v4852_v18, %v4851_v16  ;;  %v4786_v59 = vadd.f32 %v6118_v50, %v8254_v2  ;;  %v6120_v38 = vadd.f32 %v6087_v0, %v8238_v24  ;;  %v4645_v37 = vpop.f32.mrb[11].mxu0  ;;  %v4954_v26 = vadd.f32 %v4953_v10, %v4952_v43 }
 0x21b   : > { %v4784_v35 = vadd.f32 %v6119_v39, %v8254_v2  ;;  %v6121_v34 = vadd.f32 %v4645_v37, %v8240_v5 }
 0x21c   : > { %4819 = vst.msk [vmem:[%s8259_s24 + $0x50] sm:$0xff] %vm4808_vm8, %v4786_v59  ;;  %v4855_v6 = vadd.f32 %v4854_v11, %v4853_v36  ;;  %v4787_v49 = vadd.f32 %v6120_v38, %v8254_v2  ;;  %v4956_v23 = vadd.f32 %v4955_v32, %v4954_v26  ;;  %v4922_v28 = vmul.f32 %v4786_v59, %v4786_v59 }
 0x21d   : > { %4817 = vst.msk [vmem:[%s8259_s24 + $0x40] sm:$0xff] %vm4808_vm8, %v4784_v35  ;;  %v4856_v24 = vsel %vm4808_vm8, %v4784_v35, 0.0  ;;  %v4920_v25 = vmul.f32 %v4784_v35, %v4784_v35  ;;  %v4785_v1 = vadd.f32 %v6121_v34, %v8254_v2  ;;  %v4860_v21 = vsel %vm4808_vm8, %v4786_v59, 0.0 }
 0x21e   : > { %v4857_v61 = vadd.f32 %v4856_v24, %v4855_v6  ;;  %4820 = vst.msk [vmem:[%s8259_s24 + $0x58] sm:$0xff] %vm4808_vm8, %v4787_v49  ;;  %v4958_v5 = vadd.f32 %v4957_v7, %v4956_v23  ;;  %v4923_v20 = vmul.f32 %v4787_v49, %v4787_v49 }
 0x21f   : > { %v4959_v22 = vsel %vm4808_vm8, %v4920_v25, 0.0  ;;  %4818 = vst.msk [vmem:[%s8259_s24 + $0x48] sm:$0xff] %vm4808_vm8, %v4785_v1  ;;  %v4858_v44 = vsel %vm4808_vm8, %v4785_v1, 0.0  ;;  %v4921_v3 = vmul.f32 %v4785_v1, %v4785_v1  ;;  %v6090_v51 = vpop.f32.mrb[12].mxu0 }
 0x220   : > { %v4859_v45 = vadd.f32 %v4858_v44, %v4857_v61  ;;  %v6122_v27 = vadd.f32 %v6090_v51, %v8242_v55  ;;  %v4658_v53 = vpop.f32.mrb[13].mxu0  ;;  %v4960_v47 = vadd.f32 %v4959_v22, %v4958_v5  ;;  %v4862_v55 = vsel %vm4808_vm8, %v4787_v49, 0.0 }
 0x221   : > { %v4961_v46 = vsel %vm4808_vm8, %v4921_v3, 0.0  ;;  %v6123_v15 = vadd.f32 %v4658_v53, %v8244_v29  ;;  %v6091_v60 = vpop.f32.mrb[14].mxu0  ;;  %v4963_v29 = vsel %vm4808_vm8, %v4922_v28, 0.0  ;;  %v4965_v30 = vsel %vm4808_vm8, %v4923_v20, 0.0 }
 0x222   : > { %v4861_v42 = vadd.f32 %v4860_v21, %v4859_v45  ;;  %v4790_v33 = vadd.f32 %v6122_v27, %v8254_v2  ;;  %v6124_v12 = vadd.f32 %v6091_v60, %v8246_v19  ;;  %v4661_v31 = vpop.f32.mrb[15].mxu0  ;;  %v4962_v57 = vadd.f32 %v4961_v46, %v4960_v47 }
 0x223   : > { %v4788_v8 = vadd.f32 %v6123_v15, %v8254_v2  ;;  %v6125_v48 = vadd.f32 %v4661_v31, %v8248_v41 }
 0x224   : > { %4823 = vst.msk [vmem:[%s8259_s24 + $0x70] sm:$0xff] %vm4808_vm8, %v4790_v33  ;;  %v4863_v62 = vadd.f32 %v4862_v55, %v4861_v42  ;;  %v4791_v56 = vadd.f32 %v6124_v12, %v8254_v2  ;;  %v4964_v40 = vadd.f32 %v4963_v29, %v4962_v57  ;;  %v4926_v16 = vmul.f32 %v4790_v33, %v4790_v33 }
 0x225   : > { %4821 = vst.msk [vmem:[%s8259_s24 + $0x60] sm:$0xff] %vm4808_vm8, %v4788_v8  ;;  %v4864_v19 = vsel %vm4808_vm8, %v4788_v8, 0.0  ;;  %v4924_v13 = vmul.f32 %v4788_v8, %v4788_v8  ;;  %v4789_v17 = vadd.f32 %v6125_v48, %v8254_v2  ;;  %v4868_v18 = vsel %vm4808_vm8, %v4790_v33, 0.0 }
 0x226   : > { %v4865_v9 = vadd.f32 %v4864_v19, %v4863_v62  ;;  %4824 = vst.msk [vmem:[%s8259_s24 + $0x78] sm:$0xff] %vm4808_vm8, %v4791_v56  ;;  %v4966_v41 = vadd.f32 %v4965_v30, %v4964_v40  ;;  %v4927_v59 = vmul.f32 %v4791_v56, %v4791_v56  ;;  %v4870_v35 = vsel %vm4808_vm8, %v4791_v56, 0.0 }
 0x227   : > { %v4967_v14 = vsel %vm4808_vm8, %v4924_v13, 0.0  ;;  %4822 = vst.msk [vmem:[%s8259_s24 + $0x68] sm:$0xff] %vm4808_vm8, %v4789_v17  ;;  %v4866_v63 = vsel %vm4808_vm8, %v4789_v17, 0.0  ;;  %v4925_v4 = vmul.f32 %v4789_v17, %v4789_v17  ;;  %v6094_v43 = vpop.f32.mrb[16].mxu0  ;;  %v4971_v23 = vsel %vm4808_vm8, %v4926_v16, 0.0 }
 0x228   : > { %v4867_v58 = vadd.f32 %v4866_v63, %v4865_v9  ;;  %v5958_v50 = vpop.f32.mrb[16].mxu1  ;;  %v4674_v54 = vpop.f32.mrb[17].mxu0  ;;  %v4968_v52 = vadd.f32 %v4967_v14, %v4966_v41  ;;  %v4973_v5 = vsel %vm4808_vm8, %v4927_v59, 0.0 }
 0x229   : > { %v4969_v39 = vsel %vm4808_vm8, %v4925_v4, 0.0  ;;  %v6126_v0 = vadd.f32 %v6094_v43, %v5958_v50  ;;  %v2649_v36 = vpop.f32.mrb[17].mxu1  ;;  %v6095_v10 = vpop.f32.mrb[18].mxu0 }
 0x22a   : > { %v4869_v38 = vadd.f32 %v4868_v18, %v4867_v58  ;;  %v6127_v37 = vadd.f32 %v4674_v54, %v2649_v36  ;;  %v5959_v11 = vpop.f32.mrb[18].mxu1  ;;  %v4677_v26 = vpop.f32.mrb[19].mxu0  ;;  %v4970_v34 = vadd.f32 %v4969_v39, %v4968_v52 }
 0x22b   : > { %v4794_v32 = vadd.f32 %v6126_v0, %v8254_v2  ;;  %v6128_v6 = vadd.f32 %v6095_v10, %v5959_v11  ;;  %v2652_v49 = vpop.f32.mrb[19].mxu1 }
 0x22c   : > { %v4792_v24 = vadd.f32 %v6127_v37, %v8254_v2  ;;  %v4871_v25 = vadd.f32 %v4870_v35, %v4869_v38  ;;  %v6129_v1 = vadd.f32 %v4677_v26, %v2652_v49  ;;  %v4972_v7 = vadd.f32 %v4971_v23, %v4970_v34 }
 0x22d   : > { %4827 = vst.msk [vmem:[%s8259_s24 + $0x90] sm:$0xff] %vm4808_vm8, %v4794_v32  ;;  %v4795_v61 = vadd.f32 %v6128_v6, %v8254_v2  ;;  %v4930_v27 = vmul.f32 %v4794_v32, %v4794_v32  ;;  %v4876_v55 = vsel %vm4808_vm8, %v4794_v32, 0.0 }
 0x22e   : > { %4825 = vst.msk [vmem:[%s8259_s24 + $0x80] sm:$0xff] %vm4808_vm8, %v4792_v24  ;;  %v4872_v22 = vsel %vm4808_vm8, %v4792_v24, 0.0  ;;  %v4928_v44 = vmul.f32 %v4792_v24, %v4792_v24  ;;  %v4793_v3 = vadd.f32 %v6129_v1, %v8254_v2  ;;  %v4974_v28 = vadd.f32 %v4973_v5, %v4972_v7 }
 0x22f   : > { %v4873_v51 = vadd.f32 %v4872_v22, %v4871_v25  ;;  %4828 = vst.msk [vmem:[%s8259_s24 + $0x98] sm:$0xff] %vm4808_vm8, %v4795_v61  ;;  %v6098_v45 = vpop.f32.mrb[20].mxu0  ;;  %v4931_v20 = vmul.f32 %v4795_v61, %v4795_v61  ;;  %v4979_v17 = vsel %vm4808_vm8, %v4930_v27, 0.0  ;;  %v4878_v30 = vsel %vm4808_vm8, %v4795_v61, 0.0 }
 0x230   : > { %v4975_v53 = vsel %vm4808_vm8, %v4928_v44, 0.0  ;;  %4826 = vst.msk [vmem:[%s8259_s24 + $0x88] sm:$0xff] %vm4808_vm8, %v4793_v3  ;;  %v4874_v21 = vsel %vm4808_vm8, %v4793_v3, 0.0  ;;  %v4929_v47 = vmul.f32 %v4793_v3, %v4793_v3  ;;  %v5962_v46 = vpop.f32.mrb[20].mxu1  ;;  %v4690_v15 = vpop.f32.mrb[21].mxu0 }
 0x231   : > { %v4976_v60 = vadd.f32 %v4975_v53, %v4974_v28  ;;  %v4875_v42 = vadd.f32 %v4874_v21, %v4873_v51  ;;  %v6130_v33 = vadd.f32 %v6098_v45, %v5962_v46  ;;  %v2665_v12 = vpop.f32.mrb[21].mxu1  ;;  %v6099_v31 = vpop.f32.mrb[22].mxu0  ;;  %v4981_v14 = vsel %vm4808_vm8, %v4931_v20, 0.0 }
 0x232   : > { %v4977_v57 = vsel %vm4808_vm8, %v4929_v47, 0.0  ;;  %v6131_v8 = vadd.f32 %v4690_v15, %v2665_v12  ;;  %v5963_v48 = vpop.f32.mrb[22].mxu1  ;;  %v4693_v29 = vpop.f32.mrb[23].mxu0 }
 0x233   : > { %v4877_v62 = vadd.f32 %v4876_v55, %v4875_v42  ;;  %v4978_v56 = vadd.f32 %v4977_v57, %v4976_v60  ;;  %v4798_v40 = vadd.f32 %v6130_v33, %v8254_v2  ;;  %v6132_v19 = vadd.f32 %v6099_v31, %v5963_v48  ;;  %v2668_v13 = vpop.f32.mrb[23].mxu1 }
 0x234   : > { %v4796_v9 = vadd.f32 %v6131_v8, %v8254_v2  ;;  %v6133_v41 = vadd.f32 %v4693_v29, %v2668_v13 }
 0x235   : > { %v4980_v63 = vadd.f32 %v4979_v17, %v4978_v56  ;;  %4831 = vst.msk [vmem:[%s8259_s24 + $0xb0] sm:$0xff] %vm4808_vm8, %v4798_v40  ;;  %v4879_v4 = vadd.f32 %v4878_v30, %v4877_v62  ;;  %v4799_v58 = vadd.f32 %v6132_v19, %v8254_v2  ;;  %v4934_v39 = vmul.f32 %v4798_v40, %v4798_v40 }
 0x236   : > { %4829 = vst.msk [vmem:[%s8259_s24 + $0xa0] sm:$0xff] %vm4808_vm8, %v4796_v9  ;;  %v4880_v43 = vsel %vm4808_vm8, %v4796_v9, 0.0  ;;  %v4932_v16 = vmul.f32 %v4796_v9, %v4796_v9  ;;  %v4797_v50 = vadd.f32 %v6133_v41, %v8254_v2  ;;  %v4884_v32 = vsel %vm4808_vm8, %v4798_v40, 0.0 }
 0x237   : > { %v4881_v54 = vadd.f32 %v4880_v43, %v4879_v4  ;;  %v4982_v18 = vadd.f32 %v4981_v14, %v4980_v63  ;;  %v6102_v52 = vpop.f32.mrb[24].mxu0  ;;  %4832 = vst.msk [vmem:[%s8259_s24 + $0xb8] sm:$0xff] %vm4808_vm8, %v4799_v58  ;;  %v4935_v6 = vmul.f32 %v4799_v58, %v4799_v58  ;;  %v4886_v22 = vsel %vm4808_vm8, %v4799_v58, 0.0 }
 0x238   : > { %v4983_v0 = vsel %vm4808_vm8, %v4932_v16, 0.0  ;;  %4830 = vst.msk [vmem:[%s8259_s24 + $0xa8] sm:$0xff] %vm4808_vm8, %v4797_v50  ;;  %v4882_v36 = vsel %vm4808_vm8, %v4797_v50, 0.0  ;;  %v5966_v10 = vpop.f32.mrb[24].mxu1  ;;  %v4706_v59 = vpop.f32.mrb[25].mxu0  ;;  %v4933_v11 = vmul.f32 %v4797_v50, %v4797_v50  ;;  %v4987_v28 = vsel %vm4808_vm8, %v4934_v39, 0.0 }
 0x239   : > { %v4984_v38 = vadd.f32 %v4983_v0, %v4982_v18  ;;  %v4883_v37 = vadd.f32 %v4882_v36, %v4881_v54  ;;  %v6134_v26 = vadd.f32 %v6102_v52, %v5966_v10  ;;  %v2681_v35 = vpop.f32.mrb[25].mxu1  ;;  %v6103_v34 = vpop.f32.mrb[26].mxu0  ;;  %v4989_v15 = vsel %vm4808_vm8, %v4935_v6, 0.0 }
 0x23a   : > { %v6135_v49 = vadd.f32 %v4706_v59, %v2681_v35  ;;  %v5967_v23 = vpop.f32.mrb[26].mxu1  ;;  %v4709_v24 = vpop.f32.mrb[27].mxu0  ;;  %v4985_v1 = vsel %vm4808_vm8, %v4933_v11, 0.0 }
 0x23b   : > { %v4885_v25 = vadd.f32 %v4884_v32, %v4883_v37  ;;  %v4802_v7 = vadd.f32 %v6134_v26, %v8254_v2  ;;  %v6136_v61 = vadd.f32 %v6103_v34, %v5967_v23  ;;  %v2684_v5 = vpop.f32.mrb[27].mxu1  ;;  %v4986_v44 = vadd.f32 %v4985_v1, %v4984_v38 }
 0x23c   : > { %v4800_v3 = vadd.f32 %v6135_v49, %v8254_v2  ;;  %v6137_v51 = vadd.f32 %v4709_v24, %v2684_v5 }
 0x23d   : > { %4835 = vst.msk [vmem:[%s8259_s24 + $0xd0] sm:$0xff] %vm4808_vm8, %v4802_v7  ;;  %v4887_v45 = vadd.f32 %v4886_v22, %v4885_v25  ;;  %v4803_v27 = vadd.f32 %v6136_v61, %v8254_v2  ;;  %v4988_v53 = vadd.f32 %v4987_v28, %v4986_v44  ;;  %v4938_v60 = vmul.f32 %v4802_v7, %v4802_v7 }
 0x23e   : > { %4833 = vst.msk [vmem:[%s8259_s24 + $0xc0] sm:$0xff] %vm4808_vm8, %v4800_v3  ;;  %v4888_v21 = vsel %vm4808_vm8, %v4800_v3, 0.0  ;;  %v4936_v47 = vmul.f32 %v4800_v3, %v4800_v3  ;;  %v4801_v46 = vadd.f32 %v6137_v51, %v8254_v2  ;;  %v4892_v19 = vsel %vm4808_vm8, %v4802_v7, 0.0 }
 0x23f   : > { %v4889_v20 = vadd.f32 %v4888_v21, %v4887_v45  ;;  %4836 = vst.msk [vmem:[%s8259_s24 + $0xd8] sm:$0xff] %vm4808_vm8, %v4803_v27  ;;  %v6106_v42 = vpop.f32.mrb[28].mxu0  ;;  %v4990_v33 = vadd.f32 %v4989_v15, %v4988_v53  ;;  %v4939_v48 = vmul.f32 %v4803_v27, %v4803_v27  ;;  %v4995_v14 = vsel %vm4808_vm8, %v4938_v60, 0.0 }
 0x240   : > { %v4991_v12 = vsel %vm4808_vm8, %v4936_v47, 0.0  ;;  %4834 = vst.msk [vmem:[%s8259_s24 + $0xc8] sm:$0xff] %vm4808_vm8, %v4801_v46  ;;  %v4890_v31 = vsel %vm4808_vm8, %v4801_v46, 0.0  ;;  %v4937_v55 = vmul.f32 %v4801_v46, %v4801_v46  ;;  %v5970_v57 = vpop.f32.mrb[28].mxu1  ;;  %v4722_v8 = vpop.f32.mrb[29].mxu0  ;;  %v4894_v58 = vsel %vm4808_vm8, %v4803_v27, 0.0 }
 0x241   : > { %v4891_v29 = vadd.f32 %v4890_v31, %v4889_v20  ;;  %v6138_v62 = vadd.f32 %v6106_v42, %v5970_v57  ;;  %v2697_v56 = vpop.f32.mrb[29].mxu1  ;;  %v6107_v40 = vpop.f32.mrb[30].mxu0  ;;  %v4992_v13 = vadd.f32 %v4991_v12, %v4990_v33  ;;  %v4997_v52 = vsel %vm4808_vm8, %v4939_v48, 0.0 }
 0x242   : > { %v4993_v17 = vsel %vm4808_vm8, %v4937_v55, 0.0  ;;  %v6139_v30 = vadd.f32 %v4722_v8, %v2697_v56  ;;  %v5971_v9 = vpop.f32.mrb[30].mxu1  ;;  %v4725_v41 = vpop.f32.mrb[31].mxu0 }
 0x243   : > { %v4893_v63 = vadd.f32 %v4892_v19, %v4891_v29  ;;  %v4806_v4 = vadd.f32 %v6138_v62, %v8254_v2  ;;  %v6140_v43 = vadd.f32 %v6107_v40, %v5971_v9  ;;  %v2700_v16 = vpop.f32.mrb[31].mxu1  ;;  %v4994_v50 = vadd.f32 %v4993_v17, %v4992_v13 }
 0x244   : > { %v4804_v54 = vadd.f32 %v6139_v30, %v8254_v2  ;;  %v6141_v18 = vadd.f32 %v4725_v41, %v2700_v16 }
 0x245   : > { %4839 = vst.msk [vmem:[%s8259_s24 + $0xf0] sm:$0xff] %vm4808_vm8, %v4806_v4  ;;  %v4942_v39 = vmul.f32 %v4806_v4, %v4806_v4  ;;  %v4895_v0 = vadd.f32 %v4894_v58, %v4893_v63  ;;  %v4807_v36 = vadd.f32 %v6140_v43, %v8254_v2  ;;  %v4996_v10 = vadd.f32 %v4995_v14, %v4994_v50 }
 0x246   : > { %4837 = vst.msk [vmem:[%s8259_s24 + $0xe0] sm:$0xff] %vm4808_vm8, %v4804_v54  ;;  %v4896_v59 = vsel %vm4808_vm8, %v4804_v54, 0.0  ;;  %v4940_v38 = vmul.f32 %v4804_v54, %v4804_v54  ;;  %v4805_v37 = vadd.f32 %v6141_v18, %v8254_v2  ;;  %v4900_v25 = vsel %vm4808_vm8, %v4806_v4, 0.0 }
 0x247   : > { %v5003_v11 = vsel %vm4808_vm8, %v4942_v39, 0.0  ;;  %v4897_v26 = vadd.f32 %v4896_v59, %v4895_v0  ;;  %4840 = vst.msk [vmem:[%s8259_s24 + $0xf8] sm:$0xff] %vm4808_vm8, %v4807_v36  ;;  %v4902_v35 = vsel %vm4808_vm8, %v4807_v36, 0.0  ;;  %v4943_v34 = vmul.f32 %v4807_v36, %v4807_v36 }
 0x248   : > { %v4998_v32 = vadd.f32 %v4997_v52, %v4996_v10  ;;  %v4999_v6 = vsel %vm4808_vm8, %v4940_v38, 0.0  ;;  %4838 = vst.msk [vmem:[%s8259_s24 + $0xe8] sm:$0xff] %vm4808_vm8, %v4805_v37  ;;  %v4898_v49 = vsel %vm4808_vm8, %v4805_v37, 0.0  ;;  %v4941_v23 = vmul.f32 %v4805_v37, %v4805_v37 }
 0x249   : > { %v5005_v24 = vsel %vm4808_vm8, %v4943_v34, 0.0  ;;  %v4899_v2 = vadd.f32 %v4898_v49, %v4897_v26 }
 0x24a   : > { %v5000_v1 = vadd.f32 %v4999_v6, %v4998_v32  ;;  %v5001_v7 = vsel %vm4808_vm8, %v4941_v23, 0.0 }
 0x24b   : > { %v4901_v61 = vadd.f32 %v4900_v25, %v4899_v2 }
 0x24c   : > { %v5002_v5 = vadd.f32 %v5001_v7, %v5000_v1 }
 0x24d   : > { %v4903_v22 = vadd.f32 %v4902_v35, %v4901_v61 }
 0x24e   : > { %v5004_v44 = vadd.f32 %v5003_v11, %v5002_v5 }
 0x24f   : > { %v4904_v3 = vrot.slane %v4903_v22, 4 }
 0x250   : > { %v5006_v51 = vadd.f32 %v5005_v24, %v5004_v44 }
 0x251   : > { %v4905_v28 = vadd.f32 %v4904_v3, %v4903_v22 }
 0x252   : > { %v5007_v45 = vrot.slane %v5006_v51, 4 }
 0x253   : > { %v4906_v27 = vrot.slane %v4905_v28, 2 }
 0x254   : > { %v5008_v53 = vadd.f32 %v5007_v45, %v5006_v51 }
 0x255   : > { %v4907_v21 = vadd.f32 %v4906_v27, %v4905_v28 }
 0x256   : > { %v5009_v47 = vrot.slane %v5008_v53, 2 }
 0x257   : > { %v4908_v46 = vrot.slane %v4907_v21, 1 }
 0x258   : > { %v5010_v15 = vadd.f32 %v5009_v47, %v5008_v53 }
 0x259   : > { %v4909_v60 = vadd.f32 %v4908_v46, %v4907_v21 }
 0x25a   : > { %v5011_v20 = vrot.slane %v5010_v15, 1 }
 0x25b   : > { %4911 = vst.msk [vmem:[%s208_s28] sm:$0x1] %vm4910_vm9, %v4909_v60 }
 0x25c   : > { %v5012_v42 = vadd.f32 %v5011_v20, %v5010_v15 }
 0x25e   : > { %5013 = vst.msk [vmem:[%s208_s28 + $0x1] sm:$0x1] %vm4910_vm9, %v5012_v42 }
 0x25f PF: > { %s15_s15 = sadd.s32 1, %s6496_s15  }
 0x260   : > { %p12_p4 = scmp.ge.s32.totalorder %s15_s15, 4  }
 0x262   :  { %14 = sbr.rel (!%p12_p4) target bundleno = 1 (0x1), region = 84 }

// kernel: double_conv.4
= control target key start
LH: loop header
LB: loop body
LE: loop exit
PB: predicated region body
PF: predicated region fallthrough
CT: control target
= control target key end

     0   :  { %s7184_s21 = smov 0   ;;  %s9249_s0 = inlined_call_operand.vmem [shape: f32[2,16,16,8], index: 0, kind: input, shape index: {}]   ;;  %s9250_s1 = inlined_call_operand.vmem [shape: f32[1,8], index: 1, kind: input, shape index: {}]   ;;  %s9251_s2 = inlined_call_operand.vmem [shape: f32[1,8], index: 2, kind: input, shape index: {}]   ;;  %s9252_s3 = inlined_call_operand.vmem [shape: bf16[9,8,8], index: 3, kind: input, shape index: {}]   ;;  %s9253_s4 = inlined_call_operand.vmem [shape: f32[1,8], index: 4, kind: input, shape index: {}]   ;;  %s9254_s5 = inlined_call_operand.vmem [shape: f32[2,16,16,8], index: 5, kind: output, shape index: {0}]   ;;  %s9255_s6 = inlined_call_operand.vmem [shape: f32[2,2,8], index: 6, kind: output, shape index: {1}]  }
   0x1 LB: > { %s5886_s22 = sadd.s32 4294967295, %s7146_s21   ;;  %p5890_p0 = scmp.ge.s32.totalorder %s7146_s21, 1  ;;  %s7146_s21 = sphi %s7184_s21, %s17_s21  }
   0x2   : > { %p215_p1 = scmp.lt.s32.totalorder %s7146_s21, 3 }
   0x4   : > { %p216_p2 = pnand %p5890_p0, %p215_p1 }
   0x6   : > { %219 = sbr.rel (%p216_p2) target bundleno = 707 (0x2c3), region = 40 }
   0xd   : > { %v5930_v0 = vld [vmem:[%s9252_s3 + $0x4] sm:$0xf]  ;;  %vm1534_vm0 = vcmask 1043456   ;;  %v6077_v1 = vld [vmem:[%s9252_s3 + $0x10] sm:$0xf]  ;;  %vm406_vm1 = vcmask 60416  }
   0xe   : > { %7028 = vmatprep.subr.msk.bf16.mxu1 %vm1534_vm0, %v5930_v0  ;;  %7032 = vmatprep.subr.msk.bf16.mxu0 %vm1534_vm0, %v6077_v1  ;;  %v1536_v2 = vsel %vm1534_vm0, %v5930_v0, 0  ;;  %v7202_v3 = vsel %vm1534_vm0, %v6077_v1, 0  ;;  %vm409_vm2 = vcmask 57344   ;;  %p7206_p3 = scmp.lt.s32.totalorder %s5886_s22, 1  ;;  %v7148_v4 = vmov 0  }
   0xf   : > { %9270 = vst [vmem:[#allocation3_spill] sm:$0xff] %v7202_v3  ;;  %6465 = vmatpush3.bf16.msra.mxu1 %v1536_v2  ;;  %6601 = vmatpush3.bf16.msra.mxu0 %v7202_v3  ;;  %407 = vst.msk [vmem:[#allocation2] sm:$0xf] %vm406_vm1, %v7148_v4  ;;  %v7274_v5 = vld [vmem:[%s9250_s1] ss:$0 sm:$0xff]  ;;  %vm1485_vm8 = vcmask 64512  }
  0x10   : > { %408 = vst.msk [vmem:[#allocation2 + $0x4] sm:$0xf] %vm406_vm1, %v7148_v4  ;;  %411 = vst.msk [vmem:[#allocation2 + $0xc] sm:$0xf] %vm406_vm1, %v7148_v4  ;;  %s9339_s22 = smov (!%p7206_p3, %s5886_s22), 1  ;;  %vm2039_vm13 = vcmask 1042432  }
  0x11   : > { %410 = vst.msk [vmem:[#allocation2 + $0x8] sm:$0x1] %vm409_vm2, %v7148_v4  ;;  %413 = vst.msk [vmem:[#allocation2 + $0x14] sm:$0x1] %vm409_vm2, %v7148_v4  ;;  %s6277_s30 = sshll.u32 %s9339_s22, 8  ;;  %vm2040_vm14 = vcmask 1046532  }
  0x12   : > { %412 = vst.msk [vmem:[#allocation2 + $0x10] sm:$0xf] %vm406_vm1, %v7148_v4  ;;  %414 = vst.msk [vmem:[#allocation2 + $0x18] sm:$0xf] %vm406_vm1, %v7148_v4  ;;  %v7280_v6 = vld [vmem:[%s9252_s3] sm:$0xf]  ;;  %s7292_s13 = scalar_lea.vmem %s9249_s0, %s6277_s30  ;;  %s9070_s23 = scalar_lea.vmem %s9254_s5, %s6277_s30 }
  0x13   : > { %415 = vst.msk [vmem:[#allocation2 + $0x1c] sm:$0xf] %vm406_vm1, %v7148_v4  ;;  %417 = vst.msk [vmem:[#allocation2 + $0x24] sm:$0xf] %vm406_vm1, %v7148_v4  ;;  %v7285_v7 = vld [vmem:[%s9252_s3 + $0x14] sm:$0xf]  ;;  %7029 = vmatprep.subr.msk.bf16.mxu1 %vm1534_vm0, %v7280_v6 }
  0x14   : > { %416 = vst.msk [vmem:[#allocation2 + $0x20] sm:$0x1] %vm409_vm2, %v7148_v4  ;;  %419 = vst.msk [vmem:[#allocation2 + $0x2c] sm:$0x1] %vm409_vm2, %v7148_v4  ;;  %vm1048_vm3 = vsmask.f32 3328  ;;  %7034 = vmatprep.subr.msk.bf16.mxu0 %vm1534_vm0, %v7285_v7 }
  0x15   : > { %418 = vst.msk [vmem:[#allocation2 + $0x28] sm:$0xf] %vm406_vm1, %v7148_v4  ;;  %420 = vst.msk [vmem:[#allocation2 + $0x30] sm:$0xf] %vm406_vm1, %v7148_v4  ;;  %vm1049_vm4 = vsmask.f32 7440 }
  0x16   : > { %421 = vst.msk [vmem:[#allocation2 + $0x34] sm:$0xf] %vm406_vm1, %v7148_v4  ;;  %423 = vst.msk [vmem:[#allocation2 + $0x3c] sm:$0xf] %vm406_vm1, %v7148_v4  ;;  %v7297_v8 = vld [vmem:[%s9251_s2] ss:$0 sm:$0xff] }
  0x17   : > { %422 = vst.msk [vmem:[#allocation2 + $0x38] sm:$0x1] %vm409_vm2, %v7148_v4  ;;  %425 = vst.msk [vmem:[#allocation2 + $0x44] sm:$0x1] %vm409_vm2, %v7148_v4  ;;  %v264_v9 = vld [vmem:[%s7292_s13] sm:$0xff]  ;;  %v265_v10 = vld [vmem:[%s7292_s13 + $0x8] sm:$0xff] }
  0x18   : > { %424 = vst.msk [vmem:[#allocation2 + $0x40] sm:$0xf] %vm406_vm1, %v7148_v4  ;;  %426 = vst.msk [vmem:[#allocation2 + $0x48] sm:$0xf] %vm406_vm1, %v7148_v4  ;;  %vm558_vm5 = vsmask.f32 256  ;;  %v303_v11 = vmul.f32 %v7274_v5, %v264_v9  ;;  %v304_v12 = vmul.f32 %v7274_v5, %v265_v10 }
  0x19   : > { %427 = vst.msk [vmem:[#allocation2 + $0x4c] sm:$0xf] %vm406_vm1, %v7148_v4  ;;  %429 = vst.msk [vmem:[#allocation2 + $0x54] sm:$0xf] %vm406_vm1, %v7148_v4  ;;  %vm559_vm6 = vsmask.f32 4368 }
  0x1a   : > { %428 = vst.msk [vmem:[#allocation2 + $0x50] sm:$0x1] %vm409_vm2, %v7148_v4  ;;  %431 = vst.msk [vmem:[#allocation2 + $0x5c] sm:$0x1] %vm409_vm2, %v7148_v4  ;;  %vm883_vm7 = vsmask.f32 7938  ;;  %v342_v26 = vadd.f32 %v7297_v8, %v303_v11  ;;  %v343_v27 = vadd.f32 %v7297_v8, %v304_v12 }
  0x1b   : > { %430 = vst.msk [vmem:[#allocation2 + $0x58] sm:$0xf] %vm406_vm1, %v7148_v4  ;;  %432 = vst.msk [vmem:[#allocation2 + $0x60] sm:$0xf] %vm406_vm1, %v7148_v4  ;;  %v266_v13 = vld [vmem:[%s7292_s13 + $0x10] sm:$0xff]  ;;  %v267_v14 = vld [vmem:[%s7292_s13 + $0x18] sm:$0xff] }
  0x1c   : > { %433 = vst.msk [vmem:[#allocation2 + $0x64] sm:$0xf] %vm406_vm1, %v7148_v4  ;;  %435 = vst.msk [vmem:[#allocation2 + $0x6c] sm:$0xf] %vm406_vm1, %v7148_v4  ;;  %v268_v15 = vld [vmem:[%s7292_s13 + $0x20] sm:$0xff]  ;;  %v305_v19 = vmul.f32 %v7274_v5, %v266_v13  ;;  %v306_v20 = vmul.f32 %v7274_v5, %v267_v14  ;;  %v374_v34 = vmax.f32 %v342_v26, 0.0 }
  0x1d   : > { %434 = vst.msk [vmem:[#allocation2 + $0x68] sm:$0x1] %vm409_vm2, %v7148_v4  ;;  %437 = vst.msk [vmem:[#allocation2 + $0x74] sm:$0x1] %vm409_vm2, %v7148_v4  ;;  %v999_v16 = vld [vmem:[#allocation2] sm:$0xf]  ;;  %v307_v28 = vmul.f32 %v7274_v5, %v268_v15 }
  0x1e   : > { %436 = vst.msk [vmem:[#allocation2 + $0x70] sm:$0xf] %vm406_vm1, %v7148_v4  ;;  %438 = vst.msk [vmem:[#allocation2 + $0x78] sm:$0xf] %vm406_vm1, %v7148_v4  ;;  %v1000_v17 = vld [vmem:[#allocation2 + $0x4] sm:$0xf]  ;;  %v344_v36 = vadd.f32 %v7297_v8, %v305_v19  ;;  %v345_v40 = vadd.f32 %v7297_v8, %v306_v20  ;;  %v6279_v43 = vpack.c.bf16 %v374_v34, %v374_v34 }
  0x1f   : > { %439 = vst.msk [vmem:[#allocation2 + $0x7c] sm:$0xf] %vm406_vm1, %v7148_v4  ;;  %441 = vst.msk [vmem:[#allocation2 + $0x84] sm:$0xf] %vm406_vm1, %v7148_v4  ;;  %v1032_v18 = vld [vmem:[#allocation2 + $0x8] sm:$0x1]  ;;  %v346_v46 = vadd.f32 %v7297_v8, %v307_v28 }
  0x20   : > { %440 = vst.msk [vmem:[#allocation2 + $0x80] sm:$0x1] %vm409_vm2, %v7148_v4  ;;  %443 = vst.msk [vmem:[#allocation2 + $0x8c] sm:$0x1] %vm409_vm2, %v7148_v4  ;;  %v1052_v21 = vshrl.u32 %v999_v16, 16  ;;  %v1055_v22 = vshll.u32 %v999_v16, 16 }
  0x21   : > { %442 = vst.msk [vmem:[#allocation2 + $0x88] sm:$0xf] %vm406_vm1, %v7148_v4  ;;  %444 = vst.msk [vmem:[#allocation2 + $0x90] sm:$0xf] %vm406_vm1, %v7148_v4  ;;  %v1061_v23 = vshll.u32 %v1000_v17, 16  ;;  %v1065_v24 = vshrl.u32 %v1000_v17, 16 }
  0x22   : > { %445 = vst.msk [vmem:[#allocation2 + $0x94] sm:$0xf] %vm406_vm1, %v7148_v4  ;;  %447 = vst.msk [vmem:[#allocation2 + $0x9c] sm:$0xf] %vm406_vm1, %v7148_v4  ;;  %v1071_v25 = vshll.u32 %v1032_v18, 16  ;;  %v1054_v29 = vrot.slane %v1052_v21, 4 }
  0x23   : > { %446 = vst.msk [vmem:[#allocation2 + $0x98] sm:$0x1] %vm409_vm2, %v7148_v4  ;;  %449 = vst.msk [vmem:[#allocation2 + $0xa4] sm:$0x1] %vm409_vm2, %v7148_v4  ;;  %v1057_v30 = vrot.slane %v1055_v22, 5  ;;  %v1063_v31 = vrot.slane %v1061_v23, 5 }
  0x24   : > { %448 = vst.msk [vmem:[#allocation2 + $0xa0] sm:$0xf] %vm406_vm1, %v7148_v4  ;;  %450 = vst.msk [vmem:[#allocation2 + $0xa8] sm:$0xf] %vm406_vm1, %v7148_v4  ;;  %v1067_v32 = vrot.slane %v1065_v24, 4  ;;  %v1073_v33 = vrot.slane %v1071_v25, 5 }
  0x25   : > { %451 = vst.msk [vmem:[#allocation2 + $0xac] sm:$0xf] %vm406_vm1, %v7148_v4  ;;  %453 = vst.msk [vmem:[#allocation2 + $0xb4] sm:$0xf] %vm406_vm1, %v7148_v4  ;;  %v375_v35 = vmax.f32 %v343_v27, 0.0  ;;  %v269_v37 = vld [vmem:[%s7292_s13 + $0x28] sm:$0xff]  ;;  %v1058_v38 = vor.u32 %v1057_v30, %v1054_v29 }
  0x26   : > { %452 = vst.msk [vmem:[#allocation2 + $0xb0] sm:$0x1] %vm409_vm2, %v7148_v4  ;;  %455 = vst.msk [vmem:[#allocation2 + $0xbc] sm:$0x1] %vm409_vm2, %v7148_v4  ;;  %v1068_v39 = vor.u32 %v1067_v32, %v1063_v31  ;;  %v308_v41 = vmul.f32 %v7274_v5, %v269_v37  ;;  %v376_v45 = vmax.f32 %v344_v36, 0.0  ;;  %v377_v49 = vmax.f32 %v345_v40, 0.0 }
  0x27   : > { %454 = vst.msk [vmem:[#allocation2 + $0xb8] sm:$0xf] %vm406_vm1, %v7148_v4  ;;  %456 = vst.msk [vmem:[#allocation2 + $0xc0] sm:$0xf] %vm406_vm1, %v7148_v4  ;;  %v6280_v44 = vpack.c.bf16 %v375_v35, %v375_v35  ;;  %v1059_v47 = vrot.slane %v1058_v38, 4  ;;  %v562_v51 = vshrl.u32 %v6279_v43, 16 }
  0x28   : > { %457 = vst.msk [vmem:[#allocation2 + $0xc4] sm:$0xf] %vm406_vm1, %v7148_v4  ;;  %459 = vst.msk [vmem:[#allocation2 + $0xcc] sm:$0xf] %vm406_vm1, %v7148_v4  ;;  %v1069_v48 = vrot.slane %v1068_v39, 4  ;;  %v347_v50 = vadd.f32 %v7297_v8, %v308_v41  ;;  %v565_v52 = vshll.u32 %v6279_v43, 16  ;;  %v6281_v59 = vpack.c.bf16 %v376_v45, %v376_v45 }
  0x29   : > { %458 = vst.msk [vmem:[#allocation2 + $0xc8] sm:$0x1] %vm409_vm2, %v7148_v4  ;;  %461 = vst.msk [vmem:[#allocation2 + $0xd4] sm:$0x1] %vm409_vm2, %v7148_v4  ;;  %v570_v53 = vshrl.u32 %v6280_v44, 16  ;;  %v573_v54 = vshll.u32 %v6280_v44, 16  ;;  %v6282_v60 = vpack.c.bf16 %v377_v49, %v377_v49 }
  0x2a   : > { %460 = vst.msk [vmem:[#allocation2 + $0xd0] sm:$0xf] %vm406_vm1, %v7148_v4  ;;  %vm7321_vm9 = vmor %vm1048_vm3, %vm1049_vm4  ;;  %v885_v58 = vld [vmem:[#allocation2 + $0xc] sm:$0xf]  ;;  %v564_v62 = vrot.slane %v562_v51, 7  ;;  %v378_v2 = vmax.f32 %v346_v46, 0.0 }
  0x2b   : > { %v1064_v55 = vsel %vm7321_vm9, %v1059_v47, %v1063_v31  ;;  %v1074_v56 = vsel %vm7321_vm9, %v1069_v48, %v1073_v33  ;;  %vm7333_vm10 = vmor %vm558_vm5, %vm559_vm6  ;;  %v572_v63 = vrot.slane %v570_v53, 7  ;;  %v891_v1 = vld [vmem:[#allocation2 + $0x14] sm:$0x1]  ;;  %v579_v9 = vshrl.u32 %v6281_v59, 16  ;;  %v271_v22 = vld [vmem:[%s7292_s13 + $0x38] sm:$0xff]  ;;  %s5895_s30 = sshll.u32 %s9339_s22, 1 }
  0x2c   : > { %v5931_v61 = vcombine.low %v1064_v55, %v1074_v56  ;;  %vm7339_vm11 = vmand %vm406_vm1, %vm883_vm7  ;;  %v582_v10 = vshll.u32 %v6281_v59, 16  ;;  %v587_v11 = vshrl.u32 %v6282_v60, 16  ;;  %v590_v12 = vshll.u32 %v6282_v60, 16  ;;  %v270_v13 = vld [vmem:[%s7292_s13 + $0x30] sm:$0xff]  ;;  %v894_v26 = vld [vmem:[#allocation2 + $0x18] sm:$0xf]  ;;  %s262_s26 = scalar_lea.vmem %s9255_s6, %s5895_s30 }
  0x2d   : > { %vm7345_vm12 = vmand %vm409_vm2, %vm558_vm5  ;;  %v567_v14 = vor.u32 %v565_v52, %v564_v62  ;;  %v568_v15 = vrot.slane %v564_v62, 4  ;;  %v575_v16 = vor.u32 %v573_v54, %v572_v63  ;;  %v577_v17 = vrot.slane %v572_v63, 4  ;;  %v898_v27 = vld [vmem:[#allocation2 + $0x20] sm:$0x1]  ;;  %v273_v38 = vld [vmem:[%s7292_s13 + $0x48] sm:$0xff] }
  0x2e   : > { %6466 = vmatprep.mubr.msk.bf16.mxu1 %vm1485_vm8, %v5931_v61  ;;  %v581_v18 = vrot.slane %v579_v9, 7  ;;  %v589_v19 = vrot.slane %v587_v11, 7  ;;  %v379_v20 = vmax.f32 %v347_v50, 0.0  ;;  %v6283_v21 = vpack.c.bf16 %v378_v2, %v378_v2  ;;  %v272_v37 = vld [vmem:[%s7292_s13 + $0x40] sm:$0xff]  ;;  %v274_v44 = vld [vmem:[%s7292_s13 + $0x50] sm:$0xff]  ;;  %v275_v54 = vld [vmem:[%s7292_s13 + $0x58] sm:$0xff] }
  0x2f   : > { %v576_v23 = vsel %vm7333_vm10, %v568_v15, %v575_v16  ;;  %v886_v24 = vsel %vm7339_vm11, %v567_v14, %v885_v58  ;;  %v892_v25 = vsel %vm7345_vm12, %v577_v17, %v891_v1  ;;  %v309_v28 = vmul.f32 %v7274_v5, %v270_v13  ;;  %v901_v50 = vld [vmem:[#allocation2 + $0x24] sm:$0xf]  ;;  %vm7638_vm15 = vmor %vm2039_vm13, %vm2040_vm14 }
  0x30   : > { %887 = vst [vmem:[#allocation2 + $0xc] sm:$0xf] %v886_v24  ;;  %888 = vst.msk [vmem:[#allocation2 + $0x10] sm:$0xf] %vm406_vm1, %v576_v23  ;;  %v584_v29 = vor.u32 %v582_v10, %v581_v18  ;;  %v585_v30 = vrot.slane %v581_v18, 4  ;;  %v592_v31 = vor.u32 %v590_v12, %v589_v19  ;;  %v594_v32 = vrot.slane %v589_v19, 4 }
  0x31   : > { %893 = vst [vmem:[#allocation2 + $0x14] sm:$0x1] %v892_v25  ;;  %v6284_v33 = vpack.c.bf16 %v379_v20, %v379_v20  ;;  %v596_v34 = vshrl.u32 %v6283_v21, 16  ;;  %v599_v35 = vshll.u32 %v6283_v21, 16  ;;  %v310_v36 = vmul.f32 %v7274_v5, %v271_v22 }
  0x32   : > { %v593_v39 = vsel %vm7333_vm10, %v585_v30, %v592_v31  ;;  %v895_v40 = vsel %vm7339_vm11, %v584_v29, %v894_v26  ;;  %v899_v41 = vsel %vm7345_vm12, %v594_v32, %v898_v27  ;;  %v348_v43 = vadd.f32 %v7297_v8, %v309_v28 }
  0x33   : > { %896 = vst [vmem:[#allocation2 + $0x18] sm:$0xf] %v895_v40  ;;  %897 = vst.msk [vmem:[#allocation2 + $0x1c] sm:$0xf] %vm406_vm1, %v593_v39  ;;  %v7372_v45 = vrot.slane %v596_v34, 7  ;;  %v604_v46 = vshrl.u32 %v6284_v33, 16  ;;  %v349_v48 = vadd.f32 %v7297_v8, %v310_v36  ;;  %v311_v52 = vmul.f32 %v7274_v5, %v272_v37 }
  0x34   : > { %900 = vst [vmem:[#allocation2 + $0x20] sm:$0x1] %v899_v41  ;;  %v607_v47 = vshll.u32 %v6284_v33, 16  ;;  %v7377_v49 = vsel %vm1534_vm0, %v7280_v6, 0  ;;  %v380_v51 = vmax.f32 %v348_v43, 0.0  ;;  %v312_v53 = vmul.f32 %v7274_v5, %v273_v38 }
  0x35   : > { %v601_v55 = vor.u32 %v599_v35, %v7372_v45  ;;  %v7383_v56 = vrot.slane %v604_v46, 7  ;;  %v381_v58 = vmax.f32 %v349_v48, 0.0  ;;  %v313_v59 = vmul.f32 %v7274_v5, %v274_v44 }
  0x36   : > { %v7388_v60 = vsel %vm1534_vm0, %v7285_v7, 0  ;;  %v602_v6 = vrot.slane %v7372_v45, 4  ;;  %v7391_v61 = vpack.c.bf16 %v380_v51, %v380_v51  ;;  %v7394_v62 = vadd.f32 %v7297_v8, %v311_v52 }
  0x37   : > { %v1001_v63 = vld [vmem:[#allocation2 + $0xc] sm:$0xf]  ;;  %v1002_v1 = vld [vmem:[#allocation2 + $0x10] sm:$0xf]  ;;  %v7397_v9 = vor.u32 %v607_v47, %v7383_v56  ;;  %v902_v10 = vsel %vm7339_vm11, %v601_v55, %v901_v50  ;;  %v7402_v11 = vadd.f32 %v7297_v8, %v312_v53  ;;  %v7405_v7 = vmul.f32 %v7274_v5, %v275_v54 }
  0x38   : > { %v1033_v2 = vld [vmem:[#allocation2 + $0x14] sm:$0x1]  ;;  %v1076_v12 = vshrl.u32 %v1001_v63, 16  ;;  %v1079_v13 = vshll.u32 %v1001_v63, 16  ;;  %v1085_v14 = vshll.u32 %v1002_v1, 16  ;;  %v1089_v15 = vshrl.u32 %v1002_v1, 16 }
  0x39   : > { %v2806_v16 = vld [vmem:[#allocation2 + $0xc] sm:$0xf]  ;;  %903 = vst [vmem:[#allocation2 + $0x24] sm:$0xf] %v902_v10  ;;  %v1095_v17 = vshll.u32 %v1033_v2, 16  ;;  %v7409_v20 = vpack.c.bf16 %v381_v58, %v381_v58  ;;  %v7412_v21 = vadd.f32 %v7297_v8, %v313_v59 }
  0x3a   : > { %v7407_v18 = vld [vmem:[#allocation2 + $0x10] sm:$0xf]  ;;  %v2855_v19 = vshrl.u32 %v2806_v16, 16  ;;  %v1078_v22 = vrot.slane %v1076_v12, 4  ;;  %v1081_v23 = vrot.slane %v1079_v13, 5  ;;  %v1087_v24 = vrot.slane %v1085_v14, 5 }
  0x3b   : > { %v1091_v25 = vrot.slane %v1089_v15, 4  ;;  %v7414_v26 = vld [vmem:[#allocation2 + $0x14] sm:$0x1]  ;;  %v1097_v27 = vrot.slane %v1095_v17, 5  ;;  %v2858_v29 = vshll.u32 %v2806_v16, 16  ;;  %v2864_v30 = vshll.u32 %v7407_v18, 16 }
  0x3c   : > { %v2857_v28 = vrot.slane %v2855_v19, 4  ;;  %v1082_v31 = vor.u32 %v1081_v23, %v1078_v22  ;;  %v2868_v33 = vshrl.u32 %v7407_v18, 16  ;;  %v2874_v34 = vshll.u32 %v7414_v26, 16  ;;  %v2809_v35 = vld [vmem:[#allocation2 + $0x18] sm:$0xf] }
  0x3d   : > { %v1092_v32 = vor.u32 %v1091_v25, %v1087_v24  ;;  %v7419_v36 = vld [vmem:[#allocation2 + $0x1c] sm:$0xf]  ;;  %v2860_v37 = vrot.slane %v2858_v29, 5  ;;  %v2866_v38 = vrot.slane %v2864_v30, 5  ;;  %v3598_v39 = vrot.slane %v7407_v18, 5 }
  0x3e   : > { %v3601_v40 = vrot.slane %v7414_v26, 5  ;;  %v1083_v41 = vrot.slane %v1082_v31, 4  ;;  %v2870_v44 = vrot.slane %v2868_v33, 4  ;;  %v2876_v46 = vrot.slane %v2874_v34, 5  ;;  %v7423_v48 = vld [vmem:[#allocation2 + $0x20] sm:$0x1] }
  0x3f   : > { %v1093_v43 = vrot.slane %v1092_v32, 4  ;;  %v2861_v47 = vor.u32 %v2860_v37, %v2857_v28  ;;  %v2879_v50 = vshrl.u32 %v2809_v35, 16  ;;  %v2882_v51 = vshll.u32 %v2809_v35, 16  ;;  %v1003_v10 = vld [vmem:[#allocation2 + $0x18] sm:$0xf] }
  0x40   : > { %v2888_v52 = vshll.u32 %v7419_v36, 16  ;;  %v1088_v53 = vsel %vm7321_vm9, %v1083_v41, %v1087_v24  ;;  %v2871_v55 = vor.u32 %v2870_v44, %v2866_v38  ;;  %v2892_v58 = vshrl.u32 %v7419_v36, 16  ;;  %v1004_v23 = vld [vmem:[#allocation2 + $0x1c] sm:$0xf]  ;;  %v1034_v24 = vld [vmem:[#allocation2 + $0x20] sm:$0x1] }
  0x41   : > { %v1098_v54 = vsel %vm7321_vm9, %v1093_v43, %v1097_v27  ;;  %v2862_v63 = vrot.slane %v2861_v47, 4  ;;  %v2881_v1 = vrot.slane %v2879_v50, 4  ;;  %v2884_v2 = vrot.slane %v2882_v51, 5  ;;  %v1005_v30 = vld [vmem:[#allocation2 + $0x24] sm:$0xf] }
  0x42   : > { %v5932_v59 = vcombine.low %v1088_v53, %v1098_v54  ;;  %v2872_v12 = vrot.slane %v2871_v55, 4  ;;  %v2890_v13 = vrot.slane %v2888_v52, 5  ;;  %v2894_v14 = vrot.slane %v2892_v58, 4  ;;  %v905_v35 = vld [vmem:[#allocation2 + $0x2c] sm:$0x1] }
  0x43   : > { %v2898_v15 = vshll.u32 %v7423_v48, 16  ;;  %v2867_v16 = vsel %vm7321_vm9, %v2862_v63, %v2866_v38  ;;  %v2885_v17 = vor.u32 %v2884_v2, %v2881_v1  ;;  %v3605_v19 = vrot.slane %v7419_v36, 5  ;;  %v2812_v44 = vld [vmem:[#allocation2 + $0x24] sm:$0xf] }
  0x44   : > { %6467 = vmatmul.mubr.msk.bf16.vlgmr.msra.gmra.mrb[0].mxu1 %vm1485_vm8, %v5932_v59  ;;  %v3608_v22 = vrot.slane %v7423_v48, 5  ;;  %v2877_v25 = vsel %vm7321_vm9, %v2872_v12, %v2876_v46  ;;  %v2895_v27 = vor.u32 %v2894_v14, %v2890_v13  ;;  %v1100_v29 = vshrl.u32 %v1003_v10, 16 }
  0x45   : > { %6499 = vmatpush3.bf16.msra.mxu1 %v7377_v49  ;;  %v2900_v28 = vrot.slane %v2898_v15, 5  ;;  %v6078_v31 = vcombine.low %v2867_v16, %v2877_v25  ;;  %v2886_v32 = vrot.slane %v2885_v17, 4  ;;  %v7442_v33 = vrot.slane %v3605_v19, 4 }
  0x46   : > { %v1103_v34 = vshll.u32 %v1003_v10, 16  ;;  %v2896_v37 = vrot.slane %v2895_v27, 4  ;;  %v1102_v38 = vrot.slane %v1100_v29, 4  ;;  %v1109_v41 = vshll.u32 %v1004_v23, 16 }
  0x47   : > { %v1113_v43 = vshrl.u32 %v1004_v23, 16  ;;  %6602 = vmatprep.mubr.msk.bf16.mxu0 %vm1485_vm8, %v6078_v31  ;;  %v2891_v49 = vsel %vm7321_vm9, %v2886_v32, %v2890_v13  ;;  %v1119_v47 = vshll.u32 %v1034_v24, 16  ;;  %v610_v50 = vsel %vm7333_vm10, %v602_v6, %v7397_v9  ;;  %v7461_v6 = vld [vmem:[%s9252_s3 + $0x18] sm:$0xf] }
  0x48   : > { %v1105_v46 = vrot.slane %v1103_v34, 5  ;;  %v2901_v51 = vsel %vm7321_vm9, %v2896_v37, %v2900_v28  ;;  %v1111_v52 = vrot.slane %v1109_v41, 5  ;;  %v611_v54 = vrot.slane %v7383_v56, 4  ;;  %904 = vst.msk [vmem:[#allocation2 + $0x28] sm:$0xf] %vm406_vm1, %v610_v50 }
  0x49   : > { %v1115_v53 = vrot.slane %v1113_v43, 4  ;;  %v6079_v55 = vcombine.low %v2891_v49, %v2901_v51  ;;  %v1121_v59 = vrot.slane %v1119_v47, 5  ;;  %v1124_v63 = vshrl.u32 %v1005_v30, 16 }
  0x4a   : > { %v1106_v58 = vor.u32 %v1105_v46, %v1102_v38  ;;  %v906_v45 = vsel %vm7345_vm12, %v611_v54, %v905_v35  ;;  %v1127_v2 = vshll.u32 %v1005_v30, 16  ;;  %v2903_v10 = vshrl.u32 %v2812_v44, 16  ;;  %v908_v30 = vld [vmem:[#allocation2 + $0x30] sm:$0xf] }
  0x4b   : > { %v1116_v1 = vor.u32 %v1115_v53, %v1111_v52  ;;  %6603 = vmatmul.mubr.msk.bf16.vlgmr.msra.gmra.mrb[0].mxu0 %vm1485_vm8, %v6079_v55  ;;  %907 = vst [vmem:[#allocation2 + $0x2c] sm:$0x1] %v906_v45  ;;  %v1126_v9 = vrot.slane %v1124_v63, 4  ;;  %v2906_v12 = vshll.u32 %v2812_v44, 16  ;;  %v613_v13 = vshrl.u32 %v7391_v61, 16 }
  0x4c   : > { %v1107_v56 = vrot.slane %v1106_v58, 4  ;;  %6635 = vmatpush3.bf16.msra.mxu0 %v7388_v60  ;;  %v1129_v15 = vrot.slane %v1127_v2, 5  ;;  %v2905_v16 = vrot.slane %v2903_v10, 4  ;;  %v616_v17 = vshll.u32 %v7391_v61, 16  ;;  %v912_v45 = vld [vmem:[#allocation2 + $0x38] sm:$0x1] }
  0x4d   : > { %v1117_v14 = vrot.slane %v1116_v1, 4  ;;  %v2908_v24 = vrot.slane %v2906_v12, 5  ;;  %v615_v25 = vrot.slane %v613_v13, 7  ;;  %v621_v27 = vshrl.u32 %v7409_v20, 16  ;;  %7035 = vmatprep.subr.msk.bf16.mxu0 %vm1534_vm0, %v7461_v6 }
  0x4e   : > { %v1112_v23 = vsel %vm7321_vm9, %v1107_v56, %v1111_v52  ;;  %v1130_v29 = vor.u32 %v1129_v15, %v1126_v9  ;;  %v624_v60 = vshll.u32 %v7409_v20, 16  ;;  %v382_v31 = vmax.f32 %v7394_v62, 0.0 }
  0x4f   : > { %v1122_v28 = vsel %vm7321_vm9, %v1117_v14, %v1121_v59  ;;  %v1006_v32 = vld [vmem:[#allocation2 + $0x28] sm:$0xf]  ;;  %v2909_v35 = vor.u32 %v2908_v24, %v2905_v16  ;;  %v618_v37 = vor.u32 %v616_v17, %v615_v25  ;;  %v619_v38 = vrot.slane %v615_v25, 4  ;;  %v276_v16 = vld [vmem:[%s7292_s13 + $0x60] sm:$0xff] }
  0x50   : > { %v5933_v61 = vcombine.low %v1112_v23, %v1122_v28  ;;  %v7476_v34 = vld [vmem:[#allocation2 + $0x28] sm:$0xf]  ;;  %v1131_v41 = vrot.slane %v1130_v29, 4  ;;  %v1133_v43 = vshll.u32 %v1006_v32, 16  ;;  %v1137_v44 = vshrl.u32 %v1006_v32, 16 }
  0x51   : > { %v2912_v49 = vshll.u32 %v7476_v34, 16  ;;  %v2910_v46 = vrot.slane %v2909_v35, 4  ;;  %v2916_v20 = vshrl.u32 %v7476_v34, 16  ;;  %v623_v47 = vrot.slane %v621_v27, 7 }
  0x52   : > { %6470 = vmatprep.mubr.msk.bf16.mxu1 %vm1485_vm8, %v5933_v61  ;;  %v909_v62 = vsel %vm7339_vm11, %v618_v37, %v908_v30  ;;  %v1035_v50 = vld [vmem:[#allocation2 + $0x2c] sm:$0x1]  ;;  %v1135_v51 = vrot.slane %v1133_v43, 5  ;;  %v1139_v52 = vrot.slane %v1137_v44, 4  ;;  %v6287_v54 = vpack.c.bf16 %v382_v31, %v382_v31 }
  0x53   : > { %v7483_v53 = vld [vmem:[#allocation2 + $0x2c] sm:$0x1]  ;;  %910 = vst [vmem:[#allocation2 + $0x30] sm:$0xf] %v909_v62  ;;  %v353_v55 = vadd.f32 %v7297_v8, %v7405_v7  ;;  %v1143_v58 = vshll.u32 %v1035_v50, 16  ;;  %v2914_v59 = vrot.slane %v2912_v49, 5  ;;  %v626_v56 = vor.u32 %v624_v60, %v623_v47 }
  0x54   : > { %v2918_v63 = vrot.slane %v2916_v20, 4  ;;  %v2922_v1 = vshll.u32 %v7483_v53, 16  ;;  %v1136_v2 = vsel %vm7321_vm9, %v1131_v41, %v1135_v51  ;;  %v1140_v10 = vor.u32 %v1139_v52, %v1135_v51  ;;  %v277_v51 = vld [vmem:[%s7292_s13 + $0x68] sm:$0xff]  ;;  %v278_v52 = vld [vmem:[%s7292_s13 + $0x70] sm:$0xff] }
  0x55   : > { %v628_v9 = vrot.slane %v623_v47, 4  ;;  %v1145_v12 = vrot.slane %v1143_v58, 5  ;;  %v2915_v13 = vsel %vm7321_vm9, %v2910_v46, %v2914_v59  ;;  %v627_v17 = vsel %vm7333_vm10, %v619_v38, %v626_v56  ;;  %v915_v46 = vld [vmem:[#allocation2 + $0x3c] sm:$0xf] }
  0x56   : > { %v2919_v14 = vor.u32 %v2918_v63, %v2914_v59  ;;  %v2924_v15 = vrot.slane %v2922_v1, 5  ;;  %v1141_v7 = vrot.slane %v1140_v10, 4  ;;  %v383_v24 = vmax.f32 %v7402_v11, 0.0  ;;  %911 = vst.msk [vmem:[#allocation2 + $0x34] sm:$0xf] %vm406_vm1, %v627_v17 }
  0x57   : > { %v913_v23 = vsel %vm7345_vm12, %v628_v9, %v912_v45  ;;  %v630_v27 = vshrl.u32 %v6287_v54, 16  ;;  %v633_v28 = vshll.u32 %v6287_v54, 16  ;;  %v384_v29 = vmax.f32 %v7412_v21, 0.0 }
  0x58   : > { %v2920_v25 = vrot.slane %v2919_v14, 4  ;;  %914 = vst [vmem:[#allocation2 + $0x38] sm:$0x1] %v913_v23  ;;  %v1146_v60 = vsel %vm7321_vm9, %v1141_v7, %v1145_v12  ;;  %v6288_v30 = vpack.c.bf16 %v383_v24, %v383_v24  ;;  %v385_v31 = vmax.f32 %v353_v55, 0.0 }
  0x59   : > { %v315_v61 = vmul.f32 %v7274_v5, %v276_v16  ;;  %v5934_v32 = vcombine.low %v1136_v2, %v1146_v60  ;;  %v632_v38 = vrot.slane %v630_v27, 7  ;;  %v7505_v41 = vpack.c.bf16 %v384_v29, %v384_v29  ;;  %v919_v60 = vld [vmem:[#allocation2 + $0x44] sm:$0x1] }
  0x5a   : > { %v2925_v11 = vsel %vm7321_vm9, %v2920_v25, %v2924_v15  ;;  %v2815_v35 = vld [vmem:[#allocation2 + $0x30] sm:$0xf]  ;;  %v638_v50 = vshrl.u32 %v6288_v30, 16  ;;  %v641_v59 = vshll.u32 %v6288_v30, 16  ;;  %v7513_v2 = vpack.c.bf16 %v385_v31, %v385_v31 }
  0x5b   : > { %v1007_v37 = vld [vmem:[#allocation2 + $0x30] sm:$0xf]  ;;  %v6080_v43 = vcombine.low %v2915_v13, %v2925_v11  ;;  %v2927_v21 = vshrl.u32 %v2815_v35, 16  ;;  %v2930_v44 = vshll.u32 %v2815_v35, 16  ;;  %6471 = vmatmul.mubr.msk.bf16.gmra.mrb[4].mxu1 %vm1485_vm8, %v5934_v32  ;;  %v635_v47 = vor.u32 %v633_v28, %v632_v38 }
  0x5c   : > { %v1148_v49 = vshrl.u32 %v1007_v37, 16  ;;  %v1151_v20 = vshll.u32 %v1007_v37, 16  ;;  %v636_v62 = vrot.slane %v632_v38, 4  ;;  %v640_v1 = vrot.slane %v638_v50, 7 }
  0x5d   : > { %6606 = vmatprep.mubr.msk.bf16.mxu0 %vm1485_vm8, %v6080_v43  ;;  %v2929_v54 = vrot.slane %v2927_v21, 4  ;;  %v2932_v55 = vrot.slane %v2930_v44, 5  ;;  %v916_v45 = vsel %vm7339_vm11, %v635_v47, %v915_v46  ;;  %v7515_v10 = vld [vmem:[#allocation2 + $0x34] sm:$0xf]  ;;  %v316_v13 = vmul.f32 %v7274_v5, %v277_v51 }
  0x5e   : > { %v1150_v58 = vrot.slane %v1148_v49, 4  ;;  %v1153_v63 = vrot.slane %v1151_v20, 5  ;;  %v1008_v12 = vld [vmem:[#allocation2 + $0x34] sm:$0xf]  ;;  %917 = vst [vmem:[#allocation2 + $0x3c] sm:$0xf] %v916_v45  ;;  %v7521_v14 = vadd.f32 %v7297_v8, %v315_v61  ;;  %v7524_v15 = vmul.f32 %v7274_v5, %v278_v52 }
  0x5f   : > { %v7517_v56 = vld [vmem:[#allocation2 + $0x38] sm:$0x1]  ;;  %v2933_v9 = vor.u32 %v2932_v55, %v2929_v54  ;;  %v2936_v16 = vshll.u32 %v7515_v10, 16  ;;  %v2940_v7 = vshrl.u32 %v7515_v10, 16  ;;  %v1157_v27 = vshll.u32 %v1008_v12, 16 }
  0x60   : > { %v2946_v17 = vshll.u32 %v7517_v56, 16  ;;  %v1036_v23 = vld [vmem:[#allocation2 + $0x38] sm:$0x1]  ;;  %v1154_v24 = vor.u32 %v1153_v63, %v1150_v58  ;;  %v1161_v28 = vshrl.u32 %v1008_v12, 16  ;;  %v643_v38 = vor.u32 %v641_v59, %v640_v1 }
  0x61   : > { %v2934_v25 = vrot.slane %v2933_v9, 4  ;;  %v1167_v29 = vshll.u32 %v1036_v23, 16  ;;  %v2938_v30 = vrot.slane %v2936_v16, 5  ;;  %v2942_v31 = vrot.slane %v2940_v7, 4  ;;  %v922_v9 = vld [vmem:[#allocation2 + $0x48] sm:$0xf] }
  0x62   : > { %v2948_v61 = vrot.slane %v2946_v17, 5  ;;  %v1155_v32 = vrot.slane %v1154_v24, 4  ;;  %v1159_v11 = vrot.slane %v1157_v27, 5  ;;  %v1163_v35 = vrot.slane %v1161_v28, 4 }
  0x63   : > { %v1169_v37 = vrot.slane %v1167_v29, 5  ;;  %v2939_v43 = vsel %vm7321_vm9, %v2934_v25, %v2938_v30  ;;  %v2943_v21 = vor.u32 %v2942_v31, %v2938_v30  ;;  %v645_v44 = vrot.slane %v640_v1, 4  ;;  %v280_v30 = vld [vmem:[%s7292_s13 + $0x80] sm:$0xff] }
  0x64   : > { %v647_v49 = vshrl.u32 %v7505_v41, 16  ;;  %v1160_v46 = vsel %vm7321_vm9, %v1155_v32, %v1159_v11  ;;  %v1164_v20 = vor.u32 %v1163_v35, %v1159_v11  ;;  %v644_v47 = vsel %vm7333_vm10, %v636_v62, %v643_v38 }
  0x65   : > { %v650_v50 = vshll.u32 %v7505_v41, 16  ;;  %v2944_v51 = vrot.slane %v2943_v21, 4  ;;  %918 = vst.msk [vmem:[#allocation2 + $0x40] sm:$0xf] %vm406_vm1, %v644_v47  ;;  %v920_v52 = vsel %vm7345_vm12, %v645_v44, %v919_v60  ;;  %v1009_v54 = vld [vmem:[#allocation2 + $0x3c] sm:$0xf]  ;;  %v355_v59 = vadd.f32 %v7297_v8, %v316_v13 }
  0x66   : > { %v2818_v55 = vld [vmem:[#allocation2 + $0x3c] sm:$0xf]  ;;  %v649_v58 = vrot.slane %v647_v49, 7  ;;  %v1165_v63 = vrot.slane %v1164_v20, 4  ;;  %921 = vst [vmem:[#allocation2 + $0x44] sm:$0x1] %v920_v52 }
  0x67   : > { %v1172_v1 = vshrl.u32 %v1009_v54, 16  ;;  %v1175_v45 = vshll.u32 %v1009_v54, 16  ;;  %v2951_v62 = vshrl.u32 %v2818_v55, 16  ;;  %v2949_v41 = vsel %vm7321_vm9, %v2944_v51, %v2948_v61  ;;  %v279_v13 = vld [vmem:[%s7292_s13 + $0x78] sm:$0xff]  ;;  %v926_v54 = vld [vmem:[#allocation2 + $0x50] sm:$0x1] }
  0x68   : > { %v2954_v12 = vshll.u32 %v2818_v55, 16  ;;  %v652_v16 = vor.u32 %v650_v50, %v649_v58  ;;  %v653_v7 = vrot.slane %v649_v58, 4  ;;  %v6081_v17 = vcombine.low %v2939_v43, %v2949_v41 }
  0x69   : > { %v1170_v23 = vsel %vm7321_vm9, %v1165_v63, %v1169_v37  ;;  %v1174_v24 = vrot.slane %v1172_v1, 4  ;;  %v1177_v25 = vrot.slane %v1175_v45, 5  ;;  %v2953_v28 = vrot.slane %v2951_v62, 4 }
  0x6a   : > { %v5935_v27 = vcombine.low %v1160_v46, %v1170_v23  ;;  %v2956_v29 = vrot.slane %v2954_v12, 5  ;;  %v655_v60 = vshrl.u32 %v7513_v2, 16  ;;  %6607 = vmatmul.mubr.msk.bf16.gmra.mrb[4].mxu0 %vm1485_vm8, %v6081_v17  ;;  %v658_v61 = vshll.u32 %v7513_v2, 16 }
  0x6b   : > { %v1178_v31 = vor.u32 %v1177_v25, %v1174_v24  ;;  %v923_v32 = vsel %vm7339_vm11, %v652_v16, %v922_v9  ;;  %v386_v11 = vmax.f32 %v7521_v14, 0.0  ;;  %v387_v38 = vmax.f32 %v355_v59, 0.0 }
  0x6c   : > { %6474 = vmatprep.mubr.msk.bf16.mxu1 %vm1485_vm8, %v5935_v27  ;;  %v2957_v35 = vor.u32 %v2956_v29, %v2953_v28  ;;  %v657_v37 = vrot.slane %v655_v60, 7  ;;  %924 = vst [vmem:[#allocation2 + $0x48] sm:$0xf] %v923_v32  ;;  %v7555_v43 = vmul.f32 %v7274_v5, %v279_v13  ;;  %v1010_v21 = vld [vmem:[#allocation2 + $0x40] sm:$0xf]  ;;  %v7561_v2 = vadd.f32 %v7297_v8, %v7524_v15 }
  0x6d   : > { %v1179_v44 = vrot.slane %v1178_v31, 4  ;;  %v7557_v49 = vld [vmem:[#allocation2 + $0x40] sm:$0xf]  ;;  %v6291_v46 = vpack.c.bf16 %v386_v11, %v386_v11  ;;  %v7564_v14 = vmul.f32 %v7274_v5, %v280_v30  ;;  %v1037_v20 = vld [vmem:[#allocation2 + $0x44] sm:$0x1]  ;;  %v1181_v47 = vshll.u32 %v1010_v21, 16 }
  0x6e   : > { %v1185_v50 = vshrl.u32 %v1010_v21, 16  ;;  %v7566_v51 = vld [vmem:[#allocation2 + $0x44] sm:$0x1]  ;;  %v660_v52 = vor.u32 %v658_v61, %v657_v37  ;;  %v7568_v55 = vpack.c.bf16 %v387_v38, %v387_v38  ;;  %v1191_v58 = vshll.u32 %v1037_v20, 16 }
  0x6f   : > { %v2958_v59 = vrot.slane %v2957_v35, 4  ;;  %v2960_v63 = vshll.u32 %v7557_v49, 16  ;;  %v2964_v1 = vshrl.u32 %v7557_v49, 16  ;;  %v1183_v15 = vrot.slane %v1181_v47, 5 }
  0x70   : > { %v1187_v45 = vrot.slane %v1185_v50, 4  ;;  %v2970_v5 = vshll.u32 %v7566_v51, 16  ;;  %v661_v62 = vsel %vm7333_vm10, %v653_v7, %v660_v52  ;;  %v1193_v9 = vrot.slane %v1191_v58, 5  ;;  %v929_v58 = vld [vmem:[#allocation2 + $0x54] sm:$0xf] }
  0x71   : > { %v2962_v41 = vrot.slane %v2960_v63, 5  ;;  %v2966_v12 = vrot.slane %v2964_v1, 4  ;;  %v662_v16 = vrot.slane %v657_v37, 4  ;;  %925 = vst.msk [vmem:[#allocation2 + $0x4c] sm:$0xf] %vm406_vm1, %v661_v62  ;;  %v1184_v17 = vsel %vm7321_vm9, %v1179_v44, %v1183_v15 }
  0x72   : > { %v1188_v23 = vor.u32 %v1187_v45, %v1183_v15  ;;  %v2972_v24 = vrot.slane %v2970_v5, 5  ;;  %v664_v25 = vshrl.u32 %v6291_v46, 16  ;;  %v667_v60 = vshll.u32 %v6291_v46, 16 }
  0x73   : > { %v2963_v13 = vsel %vm7321_vm9, %v2958_v59, %v2962_v41  ;;  %v2967_v27 = vor.u32 %v2966_v12, %v2962_v41  ;;  %v927_v28 = vsel %vm7345_vm12, %v662_v16, %v926_v54  ;;  %v2821_v7 = vld [vmem:[#allocation2 + $0x48] sm:$0xf]  ;;  %v672_v38 = vshrl.u32 %v7568_v55, 16  ;;  %v933_v16 = vld [vmem:[#allocation2 + $0x5c] sm:$0x1] }
  0x74   : > { %v1011_v29 = vld [vmem:[#allocation2 + $0x48] sm:$0xf]  ;;  %v1189_v30 = vrot.slane %v1188_v23, 4  ;;  %928 = vst [vmem:[#allocation2 + $0x50] sm:$0x1] %v927_v28  ;;  %v2975_v31 = vshrl.u32 %v2821_v7, 16 }
  0x75   : > { %v2978_v61 = vshll.u32 %v2821_v7, 16  ;;  %v1196_v32 = vshrl.u32 %v1011_v29, 16  ;;  %v2968_v11 = vrot.slane %v2967_v27, 4  ;;  %v1199_v35 = vshll.u32 %v1011_v29, 16 }
  0x76   : > { %v666_v37 = vrot.slane %v664_v25, 7  ;;  %v1194_v21 = vsel %vm7321_vm9, %v1189_v30, %v1193_v9  ;;  %v2977_v44 = vrot.slane %v2975_v31, 4  ;;  %v674_v5 = vrot.slane %v672_v38, 7 }
  0x77   : > { %v2980_v20 = vrot.slane %v2978_v61, 5  ;;  %v1198_v47 = vrot.slane %v1196_v32, 4  ;;  %v5936_v50 = vcombine.low %v1184_v17, %v1194_v21  ;;  %v2973_v46 = vsel %vm7321_vm9, %v2968_v11, %v2972_v24  ;;  %v6011_v17 = vld [vmem:[%s9252_s3 + $0x8] sm:$0xf] }
  0x78   : > { %v1201_v52 = vrot.slane %v1199_v35, 5  ;;  %v669_v54 = vor.u32 %v667_v60, %v666_v37  ;;  %v6082_v59 = vcombine.low %v2963_v13, %v2973_v46  ;;  %v7587_v63 = vld [vmem:[#allocation2 + $0x4c] sm:$0xf]  ;;  %v670_v45 = vrot.slane %v666_v37, 4  ;;  %7030 = vmatprep.subr.msk.bf16.mxu1 %vm1534_vm0, %v6011_v17  ;;  %v283_v17 = vld [vmem:[%s7292_s13 + $0x98] sm:$0xff] }
  0x79   : > { %v2981_v1 = vor.u32 %v2980_v20, %v2977_v44  ;;  %v1012_v15 = vld [vmem:[#allocation2 + $0x4c] sm:$0xf]  ;;  %6475 = vmatmul.mubr.msk.bf16.gmra.mrb[8].mxu1 %vm1485_vm8, %v5936_v50  ;;  %v2984_v62 = vshll.u32 %v7587_v63, 16  ;;  %v2988_v9 = vshrl.u32 %v7587_v63, 16  ;;  %v675_v25 = vshll.u32 %v7568_v55, 16 }
  0x7a   : > { %v1202_v41 = vor.u32 %v1201_v52, %v1198_v47  ;;  %v1205_v12 = vshll.u32 %v1012_v15, 16  ;;  %6610 = vmatprep.mubr.msk.bf16.mxu0 %vm1485_vm8, %v6082_v59  ;;  %v1209_v24 = vshrl.u32 %v1012_v15, 16  ;;  %v679_v13 = vrot.slane %v674_v5, 4  ;;  %v281_v21 = vld [vmem:[%s7292_s13 + $0x88] sm:$0xff]  ;;  %v7619_v59 = vld [vmem:[%s9250_s1] ss:$0 sm:$0xff] }
  0x7b   : > { %v2982_v23 = vrot.slane %v2981_v1, 4  ;;  %v7598_v27 = vld [vmem:[#allocation2 + $0x50] sm:$0x1]  ;;  %v2986_v28 = vrot.slane %v2984_v62, 5  ;;  %v2990_v7 = vrot.slane %v2988_v9, 4  ;;  %v930_v60 = vsel %vm7339_vm11, %v669_v54, %v929_v58 }
  0x7c   : > { %v1038_v29 = vld [vmem:[#allocation2 + $0x50] sm:$0x1]  ;;  %v357_v30 = vadd.f32 %v7297_v8, %v7555_v43  ;;  %v2994_v31 = vshll.u32 %v7598_v27, 16  ;;  %v1203_v61 = vrot.slane %v1202_v41, 4  ;;  %v1207_v32 = vrot.slane %v1205_v12, 5 }
  0x7d   : > { %v1211_v55 = vrot.slane %v1209_v24, 4  ;;  %931 = vst [vmem:[#allocation2 + $0x54] sm:$0xf] %v930_v60  ;;  %v2987_v11 = vsel %vm7321_vm9, %v2982_v23, %v2986_v28  ;;  %v2991_v35 = vor.u32 %v2990_v7, %v2986_v28  ;;  %v1215_v37 = vshll.u32 %v1038_v29, 16  ;;  %v7625_v15 = vld [vmem:[%s9251_s2] ss:$0 sm:$0xff] }
  0x7e   : > { %v677_v38 = vor.u32 %v675_v25, %v674_v5  ;;  %v2996_v44 = vrot.slane %v2994_v31, 5  ;;  %v1208_v20 = vsel %vm7321_vm9, %v1203_v61, %v1207_v32  ;;  %v934_v8 = vsel %vm7345_vm12, %v679_v13, %v933_v16 }
  0x7f   : > { %v1212_v47 = vor.u32 %v1211_v55, %v1207_v32  ;;  %v2992_v43 = vrot.slane %v2991_v35, 4  ;;  %v1217_v50 = vrot.slane %v1215_v37, 5  ;;  %935 = vst [vmem:[#allocation2 + $0x5c] sm:$0x1] %v934_v8  ;;  %v388_v52 = vmax.f32 %v7561_v2, 0.0 }
  0x80   : > { %v678_v46 = vsel %vm7333_vm10, %v670_v45, %v677_v38  ;;  %v389_v58 = vmax.f32 %v357_v30, 0.0  ;;  %v320_v1 = vmul.f32 %v7619_v59, %v281_v21  ;;  %v358_v2 = vadd.f32 %v7625_v15, %v7564_v14  ;;  %v282_v14 = vld [vmem:[%s7292_s13 + $0x90] sm:$0xff] }
  0x81   : > { %v1213_v54 = vrot.slane %v1212_v47, 4  ;;  %932 = vst.msk [vmem:[#allocation2 + $0x58] sm:$0xf] %vm406_vm1, %v678_v46  ;;  %v2997_v45 = vsel %vm7321_vm9, %v2992_v43, %v2996_v44  ;;  %v6293_v5 = vpack.c.bf16 %v388_v52, %v388_v52  ;;  %v7649_v7 = vsel %vm7638_vm15, %v7442_v33, %v3608_v22 }
  0x82   : > { %v6083_v62 = vcombine.low %v2987_v11, %v2997_v45  ;;  %v7633_v41 = vpack.c.bf16 %v389_v58, %v389_v58  ;;  %v7636_v12 = vadd.f32 %v7625_v15, %v320_v1  ;;  %v390_v11 = vmax.f32 %v358_v2, 0.0  ;;  %v936_v58 = vld [vmem:[#allocation2 + $0x60] sm:$0xf] }
  0x83   : > { %v1218_v9 = vsel %vm7321_vm9, %v1213_v54, %v1217_v50  ;;  %v681_v13 = vshrl.u32 %v6293_v5, 16  ;;  %v684_v28 = vshll.u32 %v6293_v5, 16  ;;  %v7658_v22 = vmul.f32 %v7619_v59, %v282_v14 }
  0x84   : > { %v5937_v23 = vcombine.low %v1208_v20, %v1218_v9  ;;  %v1013_v24 = vld [vmem:[#allocation2 + $0x54] sm:$0xf]  ;;  %6611 = vmatmul.mubr.msk.bf16.gmra.mrb[8].mxu0 %vm1485_vm8, %v6083_v62  ;;  %v689_v32 = vshrl.u32 %v7633_v41, 16  ;;  %v692_v55 = vshll.u32 %v7633_v41, 16  ;;  %v7661_v33 = vmul.f32 %v7619_v59, %v283_v17 }
  0x85   : > { %v2824_v25 = vld [vmem:[#allocation2 + $0x54] sm:$0xf]  ;;  %v1220_v29 = vshrl.u32 %v1013_v24, 16  ;;  %v1223_v60 = vshll.u32 %v1013_v24, 16  ;;  %v683_v61 = vrot.slane %v681_v13, 7  ;;  %v6295_v43 = vpack.c.bf16 %v390_v11, %v390_v11 }
  0x86   : > { %v2999_v30 = vshrl.u32 %v2824_v25, 16  ;;  %v3002_v31 = vshll.u32 %v2824_v25, 16  ;;  %6478 = vmatprep.mubr.msk.bf16.mxu1 %vm1485_vm8, %v5937_v23  ;;  %v1039_v48 = vld [vmem:[#allocation2 + $0x5c] sm:$0x1]  ;;  %v940_v11 = vld [vmem:[#allocation2 + $0x68] sm:$0x1] }
  0x87   : > { %v1222_v35 = vrot.slane %v1220_v29, 4  ;;  %v1225_v37 = vrot.slane %v1223_v60, 5  ;;  %v7655_v38 = vld [vmem:[#allocation2 + $0x5c] sm:$0x1]  ;;  %v1239_v44 = vshll.u32 %v1039_v48, 16  ;;  %v686_v8 = vor.u32 %v684_v28, %v683_v61 }
  0x88   : > { %v1014_v21 = vld [vmem:[#allocation2 + $0x58] sm:$0xf]  ;;  %v3001_v47 = vrot.slane %v2999_v30, 4  ;;  %v3004_v54 = vrot.slane %v3002_v31, 5  ;;  %v3018_v5 = vshll.u32 %v7655_v38, 16  ;;  %v687_v25 = vrot.slane %v683_v61, 4 }
  0x89   : > { %v7663_v20 = vld [vmem:[#allocation2 + $0x58] sm:$0xf]  ;;  %v1226_v50 = vor.u32 %v1225_v37, %v1222_v35  ;;  %v1229_v46 = vshll.u32 %v1014_v21, 16  ;;  %v1233_v52 = vshrl.u32 %v1014_v21, 16  ;;  %v1241_v1 = vrot.slane %v1239_v44, 5 }
  0x8a   : > { %v3008_v2 = vshll.u32 %v7663_v20, 16  ;;  %v3012_v45 = vshrl.u32 %v7663_v20, 16  ;;  %v3005_v14 = vor.u32 %v3004_v54, %v3001_v47  ;;  %v3020_v24 = vrot.slane %v3018_v5, 5  ;;  %v3532_v37 = vld [vmem:[#allocation2 + $0xc] sm:$0xe] }
  0x8b   : > { %v1227_v62 = vrot.slane %v1226_v50, 4  ;;  %v1231_v9 = vrot.slane %v1229_v46, 5  ;;  %v1235_v41 = vrot.slane %v1233_v52, 4  ;;  %v691_v60 = vrot.slane %v689_v32, 7 }
  0x8c   : > { %v3010_v17 = vrot.slane %v3008_v2, 5  ;;  %v3014_v23 = vrot.slane %v3012_v45, 4  ;;  %v3006_v29 = vrot.slane %v3005_v14, 4  ;;  %v937_v31 = vsel %vm7339_vm11, %v686_v8, %v936_v58  ;;  %v943_v58 = vld [vmem:[#allocation2 + $0x6c] sm:$0xf] }
  0x8d   : > { %v1232_v13 = vsel %vm7321_vm9, %v1227_v62, %v1231_v9  ;;  %v1236_v28 = vor.u32 %v1235_v41, %v1231_v9  ;;  %v391_v48 = vmax.f32 %v7636_v12, 0.0  ;;  %v698_v35 = vshrl.u32 %v6295_v43, 16  ;;  %938 = vst [vmem:[#allocation2 + $0x60] sm:$0xf] %v937_v31  ;;  %v3533_v2 = vld [vmem:[#allocation2 + $0x18] sm:$0xe] }
  0x8e   : > { %v3015_v30 = vor.u32 %v3014_v23, %v3010_v17  ;;  %v3011_v44 = vsel %vm7321_vm9, %v3006_v29, %v3010_v17  ;;  %v694_v61 = vor.u32 %v692_v55, %v691_v60  ;;  %v696_v47 = vrot.slane %v691_v60, 4  ;;  %v284_v62 = vld [vmem:[%s7292_s13 + $0xa0] sm:$0xff]  ;;  %v285_v23 = vld [vmem:[%s7292_s13 + $0xa8] sm:$0xff] }
  0x8f   : > { %v1237_v21 = vrot.slane %v1236_v28, 4  ;;  %v6296_v46 = vpack.c.bf16 %v391_v48, %v391_v48  ;;  %v7675_v32 = vrot.slane %v698_v35, 7  ;;  %v701_v52 = vshll.u32 %v6295_v43, 16 }
  0x90   : > { %v3016_v50 = vrot.slane %v3015_v30, 4  ;;  %v695_v12 = vsel %vm7333_vm10, %v687_v25, %v694_v61  ;;  %v941_v54 = vsel %vm7345_vm12, %v696_v47, %v940_v11  ;;  %v6110_v55 = vrot.slane %v3532_v37, 9  ;;  %v7696_v25 = vld [vmem:[#allocation2 + $0x24] sm:$0xe] }
  0x91   : > { %v1242_v8 = vsel %vm7321_vm9, %v1237_v21, %v1241_v1  ;;  %939 = vst.msk [vmem:[#allocation2 + $0x64] sm:$0xf] %vm406_vm1, %v695_v12  ;;  %942 = vst [vmem:[#allocation2 + $0x68] sm:$0x1] %v941_v54  ;;  %v703_v43 = vor.u32 %v701_v52, %v7675_v32  ;;  %v704_v1 = vrot.slane %v7675_v32, 4  ;;  %v706_v41 = vshrl.u32 %v6296_v46, 16 }
  0x92   : > { %v5938_v45 = vcombine.low %v1232_v13, %v1242_v8  ;;  %v3021_v5 = vsel %vm7321_vm9, %v3016_v50, %v3020_v24  ;;  %v709_v14 = vshll.u32 %v6296_v46, 16  ;;  %v7693_v17 = vsel %vm7638_vm15, %v6110_v55, %v3598_v39  ;;  %v947_v32 = vld [vmem:[#allocation2 + $0x74] sm:$0x1] }
  0x93   : > { %v6084_v9 = vcombine.low %v3011_v44, %v3021_v5  ;;  %v944_v24 = vsel %vm7339_vm11, %v703_v43, %v943_v58  ;;  %v3600_v13 = vrot.slane %v3598_v39, 4  ;;  %v6111_v28 = vrot.slane %v3533_v2, 9 }
  0x94   : > { %6479 = vmatmul.mubr.msk.bf16.gmra.mrb[12].mxu1 %vm1485_vm8, %v5938_v45  ;;  %v7705_v29 = vsel %vm1534_vm0, %v7461_v6, 0  ;;  %v708_v60 = vrot.slane %v706_v41, 7  ;;  %945 = vst [vmem:[#allocation2 + $0x6c] sm:$0xf] %v944_v24  ;;  %v7710_v30 = vadd.f32 %v7625_v15, %v7658_v22  ;;  %v7714_v31 = vadd.f32 %v7625_v15, %v7661_v33  ;;  %v2827_v39 = vld [vmem:[#allocation2 + $0x60] sm:$0xf] }
  0x95   : > { %6614 = vmatprep.mubr.msk.bf16.mxu0 %vm1485_vm8, %v6084_v9  ;;  %v323_v18 = vmul.f32 %v7619_v59, %v284_v62  ;;  %v1015_v11 = vld [vmem:[#allocation2 + $0x60] sm:$0xf]  ;;  %v7721_v6 = vsel %vm7638_vm15, %v3600_v13, %v3601_v40  ;;  %v7727_v22 = vsel %vm7638_vm15, %v6111_v28, %v3605_v19  ;;  %v324_v48 = vmul.f32 %v7619_v59, %v285_v23 }
  0x96   : > { %v6112_v33 = vrot.slane %v7696_v25, 9  ;;  %v3023_v35 = vshrl.u32 %v2827_v39, 16  ;;  %v3026_v37 = vshll.u32 %v2827_v39, 16  ;;  %v1244_v21 = vshrl.u32 %v1015_v11, 16 }
  0x97   : > { %v1247_v44 = vshll.u32 %v1015_v11, 16  ;;  %v711_v61 = vor.u32 %v709_v14, %v708_v60  ;;  %v713_v26 = vrot.slane %v708_v60, 4  ;;  %v6127_v40 = vcombine.low %v7693_v17, %v7721_v6 }
  0x98   : > { %v6128_v36 = vcombine.low %v7727_v22, %v7649_v7  ;;  %v7735_v47 = vld [vmem:[#allocation2 + $0x64] sm:$0xf]  ;;  %v7737_v19 = vld [vmem:[#allocation2 + $0x68] sm:$0x1]  ;;  %v3025_v50 = vrot.slane %v3023_v35, 4  ;;  %v3028_v46 = vrot.slane %v3026_v37, 5  ;;  %v362_v52 = vadd.f32 %v7625_v15, %v323_v18 }
  0x99   : > { %v363_v8 = vadd.f32 %v7625_v15, %v324_v48  ;;  %v3032_v12 = vshll.u32 %v7735_v47, 16  ;;  %v3036_v54 = vshrl.u32 %v7735_v47, 16  ;;  %v3042_v58 = vshll.u32 %v7737_v19, 16  ;;  %v1016_v55 = vld [vmem:[#allocation2 + $0x64] sm:$0xf] }
  0x9a   : > { %v1246_v2 = vrot.slane %v1244_v21, 4  ;;  %v3029_v45 = vor.u32 %v3028_v46, %v3025_v50  ;;  %v1040_v5 = vld [vmem:[#allocation2 + $0x68] sm:$0x1]  ;;  %v1249_v43 = vrot.slane %v1247_v44, 5  ;;  %v1253_v62 = vshll.u32 %v1016_v55, 16 }
  0x9b   : > { %v1257_v9 = vshrl.u32 %v1016_v55, 16  ;;  %v3034_v41 = vrot.slane %v3032_v12, 5  ;;  %v3038_v14 = vrot.slane %v3036_v54, 4  ;;  %v3044_v23 = vrot.slane %v3042_v58, 5  ;;  %v1017_v13 = vld [vmem:[#allocation2 + $0x6c] sm:$0xf] }
  0x9c   : > { %v1263_v24 = vshll.u32 %v1040_v5, 16  ;;  %v3030_v28 = vrot.slane %v3029_v45, 4  ;;  %v1250_v60 = vor.u32 %v1249_v43, %v1246_v2  ;;  %v1255_v18 = vrot.slane %v1253_v62, 5 }
  0x9d   : > { %v1259_v39 = vrot.slane %v1257_v9, 4  ;;  %v3039_v11 = vor.u32 %v3038_v14, %v3034_v41  ;;  %v712_v35 = vsel %vm7333_vm10, %v704_v1, %v711_v61  ;;  %v948_v37 = vsel %vm7345_vm12, %v713_v26, %v947_v32  ;;  %v286_v14 = vld [vmem:[%s7292_s13 + $0xb0] sm:$0xff] }
  0x9e   : > { %v1265_v48 = vrot.slane %v1263_v24, 5  ;;  %v3035_v21 = vsel %vm7321_vm9, %v3030_v28, %v3034_v41  ;;  %v1251_v44 = vrot.slane %v1250_v60, 4  ;;  %946 = vst.msk [vmem:[#allocation2 + $0x70] sm:$0xf] %vm406_vm1, %v712_v35  ;;  %949 = vst [vmem:[#allocation2 + $0x74] sm:$0x1] %v948_v37 }
  0x9f   : > { %v1260_v50 = vor.u32 %v1259_v39, %v1255_v18  ;;  %v1268_v46 = vshrl.u32 %v1017_v13, 16  ;;  %v3040_v12 = vrot.slane %v3039_v11, 4  ;;  %v1271_v54 = vshll.u32 %v1017_v13, 16 }
  0xa0   : > { %v392_v58 = vmax.f32 %v7710_v30, 0.0  ;;  %v393_v1 = vmax.f32 %v7714_v31, 0.0  ;;  %v1256_v61 = vsel %vm7321_vm9, %v1251_v44, %v1255_v18  ;;  %v394_v55 = vmax.f32 %v362_v52, 0.0  ;;  %v287_v31 = vld [vmem:[%s7292_s13 + $0xb8] sm:$0xff] }
  0xa1   : > { %v1261_v26 = vrot.slane %v1260_v50, 4  ;;  %v1270_v32 = vrot.slane %v1268_v46, 4  ;;  %v3045_v2 = vsel %vm7321_vm9, %v3040_v12, %v3044_v23  ;;  %v1273_v45 = vrot.slane %v1271_v54, 5  ;;  %v950_v23 = vld [vmem:[#allocation2 + $0x78] sm:$0xf] }
  0xa2   : > { %v6297_v5 = vpack.c.bf16 %v392_v58, %v392_v58  ;;  %v6298_v43 = vpack.c.bf16 %v393_v1, %v393_v1  ;;  %v6085_v62 = vcombine.low %v3035_v21, %v3045_v2  ;;  %v395_v41 = vmax.f32 %v363_v8, 0.0  ;;  %v954_v58 = vld [vmem:[#allocation2 + $0x80] sm:$0x1] }
  0xa3   : > { %v1266_v9 = vsel %vm7321_vm9, %v1261_v26, %v1265_v48  ;;  %v6299_v30 = vpack.c.bf16 %v394_v55, %v394_v55  ;;  %v1274_v13 = vor.u32 %v1273_v45, %v1270_v32  ;;  %v325_v21 = vmul.f32 %v7619_v59, %v286_v14  ;;  %v957_v55 = vld [vmem:[#allocation2 + $0x84] sm:$0xf] }
  0xa4   : > { %v5939_v24 = vcombine.low %v1256_v61, %v1266_v9  ;;  %v715_v28 = vshrl.u32 %v6297_v5, 16  ;;  %v718_v60 = vshll.u32 %v6297_v5, 16  ;;  %6615 = vmatmul.mubr.msk.bf16.gmra.mrb[12].mxu0 %vm1485_vm8, %v6085_v62  ;;  %v723_v52 = vshrl.u32 %v6298_v43, 16  ;;  %v3535_v9 = vld [vmem:[#allocation2 + $0x30] sm:$0xe] }
  0xa5   : > { %v726_v18 = vshll.u32 %v6298_v43, 16  ;;  %v6300_v39 = vpack.c.bf16 %v395_v41, %v395_v41  ;;  %v732_v11 = vshrl.u32 %v6299_v30, 16  ;;  %v1018_v35 = vld [vmem:[#allocation2 + $0x70] sm:$0xf]  ;;  %v1041_v37 = vld [vmem:[#allocation2 + $0x74] sm:$0x1]  ;;  %6636 = vmatprep.mubr.msk.bf16.mxu0 %vm1485_vm8, %v6127_v40  ;;  %v326_v44 = vmul.f32 %v7619_v59, %v287_v31 }
  0xa6   : > { %6482 = vmatprep.mubr.msk.bf16.mxu1 %vm1485_vm8, %v5939_v24  ;;  %v1275_v48 = vrot.slane %v1274_v13, 4  ;;  %v717_v8 = vrot.slane %v715_v28, 7  ;;  %v1277_v50 = vshll.u32 %v1018_v35, 16  ;;  %v1281_v46 = vshrl.u32 %v1018_v35, 16 }
  0xa7   : > { %v1287_v12 = vshll.u32 %v1041_v37, 16  ;;  %v725_v54 = vrot.slane %v723_v52, 7  ;;  %v734_v26 = vrot.slane %v732_v11, 7  ;;  %v735_v32 = vshll.u32 %v6299_v30, 16  ;;  %v7784_v52 = vld [vmem:[%s9252_s3 + $0x1c] sm:$0xf] }
  0xa8   : > { %v720_v1 = vor.u32 %v718_v60, %v717_v8  ;;  %v721_v61 = vrot.slane %v717_v8, 4  ;;  %v1279_v2 = vrot.slane %v1277_v50, 5  ;;  %v1283_v45 = vrot.slane %v1281_v46, 4  ;;  %v288_v50 = vld [vmem:[%s7292_s13 + $0xc0] sm:$0xff] }
  0xa9   : > { %v1289_v17 = vrot.slane %v1287_v12, 5  ;;  %v728_v6 = vor.u32 %v726_v18, %v725_v54  ;;  %v730_v40 = vrot.slane %v725_v54, 4  ;;  %v737_v43 = vor.u32 %v735_v32, %v734_v26 }
  0xaa   : > { %v951_v5 = vsel %vm7339_vm11, %v720_v1, %v950_v23  ;;  %v738_v62 = vrot.slane %v734_v26, 4  ;;  %v1280_v41 = vsel %vm7321_vm9, %v1275_v48, %v1279_v2  ;;  %v1284_v14 = vor.u32 %v1283_v45, %v1279_v2 }
  0xab   : > { %v729_v31 = vsel %vm7333_vm10, %v721_v61, %v728_v6  ;;  %952 = vst [vmem:[#allocation2 + $0x78] sm:$0xf] %v951_v5  ;;  %v740_v30 = vshrl.u32 %v6300_v39, 16  ;;  %v955_v24 = vsel %vm7345_vm12, %v730_v40, %v954_v58  ;;  %v743_v13 = vshll.u32 %v6300_v39, 16 }
  0xac   : > { %953 = vst.msk [vmem:[#allocation2 + $0x7c] sm:$0xf] %vm406_vm1, %v729_v31  ;;  %v958_v28 = vsel %vm7339_vm11, %v737_v43, %v957_v55  ;;  %v3612_v60 = vrot.slane %v7476_v34, 5  ;;  %v1285_v18 = vrot.slane %v1284_v14, 4  ;;  %6637 = vmatmul.mubr.msk.bf16.vlgmr.msra.gmra.mrb[0].mxu0 %vm1485_vm8, %v6128_v36  ;;  %956 = vst [vmem:[#allocation2 + $0x80] sm:$0x1] %v955_v24  ;;  %v365_v54 = vadd.f32 %v7625_v15, %v326_v44 }
  0xad   : > { %v742_v23 = vrot.slane %v740_v30, 7  ;;  %959 = vst [vmem:[#allocation2 + $0x84] sm:$0xf] %v958_v28  ;;  %v3615_v39 = vrot.slane %v7483_v53, 5  ;;  %v6113_v11 = vrot.slane %v3535_v9, 9  ;;  %6669 = vmatpush3.bf16.msra.mxu0 %v7705_v29  ;;  %v3619_v7 = vrot.slane %v7515_v10, 5 }
  0xae   : > { %v961_v34 = vld [vmem:[#allocation2 + $0x8c] sm:$0x1]  ;;  %v3613_v35 = vsel %vm7638_vm15, %v6112_v33, %v3612_v60  ;;  %v3614_v37 = vrot.slane %v3612_v60, 4  ;;  %v3622_v22 = vrot.slane %v7517_v56, 5  ;;  %v1290_v36 = vsel %vm7321_vm9, %v1285_v18, %v1289_v17  ;;  %7036 = vmatprep.subr.msk.bf16.mxu0 %vm1534_vm0, %v7784_v52  ;;  %v290_v18 = vld [vmem:[%s7292_s13 + $0xd0] sm:$0xff] }
  0xaf   : > { %v745_v48 = vor.u32 %v743_v13, %v742_v23  ;;  %v747_v8 = vrot.slane %v742_v23, 4  ;;  %v364_v53 = vadd.f32 %v7625_v15, %v325_v21  ;;  %v289_v29 = vld [vmem:[%s7292_s13 + $0xc8] sm:$0xff]  ;;  %v5940_v25 = vcombine.low %v1280_v41, %v1290_v36 }
  0xb0   : > { %v3616_v33 = vsel %vm7638_vm15, %v3614_v37, %v3615_v39  ;;  %v3620_v10 = vsel %vm7638_vm15, %v6113_v11, %v3619_v7  ;;  %v3621_v56 = vrot.slane %v3619_v7, 4  ;;  %v327_v26 = vmul.f32 %v7619_v59, %v288_v50 }
  0xb1   : > { %v746_v46 = vsel %vm7333_vm10, %v738_v62, %v745_v48  ;;  %v962_v12 = vsel %vm7345_vm12, %v747_v8, %v961_v34  ;;  %v6129_v21 = vcombine.low %v3613_v35, %v3616_v33  ;;  %6483 = vmatmul.mubr.msk.bf16.gmra.mrb[16].mxu1 %vm1485_vm8, %v5940_v25  ;;  %v396_v61 = vmax.f32 %v364_v53, 0.0 }
  0xb2   : > { %v7815_v58 = vld [vmem:[#allocation2 + $0x78] sm:$0xf]  ;;  %960 = vst.msk [vmem:[#allocation2 + $0x88] sm:$0xf] %vm406_vm1, %v746_v46  ;;  %963 = vst [vmem:[#allocation2 + $0x8c] sm:$0x1] %v962_v12  ;;  %v3623_v1 = vsel %vm7638_vm15, %v3621_v56, %v3622_v22  ;;  %v328_v32 = vmul.f32 %v7619_v59, %v289_v29  ;;  %v366_v9 = vadd.f32 %v7625_v15, %v327_v26 }
  0xb3   : > { %v7822_v55 = vld [vmem:[#allocation2 + $0x7c] sm:$0xf]  ;;  %v1292_v2 = vshrl.u32 %v7815_v58, 16  ;;  %v1295_v44 = vshll.u32 %v7815_v58, 16  ;;  %6640 = vmatprep.mubr.msk.bf16.mxu0 %vm1485_vm8, %v6129_v21  ;;  %v6130_v45 = vcombine.low %v3620_v10, %v3623_v1  ;;  %v397_v17 = vmax.f32 %v365_v54, 0.0 }
  0xb4   : > { %v1042_v6 = vld [vmem:[#allocation2 + $0x80] sm:$0x1]  ;;  %v1301_v40 = vshll.u32 %v7822_v55, 16  ;;  %v1305_v5 = vshrl.u32 %v7822_v55, 16  ;;  %v7829_v43 = vld [vmem:[#allocation2 + $0x84] sm:$0xf]  ;;  %v6301_v62 = vpack.c.bf16 %v396_v61, %v396_v61  ;;  %v367_v50 = vadd.f32 %v7625_v15, %v328_v32 }
  0xb5   : > { %v1294_v41 = vrot.slane %v1292_v2, 4  ;;  %v1297_v14 = vrot.slane %v1295_v44, 5  ;;  %v1311_v31 = vshll.u32 %v1042_v6, 16  ;;  %v1316_v30 = vshrl.u32 %v7829_v43, 16  ;;  %6641 = vmatmul.mubr.msk.bf16.gmra.mrb[4].mxu0 %vm1485_vm8, %v6130_v45  ;;  %v964_v1 = vld [vmem:[#allocation2 + $0x90] sm:$0xf] }
  0xb6   : > { %v1303_v24 = vrot.slane %v1301_v40, 5  ;;  %v1307_v13 = vrot.slane %v1305_v5, 4  ;;  %v1319_v28 = vshll.u32 %v7829_v43, 16  ;;  %v6302_v60 = vpack.c.bf16 %v397_v17, %v397_v17  ;;  %v3536_v61 = vld [vmem:[#allocation2 + $0x3c] sm:$0xe] }
  0xb7   : > { %v1298_v23 = vor.u32 %v1297_v14, %v1294_v41  ;;  %v1313_v39 = vrot.slane %v1311_v31, 5  ;;  %v1318_v11 = vrot.slane %v1316_v30, 4  ;;  %v749_v34 = vshrl.u32 %v6301_v62, 16  ;;  %v968_v45 = vld [vmem:[#allocation2 + $0x98] sm:$0x1] }
  0xb8   : > { %v1308_v35 = vor.u32 %v1307_v13, %v1303_v24  ;;  %v1321_v37 = vrot.slane %v1319_v28, 5  ;;  %v752_v7 = vshll.u32 %v6301_v62, 16  ;;  %v757_v22 = vshrl.u32 %v6302_v60, 16  ;;  %v3537_v17 = vld [vmem:[#allocation2 + $0x48] sm:$0xe] }
  0xb9   : > { %v1299_v36 = vrot.slane %v1298_v23, 4  ;;  %v7836_v48 = vld [vmem:[#allocation2 + $0x88] sm:$0xf]  ;;  %v1043_v8 = vld [vmem:[#allocation2 + $0x8c] sm:$0x1]  ;;  %v751_v53 = vrot.slane %v749_v34, 7  ;;  %v329_v29 = vmul.f32 %v7619_v59, %v290_v18 }
  0xba   : > { %v1309_v25 = vrot.slane %v1308_v35, 4  ;;  %v1322_v33 = vor.u32 %v1321_v37, %v1318_v11  ;;  %v1325_v10 = vshll.u32 %v7836_v48, 16  ;;  %v1329_v56 = vshrl.u32 %v7836_v48, 16  ;;  %v7128_v16 = vld [vmem:[#allocation2 + $0x88] sm:$0xf] }
  0xbb   : > { %v1304_v46 = vsel %vm7321_vm9, %v1299_v36, %v1303_v24  ;;  %v1335_v12 = vshll.u32 %v1043_v8, 16  ;;  %v754_v21 = vor.u32 %v752_v7, %v751_v53  ;;  %v755_v54 = vrot.slane %v751_v53, 4  ;;  %v291_v7 = vld [vmem:[%s7292_s13 + $0xd8] sm:$0xff] }
  0xbc   : > { %v1314_v26 = vsel %vm7321_vm9, %v1309_v25, %v1313_v39  ;;  %v1323_v32 = vrot.slane %v1322_v33, 4  ;;  %v1327_v2 = vrot.slane %v1325_v10, 5  ;;  %v1331_v44 = vrot.slane %v1329_v56, 4 }
  0xbd   : > { %v5941_v6 = vcombine.low %v1304_v46, %v1314_v26  ;;  %v1337_v40 = vrot.slane %v1335_v12, 5  ;;  %v759_v5 = vrot.slane %v757_v22, 7  ;;  %v760_v62 = vshll.u32 %v6302_v60, 16  ;;  %v292_v22 = vld [vmem:[%s7292_s13 + $0xe0] sm:$0xff] }
  0xbe   : > { %v1328_v41 = vsel %vm7321_vm9, %v1323_v32, %v1327_v2  ;;  %v1332_v14 = vor.u32 %v1331_v44, %v1327_v2  ;;  %v965_v31 = vsel %vm7339_vm11, %v754_v21, %v964_v1  ;;  %v398_v30 = vmax.f32 %v366_v9, 0.0  ;;  %v975_v44 = vld [vmem:[#allocation2 + $0xa4] sm:$0x1] }
  0xbf   : > { %6486 = vmatprep.mubr.msk.bf16.mxu1 %vm1485_vm8, %v5941_v6  ;;  %v762_v24 = vor.u32 %v760_v62, %v759_v5  ;;  %v764_v13 = vrot.slane %v759_v5, 4  ;;  %966 = vst [vmem:[#allocation2 + $0x90] sm:$0xf] %v965_v31  ;;  %v399_v28 = vmax.f32 %v367_v50, 0.0  ;;  %v6114_v18 = vrot.slane %v3536_v61, 9  ;;  %v293_v31 = vld [vmem:[%s7292_s13 + $0xe8] sm:$0xff] }
  0xc0   : > { %v1333_v23 = vrot.slane %v1332_v14, 4  ;;  %v6303_v39 = vpack.c.bf16 %v398_v30, %v398_v30  ;;  %v3626_v60 = vrot.slane %v7557_v49, 5  ;;  %v3629_v11 = vrot.slane %v7566_v51, 5 }
  0xc1   : > { %v763_v34 = vsel %vm7333_vm10, %v755_v54, %v762_v24  ;;  %v969_v9 = vsel %vm7345_vm12, %v764_v13, %v968_v45  ;;  %v6304_v35 = vpack.c.bf16 %v399_v28, %v399_v28  ;;  %v6115_v37 = vrot.slane %v3537_v17, 9  ;;  %v971_v54 = vld [vmem:[#allocation2 + $0x9c] sm:$0xf] }
  0xc2   : > { %v1338_v36 = vsel %vm7321_vm9, %v1333_v23, %v1337_v40  ;;  %967 = vst.msk [vmem:[#allocation2 + $0x94] sm:$0xf] %vm406_vm1, %v763_v34  ;;  %970 = vst [vmem:[#allocation2 + $0x98] sm:$0x1] %v969_v9  ;;  %v766_v8 = vshrl.u32 %v6303_v39, 16  ;;  %v769_v49 = vshll.u32 %v6303_v39, 16  ;;  %v3627_v51 = vsel %vm7638_vm15, %v6114_v18, %v3626_v60 }
  0xc3   : > { %v5942_v53 = vcombine.low %v1328_v41, %v1338_v36  ;;  %v774_v50 = vshrl.u32 %v6304_v35, 16  ;;  %v777_v25 = vshll.u32 %v6304_v35, 16  ;;  %v3628_v33 = vrot.slane %v3626_v60, 4 }
  0xc4   : > { %v768_v10 = vrot.slane %v766_v8, 7  ;;  %v3633_v56 = vrot.slane %v7587_v63, 5  ;;  %v3636_v46 = vrot.slane %v7598_v27, 5  ;;  %v330_v12 = vmul.f32 %v7619_v59, %v291_v7 }
  0xc5   : > { %6487 = vmatmul.mubr.msk.bf16.gmra.mrb[20].mxu1 %vm1485_vm8, %v5942_v53  ;;  %v776_v21 = vrot.slane %v774_v50, 7  ;;  %v3630_v1 = vsel %vm7638_vm15, %v3628_v33, %v3629_v11  ;;  %v368_v61 = vadd.f32 %v7625_v15, %v329_v29  ;;  %v331_v26 = vmul.f32 %v7619_v59, %v292_v22  ;;  %v3538_v22 = vld [vmem:[#allocation2 + $0x54] sm:$0xe] }
  0xc6   : > { %v7872_v32 = vld [vmem:[#allocation2 + $0x90] sm:$0xf]  ;;  %v771_v2 = vor.u32 %v769_v49, %v768_v10  ;;  %v772_v63 = vrot.slane %v768_v10, 4  ;;  %v6131_v27 = vcombine.low %v3627_v51, %v3630_v1  ;;  %v3634_v45 = vsel %vm7638_vm15, %v6115_v37, %v3633_v56 }
  0xc7   : > { %v1340_v17 = vshrl.u32 %v7872_v32, 16  ;;  %v1343_v6 = vshll.u32 %v7872_v32, 16  ;;  %v779_v40 = vor.u32 %v777_v25, %v776_v21  ;;  %v781_v5 = vrot.slane %v776_v21, 4 }
  0xc8   : > { %v972_v29 = vsel %vm7339_vm11, %v771_v2, %v971_v54  ;;  %6644 = vmatprep.mubr.msk.bf16.mxu0 %vm1485_vm8, %v6131_v27  ;;  %v3635_v62 = vrot.slane %v3633_v56, 4  ;;  %v369_v41 = vadd.f32 %v7625_v15, %v330_v12  ;;  %v400_v14 = vmax.f32 %v368_v61, 0.0 }
  0xc9   : > { %v7883_v30 = vld [vmem:[#allocation2 + $0x94] sm:$0xf]  ;;  %v1044_v24 = vld [vmem:[#allocation2 + $0x98] sm:$0x1]  ;;  %v1342_v13 = vrot.slane %v1340_v17, 4  ;;  %v1345_v28 = vrot.slane %v1343_v6, 5  ;;  %v780_v18 = vsel %vm7333_vm10, %v772_v63, %v779_v40  ;;  %v976_v23 = vsel %vm7345_vm12, %v781_v5, %v975_v44 }
  0xca   : > { %973 = vst [vmem:[#allocation2 + $0x9c] sm:$0xf] %v972_v29  ;;  %v1349_v39 = vshll.u32 %v7883_v30, 16  ;;  %v1353_v60 = vshrl.u32 %v7883_v30, 16  ;;  %v1359_v11 = vshll.u32 %v1044_v24, 16  ;;  %v3637_v34 = vsel %vm7638_vm15, %v3635_v62, %v3636_v46 }
  0xcb   : > { %974 = vst.msk [vmem:[#allocation2 + $0xa0] sm:$0xf] %vm406_vm1, %v780_v18  ;;  %977 = vst [vmem:[#allocation2 + $0xa4] sm:$0x1] %v976_v23  ;;  %v1346_v9 = vor.u32 %v1345_v28, %v1342_v13  ;;  %v6132_v35 = vcombine.low %v3634_v45, %v3637_v34  ;;  %v401_v37 = vmax.f32 %v369_v41, 0.0  ;;  %v6305_v7 = vpack.c.bf16 %v400_v14, %v400_v14 }
  0xcc   : > { %v1351_v36 = vrot.slane %v1349_v39, 5  ;;  %v1355_v8 = vrot.slane %v1353_v60, 4  ;;  %v1361_v49 = vrot.slane %v1359_v11, 5  ;;  %v332_v51 = vmul.f32 %v7619_v59, %v293_v31  ;;  %v978_v41 = vld [vmem:[#allocation2 + $0xa8] sm:$0xf] }
  0xcd   : > { %v1347_v53 = vrot.slane %v1346_v9, 4  ;;  %6645 = vmatmul.mubr.msk.bf16.gmra.mrb[8].mxu0 %vm1485_vm8, %v6132_v35  ;;  %v6306_v50 = vpack.c.bf16 %v401_v37, %v401_v37  ;;  %v783_v25 = vshrl.u32 %v6305_v7, 16  ;;  %v786_v33 = vshll.u32 %v6305_v7, 16  ;;  %v982_v11 = vld [vmem:[#allocation2 + $0xb0] sm:$0x1] }
  0xce   : > { %v1356_v10 = vor.u32 %v1355_v8, %v1351_v36  ;;  %v370_v56 = vadd.f32 %v7625_v15, %v331_v26  ;;  %v371_v46 = vadd.f32 %v7625_v15, %v332_v51  ;;  %v6116_v12 = vrot.slane %v3538_v22, 9 }
  0xcf   : > { %v1352_v21 = vsel %vm7321_vm9, %v1347_v53, %v1351_v36  ;;  %v785_v54 = vrot.slane %v783_v25, 7  ;;  %v791_v1 = vshrl.u32 %v6306_v50, 16  ;;  %v794_v61 = vshll.u32 %v6306_v50, 16  ;;  %v3539_v53 = vld [vmem:[#allocation2 + $0x60] sm:$0xe] }
  0xd0   : > { %v1357_v2 = vrot.slane %v1356_v10, 4  ;;  %v402_v63 = vmax.f32 %v370_v56, 0.0  ;;  %v403_v44 = vmax.f32 %v371_v46, 0.0  ;;  %v3640_v27 = vrot.slane %v7663_v20, 5 }
  0xd1   : > { %v7900_v59 = vld [vmem:[#allocation2 + $0x9c] sm:$0xf]  ;;  %v788_v6 = vor.u32 %v786_v33, %v785_v54  ;;  %v789_v24 = vrot.slane %v785_v54, 4  ;;  %v793_v23 = vrot.slane %v791_v1, 7  ;;  %v985_v1 = vld [vmem:[#allocation2 + $0xb4] sm:$0xf] }
  0xd2   : > { %v7903_v45 = vld [vmem:[#allocation2 + $0xa0] sm:$0xf]  ;;  %v1045_v17 = vld [vmem:[#allocation2 + $0xa4] sm:$0x1]  ;;  %v1364_v26 = vshrl.u32 %v7900_v59, 16  ;;  %v1367_v15 = vshll.u32 %v7900_v59, 16  ;;  %v1362_v40 = vsel %vm7321_vm9, %v1357_v2, %v1361_v49  ;;  %v6307_v34 = vpack.c.bf16 %v402_v63, %v402_v63 }
  0xd3   : > { %v1373_v5 = vshll.u32 %v7903_v45, 16  ;;  %v1377_v29 = vshrl.u32 %v7903_v45, 16  ;;  %v1383_v62 = vshll.u32 %v1045_v17, 16  ;;  %v5943_v14 = vcombine.low %v1352_v21, %v1362_v40  ;;  %v3540_v40 = vld [vmem:[#allocation2 + $0x6c] sm:$0xe] }
  0xd4   : > { %v1366_v31 = vrot.slane %v1364_v26, 4  ;;  %v1369_v20 = vrot.slane %v1367_v15, 5  ;;  %v979_v60 = vsel %vm7339_vm11, %v788_v6, %v978_v41  ;;  %v6308_v9 = vpack.c.bf16 %v403_v44, %v403_v44  ;;  %v989_v6 = vld [vmem:[#allocation2 + $0xbc] sm:$0x1]  ;;  %v2831_v41 = vld [vmem:[#allocation2 + $0x70] sm:$0xf] }
  0xd5   : > { %v1375_v13 = vrot.slane %v1373_v5, 5  ;;  %v1379_v28 = vrot.slane %v1377_v29, 4  ;;  %v1385_v18 = vrot.slane %v1383_v62, 5  ;;  %6490 = vmatprep.mubr.msk.bf16.mxu1 %vm1485_vm8, %v5943_v14  ;;  %v796_v37 = vor.u32 %v794_v61, %v793_v23  ;;  %980 = vst [vmem:[#allocation2 + $0xa8] sm:$0xf] %v979_v60 }
  0xd6   : > { %v1370_v39 = vor.u32 %v1369_v20, %v1366_v31  ;;  %v798_v7 = vrot.slane %v793_v23, 4  ;;  %v3641_v22 = vsel %vm7638_vm15, %v6116_v12, %v3640_v27  ;;  %v800_v8 = vshrl.u32 %v6307_v34, 16  ;;  %v2832_v14 = vld [vmem:[#allocation2 + $0x74] sm:$0x1] }
  0xd7   : > { %v1380_v35 = vor.u32 %v1379_v28, %v1375_v13  ;;  %v803_v49 = vshll.u32 %v6307_v34, 16  ;;  %v808_v51 = vshrl.u32 %v6308_v9, 16  ;;  %v797_v25 = vsel %vm7333_vm10, %v789_v24, %v796_v37 }
  0xd8   : > { %v1371_v36 = vrot.slane %v1370_v39, 4  ;;  %v983_v33 = vsel %vm7345_vm12, %v798_v7, %v982_v11  ;;  %v811_v10 = vshll.u32 %v6308_v9, 16  ;;  %981 = vst.msk [vmem:[#allocation2 + $0xac] sm:$0xf] %vm406_vm1, %v797_v25  ;;  %v802_v46 = vrot.slane %v800_v8, 7 }
  0xd9   : > { %v1381_v50 = vrot.slane %v1380_v35, 4  ;;  %984 = vst [vmem:[#allocation2 + $0xb0] sm:$0x1] %v983_v33  ;;  %v810_v12 = vrot.slane %v808_v51, 7  ;;  %v3642_v21 = vrot.slane %v3640_v27, 4  ;;  %v3643_v61 = vrot.slane %v7655_v38, 5 }
  0xda   : > { %v1376_v56 = vsel %vm7321_vm9, %v1371_v36, %v1375_v13  ;;  %v6117_v2 = vrot.slane %v3539_v53, 9  ;;  %v3647_v63 = vrot.slane %v7735_v47, 5  ;;  %v805_v17 = vor.u32 %v803_v49, %v802_v46 }
  0xdb   : > { %v1386_v54 = vsel %vm7321_vm9, %v1381_v50, %v1385_v18  ;;  %v806_v26 = vrot.slane %v802_v46, 4  ;;  %v813_v15 = vor.u32 %v811_v10, %v810_v12  ;;  %v815_v5 = vrot.slane %v810_v12, 4  ;;  %v3541_v10 = vld [vmem:[#allocation2 + $0x78] sm:$0xe] }
  0xdc   : > { %v5944_v44 = vcombine.low %v1376_v56, %v1386_v54  ;;  %v3644_v29 = vsel %vm7638_vm15, %v3642_v21, %v3643_v61  ;;  %v3648_v27 = vsel %vm7638_vm15, %v6117_v2, %v3647_v63  ;;  %v3649_v62 = vrot.slane %v3647_v63, 4  ;;  %v7932_v38 = vld [vmem:[#allocation2 + $0xa8] sm:$0xf]  ;;  %v7965_v61 = vld [vmem:[#allocation2 + $0x80] sm:$0x1] }
  0xdd   : > { %v814_v47 = vsel %vm7333_vm10, %v806_v26, %v813_v15  ;;  %v986_v31 = vsel %vm7339_vm11, %v805_v17, %v985_v1  ;;  %v6133_v20 = vcombine.low %v3641_v22, %v3644_v29  ;;  %v3650_v24 = vrot.slane %v7737_v19, 5  ;;  %v7963_v1 = vld [vmem:[#allocation2 + $0x7c] sm:$0xf]  ;;  %v3542_v26 = vld [vmem:[#allocation2 + $0x84] sm:$0xe] }
  0xde   : > { %6491 = vmatmul.mubr.msk.bf16.gmra.mrb[24].mxu1 %vm1485_vm8, %v5944_v44  ;;  %v1388_v13 = vshrl.u32 %v7932_v38, 16  ;;  %v1391_v28 = vshll.u32 %v7932_v38, 16  ;;  %987 = vst [vmem:[#allocation2 + $0xb4] sm:$0xf] %v986_v31  ;;  %988 = vst.msk [vmem:[#allocation2 + $0xb8] sm:$0xf] %vm406_vm1, %v814_v47  ;;  %v990_v18 = vsel %vm7345_vm12, %v815_v5, %v989_v6 }
  0xdf   : > { %991 = vst [vmem:[#allocation2 + $0xbc] sm:$0x1] %v990_v18  ;;  %6648 = vmatprep.mubr.msk.bf16.mxu0 %vm1485_vm8, %v6133_v20  ;;  %v3651_v23 = vsel %vm7638_vm15, %v3649_v62, %v3650_v24  ;;  %v6118_v39 = vrot.slane %v3540_v40, 9  ;;  %v3654_v60 = vrot.slane %v2831_v41, 5  ;;  %v3657_v11 = vrot.slane %v2832_v14, 5 }
  0xe0   : > { %v7947_v19 = vld [vmem:[#allocation2 + $0xac] sm:$0xf]  ;;  %v7949_v34 = vld [vmem:[#allocation2 + $0xb0] sm:$0x1]  ;;  %v1390_v9 = vrot.slane %v1388_v13, 4  ;;  %v1393_v35 = vrot.slane %v1391_v28, 5  ;;  %v6134_v37 = vcombine.low %v3648_v27, %v3651_v23 }
  0xe1   : > { %v1397_v7 = vshll.u32 %v7947_v19, 16  ;;  %v1401_v22 = vshrl.u32 %v7947_v19, 16  ;;  %v1407_v36 = vshll.u32 %v7949_v34, 16  ;;  %v3655_v49 = vsel %vm7638_vm15, %v6118_v39, %v3654_v60  ;;  %v2837_v29 = vld [vmem:[#allocation2 + $0x88] sm:$0xf] }
  0xe2   : > { %v1394_v8 = vor.u32 %v1393_v35, %v1390_v9  ;;  %6649 = vmatmul.mubr.msk.bf16.gmra.mrb[12].mxu0 %vm1485_vm8, %v6134_v37  ;;  %v3656_v51 = vrot.slane %v3654_v60, 4  ;;  %v6119_v14 = vrot.slane %v3541_v10, 9  ;;  %v2838_v47 = vld [vmem:[#allocation2 + $0x8c] sm:$0x1]  ;;  %v2840_v24 = vld [vmem:[#allocation2 + $0x94] sm:$0xf] }
  0xe3   : > { %v1399_v53 = vrot.slane %v1397_v7, 5  ;;  %v1403_v50 = vrot.slane %v1401_v22, 4  ;;  %v1409_v46 = vrot.slane %v1407_v36, 5  ;;  %v3543_v13 = vld [vmem:[#allocation2 + $0x90] sm:$0xe]  ;;  %v3661_v23 = vrot.slane %v7963_v1, 5 }
  0xe4   : > { %v1395_v25 = vrot.slane %v1394_v8, 4  ;;  %v3658_v33 = vsel %vm7638_vm15, %v3656_v51, %v3657_v11  ;;  %v3664_v39 = vrot.slane %v7965_v61, 5  ;;  %v6120_v9 = vrot.slane %v3542_v26, 9  ;;  %v2841_v37 = vld [vmem:[#allocation2 + $0x98] sm:$0x1] }
  0xe5   : > { %v1404_v56 = vor.u32 %v1403_v50, %v1399_v53  ;;  %v7959_v12 = vld [vmem:[#allocation2 + $0xb4] sm:$0xf]  ;;  %v7961_v21 = vld [vmem:[#allocation2 + $0xb8] sm:$0xf]  ;;  %v6135_v54 = vcombine.low %v3655_v49, %v3658_v33  ;;  %v3668_v35 = vrot.slane %v2837_v29, 5  ;;  %v3662_v22 = vsel %vm7638_vm15, %v6119_v14, %v3661_v23 }
  0xe6   : > { %v7967_v2 = vld [vmem:[#allocation2 + $0xbc] sm:$0x1]  ;;  %v1412_v63 = vshrl.u32 %v7959_v12, 16  ;;  %v1415_v44 = vshll.u32 %v7959_v12, 16  ;;  %v1421_v17 = vshll.u32 %v7961_v21, 16  ;;  %v1400_v15 = vsel %vm7321_vm9, %v1395_v25, %v1399_v53 }
  0xe7   : > { %v1405_v6 = vrot.slane %v1404_v56, 4  ;;  %v1425_v40 = vshrl.u32 %v7961_v21, 16  ;;  %v1431_v5 = vshll.u32 %v7967_v2, 16  ;;  %6652 = vmatprep.mubr.msk.bf16.mxu0 %vm1485_vm8, %v6135_v54  ;;  %v3663_v36 = vrot.slane %v3661_v23, 4  ;;  %v2843_v25 = vld [vmem:[#allocation2 + $0xa0] sm:$0xf] }
  0xe8   : > { %v1414_v27 = vrot.slane %v1412_v63, 4  ;;  %v1417_v62 = vrot.slane %v1415_v44, 5  ;;  %v1423_v41 = vrot.slane %v1421_v17, 5  ;;  %v3671_v8 = vrot.slane %v2838_v47, 5  ;;  %v2844_v54 = vld [vmem:[#allocation2 + $0xa4] sm:$0x1] }
  0xe9   : > { %v1410_v31 = vsel %vm7321_vm9, %v1405_v6, %v1409_v46  ;;  %v1427_v20 = vrot.slane %v1425_v40, 4  ;;  %v1433_v11 = vrot.slane %v1431_v5, 5  ;;  %v3669_v51 = vsel %vm7638_vm15, %v6120_v9, %v3668_v35  ;;  %v3544_v63 = vld [vmem:[#allocation2 + $0x9c] sm:$0xe]  ;;  %v7081_v17 = vld [vmem:[#allocation2] sm:$0xf] }
  0xea   : > { %v5945_v28 = vcombine.low %v1400_v15, %v1410_v31  ;;  %v1418_v18 = vor.u32 %v1417_v62, %v1414_v27  ;;  %v3670_v53 = vrot.slane %v3668_v35, 4  ;;  %v6121_v50 = vrot.slane %v3543_v13, 9  ;;  %v7992_v26 = vld [vmem:[#allocation2 + $0x4] sm:$0xf]  ;;  %v2846_v5 = vld [vmem:[#allocation2 + $0xac] sm:$0xf] }
  0xeb   : > { %v1428_v60 = vor.u32 %v1427_v20, %v1423_v41  ;;  %v3665_v10 = vsel %vm7638_vm15, %v3663_v36, %v3664_v39  ;;  %v3675_v56 = vrot.slane %v2840_v24, 5  ;;  %v3678_v46 = vrot.slane %v2841_v37, 5  ;;  %v3545_v31 = vld [vmem:[#allocation2 + $0xa8] sm:$0xe]  ;;  %v7083_v9 = vld [vmem:[#allocation2 + $0xc] sm:$0xf] }
  0xec   : > { %6494 = vmatprep.mubr.msk.bf16.mxu1 %vm1485_vm8, %v5945_v28  ;;  %v1419_v7 = vrot.slane %v1418_v18, 4  ;;  %v5963_v15 = vcombine.low %v7081_v17, %v7992_v26  ;;  %v6136_v6 = vcombine.low %v3662_v22, %v3665_v10  ;;  %v3672_v40 = vsel %vm7638_vm15, %v3670_v53, %v3671_v8  ;;  %v2849_v28 = vld [vmem:[#allocation2 + $0xb8] sm:$0xf]  ;;  %v294_v18 = vld [vmem:[%s7292_s13 + $0xf0] sm:$0xff]  ;;  %v8012_v22 = vld [vmem:[#allocation2 + $0x1c] sm:$0xf] }
  0xed   : > { %v1429_v49 = vrot.slane %v1428_v60, 4  ;;  %v6137_v27 = vcombine.low %v3669_v51, %v3672_v40  ;;  %v3677_v62 = vrot.slane %v3675_v56, 4  ;;  %v3682_v14 = vrot.slane %v2843_v25, 5  ;;  %v2847_v60 = vld [vmem:[#allocation2 + $0xb0] sm:$0x1] }
  0xee   : > { %v1424_v33 = vsel %vm7321_vm9, %v1419_v7, %v1423_v41  ;;  %6653 = vmatmul.mubr.msk.bf16.gmra.mrb[16].mxu0 %vm1485_vm8, %v6136_v6  ;;  %v6122_v41 = vrot.slane %v3544_v63, 9  ;;  %v3685_v47 = vrot.slane %v2844_v54, 5  ;;  %v3676_v20 = vsel %vm7638_vm15, %v6121_v50, %v3675_v56  ;;  %v8009_v35 = vld [vmem:[#allocation2 + $0x10] sm:$0xf]  ;;  %v7085_v7 = vld [vmem:[#allocation2 + $0x18] sm:$0xf] }
  0xef   : > { %v1434_v44 = vsel %vm7321_vm9, %v1429_v49, %v1433_v11  ;;  %6656 = vmatprep.mubr.msk.bf16.mxu0 %vm1485_vm8, %v6137_v27  ;;  %v3679_v24 = vsel %vm7638_vm15, %v3677_v62, %v3678_v46  ;;  %v3689_v13 = vrot.slane %v2846_v5, 5  ;;  %v3684_v39 = vrot.slane %v3682_v14, 4  ;;  %v295_v11 = vld [vmem:[%s7292_s13 + $0xf8] sm:$0xff]  ;;  %v3546_v51 = vld [vmem:[#allocation2 + $0xb4] sm:$0xe] }
  0xf0   : > { %v5946_v29 = vcombine.low %v1424_v33, %v1434_v44  ;;  %v3683_v23 = vsel %vm7638_vm15, %v6122_v41, %v3682_v14  ;;  %v5964_v37 = vcombine.low %v7083_v9, %v8009_v35  ;;  %v5965_v36 = vcombine.low %v7085_v7, %v8012_v22  ;;  %v2850_v49 = vld [vmem:[#allocation2 + $0xbc] sm:$0x1]  ;;  %v7087_v33 = vld [vmem:[%s9250_s1] ss:$0 sm:$0xff]  ;;  %v7089_v5 = vld [vmem:[%s9252_s3 + $0x8] sm:$0xf] }
  0xf1   : > { %v6123_v8 = vrot.slane %v3545_v31, 9  ;;  %v6138_v53 = vcombine.low %v3676_v20, %v3679_v24  ;;  %v3686_v50 = vsel %vm7638_vm15, %v3684_v39, %v3685_v47  ;;  %v3696_v25 = vrot.slane %v2849_v28, 5  ;;  %v7088_v6 = vld [vmem:[%s9251_s2] ss:$0 sm:$0xff]  ;;  %v8031_v41 = vld [vmem:[%s9252_s3 + $0xc] sm:$0xf] }
  0xf2   : > { %6495 = vmatmul.mubr.msk.bf16.gmra.mrb[28].mxu1 %vm1485_vm8, %v5946_v29  ;;  %v333_v10 = vmul.f32 %v7087_v33, %v294_v18  ;;  %v6139_v56 = vcombine.low %v3683_v23, %v3686_v50  ;;  %v3691_v46 = vrot.slane %v3689_v13, 4  ;;  %v3692_v54 = vrot.slane %v2847_v60, 5  ;;  %v7090_v60 = vld [vmem:[#allocation2 + $0x24] sm:$0xf] }
  0xf3   : > { %6500 = vmatprep.mubr.msk.bf16.mxu1 %vm1485_vm8, %v5963_v15  ;;  %v334_v63 = vmul.f32 %v7087_v33, %v295_v11  ;;  %v6124_v44 = vrot.slane %v3546_v51, 9  ;;  %v3698_v17 = vrot.slane %v3696_v25, 4  ;;  %v3699_v15 = vrot.slane %v2850_v49, 5  ;;  %v8046_v11 = vld [vmem:[#allocation2 + $0x28] sm:$0xf] }
  0xf4   : > { %v372_v40 = vadd.f32 %v7088_v6, %v333_v10  ;;  %v2253_v29 = vsel %vm1534_vm0, %v7089_v5, 0  ;;  %v3690_v14 = vsel %vm7638_vm15, %v6123_v8, %v3689_v13  ;;  %v3693_v47 = vsel %vm7638_vm15, %v3691_v46, %v3692_v54  ;;  %v7092_v8 = vld [vmem:[#allocation2 + $0x30] sm:$0xf]  ;;  %v8049_v49 = vld [vmem:[#allocation2 + $0x34] sm:$0xf] }
  0xf5   : > { %v373_v27 = vadd.f32 %v7088_v6, %v334_v63  ;;  %v3697_v20 = vsel %vm7638_vm15, %v6124_v44, %v3696_v25  ;;  %v3700_v24 = vsel %vm7638_vm15, %v3698_v17, %v3699_v15  ;;  %v6140_v23 = vcombine.low %v3690_v14, %v3693_v47  ;;  %v992_v25 = vld [vmem:[#allocation2 + $0xc0] sm:$0xf]  ;;  %v7094_v15 = vld [vmem:[#allocation2 + $0x3c] sm:$0xf]  ;;  %v7096_v5 = vld [vmem:[#allocation2 + $0x48] sm:$0xf] }
  0xf6   : > { %6657 = vmatmul.mubr.msk.bf16.gmra.mrb[20].mxu0 %vm1485_vm8, %v6138_v53  ;;  %v404_v62 = vmax.f32 %v372_v40, 0.0  ;;  %v5966_v9 = vcombine.low %v7090_v60, %v8046_v11  ;;  %v5967_v51 = vcombine.low %v7092_v8, %v8049_v49  ;;  %v8063_v6 = vld [vmem:[#allocation2 + $0x40] sm:$0xf]  ;;  %v3080_v57 = vshll.u32 %v7963_v1, 16  ;;  %v8078_v60 = vld [vmem:[#allocation2 + $0x64] sm:$0xf] }
  0xf7   : > { %6660 = vmatprep.mubr.msk.bf16.mxu0 %vm1485_vm8, %v6139_v56  ;;  %v405_v31 = vmax.f32 %v373_v27, 0.0  ;;  %v996_v56 = vld [vmem:[#allocation2 + $0xc8] sm:$0x1]  ;;  %v5968_v40 = vcombine.low %v7094_v15, %v8063_v6  ;;  %v3084_v27 = vshrl.u32 %v7963_v1, 16  ;;  %v7047_v8 = vld [vmem:[#allocation2 + $0x18] sm:$0xff]  }
  0xf8   : > { %v6309_v28 = vpack.c.bf16 %v404_v62, %v404_v62  ;;  %v8081_v1 = vrot.slane %v3080_v57, 5 }
  0xf9   : > { %v6310_v18 = vpack.c.bf16 %v405_v31, %v405_v31 }
  0xfa   : > { %6501 = vmatmul.mubr.msk.bf16.vlgmr.msra.gmra.mrb[0].mxu1 %vm1485_vm8, %v5964_v37  ;;  %v817_v13 = vshrl.u32 %v6309_v28, 16  ;;  %v820_v39 = vshll.u32 %v6309_v28, 16  ;;  %v6141_v37 = vcombine.low %v3697_v20, %v3700_v24  ;;  %v7098_v24 = vld [vmem:[#allocation2 + $0x54] sm:$0xf]  ;;  %v8073_v28 = vld [vmem:[#allocation2 + $0x58] sm:$0xf] }
  0xfb   : > { %6533 = vmatpush3.bf16.msra.mxu1 %v2253_v29  ;;  %6504 = vmatprep.mubr.msk.bf16.mxu1 %vm1485_vm8, %v5965_v36  ;;  %v825_v7 = vshrl.u32 %v6310_v18, 16  ;;  %v828_v36 = vshll.u32 %v6310_v18, 16  ;;  %v8066_v29 = vld [vmem:[#allocation2 + $0x4c] sm:$0xf]  ;;  %v5970_v18 = vcombine.low %v7098_v24, %v8073_v28  ;;  %9282 = vst [vmem:[#allocation4_spill] sm:$0xff] %v8081_v1  ;;  %v7048_v24 = vld [vmem:[#allocation2 + $0x24] sm:$0xff]  }
  0xfc   : > { %7031 = vmatprep.subr.msk.bf16.mxu1 %vm1534_vm0, %v8031_v41  ;;  %v819_v53 = vrot.slane %v817_v13, 7  ;;  %v5969_v0 = vcombine.low %v7096_v5, %v8066_v29 }
  0xfd   : > { %v827_v50 = vrot.slane %v825_v7, 7  ;;  %v3090_v7 = vshll.u32 %v7965_v61, 16 }
  0xfe   : > { %6661 = vmatmul.mubr.msk.bf16.gmra.mrb[24].mxu0 %vm1485_vm8, %v6140_v23  ;;  %v822_v33 = vor.u32 %v820_v39, %v819_v53  ;;  %v823_v10 = vrot.slane %v819_v53, 4  ;;  %v7100_v39 = vld [vmem:[#allocation2 + $0x60] sm:$0xf] }
  0xff   : > { %6664 = vmatprep.mubr.msk.bf16.mxu0 %vm1485_vm8, %v6141_v37  ;;  %v830_v46 = vor.u32 %v828_v36, %v827_v50  ;;  %v832_v54 = vrot.slane %v827_v50, 4  ;;  %v3086_v37 = vrot.slane %v3084_v27, 4  ;;  %v2044_v50 = vrot.slane %v7992_v26, 5  ;;  %v7104_v26 = vld [vmem:[#allocation2 + $0x6c] sm:$0xf] }
 0x100   : > { %v993_v63 = vsel %vm7339_vm11, %v822_v33, %v992_v25  ;;  %v1991_v25 = vld [vmem:[#allocation2] sm:$0xe]  ;;  %v1992_v33 = vld [vmem:[#allocation2 + $0xc] sm:$0xe]  ;;  %v8094_v15 = vrot.slane %v3090_v7, 5 }
 0x101   : > { %v831_v44 = vsel %vm7333_vm10, %v823_v10, %v830_v46  ;;  %994 = vst [vmem:[#allocation2 + $0xc0] sm:$0xf] %v993_v63  ;;  %v997_v17 = vsel %vm7345_vm12, %v832_v54, %v996_v56  ;;  %v2058_v10 = vrot.slane %v8012_v22, 5  ;;  %v7102_v56 = vld [vmem:[#allocation2 + $0x8] sm:$0x1]  ;;  %v3087_v61 = vor.u32 %v3086_v37, %v8081_v1  ;;  %v7053_v7 = vld [vmem:[#allocation2 + $0x60] sm:$0xff]  }
 0x102   : > { %6505 = vmatmul.mubr.msk.bf16.gmra.mrb[4].mxu1 %vm1485_vm8, %v5966_v9  ;;  %995 = vst.msk [vmem:[#allocation2 + $0xc4] sm:$0xf] %vm406_vm1, %v831_v44  ;;  %998 = vst [vmem:[#allocation2 + $0xc8] sm:$0x1] %v997_v17  ;;  %v5971_v9 = vcombine.low %v7100_v39, %v8078_v60  ;;  %v2047_v46 = vrot.slane %v7102_v56, 5  ;;  %v5973_v22 = vcombine.low %v7815_v58, %v7822_v55  ;;  %v2046_v57 = vrot.slane %v2044_v50, 4 }
 0x103   : > { %6508 = vmatprep.mubr.msk.bf16.mxu1 %vm1485_vm8, %v5967_v51  ;;  %v2051_v51 = vrot.slane %v8009_v35, 5  ;;  %v1993_v54 = vld [vmem:[#allocation2 + $0x18] sm:$0xe]  ;;  %v1994_v63 = vld [vmem:[#allocation2 + $0x24] sm:$0xe]  ;;  %v2065_v35 = vrot.slane %v8046_v11, 5  ;;  %v5974_v55 = vcombine.low %v7829_v43, %v7836_v48  ;;  %v5975_v37 = vcombine.low %v7872_v32, %v7883_v30 }
 0x104   : > { %v7103_v44 = vld [vmem:[#allocation2 + $0x14] sm:$0x1]  ;;  %9283 = vst [vmem:[#allocation5_spill] sm:$0xff] %v8094_v15  ;;  %v2060_v11 = vrot.slane %v2058_v10, 4  ;;  %v2072_v39 = vrot.slane %v8049_v49, 5  ;;  %v4892_v58 = vsel %vm1534_vm0, %v7784_v52, 0  ;;  %v8120_v52 = vsel %vm7638_vm15, %v2046_v57, %v2047_v46 }
 0x105   : > { %v2054_v17 = vrot.slane %v7103_v44, 5  ;;  %v2053_v27 = vrot.slane %v2051_v51, 4  ;;  %v1996_v32 = vld [vmem:[#allocation2 + $0x3c] sm:$0xe]  ;;  %v7108_v46 = vld [vmem:[#allocation2 + $0x38] sm:$0x1] }
 0x106   : > { %v2074_v56 = vrot.slane %v2072_v39, 4  ;;  %v4361_v44 = vld [vmem:[#allocation2 + $0x18] sm:$0xf] }
 0x107   : > { %v8128_v48 = vsel %vm7638_vm15, %v2053_v27, %v2054_v17  ;;  %v7109_v27 = vld [vmem:[#allocation2 + $0x44] sm:$0x1]  ;;  %v7052_v17 = vld [vmem:[#allocation2 + $0x54] sm:$0xff]  }
 0x108   : > { %v3547_v4 = vld [vmem:[#allocation2 + $0xc0] sm:$0xe] }
 0x109   : > { %v2852_v62 = vld [vmem:[#allocation2 + $0xc4] sm:$0xf]  ;;  %v2853_v14 = vld [vmem:[#allocation2 + $0xc8] sm:$0x1]  ;;  %v6125_v47 = vrot.slane %v3547_v4, 9  ;;  %v5996_v4 = vrot.slane %v1992_v33, 9 }
 0x10a   : > { %6509 = vmatmul.mubr.msk.bf16.gmra.mrb[8].mxu1 %vm1485_vm8, %v5968_v40  ;;  %v3703_v31 = vrot.slane %v2852_v62, 5  ;;  %v3706_v20 = vrot.slane %v2853_v14, 5  ;;  %v8096_v40 = vld [vmem:[#allocation2 + $0x70] sm:$0xf]  ;;  %v5997_v62 = vrot.slane %v1993_v54, 9 }
 0x10b   : > { %6512 = vmatprep.mubr.msk.bf16.mxu1 %vm1485_vm8, %v5969_v0  ;;  %v5972_v5 = vcombine.low %v7104_v26, %v8096_v40  ;;  %v5995_v0 = vrot.slane %v1991_v25, 9  ;;  %v7106_v14 = vld [vmem:[#allocation2 + $0x20] sm:$0x1]  ;;  %v8124_v43 = vsel %vm7638_vm15, %v5996_v4, %v2051_v51  ;;  %v2079_v51 = vrot.slane %v8063_v6, 5 }
 0x10c   : > { %v3704_v23 = vsel %vm7638_vm15, %v6125_v47, %v3703_v31  ;;  %v3705_v13 = vrot.slane %v3703_v31, 4  ;;  %v2061_v47 = vrot.slane %v7106_v14, 5  ;;  %v5998_v31 = vrot.slane %v1994_v63, 9  ;;  %v8147_v25 = vld [vmem:[%s9252_s3 + $0x20] sm:$0xf] }
 0x10d   : > { %v8133_v30 = vsel %vm7638_vm15, %v5997_v62, %v2058_v10  ;;  %v8161_v63 = vsel %vm1534_vm0, %v8031_v41, 0  ;;  %v2081_v4 = vrot.slane %v2079_v51, 4  ;;  %v2082_v62 = vrot.slane %v7109_v27, 5  ;;  %v7050_v14 = vld [vmem:[#allocation2 + $0x3c] sm:$0xff]  }
 0x10e   : > { %v3707_v36 = vsel %vm7638_vm15, %v3705_v13, %v3706_v20  ;;  %v8102_v20 = vrot.slane %v3087_v61, 4  ;;  %v8137_v49 = vsel %vm7638_vm15, %v2060_v11, %v2061_v47  ;;  %v2075_v61 = vrot.slane %v7108_v46, 5  ;;  %v8174_v11 = vld [vmem:[#allocation2 + $0x54] sm:$0xe]  ;;  %v4365_v46 = vld [vmem:[#allocation2 + $0x28] sm:$0xf] }
 0x10f   : > { %v6142_v53 = vcombine.low %v3704_v23, %v3707_v36  ;;  %v7107_v23 = vld [vmem:[#allocation2 + $0x2c] sm:$0x1]  ;;  %v1995_v36 = vld [vmem:[#allocation2 + $0x30] sm:$0xe] }
 0x110   : > { %9284 = vst [vmem:[#allocation6_spill] sm:$0xff] %v8102_v20  ;;  %v2068_v13 = vrot.slane %v7107_v23, 5  ;;  %v5999_v10 = vrot.slane %v1995_v36, 9 }
 0x111   : > { %6665 = vmatmul.mubr.msk.bf16.gmra.mrb[28].mxu0 %vm1485_vm8, %v6142_v53  ;;  %v8141_v53 = vsel %vm7638_vm15, %v5998_v31, %v2065_v35  ;;  %v4410_v31 = vshrl.u32 %v4361_v44, 16 }
 0x112   : > { %6513 = vmatmul.mubr.msk.bf16.gmra.mrb[12].mxu1 %vm1485_vm8, %v5970_v18  ;;  %6670 = vmatprep.mubr.msk.bf16.mxu0 %vm1485_vm8, %v7047_v8  ;;  %v2067_v18 = vrot.slane %v2065_v35, 4  ;;  %v8116_v8 = vsel %vm7638_vm15, %v5995_v0, %v2044_v50  ;;  %v1997_v50 = vld [vmem:[#allocation2 + $0x48] sm:$0xe]  ;;  %v6000_v35 = vrot.slane %v1996_v32, 9  ;;  %v4362_v0 = vld [vmem:[#allocation2 + $0x1c] sm:$0xf]  ;;  %v8178_v47 = vsel %vm7638_vm15, %v5999_v10, %v2072_v39 }
 0x113   : > { %6516 = vmatprep.mubr.msk.bf16.mxu1 %vm1485_vm8, %v5971_v9  ;;  %v7049_v9 = vld [vmem:[#allocation2 + $0x30] sm:$0xff]   ;;  %v4423_v36 = vshrl.u32 %v4362_v0, 16  ;;  %v4364_v32 = vld [vmem:[#allocation2 + $0x24] sm:$0xf]  ;;  %v6002_v10 = vrot.slane %v8174_v11, 9 }
 0x114   : > { %v8152_v33 = vsel %vm7638_vm15, %v2067_v18, %v2068_v13  ;;  %v7051_v18 = vld [vmem:[#allocation2 + $0x48] sm:$0xff]   ;;  %v8186_v23 = vsel %vm7638_vm15, %v6000_v35, %v2079_v51  ;;  %v7110_v13 = vld [vmem:[#allocation2 + $0x50] sm:$0x1]  ;;  %v2100_v35 = vrot.slane %v8078_v60, 5  ;;  %v4437_v27 = vshll.u32 %v4364_v32, 16 }
 0x115   : > { %v4425_v11 = vrot.slane %v4423_v36, 4  ;;  %v7111_v51 = vld [vmem:[#allocation2 + $0x5c] sm:$0x1]  ;;  %v4366_v36 = vld [vmem:[#allocation2 + $0x2c] sm:$0x1] }
 0x116   : > { %v2102_v57 = vrot.slane %v2100_v35, 4 }
 0x119   : > { %6671 = vmatmul.mubr.msk.bf16.vlgmr.msra.gmra.mrb[0].mxu0 %vm1485_vm8, %v7048_v24  ;;  %v4413_v24 = vshll.u32 %v4361_v44, 16  ;;  %v2107_v44 = vrot.slane %v8096_v40, 5  ;;  %v2096_v40 = vrot.slane %v7111_v51, 5 }
 0x11a   : > { %6517 = vmatmul.mubr.msk.bf16.gmra.mrb[16].mxu1 %vm1485_vm8, %v5972_v5  ;;  %6703 = vmatpush3.bf16.msra.mxu0 %v4892_v58  ;;  %v6001_v5 = vrot.slane %v1997_v50, 9  ;;  %v2089_v58 = vrot.slane %v7110_v13, 5  ;;  %v4443_v13 = vshll.u32 %v4365_v46, 16 }
 0x11b   : > { %6520 = vmatprep.mubr.msk.bf16.mxu1 %vm1485_vm8, %v5973_v22  ;;  %6674 = vmatprep.mubr.msk.bf16.mxu0 %vm1485_vm8, %v7049_v9  ;;  %v2086_v22 = vrot.slane %v8066_v29, 5  ;;  %v8182_v29 = vsel %vm7638_vm15, %v2074_v56, %v2075_v61  ;;  %v4419_v9 = vshll.u32 %v4362_v0, 16  ;;  %v2093_v56 = vrot.slane %v8073_v28, 5 }
 0x11c   : > { %7037 = vmatprep.subr.msk.bf16.mxu0 %vm1534_vm0, %v8147_v25  ;;  %v8200_v61 = vsel %vm7638_vm15, %v2081_v4, %v2082_v62  ;;  %v4415_v28 = vrot.slane %v4413_v24, 5  ;;  %v4434_v0 = vshrl.u32 %v4364_v32, 16  ;;  %v4447_v4 = vshrl.u32 %v4365_v46, 16 }
 0x11d   : > { %v8191_v39 = vsel %vm7638_vm15, %v6001_v5, %v2086_v22  ;;  %v2088_v50 = vrot.slane %v2086_v22, 4  ;;  %v2000_v5 = vld [vmem:[#allocation2 + $0x6c] sm:$0xe]  ;;  %v4412_v22 = vrot.slane %v4410_v31, 4  ;;  %v2095_v60 = vrot.slane %v2093_v56, 4 }
 0x11e   : > { %v7112_v31 = vld [vmem:[#allocation2 + $0x68] sm:$0x1]  ;;  %v6004_v26 = vrot.slane %v2000_v5, 9  ;;  %v2109_v32 = vrot.slane %v2107_v44, 4  ;;  %v4436_v6 = vrot.slane %v4434_v0, 4  ;;  %v4439_v46 = vrot.slane %v4437_v27, 5 }
 0x11f   : > { %v2103_v24 = vrot.slane %v7112_v31, 5  ;;  %v4416_v54 = vor.u32 %v4415_v28, %v4412_v22  ;;  %v8211_v1 = vrot.slane %v4443_v13, 5  ;;  %v4449_v51 = vrot.slane %v4447_v4, 4 }
 0x120   : > { %v9285_v31 = vcombine.low %v7900_v59, %v7903_v45  ;;  %v8219_v5 = vsel %vm7638_vm15, %v2088_v50, %v2089_v58  ;;  %v8223_v22 = vsel %vm7638_vm15, %v6002_v10, %v2093_v56  ;;  %v8227_v28 = vsel %vm7638_vm15, %v2095_v60, %v2096_v40  ;;  %v7114_v56 = vld [vmem:[#allocation2 + $0x7c] sm:$0xf]  ;;  %v8258_v40 = vld [vmem:[#allocation2 + $0x34] sm:$0xf] }
 0x121   : > { %6675 = vmatmul.mubr.msk.bf16.gmra.mrb[4].mxu0 %vm1485_vm8, %v7050_v14  ;;  %v4363_v14 = vld [vmem:[#allocation2 + $0x20] sm:$0x1]  ;;  %v9286_v59 = vcombine.low %v7932_v38, %v7947_v19  ;;  %v8239_v58 = vsel %vm7638_vm15, %v2102_v57, %v2103_v24  ;;  %v8243_v50 = vsel %vm7638_vm15, %v6004_v26, %v2107_v44  ;;  %v4453_v10 = vshll.u32 %v4366_v36, 16  ;;  %9287 = vst [vmem:[#allocation7_spill] sm:$0xff] %v8258_v40  ;;  %v2003_v57 = vld [vmem:[#allocation2 + $0x90] sm:$0xe] }
 0x122   : > { %6521 = vmatmul.mubr.msk.bf16.gmra.mrb[20].mxu1 %vm1485_vm8, %v5974_v55  ;;  %v1999_v55 = vld [vmem:[#allocation2 + $0x60] sm:$0xe]  ;;  %6678 = vmatprep.mubr.msk.bf16.mxu0 %vm1485_vm8, %v7051_v18  ;;  %v7113_v18 = vld [vmem:[#allocation2 + $0x74] sm:$0x1]  ;;  %v4429_v3 = vshll.u32 %v4363_v14, 16  ;;  %v2114_v27 = vrot.slane %v7114_v56, 5  ;;  %v4450_v4 = vor.u32 %v4449_v51, %v8211_v1 }
 0x123   : > { %6524 = vmatprep.mubr.msk.bf16.mxu1 %vm1485_vm8, %v5975_v37  ;;  %v8206_v37 = vrot.slane %v4419_v9, 5  ;;  %v6003_v41 = vrot.slane %v1999_v55, 9  ;;  %v2110_v9 = vrot.slane %v7113_v18, 5  ;;  %v2001_v55 = vld [vmem:[#allocation2 + $0x78] sm:$0xe]  ;;  %v4417_v38 = vrot.slane %v4416_v54, 4 }
 0x124   : > { %v6005_v13 = vrot.slane %v2001_v55, 9  ;;  %v4431_v44 = vrot.slane %v4429_v3, 5  ;;  %v7054_v14 = vld [vmem:[#allocation2 + $0x6c] sm:$0xff]   ;;  %v4455_v24 = vrot.slane %v4453_v10, 5  ;;  %v4370_v18 = vld [vmem:[#allocation2 + $0x3c] sm:$0xf] }
 0x125   : > { %v4426_v62 = vor.u32 %v4425_v11, %v8206_v37  ;;  %v8231_v0 = vsel %vm7638_vm15, %v6003_v41, %v2100_v35  ;;  %v4367_v11 = vld [vmem:[#allocation2 + $0x30] sm:$0xf]  ;;  %v8248_v41 = vsel %vm7638_vm15, %v2109_v32, %v2110_v9  ;;  %v4440_v35 = vor.u32 %v4439_v46, %v4436_v6  ;;  %v2002_v55 = vld [vmem:[#allocation2 + $0x84] sm:$0xe] }
 0x126   : > { %v4458_v54 = vshrl.u32 %v4367_v11, 16  ;;  %v4461_v6 = vshll.u32 %v4367_v11, 16  ;;  %v2116_v32 = vrot.slane %v2114_v27, 4  ;;  %v4422_v9 = vsel %vm7321_vm9, %v4417_v38, %v8206_v37  ;;  %v8283_v38 = vld [vmem:[#allocation2 + $0x38] sm:$0x1] }
 0x127   : > { %v4427_v26 = vrot.slane %v4426_v62, 4  ;;  %v7115_v62 = vld [vmem:[#allocation2 + $0x80] sm:$0x1]  ;;  %v4441_v36 = vrot.slane %v4440_v35, 4  ;;  %v8267_v46 = vsel %vm1534_vm0, %v8147_v25, 0  ;;  %v8271_v51 = vsel %vm7638_vm15, %v6005_v13, %v2114_v27  ;;  %9291 = vst [vmem:[#allocation10_spill] sm:$0xff] %v8283_v38 }
 0x128   : > { %v2117_v3 = vrot.slane %v7115_v62, 5  ;;  %9288 = vst [vmem:[#allocation8_spill] sm:$0xff] %v8267_v46  ;;  %v4451_v56 = vrot.slane %v4450_v4, 4  ;;  %v4467_v11 = vshll.u32 %v8258_v40, 16  ;;  %v4471_v37 = vshrl.u32 %v8258_v40, 16 }
 0x129   : > { %6679 = vmatmul.mubr.msk.bf16.gmra.mrb[8].mxu0 %vm1485_vm8, %v7052_v17  ;;  %v4432_v10 = vsel %vm7321_vm9, %v4427_v26, %v4431_v44  ;;  %v9290_v25 = vcombine.low %v7959_v12, %v7961_v21  ;;  %v4460_v27 = vrot.slane %v4458_v54, 4  ;;  %v4463_v35 = vrot.slane %v4461_v6, 5  ;;  %v7118_v40 = vld [vmem:[#allocation2 + $0x94] sm:$0xf] }
 0x12a   : > { %6525 = vmatmul.mubr.msk.bf16.gmra.mrb[24].mxu1 %vm1485_vm8, %v9285_v31  ;;  %6682 = vmatprep.mubr.msk.bf16.mxu0 %vm1485_vm8, %v7053_v7  ;;  %v8273_v31 = vld [vmem:[#allocation2 + $0x40] sm:$0xf]  ;;  %v4482_v13 = vshrl.u32 %v4370_v18, 16  ;;  %v4485_v62 = vshll.u32 %v4370_v18, 16  ;;  %v9292_v7 = vcombine.low %v8116_v8, %v8120_v52  ;;  %v8291_v26 = vsel %vm7638_vm15, %v2116_v32, %v2117_v3  ;;  %v7116_v8 = vld [vmem:[#allocation2 + $0x88] sm:$0xf] }
 0x12b   : > { %6528 = vmatprep.mubr.msk.bf16.mxu1 %vm1485_vm8, %v9286_v59  ;;  %9289 = vst [vmem:[#allocation9_spill] sm:$0xff] %v8273_v31  ;;  %v7055_v59 = vld [vmem:[#allocation2 + $0x78] sm:$0xff]   ;;  %v6006_v44 = vrot.slane %v2002_v55, 9  ;;  %v4491_v12 = vshll.u32 %v8273_v31, 16  ;;  %v4495_v4 = vshrl.u32 %v8273_v31, 16  ;;  %v8296_v54 = vcombine.low %v4422_v9, %v4432_v10 }
 0x12c   : > { %v4446_v6 = vsel %vm7321_vm9, %v4441_v36, %v8211_v1  ;;  %v2121_v52 = vrot.slane %v7116_v8, 5  ;;  %v4373_v3 = vld [vmem:[#allocation2 + $0x48] sm:$0xf]  ;;  %v4456_v18 = vsel %vm7321_vm9, %v4451_v56, %v4455_v24  ;;  %v8307_v55 = vrot.slane %v4467_v11, 5  ;;  %v8310_v10 = vld [vmem:[#allocation2 + $0x4c] sm:$0xf] }
 0x12d   : > { %v4477_v9 = vshll.u32 %v8283_v38, 16  ;;  %9293 = vst [vmem:[#allocation11_spill] sm:$0xff] %v8310_v10  ;;  %v4464_v36 = vor.u32 %v4463_v35, %v4460_v27  ;;  %v4484_v8 = vrot.slane %v4482_v13, 4  ;;  %v4487_v17 = vrot.slane %v4485_v62, 5  ;;  %v7056_v11 = vld [vmem:[#allocation2 + $0x84] sm:$0xff]   ;;  %v7057_v35 = vld [vmem:[#allocation2 + $0x90] sm:$0xff]  }
 0x12e   : > { %v8316_v60 = vrot.slane %v4491_v12, 5  ;;  %v4506_v24 = vshrl.u32 %v4373_v3, 16  ;;  %v4509_v56 = vshll.u32 %v4373_v3, 16  ;;  %v2123_v32 = vrot.slane %v2121_v52, 4 }
 0x12f   : > { %v4515_v31 = vshll.u32 %v8310_v10, 16  ;;  %v4519_v27 = vshrl.u32 %v8310_v10, 16  ;;  %v8324_v1 = vcombine.low %v4446_v6, %v4456_v18  ;;  %v8327_v62 = vrot.slane %v4477_v9, 5  ;;  %v8336_v6 = vld [vmem:[#allocation2 + $0x58] sm:$0xf]  ;;  %v7058_v10 = vld [vmem:[#allocation2 + $0x9c] sm:$0xff]  }
 0x130   : > { %v9296_v3 = vcombine.low %v8124_v43, %v8128_v48  ;;  %v6007_v38 = vrot.slane %v2003_v57, 9  ;;  %v2128_v20 = vrot.slane %v7118_v40, 5  ;;  %9297 = vst [vmem:[#allocation14_spill] sm:$0xff] %v8336_v6  ;;  %v9298_v18 = vcombine.low %v8133_v30, %v8137_v49  ;;  %v2004_v43 = vld [vmem:[#allocation2 + $0x9c] sm:$0xe] }
 0x131   : > { %6683 = vmatmul.mubr.msk.bf16.gmra.mrb[12].mxu0 %vm1485_vm8, %v7054_v14  ;;  %v4473_v14 = vrot.slane %v4471_v37, 4  ;;  %v8320_v37 = vsel %vm7638_vm15, %v6006_v44, %v2121_v52  ;;  %9295 = vst [vmem:[#allocation13_spill] sm:$0xff] %v8324_v1  ;;  %v8334_v44 = vrot.slane %v4464_v36, 4  ;;  %v4488_v52 = vor.u32 %v4487_v17, %v4484_v8  ;;  %v7119_v30 = vld [vmem:[%s9252_s3 + $0x10] sm:$0xf]  ;;  %v7059_v1 = vld [vmem:[#allocation2 + $0xa8] sm:$0xff]  }
 0x132   : > { %6529 = vmatmul.mubr.msk.bf16.gmra.mrb[28].mxu1 %vm1485_vm8, %v9290_v25  ;;  %6686 = vmatprep.mubr.msk.bf16.mxu0 %vm1485_vm8, %v7055_v59  ;;  %v8314_v25 = vld [vmem:[#allocation2 + $0x44] sm:$0x1]  ;;  %v4497_v59 = vrot.slane %v4495_v4, 4  ;;  %v4376_v4 = vld [vmem:[#allocation2 + $0x54] sm:$0xf]  ;;  %v2135_v48 = vrot.slane %v7903_v45, 5 }
 0x133   : > { %6534 = vmatprep.mubr.msk.bf16.mxu1 %vm1485_vm8, %v9292_v7  ;;  %v8301_v7 = vld [vmem:[#allocation2 + $0x8c] sm:$0x1]  ;;  %9294 = vst [vmem:[#allocation12_spill] sm:$0xff] %v8314_v25  ;;  %v4474_v13 = vor.u32 %v4473_v14, %v8307_v55  ;;  %v4501_v12 = vshll.u32 %v8314_v25, 16  ;;  %v4508_v9 = vrot.slane %v4506_v24, 4  ;;  %v4511_v36 = vrot.slane %v4509_v56, 5 }
 0x134   : > { %v4498_v14 = vor.u32 %v4497_v59, %v8316_v60  ;;  %v8346_v57 = vrot.slane %v4515_v31, 5  ;;  %v4521_v17 = vrot.slane %v4519_v27, 4  ;;  %v4530_v40 = vshrl.u32 %v4376_v4, 16  ;;  %v8353_v45 = vld [vmem:[#allocation2 + $0x50] sm:$0x1] }
 0x135   : > { %v4533_v8 = vshll.u32 %v4376_v4, 16  ;;  %v4475_v49 = vrot.slane %v4474_v13, 4  ;;  %v4539_v59 = vshll.u32 %v8336_v6, 16  ;;  %v4543_v31 = vshrl.u32 %v8336_v6, 16  ;;  %v7121_v25 = vld [vmem:[#allocation2 + $0xa4] sm:$0x1] }
 0x136   : > { %v4489_v24 = vrot.slane %v4488_v52, 4  ;;  %v2130_v56 = vrot.slane %v2128_v20, 4  ;;  %v6008_v4 = vrot.slane %v2004_v43, 9  ;;  %v2138_v15 = vrot.slane %v7121_v25, 5 }
 0x137   : > { %v4525_v13 = vshll.u32 %v8353_v45, 16  ;;  %v4535_v46 = vrot.slane %v4533_v8, 5  ;;  %v9299_v6 = vrot.slane %v8301_v7, 5  ;;  %v8369_v25 = vrot.slane %v4539_v59, 5 }
 0x138   : > { %v4545_v43 = vrot.slane %v4543_v31, 4  ;;  %v4470_v7 = vsel %vm7321_vm9, %v8334_v44, %v8307_v55 }
 0x139   : > { %6687 = vmatmul.mubr.msk.bf16.gmra.mrb[16].mxu0 %vm1485_vm8, %v7056_v11  ;;  %v7120_v11 = vld [vmem:[#allocation2 + $0x98] sm:$0x1]  ;;  %v8363_v52 = vsel %vm7638_vm15, %v2123_v32, %v9299_v6  ;;  %v4480_v32 = vsel %vm7321_vm9, %v4475_v49, %v8327_v62  ;;  %v9301_v6 = vcombine.low %v8178_v47, %v8182_v29  ;;  %v8399_v62 = vsel %vm7638_vm15, %v6008_v4, %v2135_v48  ;;  %v2005_v47 = vld [vmem:[#allocation2 + $0xa8] sm:$0xe] }
 0x13a   : > { %6535 = vmatmul.mubr.msk.bf16.vlgmr.msra.gmra.mrb[0].mxu1 %vm1485_vm8, %v9296_v3  ;;  %6690 = vmatprep.mubr.msk.bf16.mxu0 %vm1485_vm8, %v7057_v35  ;;  %v2131_v27 = vrot.slane %v7120_v11, 5  ;;  %v4499_v3 = vrot.slane %v4498_v14, 4  ;;  %v4522_v35 = vor.u32 %v4521_v17, %v8346_v57  ;;  %v8367_v14 = vsel %vm7638_vm15, %v6007_v38, %v2128_v20  ;;  %v8424_v11 = vld [vmem:[#allocation2 + $0x64] sm:$0xf]  ;;  %v7060_v4 = vld [vmem:[#allocation2 + $0xb4] sm:$0xff]  }
 0x13b   : > { %6567 = vmatpush3.bf16.msra.mxu1 %v8161_v63  ;;  %6538 = vmatprep.mubr.msk.bf16.mxu1 %vm1485_vm8, %v9298_v18  ;;  %v4503_v63 = vrot.slane %v4501_v12, 5  ;;  %v2137_v18 = vrot.slane %v2135_v48, 4  ;;  %v4532_v12 = vrot.slane %v4530_v40, 4  ;;  %v4494_v20 = vsel %vm7321_vm9, %v4489_v24, %v8316_v60 }
 0x13c   : > { %7033 = vmatprep.subr.msk.bf16.mxu1 %vm1534_vm0, %v7119_v30  ;;  %v4512_v30 = vor.u32 %v4511_v36, %v4508_v9  ;;  %v9300_v9 = vcombine.low %v8141_v53, %v8152_v33  ;;  %v8387_v38 = vsel %vm7638_vm15, %v2130_v56, %v2131_v27  ;;  %v8389_v53 = vld [vmem:[#allocation2 + $0x5c] sm:$0x1]  ;;  %v4379_v33 = vld [vmem:[#allocation2 + $0x60] sm:$0xf]  ;;  %v4523_v36 = vrot.slane %v4522_v35, 4 }
 0x13d   : > { %v4504_v55 = vsel %vm7321_vm9, %v4499_v3, %v4503_v63  ;;  %v8403_v60 = vsel %vm7638_vm15, %v2137_v18, %v2138_v15  ;;  %v4527_v17 = vrot.slane %v4525_v13, 5  ;;  %v4536_v40 = vor.u32 %v4535_v46, %v4532_v12  ;;  %v2006_v15 = vld [vmem:[#allocation2 + $0xb4] sm:$0xe]  ;;  %v8426_v27 = vld [vmem:[#allocation2 + $0x68] sm:$0x1]  ;;  %v7061_v12 = vld [vmem:[#allocation2 + $0xc0] sm:$0xff]  }
 0x13e   : > { %v4513_v44 = vrot.slane %v4512_v30, 4  ;;  %v2142_v29 = vrot.slane %v7947_v19, 5  ;;  %v4546_v48 = vor.u32 %v4545_v43, %v8369_v25  ;;  %v4549_v49 = vshll.u32 %v8389_v53, 16  ;;  %9302 = vst [vmem:[#allocation15_spill] sm:$0xff] %v8426_v27  ;;  %v4382_v13 = vld [vmem:[#allocation2 + $0x6c] sm:$0xf] }
 0x13f   : > { %v4554_v63 = vshrl.u32 %v4379_v33, 16  ;;  %v8412_v59 = vcombine.low %v4470_v7, %v4480_v32  ;;  %v4557_v31 = vshll.u32 %v4379_v33, 16  ;;  %v6009_v24 = vrot.slane %v2005_v47, 9  ;;  %v8495_v19 = vld [vmem:[#allocation2 + $0x74] sm:$0x1] }
 0x140   : > { %v2145_v56 = vrot.slane %v7949_v34, 5  ;;  %v4528_v3 = vsel %vm7321_vm9, %v4523_v36, %v4527_v17  ;;  %v8430_v18 = vrot.slane %v4536_v40, 4  ;;  %v2144_v30 = vrot.slane %v2142_v29, 4  ;;  %v4385_v17 = vld [vmem:[#allocation2 + $0x78] sm:$0xf]  ;;  %9309 = vst [vmem:[#allocation20_spill] sm:$0xff] %v8495_v19 }
 0x141   : > { %6691 = vmatmul.mubr.msk.bf16.gmra.mrb[20].mxu0 %vm1485_vm8, %v7058_v10  ;;  %v8414_v10 = vcombine.low %v4494_v20, %v4504_v55  ;;  %v6010_v35 = vrot.slane %v2006_v15, 9  ;;  %v8432_v43 = vrot.slane %v4546_v48, 4  ;;  %v2149_v34 = vrot.slane %v7961_v21, 5  ;;  %v8448_v55 = vld [vmem:[#allocation2 + $0x70] sm:$0xf] }
 0x142   : > { %6539 = vmatmul.mubr.msk.bf16.gmra.mrb[4].mxu1 %vm1485_vm8, %v9300_v9  ;;  %6694 = vmatprep.mubr.msk.bf16.mxu0 %vm1485_vm8, %v7059_v1  ;;  %v4518_v1 = vsel %vm7321_vm9, %v4513_v44, %v8346_v57  ;;  %v8434_v57 = vrot.slane %v4549_v49, 5  ;;  %v8437_v9 = vrot.slane %v4554_v63, 4  ;;  %v9303_v7 = vcombine.low %v8186_v23, %v8200_v61  ;;  %9304 = vst [vmem:[#allocation16_spill] sm:$0xff] %v8448_v55  ;;  %v4388_v48 = vld [vmem:[#allocation2 + $0x84] sm:$0xf] }
 0x143   : > { %6542 = vmatprep.mubr.msk.bf16.mxu1 %vm1485_vm8, %v9301_v6  ;;  %v8443_v32 = vrot.slane %v4557_v31, 5  ;;  %v4563_v20 = vshll.u32 %v8424_v11, 16  ;;  %v4567_v33 = vshrl.u32 %v8424_v11, 16  ;;  %v4573_v6 = vshll.u32 %v8426_v27, 16  ;;  %v8537_v27 = vld [vmem:[#allocation2 + $0xa0] sm:$0xf] }
 0x144   : > { %v9305_v21 = vcombine.low %v8191_v39, %v8219_v5  ;;  %v8454_v44 = vcombine.low %v4518_v1, %v4528_v3  ;;  %v8458_v23 = vsel %vm7638_vm15, %v6009_v24, %v2142_v29  ;;  %v4578_v61 = vshrl.u32 %v4382_v13, 16  ;;  %v8474_v29 = vld [vmem:[#allocation2 + $0x7c] sm:$0xf]  ;;  %v8485_v1 = vld [vmem:[#allocation2 + $0x88] sm:$0xf]  ;;  %v7062_v24 = vld [vmem:[#allocation2 + $0xcc] sm:$0xff]  }
 0x145   : > { %v4581_v36 = vshll.u32 %v4382_v13, 16  ;;  %v8467_v39 = vsel %vm7638_vm15, %v2144_v30, %v2145_v56  ;;  %v8471_v5 = vsel %vm7638_vm15, %v6010_v35, %v2149_v34  ;;  %9306 = vst [vmem:[#allocation17_spill] sm:$0xff] %v8474_v29  ;;  %v8481_v15 = vrot.slane %v2149_v34, 4  ;;  %9307 = vst [vmem:[#allocation18_spill] sm:$0xff] %v8485_v1  ;;  %v4391_v35 = vld [vmem:[#allocation2 + $0x90] sm:$0xf] }
 0x146   : > { %v4587_v63 = vshll.u32 %v8448_v55, 16  ;;  %v4591_v31 = vshrl.u32 %v8448_v55, 16  ;;  %v4560_v56 = vor.u32 %v8443_v32, %v8437_v9  ;;  %v4569_v3 = vrot.slane %v4567_v33, 4  ;;  %v4394_v55 = vld [vmem:[#allocation2 + $0x9c] sm:$0xf] }
 0x147   : > { %v8491_v30 = vrot.slane %v4573_v6, 5  ;;  %v4580_v13 = vrot.slane %v4578_v61, 4  ;;  %v4602_v34 = vshrl.u32 %v4385_v17, 16  ;;  %v4611_v46 = vshll.u32 %v8474_v29, 16 }
 0x148   : > { %v4615_v40 = vshrl.u32 %v8474_v29, 16  ;;  %v4626_v49 = vshrl.u32 %v4388_v48, 16  ;;  %v4629_v9 = vshll.u32 %v4388_v48, 16  ;;  %v8499_v32 = vrot.slane %v4587_v63, 5 }
 0x149   : > { %6695 = vmatmul.mubr.msk.bf16.gmra.mrb[24].mxu0 %vm1485_vm8, %v7060_v4  ;;  %v8489_v4 = vrot.slane %v4563_v20, 5  ;;  %v4593_v20 = vrot.slane %v4591_v31, 4  ;;  %v4635_v33 = vshll.u32 %v8485_v1, 16  ;;  %v4639_v6 = vshrl.u32 %v8485_v1, 16 }
 0x14a   : > { %6543 = vmatmul.mubr.msk.bf16.gmra.mrb[8].mxu1 %vm1485_vm8, %v9303_v7  ;;  %6698 = vmatprep.mubr.msk.bf16.mxu0 %vm1485_vm8, %v7061_v12  ;;  %v4583_v12 = vrot.slane %v4581_v36, 5  ;;  %v4605_v7 = vshll.u32 %v4385_v17, 16  ;;  %v9310_v61 = vcombine.low %v8223_v22, %v8227_v28  ;;  %v4650_v36 = vshrl.u32 %v4391_v35, 16 }
 0x14b   : > { %6546 = vmatprep.mubr.msk.bf16.mxu1 %vm1485_vm8, %v9305_v21  ;;  %v8493_v21 = vld [vmem:[#allocation2 + $0x94] sm:$0xf]  ;;  %v4653_v17 = vshll.u32 %v4391_v35, 16  ;;  %v9311_v48 = vcombine.low %v8231_v0, %v8239_v58  ;;  %v4570_v63 = vor.u32 %v4569_v3, %v8489_v4  ;;  %v4597_v31 = vshll.u32 %v8495_v19, 16 }
 0x14c   : > { %9308 = vst [vmem:[#allocation19_spill] sm:$0xff] %v8493_v21  ;;  %v4659_v8 = vshll.u32 %v8493_v21, 16  ;;  %v4663_v47 = vshrl.u32 %v8493_v21, 16  ;;  %v4604_v1 = vrot.slane %v4602_v34, 4  ;;  %v4607_v29 = vrot.slane %v4605_v7, 5 }
 0x14d   : > { %v8516_v22 = vrot.slane %v4611_v46, 5  ;;  %v4617_v28 = vrot.slane %v4615_v40, 4  ;;  %v4628_v35 = vrot.slane %v4626_v49, 4  ;;  %v4584_v0 = vor.u32 %v4583_v12, %v4580_v13  ;;  %v8525_v7 = vld [vmem:[#allocation2 + $0x8c] sm:$0x1] }
 0x14e   : > { %v4594_v58 = vor.u32 %v4593_v20, %v8499_v32  ;;  %v8523_v3 = vrot.slane %v4635_v33, 5  ;;  %v4641_v34 = vrot.slane %v4639_v6, 4  ;;  %v4655_v46 = vrot.slane %v4653_v17, 5 }
 0x14f   : > { %v8527_v21 = vrot.slane %v4659_v8, 5  ;;  %v4665_v40 = vrot.slane %v4663_v47, 4  ;;  %v8529_v49 = vrot.slane %v4560_v56, 4  ;;  %v4674_v13 = vshrl.u32 %v4394_v55, 16 }
 0x150   : > { %v4677_v12 = vshll.u32 %v4394_v55, 16  ;;  %v4608_v20 = vor.u32 %v4607_v29, %v4604_v1  ;;  %v4618_v33 = vor.u32 %v4617_v28, %v8516_v22  ;;  %v4585_v8 = vrot.slane %v4584_v0, 4 }
 0x151   : > { %6699 = vmatmul.mubr.msk.bf16.gmra.mrb[28].mxu0 %vm1485_vm8, %v7062_v24  ;;  %v4652_v24 = vrot.slane %v4650_v36, 4  ;;  %v4571_v36 = vrot.slane %v4570_v63, 4  ;;  %v4642_v47 = vor.u32 %v4641_v34, %v8523_v3  ;;  %v4645_v56 = vshll.u32 %v8525_v7, 16 }
 0x152   : > { %6547 = vmatmul.mubr.msk.bf16.gmra.mrb[12].mxu1 %vm1485_vm8, %v9310_v61  ;;  %v4631_v61 = vrot.slane %v4629_v9, 5  ;;  %6704 = vmatprep.mubr.msk.bf16.mxu0 %vm1485_vm8, %v8296_v54  ;;  %v8531_v9 = vrot.slane %v4597_v31, 5  ;;  %v8533_v54 = vld [vmem:[#allocation2 + $0x98] sm:$0x1]  ;;  %v9312_v17 = vcombine.low %v8243_v50, %v8248_v41  ;;  %v4595_v55 = vrot.slane %v4594_v58, 4  ;;  %v9314_v50 = vld [vmem:[#allocation13_spill] sm:$0xff] }
 0x153   : > { %6550 = vmatprep.mubr.msk.bf16.mxu1 %vm1485_vm8, %v9311_v48  ;;  %v8521_v48 = vld [vmem:[#allocation2 + $0x80] sm:$0x1]  ;;  %v4656_v29 = vor.u32 %v4655_v46, %v4652_v24  ;;  %v4666_v1 = vor.u32 %v4665_v40, %v8527_v21  ;;  %v4669_v31 = vshll.u32 %v8533_v54, 16  ;;  %v9313_v28 = vcombine.low %v8271_v51, %v8291_v26 }
 0x154   : > { %v4621_v6 = vshll.u32 %v8521_v48, 16  ;;  %v4632_v19 = vor.u32 %v4631_v61, %v4628_v35  ;;  %v4676_v63 = vrot.slane %v4674_v13, 4  ;;  %v4679_v35 = vrot.slane %v4677_v12, 5  ;;  %v9315_v46 = vld [vmem:[#allocation8_spill] sm:$0xff] }
 0x155   : > { %v4683_v61 = vshll.u32 %v8537_v27, 16  ;;  %v4687_v0 = vshrl.u32 %v8537_v27, 16  ;;  %v4609_v41 = vrot.slane %v4608_v20, 4  ;;  %v4619_v58 = vrot.slane %v4618_v33, 4 }
 0x156   : > { %v4623_v34 = vrot.slane %v4621_v6, 5  ;;  %v4633_v24 = vrot.slane %v4632_v19, 4  ;;  %v9316_v51 = vrot.slane %v7967_v2, 5  ;;  %v4566_v40 = vsel %vm7321_vm9, %v8529_v49, %v8489_v4  ;;  %v8569_v19 = vld [vmem:[#allocation2 + $0xa4] sm:$0x1] }
 0x157   : > { %v4643_v13 = vrot.slane %v4642_v47, 4  ;;  %v4647_v12 = vrot.slane %v4645_v56, 5  ;;  %v4657_v20 = vrot.slane %v4656_v29, 4  ;;  %v4667_v2 = vrot.slane %v4666_v1, 4  ;;  %v4397_v6 = vld [vmem:[#allocation2 + $0xa8] sm:$0xf] }
 0x158   : > { %v8563_v26 = vsel %vm7638_vm15, %v8481_v15, %v9316_v51  ;;  %v4671_v33 = vrot.slane %v4669_v31, 5  ;;  %v4590_v15 = vsel %vm7321_vm9, %v4585_v8, %v8499_v32  ;;  %v4689_v4 = vrot.slane %v4687_v0, 4  ;;  %v8590_v32 = vld [vmem:[#allocation2 + $0xac] sm:$0xf] }
 0x159   : > { %6705 = vmatmul.mubr.msk.bf16.vlgmr.msra.gmra.mrb[0].mxu0 %vm1485_vm8, %v9314_v50  ;;  %v4600_v49 = vsel %vm7321_vm9, %v4595_v55, %v8531_v9  ;;  %v4638_v47 = vsel %vm7321_vm9, %v4633_v24, %v8523_v3  ;;  %v4648_v8 = vsel %vm7321_vm9, %v4643_v13, %v4647_v12  ;;  %v4693_v56 = vshll.u32 %v8569_v19, 16  ;;  %v5093_v13 = vld [vmem:[#allocation2 + $0x60] sm:$0xe] }
 0x15a   : > { %6551 = vmatmul.mubr.msk.bf16.gmra.mrb[16].mxu1 %vm1485_vm8, %v9312_v17  ;;  %6737 = vmatpush3.bf16.msra.mxu0 %v9315_v46  ;;  %v4680_v17 = vor.u32 %v4679_v35, %v4676_v63  ;;  %v4698_v29 = vshrl.u32 %v4397_v6, 16  ;;  %v4701_v9 = vshll.u32 %v4397_v6, 16  ;;  %v9317_v55 = vcombine.low %v8320_v37, %v8363_v52  ;;  %v9321_v46 = vld [vmem:[#allocation11_spill] sm:$0xff] }
 0x15b   : > { %6554 = vmatprep.mubr.msk.bf16.mxu1 %vm1485_vm8, %v9313_v28  ;;  %6708 = vmatprep.mubr.msk.bf16.mxu0 %vm1485_vm8, %v8412_v59  ;;  %v4576_v59 = vsel %vm7321_vm9, %v4571_v36, %v8491_v30  ;;  %v8577_v28 = vrot.slane %v4683_v61, 5  ;;  %v4614_v30 = vsel %vm7321_vm9, %v4609_v41, %v8516_v22  ;;  %v4624_v36 = vsel %vm7321_vm9, %v4619_v58, %v4623_v34  ;;  %v4400_v61 = vld [vmem:[#allocation2 + $0xb4] sm:$0xf] }
 0x15c   : > { %v9318_v22 = vsel %vm7321_vm9, %v8432_v43, %v8434_v57  ;;  %v9319_v3 = vsel %vm7321_vm9, %v8430_v18, %v8369_v25  ;;  %v6026_v31 = vcombine.low %v8458_v23, %v8467_v39  ;;  %v4662_v37 = vsel %vm7321_vm9, %v4657_v20, %v8527_v21  ;;  %v5091_v23 = vld [vmem:[#allocation2 + $0x48] sm:$0xe] }
 0x15d   : > { %v6198_v1 = vcombine.low %v9319_v3, %v9318_v22  ;;  %v4672_v52 = vsel %vm7321_vm9, %v4667_v2, %v4671_v33  ;;  %v9320_v63 = vcombine.low %v8367_v14, %v8387_v38  ;;  %v6027_v43 = vcombine.low %v8471_v5, %v8563_v26  ;;  %v8634_v38 = vld [vmem:[#allocation2 + $0xb0] sm:$0x1]  ;;  %v8741_v26 = vld [vmem:[#allocation2 + $0xbc] sm:$0x1] }
 0x15e   : > { %v8622_v25 = vrot.slane %v4680_v17, 4  ;;  %v4690_v18 = vor.u32 %v4689_v4, %v8577_v28  ;;  %v4707_v57 = vshll.u32 %v8590_v32, 16  ;;  %v6199_v39 = vcombine.low %v4566_v40, %v4576_v59  ;;  %v9322_v4 = vld [vmem:[#allocation14_spill] sm:$0xff] }
 0x15f   : > { %v8628_v21 = vcombine.low %v4590_v15, %v4600_v49  ;;  %v8630_v35 = vcombine.low %v4614_v30, %v4624_v36  ;;  %v8632_v14 = vcombine.low %v4638_v47, %v4648_v8  ;;  %v8638_v0 = vcombine.low %v4662_v37, %v4672_v52  ;;  %v9325_v52 = vld [vmem:[#allocation16_spill] sm:$0xff] }
 0x160   : > { %v8640_v50 = vrot.slane %v4693_v56, 5  ;;  %v4700_v41 = vrot.slane %v4698_v29, 4  ;;  %v4703_v58 = vrot.slane %v4701_v9, 5  ;;  %v4711_v34 = vshrl.u32 %v8590_v32, 16  ;;  %v8664_v56 = vld [vmem:[#allocation2 + $0xb8] sm:$0xf] }
 0x161   : > { %6709 = vmatmul.mubr.msk.bf16.gmra.mrb[4].mxu0 %vm1485_vm8, %v8414_v10  ;;  %v5092_v10 = vld [vmem:[#allocation2 + $0x54] sm:$0xe]  ;;  %v6229_v24 = vrot.slane %v5091_v23, 9  ;;  %v5181_v51 = vrot.slane %v9321_v46, 5  ;;  %v5184_v40 = vrot.slane %v8353_v45, 5  ;;  %v8649_v12 = vrot.slane %v4690_v18, 4 }
 0x162   : > { %6555 = vmatmul.mubr.msk.bf16.gmra.mrb[20].mxu1 %vm1485_vm8, %v9317_v55  ;;  %6712 = vmatprep.mubr.msk.bf16.mxu0 %vm1485_vm8, %v8454_v44  ;;  %v4686_v44 = vsel %vm7321_vm9, %v8622_v25, %v8577_v28  ;;  %v8651_v59 = vrot.slane %v4707_v57, 5  ;;  %v4717_v20 = vshll.u32 %v8634_v38, 16  ;;  %v4722_v2 = vshrl.u32 %v4400_v61, 16  ;;  %v5094_v45 = vld [vmem:[#allocation2 + $0x6c] sm:$0xe]  ;;  %v9324_v55 = vld [vmem:[#allocation15_spill] sm:$0xff] }
 0x163   : > { %6558 = vmatprep.mubr.msk.bf16.mxu1 %vm1485_vm8, %v9320_v63  ;;  %v8656_v33 = vsel %vm7638_vm15, %v6229_v24, %v5181_v51  ;;  %v5183_v6 = vrot.slane %v5181_v51, 4  ;;  %v6230_v15 = vrot.slane %v5092_v10, 9  ;;  %v4725_v17 = vshll.u32 %v4400_v61, 16  ;;  %v9326_v18 = vld [vmem:[#allocation20_spill] sm:$0xff] }
 0x164   : > { %v5188_v49 = vrot.slane %v9322_v4, 5  ;;  %v5191_v30 = vrot.slane %v8389_v53, 5  ;;  %v6231_v36 = vrot.slane %v5093_v13, 9  ;;  %v9323_v47 = vcombine.low %v8399_v62, %v8403_v60  ;;  %v4403_v4 = vld [vmem:[#allocation2 + $0xc0] sm:$0xf] }
 0x165   : > { %v4713_v8 = vrot.slane %v4711_v34, 4  ;;  %v8668_v29 = vsel %vm7638_vm15, %v5183_v6, %v5184_v40  ;;  %v5195_v9 = vrot.slane %v8424_v11, 5  ;;  %v5198_v22 = vrot.slane %v9324_v55, 5  ;;  %v5095_v6 = vld [vmem:[#allocation2 + $0x78] sm:$0xe]  ;;  %v7067_v28 = vld [vmem:[#allocation2 + $0x3c] sm:$0xff]  }
 0x166   : > { %v6246_v53 = vcombine.low %v8656_v33, %v8668_v29  ;;  %v8677_v62 = vsel %vm7638_vm15, %v6230_v15, %v5188_v49  ;;  %v5190_v60 = vrot.slane %v5188_v49, 4  ;;  %v6232_v3 = vrot.slane %v5094_v45, 9  ;;  %v7129_v29 = vld [vmem:[#allocation2 + $0x8c] sm:$0x1] }
 0x167   : > { %v8682_v37 = vsel %vm7638_vm15, %v6231_v36, %v5195_v9  ;;  %v5197_v11 = vrot.slane %v5195_v9, 4  ;;  %v5202_v63 = vrot.slane %v9325_v52, 5  ;;  %v4704_v57 = vor.u32 %v4703_v58, %v4700_v41  ;;  %v7063_v58 = vld [vmem:[#allocation2 + $0xc] sm:$0xff]  }
 0x168   : > { %v4731_v23 = vshll.u32 %v8664_v56, 16  ;;  %v4735_v61 = vshrl.u32 %v8664_v56, 16  ;;  %v8691_v10 = vsel %vm7638_vm15, %v5190_v60, %v5191_v30  ;;  %v4696_v46 = vsel %vm7321_vm9, %v8649_v12, %v8640_v50  ;;  %v9328_v9 = vld [vmem:[#allocation6_spill] sm:$0xff] }
 0x169   : > { %6713 = vmatmul.mubr.msk.bf16.gmra.mrb[8].mxu0 %vm1485_vm8, %v6198_v1  ;;  %v2833_v1 = vld [vmem:[#allocation2 + $0x78] sm:$0xf]  ;;  %v6247_v34 = vcombine.low %v8677_v62, %v8691_v10  ;;  %v8697_v24 = vsel %vm7638_vm15, %v5197_v11, %v5198_v22  ;;  %v5204_v41 = vrot.slane %v5202_v63, 4  ;;  %v8707_v51 = vrot.slane %v4717_v20, 5  ;;  %v8735_v11 = vld [vmem:[#allocation2 + $0xc4] sm:$0xf] }
 0x16a   : > { %6559 = vmatmul.mubr.msk.bf16.gmra.mrb[24].mxu1 %vm1485_vm8, %v9323_v47  ;;  %6716 = vmatprep.mubr.msk.bf16.mxu0 %vm1485_vm8, %v6199_v39  ;;  %v8701_v39 = vsel %vm7638_vm15, %v6232_v3, %v5202_v63  ;;  %v8709_v40 = vrot.slane %v4722_v2, 4  ;;  %v6248_v13 = vcombine.low %v8682_v37, %v8697_v24  ;;  %v4714_v15 = vor.u32 %v4713_v8, %v8651_v59  ;;  %v9327_v47 = vld [vmem:[#allocation5_spill] sm:$0xff]  ;;  %v5096_v8 = vld [vmem:[#allocation2 + $0x84] sm:$0xe]  ;;  %v7133_v24 = vld [vmem:[#allocation2 + $0xa4] sm:$0x1] }
 0x16b   : > { %6562 = vmatprep.mubr.msk.bf16.mxu1 %vm1485_vm8, %v6026_v31  ;;  %v5205_v31 = vrot.slane %v9326_v18, 5  ;;  %v8714_v45 = vrot.slane %v4725_v17, 5  ;;  %v3071_v30 = vshrl.u32 %v2833_v1, 16  ;;  %v8720_v36 = vrot.slane %v4704_v57, 4  ;;  %v9329_v18 = vld [vmem:[#allocation17_spill] sm:$0xff] }
 0x16c   : > { %v3074_v2 = vshll.u32 %v2833_v1, 16  ;;  %v3093_v55 = vsel %vm7321_vm9, %v9328_v9, %v9327_v47  ;;  %v8732_v17 = vrot.slane %v4731_v23, 5  ;;  %v4737_v22 = vrot.slane %v4735_v61, 4  ;;  %v9330_v23 = vld [vmem:[#allocation18_spill] sm:$0xff]  ;;  %v7065_v47 = vld [vmem:[#allocation2 + $0x24] sm:$0xff]  }
 0x16d   : > { %v8718_v49 = vsel %vm7638_vm15, %v5204_v41, %v5205_v31  ;;  %v3073_v60 = vrot.slane %v3071_v30, 4  ;;  %v6233_v3 = vrot.slane %v5095_v6, 9  ;;  %v4746_v52 = vshrl.u32 %v4403_v4, 16  ;;  %v7064_v30 = vld [vmem:[#allocation2 + $0x18] sm:$0xff]  }
 0x16e   : > { %v6249_v20 = vcombine.low %v8701_v39, %v8718_v49  ;;  %v3076_v63 = vrot.slane %v3074_v2, 5  ;;  %v5209_v31 = vrot.slane %v9329_v18, 5  ;;  %v5212_v57 = vrot.slane %v8521_v48, 5  ;;  %v4406_v18 = vld [vmem:[#allocation2 + $0xcc] sm:$0xf] }
 0x16f   : > { %v4715_v5 = vrot.slane %v4714_v15, 4  ;;  %v5216_v61 = vrot.slane %v9330_v23, 5  ;;  %v5219_v1 = vrot.slane %v8525_v7, 5  ;;  %v4749_v41 = vshll.u32 %v4403_v4, 16 }
 0x170   : > { %v8749_v6 = vsel %vm7638_vm15, %v6233_v3, %v5209_v31  ;;  %v5211_v48 = vrot.slane %v5209_v31, 4  ;;  %v4759_v15 = vshrl.u32 %v8735_v11, 16  ;;  %v4741_v4 = vshll.u32 %v8741_v26, 16 }
 0x171   : > { %6717 = vmatmul.mubr.msk.bf16.gmra.mrb[12].mxu0 %vm1485_vm8, %v8628_v21  ;;  %v4755_v21 = vshll.u32 %v8735_v11, 16  ;;  %v5218_v7 = vrot.slane %v5216_v61, 4  ;;  %v4738_v3 = vor.u32 %v4737_v22, %v8732_v17  ;;  %v4720_v31 = vsel %vm7321_vm9, %v4715_v5, %v8707_v51  ;;  %v5097_v5 = vld [vmem:[#allocation2 + $0x90] sm:$0xe] }
 0x172   : > { %6563 = vmatmul.mubr.msk.bf16.gmra.mrb[28].mxu1 %vm1485_vm8, %v6027_v43  ;;  %v6234_v43 = vrot.slane %v5096_v8, 9  ;;  %6720 = vmatprep.mubr.msk.bf16.mxu0 %vm1485_vm8, %v8630_v35  ;;  %v4728_v35 = vor.u32 %v8714_v45, %v8709_v40  ;;  %v8762_v8 = vsel %vm7638_vm15, %v5211_v48, %v5212_v57  ;;  %v4748_v57 = vrot.slane %v4746_v52, 4  ;;  %v9332_v48 = vld [vmem:[#allocation3_spill] sm:$0xff] }
 0x173   : > { %6568 = vmatprep.mubr.msk.bf16.mxu1 %vm1485_vm8, %v7063_v58  ;;  %v3077_v58 = vor.u32 %v3076_v63, %v3073_v60  ;;  %v4710_v60 = vsel %vm7321_vm9, %v8720_v36, %v8651_v59  ;;  %v8769_v63 = vld [vmem:[#allocation2 + $0xc8] sm:$0x1]  ;;  %v6250_v40 = vcombine.low %v8749_v6, %v8762_v8  ;;  %v8775_v45 = vsel %vm7638_vm15, %v5218_v7, %v5219_v1  ;;  %v9331_v59 = vld [vmem:[#allocation4_spill] sm:$0xff] }
 0x174   : > { %v8755_v2 = vsel %vm7638_vm15, %v6234_v43, %v5216_v61  ;;  %v8780_v43 = vld [vmem:[#allocation2 + $0xd0] sm:$0xf]  ;;  %v4751_v23 = vrot.slane %v4749_v41, 5  ;;  %v8788_v61 = vrot.slane %v4755_v21, 5  ;;  %v4761_v1 = vrot.slane %v4759_v15, 4 }
 0x175   : > { %v3078_v9 = vrot.slane %v3077_v58, 4  ;;  %v6251_v22 = vcombine.low %v8755_v2, %v8775_v45  ;;  %v4765_v51 = vshll.u32 %v8769_v63, 16  ;;  %v4770_v52 = vshrl.u32 %v4406_v18, 16 }
 0x176   : > { %v4773_v41 = vshll.u32 %v4406_v18, 16  ;;  %v6205_v21 = vcombine.low %v4710_v60, %v4720_v31  ;;  %v4729_v15 = vrot.slane %v4728_v35, 4  ;;  %v4783_v7 = vshrl.u32 %v8780_v43, 16 }
 0x177   : > { %v3083_v36 = vsel %vm7321_vm9, %v3078_v9, %v9331_v59  ;;  %v7066_v9 = vld [vmem:[#allocation2 + $0x30] sm:$0xff]   ;;  %v4739_v50 = vrot.slane %v4738_v3, 4  ;;  %v4752_v12 = vor.u32 %v4751_v23, %v4748_v57  ;;  %v4762_v59 = vor.u32 %v4761_v1, %v8788_v61 }
 0x178   : > { %v8790_v58 = vcombine.low %v3083_v36, %v3093_v55  ;;  %v6204_v55 = vcombine.low %v4686_v44, %v4696_v46  ;;  %v6235_v36 = vrot.slane %v5097_v5, 9  ;;  %v4767_v25 = vrot.slane %v4765_v51, 5  ;;  %v9333_v46 = vld [vmem:[#allocation19_spill] sm:$0xff] }
 0x179   : > { %6721 = vmatmul.mubr.msk.bf16.gmra.mrb[16].mxu0 %vm1485_vm8, %v8632_v14  ;;  %v4743_v14 = vrot.slane %v4741_v4, 5  ;;  %v4772_v44 = vrot.slane %v4770_v52, 4  ;;  %v5223_v18 = vrot.slane %v9333_v46, 5  ;;  %v5230_v4 = vrot.slane %v8537_v27, 5  ;;  %v8823_v52 = vld [vmem:[#allocation2 + $0xd4] sm:$0x1] }
 0x17a   : > { %6569 = vmatmul.mubr.msk.bf16.vlgmr.msra.gmra.mrb[0].mxu1 %vm1485_vm8, %v7064_v30  ;;  %v4779_v30 = vshll.u32 %v8780_v43, 16  ;;  %6724 = vmatprep.mubr.msk.bf16.mxu0 %vm1485_vm8, %v8638_v0  ;;  %v4775_v0 = vrot.slane %v4773_v41, 5  ;;  %v4785_v31 = vrot.slane %v4783_v7, 4  ;;  %v5233_v23 = vrot.slane %v8569_v19, 5 }
 0x17b   : > { %6771 = vmatpush3.bf16.msra.mxu1 %v9332_v48  ;;  %6572 = vmatprep.mubr.msk.bf16.mxu1 %vm1485_vm8, %v7065_v47  ;;  %v5098_v47 = vld [vmem:[#allocation2 + $0x9c] sm:$0xe]  ;;  %v5226_v48 = vrot.slane %v8533_v54, 5  ;;  %v8819_v3 = vsel %vm7638_vm15, %v6235_v36, %v5223_v18  ;;  %v5225_v57 = vrot.slane %v5223_v18, 4  ;;  %v4753_v1 = vrot.slane %v4752_v12, 4 }
 0x17c   : > { %v8814_v60 = vrot.slane %v4779_v30, 5  ;;  %v6236_v35 = vrot.slane %v5098_v47, 9  ;;  %v4763_v51 = vrot.slane %v4762_v59, 4  ;;  %v5232_v5 = vrot.slane %v5230_v4, 4  ;;  %v5087_v12 = vld [vmem:[#allocation2 + $0x18] sm:$0xe] }
 0x17d   : > { %v8832_v27 = vsel %vm7638_vm15, %v5225_v57, %v5226_v48  ;;  %v4734_v19 = vsel %vm7321_vm9, %v4729_v15, %v8732_v17  ;;  %v4744_v41 = vsel %vm7321_vm9, %v4739_v50, %v4743_v14  ;;  %v4776_v47 = vor.u32 %v4775_v0, %v4772_v44  ;;  %v7068_v15 = vld [vmem:[#allocation2 + $0x48] sm:$0xff]   ;;  %v7122_v59 = vld [vmem:[#allocation2 + $0x1c] sm:$0xf] }
 0x17e   : > { %v8827_v54 = vsel %vm7638_vm15, %v6236_v35, %v5230_v4  ;;  %v6252_v30 = vcombine.low %v8819_v3, %v8832_v27  ;;  %v8844_v7 = vsel %vm7638_vm15, %v5232_v5, %v5233_v23  ;;  %v4758_v14 = vsel %vm7321_vm9, %v4753_v1, %v8788_v61  ;;  %v5100_v1 = vld [vmem:[#allocation2 + $0xb4] sm:$0xe]  ;;  %v5088_v5 = vld [vmem:[#allocation2 + $0x24] sm:$0xe] }
 0x17f   : > { %v6253_v17 = vcombine.low %v8827_v54, %v8844_v7  ;;  %v4768_v50 = vsel %vm7321_vm9, %v4763_v51, %v4767_v25  ;;  %v5153_v36 = vrot.slane %v7122_v59, 5  ;;  %v6206_v44 = vcombine.low %v4734_v19, %v4744_v41  ;;  %v7124_v19 = vld [vmem:[#allocation2 + $0x28] sm:$0xf]  ;;  %v9334_v59 = vld [vmem:[#allocation7_spill] sm:$0xff] }
 0x180   : > { %v6225_v46 = vrot.slane %v5087_v12, 9  ;;  %v6207_v18 = vcombine.low %v4758_v14, %v4768_v50  ;;  %v4777_v48 = vrot.slane %v4776_v47, 4  ;;  %v5237_v61 = vrot.slane %v8590_v32, 5  ;;  %v5089_v50 = vld [vmem:[#allocation2 + $0x30] sm:$0xe] }
 0x181   : > { %6725 = vmatmul.mubr.msk.bf16.gmra.mrb[20].mxu0 %vm1485_vm8, %v6204_v55  ;;  %v4789_v55 = vshll.u32 %v8823_v52, 16  ;;  %v5155_v4 = vrot.slane %v5153_v36, 4  ;;  %v5240_v25 = vrot.slane %v8634_v38, 5  ;;  %v5160_v41 = vrot.slane %v7124_v19, 5 }
 0x182   : > { %6573 = vmatmul.mubr.msk.bf16.gmra.mrb[4].mxu1 %vm1485_vm8, %v7066_v9  ;;  %6728 = vmatprep.mubr.msk.bf16.mxu0 %vm1485_vm8, %v6205_v21  ;;  %v4786_v9 = vor.u32 %v4785_v31, %v8814_v60  ;;  %v7069_v21 = vld [vmem:[#allocation2 + $0x54] sm:$0xff]   ;;  %v7123_v31 = vld [vmem:[#allocation2 + $0x20] sm:$0x1]  ;;  %v5154_v51 = vsel %vm7638_vm15, %v6225_v46, %v5153_v36  ;;  %v4782_v32 = vsel %vm7321_vm9, %v4777_v48, %v8814_v60  ;;  %v5244_v12 = vrot.slane %v8664_v56, 5  ;;  %v7071_v60 = vld [vmem:[#allocation2 + $0x6c] sm:$0xff]  }
 0x183   : > { %6576 = vmatprep.mubr.msk.bf16.mxu1 %vm1485_vm8, %v7067_v28  ;;  %v5099_v28 = vld [vmem:[#allocation2 + $0xa8] sm:$0xe]  ;;  %v4791_v35 = vrot.slane %v4789_v55, 5  ;;  %v5156_v57 = vrot.slane %v7123_v31, 5  ;;  %v6238_v55 = vrot.slane %v5100_v1, 9  ;;  %v5167_v36 = vrot.slane %v9334_v59, 5 }
 0x184   : > { %v4787_v0 = vrot.slane %v4786_v9, 4  ;;  %v6237_v23 = vrot.slane %v5099_v28, 9  ;;  %v5239_v9 = vrot.slane %v5237_v61, 4  ;;  %v5247_v28 = vrot.slane %v8741_v26, 5  ;;  %v7125_v46 = vld [vmem:[#allocation2 + $0x2c] sm:$0x1] }
 0x185   : > { %v5157_v14 = vsel %vm7638_vm15, %v5155_v4, %v5156_v57  ;;  %v5246_v4 = vrot.slane %v5244_v12, 4  ;;  %v6227_v57 = vrot.slane %v5089_v50, 9  ;;  %v9335_v26 = vld [vmem:[#allocation10_spill] sm:$0xff]  ;;  %v5090_v1 = vld [vmem:[#allocation2 + $0x3c] sm:$0xe] }
 0x186   : > { %v8865_v47 = vsel %vm7638_vm15, %v6237_v23, %v5237_v61  ;;  %v4792_v38 = vsel %vm7321_vm9, %v4787_v0, %v4791_v35  ;;  %v5162_v0 = vrot.slane %v5160_v41, 4  ;;  %v8886_v35 = vsel %vm7638_vm15, %v6238_v55, %v5244_v12  ;;  %v2830_v55 = vld [vmem:[#allocation2 + $0x6c] sm:$0xf]  ;;  %v7072_v50 = vld [vmem:[#allocation2 + $0x78] sm:$0xff]  }
 0x187   : > { %v6208_v48 = vcombine.low %v4782_v32, %v4792_v38  ;;  %v6242_v31 = vcombine.low %v5154_v51, %v5157_v14  ;;  %v5169_v23 = vrot.slane %v5167_v36, 4  ;;  %v5170_v61 = vrot.slane %v9335_v26, 5  ;;  %v5101_v32 = vld [vmem:[#allocation2 + $0xc0] sm:$0xe]  ;;  %v5102_v14 = vld [vmem:[#allocation2 + $0xcc] sm:$0xe] }
 0x188   : > { %v5168_v12 = vsel %vm7638_vm15, %v6227_v57, %v5167_v36  ;;  %v6240_v26 = vrot.slane %v5102_v14, 9 }
 0x189   : > { %6729 = vmatmul.mubr.msk.bf16.gmra.mrb[24].mxu0 %vm1485_vm8, %v6206_v44  ;;  %v6226_v44 = vrot.slane %v5088_v5, 9  ;;  %v9336_v5 = vld [vmem:[#allocation9_spill] sm:$0xff]  ;;  %v5171_v59 = vsel %vm7638_vm15, %v5169_v23, %v5170_v61  ;;  %v7126_v23 = vld [vmem:[#allocation2 + $0x70] sm:$0xf] }
 0x18a   : > { %6577 = vmatmul.mubr.msk.bf16.gmra.mrb[8].mxu1 %vm1485_vm8, %v7068_v15  ;;  %6732 = vmatprep.mubr.msk.bf16.mxu0 %vm1485_vm8, %v6207_v18  ;;  %v7070_v15 = vld [vmem:[#allocation2 + $0x60] sm:$0xff]   ;;  %v5163_v18 = vrot.slane %v7125_v46, 5  ;;  %v5174_v19 = vrot.slane %v9336_v5, 5  ;;  %v3056_v61 = vshll.u32 %v7126_v23, 16  ;;  %v3060_v5 = vshrl.u32 %v7126_v23, 16 }
 0x18b   : > { %6580 = vmatprep.mubr.msk.bf16.mxu1 %vm1485_vm8, %v7069_v21  ;;  %v8879_v21 = vsel %vm7638_vm15, %v5239_v9, %v5240_v25  ;;  %v8892_v25 = vsel %vm7638_vm15, %v5246_v4, %v5247_v28  ;;  %v5161_v51 = vsel %vm7638_vm15, %v6226_v44, %v5160_v41  ;;  %v6239_v28 = vrot.slane %v5101_v32, 9  ;;  %v7073_v46 = vld [vmem:[#allocation2 + $0x84] sm:$0xff]   ;;  %v2839_v23 = vld [vmem:[#allocation2 + $0x90] sm:$0xf] }
 0x18c   : > { %v6254_v56 = vcombine.low %v8865_v47, %v8879_v21  ;;  %v6255_v9 = vcombine.low %v8886_v35, %v8892_v25  ;;  %v5164_v38 = vsel %vm7638_vm15, %v5162_v0, %v5163_v18  ;;  %v5254_v41 = vrot.slane %v8769_v63, 5 }
 0x18d   : > { %v6243_v44 = vcombine.low %v5161_v51, %v5164_v38  ;;  %v5176_v18 = vrot.slane %v5174_v19, 4  ;;  %v3047_v4 = vshrl.u32 %v2830_v55, 16  ;;  %v5261_v32 = vrot.slane %v8823_v52, 5 }
 0x191   : > { %6733 = vmatmul.mubr.msk.bf16.gmra.mrb[28].mxu0 %vm1485_vm8, %v6208_v48  ;;  %v9337_v48 = vld [vmem:[#allocation12_spill] sm:$0xff] }
 0x192   : > { %6581 = vmatmul.mubr.msk.bf16.gmra.mrb[12].mxu1 %vm1485_vm8, %v7070_v15  ;;  %6738 = vmatprep.mubr.msk.bf16.mxu0 %vm1485_vm8, %v6242_v31  ;;  %v6228_v15 = vrot.slane %v5090_v1, 9  ;;  %v5177_v0 = vrot.slane %v9337_v48, 5  ;;  %v3050_v31 = vshll.u32 %v2830_v55, 16  ;;  %v6244_v1 = vcombine.low %v5168_v12, %v5171_v59 }
 0x193   : > { %6584 = vmatprep.mubr.msk.bf16.mxu1 %vm1485_vm8, %v7071_v60  ;;  %v5251_v60 = vrot.slane %v8735_v11, 5  ;;  %v5258_v11 = vrot.slane %v8780_v43, 5  ;;  %v3049_v12 = vrot.slane %v3047_v4, 4  ;;  %v3062_v59 = vrot.slane %v3060_v5, 4  ;;  %v7127_v4 = vld [vmem:[#allocation2 + $0x74] sm:$0x1] }
 0x194   : > { %v5175_v43 = vsel %vm7638_vm15, %v6228_v15, %v5174_v19  ;;  %v3052_v14 = vrot.slane %v3050_v31, 5  ;;  %v5178_v52 = vsel %vm7638_vm15, %v5176_v18, %v5177_v0  ;;  %v3066_v31 = vshll.u32 %v7127_v4, 16 }
 0x195   : > { %v8913_v36 = vsel %vm7638_vm15, %v6239_v28, %v5251_v60  ;;  %v5253_v57 = vrot.slane %v5251_v60, 4  ;;  %v8927_v38 = vsel %vm7638_vm15, %v6240_v26, %v5258_v11  ;;  %v5260_v55 = vrot.slane %v5258_v11, 4  ;;  %v7074_v60 = vld [vmem:[#allocation2 + $0x90] sm:$0xff]   ;;  %v7076_v11 = vld [vmem:[#allocation2 + $0xa8] sm:$0xff]  }
 0x196   : > { %v6245_v19 = vcombine.low %v5175_v43, %v5178_v52  ;;  %v3053_v15 = vor.u32 %v3052_v14, %v3049_v12  ;;  %v3108_v26 = vshrl.u32 %v7128_v16, 16  ;;  %v3068_v5 = vrot.slane %v3066_v31, 5  ;;  %v7131_v31 = vld [vmem:[#allocation2 + $0xa0] sm:$0xf] }
 0x197   : > { %v8919_v63 = vsel %vm7638_vm15, %v5253_v57, %v5254_v41  ;;  %v8937_v28 = vsel %vm7638_vm15, %v5260_v55, %v5261_v32  ;;  %v3104_v57 = vshll.u32 %v7128_v16, 16  ;;  %v7077_v32 = vld [vmem:[#allocation2 + $0xb4] sm:$0xff]   ;;  %v3119_v52 = vshrl.u32 %v2839_v23, 16 }
 0x198   : > { %v6256_v51 = vcombine.low %v8913_v36, %v8919_v63  ;;  %v6257_v41 = vcombine.low %v8927_v38, %v8937_v28  ;;  %v3110_v14 = vrot.slane %v3108_v26, 4 }
 0x199   : > { %6739 = vmatmul.mubr.msk.bf16.vlgmr.msra.gmra.mrb[0].mxu0 %vm1485_vm8, %v6243_v44  ;;  %v7075_v44 = vld [vmem:[#allocation2 + $0x9c] sm:$0xff]   ;;  %v8948_v12 = vrot.slane %v3104_v57, 5  ;;  %v3121_v57 = vrot.slane %v3119_v52, 4  ;;  %v2845_v52 = vld [vmem:[#allocation2 + $0xa8] sm:$0xf] }
 0x19a   : > { %6585 = vmatmul.mubr.msk.bf16.gmra.mrb[16].mxu1 %vm1485_vm8, %v7072_v50  ;;  %6742 = vmatprep.mubr.msk.bf16.mxu0 %vm1485_vm8, %v6244_v1  ;;  %v3058_v50 = vrot.slane %v3056_v61, 5  ;;  %v3054_v1 = vrot.slane %v3053_v15, 4 }
 0x19b   : > { %6588 = vmatprep.mubr.msk.bf16.mxu1 %vm1485_vm8, %v7073_v46  ;;  %v2836_v46 = vld [vmem:[#allocation2 + $0x84] sm:$0xf] }
 0x19c   : > { %v3063_v48 = vor.u32 %v3062_v59, %v3058_v50  ;;  %v3095_v18 = vshrl.u32 %v2836_v46, 16  ;;  %v3098_v0 = vshll.u32 %v2836_v46, 16  ;;  %v3122_v59 = vshll.u32 %v2839_v23, 16  ;;  %v7130_v46 = vld [vmem:[#allocation2 + $0x94] sm:$0xf] }
 0x19d   : > { %v3132_v15 = vshrl.u32 %v7130_v46, 16 }
 0x19e   : > { %v3064_v61 = vrot.slane %v3063_v48, 4  ;;  %v3097_v55 = vrot.slane %v3095_v18, 4  ;;  %v3100_v43 = vrot.slane %v3098_v0, 5  ;;  %v3152_v18 = vshll.u32 %v7131_v31, 16 }
 0x19f   : > { %v3156_v0 = vshrl.u32 %v7131_v31, 16  ;;  %v3124_v26 = vrot.slane %v3122_v59, 5  ;;  %v7132_v59 = vld [vmem:[#allocation2 + $0x98] sm:$0x1] }
 0x1a0   : > { %v3069_v33 = vsel %vm7321_vm9, %v3064_v61, %v3068_v5  ;;  %v3101_v16 = vor.u32 %v3100_v43, %v3097_v55  ;;  %v8967_v43 = vrot.slane %v3152_v18, 5 }
 0x1a1   : > { %6743 = vmatmul.mubr.msk.bf16.gmra.mrb[4].mxu0 %vm1485_vm8, %v6245_v19  ;;  %v3128_v19 = vshll.u32 %v7130_v46, 16 }
 0x1a2   : > { %6589 = vmatmul.mubr.msk.bf16.gmra.mrb[20].mxu1 %vm1485_vm8, %v7074_v60  ;;  %6746 = vmatprep.mubr.msk.bf16.mxu0 %vm1485_vm8, %v6246_v53  ;;  %v2842_v60 = vld [vmem:[#allocation2 + $0x9c] sm:$0xf]  ;;  %v3114_v53 = vshll.u32 %v7129_v29, 16  ;;  %v3102_v62 = vrot.slane %v3101_v16, 4  ;;  %v2848_v29 = vld [vmem:[#allocation2 + $0xb4] sm:$0xf] }
 0x1a3   : > { %6592 = vmatprep.mubr.msk.bf16.mxu1 %vm1485_vm8, %v7075_v44  ;;  %v3059_v44 = vsel %vm7321_vm9, %v3054_v1, %v3058_v50  ;;  %v3143_v48 = vshrl.u32 %v2842_v60, 16  ;;  %v3146_v4 = vshll.u32 %v2842_v60, 16  ;;  %v3111_v50 = vor.u32 %v3110_v14, %v8948_v12  ;;  %v7078_v1 = vld [vmem:[#allocation2 + $0xc0] sm:$0xff]  }
 0x1a4   : > { %v6086_v23 = vcombine.low %v3059_v44, %v3069_v33  ;;  %v3116_v61 = vrot.slane %v3114_v53, 5  ;;  %v8965_v5 = vrot.slane %v3128_v19, 5  ;;  %v3158_v14 = vrot.slane %v3156_v0, 4  ;;  %v7134_v19 = vld [vmem:[#allocation2 + $0xac] sm:$0xf] }
 0x1a5   : > { %v3148_v55 = vrot.slane %v3146_v4, 5  ;;  %v3112_v10 = vrot.slane %v3111_v50, 4  ;;  %v3138_v60 = vshll.u32 %v7132_v59, 16  ;;  %v3167_v44 = vshrl.u32 %v2845_v52, 16 }
 0x1a6   : > { %v3170_v33 = vshll.u32 %v2845_v52, 16  ;;  %v3159_v46 = vor.u32 %v3158_v14, %v8967_v43  ;;  %v3107_v4 = vsel %vm7321_vm9, %v3102_v62, %v8948_v12  ;;  %v3191_v16 = vshrl.u32 %v2848_v29, 16 }
 0x1a7   : > { %v3117_v31 = vsel %vm7321_vm9, %v3112_v10, %v3116_v61  ;;  %v3140_v0 = vrot.slane %v3138_v60, 5  ;;  %v3194_v50 = vshll.u32 %v2848_v29, 16  ;;  %v3169_v61 = vrot.slane %v3167_v44, 4 }
 0x1a8   : > { %v6088_v49 = vcombine.low %v3107_v4, %v3117_v31 }
 0x1a9   : > { %6747 = vmatmul.mubr.msk.bf16.gmra.mrb[8].mxu0 %vm1485_vm8, %v6247_v34  ;;  %v3125_v34 = vor.u32 %v3124_v26, %v3121_v57  ;;  %v7135_v57 = vld [vmem:[#allocation2 + $0xb8] sm:$0xf]  ;;  %v3196_v52 = vrot.slane %v3194_v50, 5 }
 0x1aa   : > { %6593 = vmatmul.mubr.msk.bf16.gmra.mrb[24].mxu1 %vm1485_vm8, %v7076_v11  ;;  %6750 = vmatprep.mubr.msk.bf16.mxu0 %vm1485_vm8, %v6248_v13  ;;  %v3134_v11 = vrot.slane %v3132_v15, 4  ;;  %v3162_v13 = vshll.u32 %v7133_v24, 16  ;;  %v3176_v15 = vshll.u32 %v7134_v19, 16  ;;  %v3200_v26 = vshll.u32 %v7135_v57, 16 }
 0x1ab   : > { %6596 = vmatprep.mubr.msk.bf16.mxu1 %vm1485_vm8, %v7077_v32  ;;  %v3145_v32 = vrot.slane %v3143_v48, 4  ;;  %v3180_v48 = vshrl.u32 %v7134_v19, 16  ;;  %v3126_v18 = vrot.slane %v3125_v34, 4  ;;  %v2851_v34 = vld [vmem:[#allocation2 + $0xc0] sm:$0xf] }
 0x1ac   : > { %v3135_v37 = vor.u32 %v3134_v11, %v8965_v5  ;;  %v3172_v11 = vrot.slane %v3170_v33, 5  ;;  %v3178_v14 = vrot.slane %v3176_v15, 5  ;;  %v3202_v62 = vrot.slane %v3200_v26, 5  ;;  %v7137_v33 = vld [vmem:[#allocation2 + $0xc4] sm:$0xf] }
 0x1ad   : > { %v3149_v53 = vor.u32 %v3148_v55, %v3145_v32  ;;  %v3160_v55 = vrot.slane %v3159_v46, 4  ;;  %v3182_v39 = vrot.slane %v3180_v48, 4  ;;  %v3131_v6 = vsel %vm7321_vm9, %v3126_v18, %v8965_v5 }
 0x1ae   : > { %v3136_v12 = vrot.slane %v3135_v37, 4  ;;  %v3173_v24 = vor.u32 %v3172_v11, %v3169_v61  ;;  %v3215_v5 = vshrl.u32 %v2851_v34, 16  ;;  %v3218_v44 = vshll.u32 %v2851_v34, 16 }
 0x1af   : > { %v3150_v32 = vrot.slane %v3149_v53, 4  ;;  %v3224_v29 = vshll.u32 %v7137_v33, 16  ;;  %v3228_v53 = vshrl.u32 %v7137_v33, 16 }
 0x1b0   : > { %v3141_v8 = vsel %vm7321_vm9, %v3136_v12, %v3140_v0  ;;  %v3174_v4 = vrot.slane %v3173_v24, 4  ;;  %v3217_v0 = vrot.slane %v3215_v5, 4 }
 0x1b1   : > { %6751 = vmatmul.mubr.msk.bf16.gmra.mrb[12].mxu0 %vm1485_vm8, %v6249_v20  ;;  %v3193_v20 = vrot.slane %v3191_v16, 4  ;;  %v3155_v60 = vsel %vm7321_vm9, %v3150_v32, %v8967_v43  ;;  %v7138_v43 = vld [vmem:[#allocation2 + $0xbc] sm:$0x1]  ;;  %v6089_v15 = vcombine.low %v3131_v6, %v3141_v8  ;;  %v3220_v16 = vrot.slane %v3218_v44, 5 }
 0x1b2   : > { %6597 = vmatmul.mubr.msk.bf16.gmra.mrb[28].mxu1 %vm1485_vm8, %v7078_v1  ;;  %v3204_v1 = vshrl.u32 %v7135_v57, 16  ;;  %6754 = vmatprep.mubr.msk.bf16.mxu0 %vm1485_vm8, %v6250_v40  ;;  %v7136_v40 = vld [vmem:[#allocation2 + $0xb0] sm:$0x1]  ;;  %v3210_v19 = vshll.u32 %v7138_v43, 16  ;;  %v3226_v50 = vrot.slane %v3224_v29, 5  ;;  %v3230_v2 = vrot.slane %v3228_v53, 4 }
 0x1b3   : > { %6618 = vmatprep.mubr.msk.bf16.mxu1 %vm1485_vm8, %v6086_v23  ;;  %v3164_v23 = vrot.slane %v3162_v13, 5  ;;  %v3186_v59 = vshll.u32 %v7136_v40, 16  ;;  %v3183_v13 = vor.u32 %v3182_v39, %v3178_v14  ;;  %v3179_v26 = vsel %vm7321_vm9, %v3174_v4, %v3178_v14 }
 0x1b4   : > { %v3206_v10 = vrot.slane %v3204_v1, 4  ;;  %v3212_v57 = vrot.slane %v3210_v19, 5  ;;  %v3221_v27 = vor.u32 %v3220_v16, %v3217_v0  ;;  %v7139_v1 = vld [vmem:[#allocation2 + $0xc8] sm:$0x1] }
 0x1b5   : > { %v3165_v37 = vsel %vm7321_vm9, %v3160_v55, %v3164_v23  ;;  %v3184_v31 = vrot.slane %v3183_v13, 4  ;;  %v3188_v18 = vrot.slane %v3186_v59, 5  ;;  %v3234_v12 = vshll.u32 %v7139_v1, 16 }
 0x1b6   : > { %v3207_v46 = vor.u32 %v3206_v10, %v3202_v62  ;;  %v6090_v48 = vcombine.low %v3155_v60, %v3165_v37  ;;  %v3222_v55 = vrot.slane %v3221_v27, 4  ;;  %v9063_v10 = vld [vmem:[%s9253_s4] ss:$0 sm:$0xff] }
 0x1b7   : > { %v3189_v3 = vsel %vm7321_vm9, %v3184_v31, %v3188_v18  ;;  %v3236_v39 = vrot.slane %v3234_v12, 5 }
 0x1b8   : > { %v6091_v11 = vcombine.low %v3179_v26, %v3189_v3  ;;  %v3227_v54 = vsel %vm7321_vm9, %v3222_v55, %v3226_v50 }
 0x1b9   : > { %6755 = vmatmul.mubr.msk.bf16.gmra.mrb[16].mxu0 %vm1485_vm8, %v6251_v22  ;;  %v3208_v22 = vrot.slane %v3207_v46, 4 }
 0x1ba   : > { %6619 = vmatmul.mubr.msk.bf16.vlgmr.msra.gmra.mrb[16].mxu1 %vm1485_vm8, %v8790_v58  ;;  %v3197_v58 = vor.u32 %v3196_v52, %v3193_v20  ;;  %6758 = vmatprep.mubr.msk.bf16.mxu0 %vm1485_vm8, %v6252_v30  ;;  %v3231_v30 = vor.u32 %v3230_v2, %v3226_v50 }
 0x1bb   : > { %6622 = vmatprep.mubr.msk.bf16.mxu1 %vm1485_vm8, %v6088_v49  ;;  %v3213_v61 = vsel %vm7321_vm9, %v3208_v22, %v3212_v57 }
 0x1bc   : > { %v3198_v45 = vrot.slane %v3197_v58, 4  ;;  %v3232_v14 = vrot.slane %v3231_v30, 4 }
 0x1be   : > { %v3203_v23 = vsel %vm7321_vm9, %v3198_v45, %v3202_v62  ;;  %v3237_v7 = vsel %vm7321_vm9, %v3232_v14, %v3236_v39 }
 0x1bf   : > { %v6092_v32 = vcombine.low %v3203_v23, %v3213_v61 }
 0x1c1   : > { %6759 = vmatmul.mubr.msk.bf16.gmra.mrb[20].mxu0 %vm1485_vm8, %v6253_v17  ;;  %v6093_v17 = vcombine.low %v3227_v54, %v3237_v7 }
 0x1c2   : > { %6623 = vmatmul.mubr.msk.bf16.gmra.mrb[20].mxu1 %vm1485_vm8, %v6089_v15  ;;  %6762 = vmatprep.mubr.msk.bf16.mxu0 %vm1485_vm8, %v6254_v56 }
 0x1c3   : > { %6626 = vmatprep.mubr.msk.bf16.mxu1 %vm1485_vm8, %v6090_v48 }
 0x1c9   : > { %6763 = vmatmul.mubr.msk.bf16.gmra.mrb[24].mxu0 %vm1485_vm8, %v6255_v9 }
 0x1ca   : > { %6627 = vmatmul.mubr.msk.bf16.gmra.mrb[24].mxu1 %vm1485_vm8, %v6091_v11  ;;  %6766 = vmatprep.mubr.msk.bf16.mxu0 %vm1485_vm8, %v6256_v51 }
 0x1cb   : > { %6630 = vmatprep.mubr.msk.bf16.mxu1 %vm1485_vm8, %v6092_v32 }
 0x1d1   : > { %6767 = vmatmul.mubr.msk.bf16.gmra.mrb[28].mxu0 %vm1485_vm8, %v6257_v41 }
 0x1d2   : > { %6631 = vmatmul.mubr.msk.bf16.gmra.mrb[28].mxu1 %vm1485_vm8, %v6093_v17 }
 0x24d   : > { %v6570_v42 = vpop.f32.mrb[0].mxu1 }
 0x24e   : > { %v2647_v47 = vpop.f32.mrb[1].mxu1 }
 0x24f   : > { %v6571_v21 = vpop.f32.mrb[2].mxu1 }
 0x250   : > { %v2650_v56 = vpop.f32.mrb[3].mxu1 }
 0x255   : > { %v6574_v35 = vpop.f32.mrb[4].mxu1 }
 0x256   : > { %v2663_v25 = vpop.f32.mrb[5].mxu1 }
 0x257   : > { %v6575_v9 = vpop.f32.mrb[6].mxu1 }
 0x258   : > { %v2666_v49 = vpop.f32.mrb[7].mxu1 }
 0x25d   : > { %v9044_v36 = vpop.f32.mrb[8].mxu1 }
 0x25e   : > { %v9046_v63 = vpop.f32.mrb[9].mxu1 }
 0x25f   : > { %v9048_v51 = vpop.f32.mrb[10].mxu1 }
 0x260   : > { %v9050_v20 = vpop.f32.mrb[11].mxu1 }
 0x265   : > { %v9052_v38 = vpop.f32.mrb[12].mxu1 }
 0x266   : > { %v9054_v28 = vpop.f32.mrb[13].mxu1 }
 0x267   : > { %v9056_v41 = vpop.f32.mrb[14].mxu1 }
 0x268   : > { %v9058_v52 = vpop.f32.mrb[15].mxu1 }
 0x26c   : > { %v6740_v62 = vpop.f32.mrb[0].mxu0 }
 0x26d   : > { %v6772_v34 = vadd.f32 %v6740_v62, %v6570_v42  ;;  %v5398_v6 = vpop.f32.mrb[1].mxu0 }
 0x26e   : > { %v6773_v8 = vadd.f32 %v5398_v6, %v2647_v47  ;;  %v6741_v40 = vpop.f32.mrb[2].mxu0 }
 0x26f   : > { %v5566_v59 = vadd.f32 %v6772_v34, %v9063_v10  ;;  %v6774_v60 = vadd.f32 %v6741_v40, %v6571_v21  ;;  %v5401_v37 = vpop.f32.mrb[3].mxu0 }
 0x270   : > { %v5564_v24 = vadd.f32 %v6773_v8, %v9063_v10  ;;  %v6775_v13 = vadd.f32 %v5401_v37, %v2650_v56 }
 0x271   : > { %5598 = vst.msk [vmem:[%s9070_s23 + $0x10] sm:$0xff] %vm1485_vm8, %v5566_v59  ;;  %v5567_v5 = vadd.f32 %v6774_v60, %v9063_v10  ;;  %v5700_v29 = vmul.f32 %v5566_v59, %v5566_v59  ;;  %v5631_v31 = vsel %vm1485_vm8, %v5566_v59, 0.0 }
 0x272   : > { %5596 = vst.msk [vmem:[%s9070_s23] sm:$0xff] %vm1485_vm8, %v5564_v24  ;;  %v5698_v44 = vmul.f32 %v5564_v24, %v5564_v24  ;;  %v5565_v33 = vadd.f32 %v6775_v13, %v9063_v10  ;;  %v5628_v53 = vsel %vm1485_vm8, %v5564_v24, 0.0 }
 0x273   : > { %5599 = vst.msk [vmem:[%s9070_s23 + $0x18] sm:$0xff] %vm1485_vm8, %v5567_v5  ;;  %v5701_v19 = vmul.f32 %v5567_v5, %v5567_v5  ;;  %v5733_v3 = vsel %vm1485_vm8, %v5700_v29, 0.0  ;;  %v5633_v27 = vsel %vm1485_vm8, %v5567_v5, 0.0 }
 0x274   : > { %5597 = vst.msk [vmem:[%s9070_s23 + $0x8] sm:$0xff] %vm1485_vm8, %v5565_v33  ;;  %v5629_v58 = vsel %vm1485_vm8, %v5565_v33, 0.0  ;;  %v5699_v46 = vmul.f32 %v5565_v33, %v5565_v33  ;;  %v6744_v43 = vpop.f32.mrb[4].mxu0  ;;  %v5730_v18 = vsel %vm1485_vm8, %v5698_v44, 0.0 }
 0x275   : > { %v5630_v15 = vadd.f32 %v5629_v58, %v5628_v53  ;;  %v6776_v48 = vadd.f32 %v6744_v43, %v6574_v35  ;;  %v5414_v4 = vpop.f32.mrb[5].mxu0  ;;  %v5735_v12 = vsel %vm1485_vm8, %v5701_v19, 0.0 }
 0x276   : > { %v5731_v0 = vsel %vm1485_vm8, %v5699_v46, 0.0  ;;  %v6777_v16 = vadd.f32 %v5414_v4, %v2663_v25  ;;  %v6745_v50 = vpop.f32.mrb[6].mxu0 }
 0x277   : > { %v5632_v2 = vadd.f32 %v5631_v31, %v5630_v15  ;;  %v5732_v45 = vadd.f32 %v5731_v0, %v5730_v18  ;;  %v5570_v22 = vadd.f32 %v6776_v48, %v9063_v10  ;;  %v6778_v57 = vadd.f32 %v6745_v50, %v6575_v9  ;;  %v5417_v26 = vpop.f32.mrb[7].mxu0 }
 0x278   : > { %v5568_v30 = vadd.f32 %v6777_v16, %v9063_v10  ;;  %v6779_v1 = vadd.f32 %v5417_v26, %v2666_v49 }
 0x279   : > { %v5734_v23 = vadd.f32 %v5733_v3, %v5732_v45  ;;  %5602 = vst.msk [vmem:[%s9070_s23 + $0x30] sm:$0xff] %vm1485_vm8, %v5570_v22  ;;  %v5634_v61 = vadd.f32 %v5633_v27, %v5632_v2  ;;  %v5571_v55 = vadd.f32 %v6778_v57, %v9063_v10  ;;  %v5704_v7 = vmul.f32 %v5570_v22, %v5570_v22 }
 0x27a   : > { %5600 = vst.msk [vmem:[%s9070_s23 + $0x20] sm:$0xff] %vm1485_vm8, %v5568_v30  ;;  %v5635_v11 = vsel %vm1485_vm8, %v5568_v30, 0.0  ;;  %v5702_v32 = vmul.f32 %v5568_v30, %v5568_v30  ;;  %v5569_v14 = vadd.f32 %v6779_v1, %v9063_v10  ;;  %v5639_v49 = vsel %vm1485_vm8, %v5570_v22, 0.0 }
 0x27b   : > { %v5636_v39 = vadd.f32 %v5635_v11, %v5634_v61  ;;  %v5736_v54 = vadd.f32 %v5735_v12, %v5734_v23  ;;  %5603 = vst.msk [vmem:[%s9070_s23 + $0x38] sm:$0xff] %vm1485_vm8, %v5571_v55  ;;  %v5705_v62 = vmul.f32 %v5571_v55, %v5571_v55 }
 0x27c   : > { %v5737_v17 = vsel %vm1485_vm8, %v5702_v32, 0.0  ;;  %5601 = vst.msk [vmem:[%s9070_s23 + $0x28] sm:$0xff] %vm1485_vm8, %v5569_v14  ;;  %v5637_v42 = vsel %vm1485_vm8, %v5569_v14, 0.0  ;;  %v6748_v47 = vpop.f32.mrb[8].mxu0  ;;  %v5703_v35 = vmul.f32 %v5569_v14, %v5569_v14 }
 0x27d   : > { %v5738_v21 = vadd.f32 %v5737_v17, %v5736_v54  ;;  %v5638_v56 = vadd.f32 %v5637_v42, %v5636_v39  ;;  %v6780_v25 = vadd.f32 %v6748_v47, %v9044_v36  ;;  %v5430_v9 = vpop.f32.mrb[9].mxu0  ;;  %v5641_v36 = vsel %vm1485_vm8, %v5571_v55, 0.0 }
 0x27e   : > { %v6781_v34 = vadd.f32 %v5430_v9, %v9046_v63  ;;  %v6749_v6 = vpop.f32.mrb[10].mxu0  ;;  %v5739_v40 = vsel %vm1485_vm8, %v5703_v35, 0.0  ;;  %v5741_v63 = vsel %vm1485_vm8, %v5704_v7, 0.0  ;;  %v5743_v46 = vsel %vm1485_vm8, %v5705_v62, 0.0 }
 0x27f   : > { %v5640_v8 = vadd.f32 %v5639_v49, %v5638_v56  ;;  %v5574_v59 = vadd.f32 %v6780_v25, %v9063_v10  ;;  %v6782_v60 = vadd.f32 %v6749_v6, %v9048_v51  ;;  %v5433_v37 = vpop.f32.mrb[11].mxu0  ;;  %v5740_v24 = vadd.f32 %v5739_v40, %v5738_v21 }
 0x280   : > { %v5572_v13 = vadd.f32 %v6781_v34, %v9063_v10  ;;  %v6783_v5 = vadd.f32 %v5433_v37, %v9050_v20 }
 0x281   : > { %5606 = vst.msk [vmem:[%s9070_s23 + $0x50] sm:$0xff] %vm1485_vm8, %v5574_v59  ;;  %v5642_v44 = vadd.f32 %v5641_v36, %v5640_v8  ;;  %v5575_v33 = vadd.f32 %v6782_v60, %v9063_v10  ;;  %v5742_v29 = vadd.f32 %v5741_v63, %v5740_v24  ;;  %v5708_v31 = vmul.f32 %v5574_v59, %v5574_v59 }
 0x282   : > { %5604 = vst.msk [vmem:[%s9070_s23 + $0x40] sm:$0xff] %vm1485_vm8, %v5572_v13  ;;  %v5643_v51 = vsel %vm1485_vm8, %v5572_v13, 0.0  ;;  %v5706_v53 = vmul.f32 %v5572_v13, %v5572_v13  ;;  %v5573_v58 = vadd.f32 %v6783_v5, %v9063_v10  ;;  %v5647_v50 = vsel %vm1485_vm8, %v5574_v59, 0.0 }
 0x283   : > { %v5644_v43 = vadd.f32 %v5643_v51, %v5642_v44  ;;  %5607 = vst.msk [vmem:[%s9070_s23 + $0x58] sm:$0xff] %vm1485_vm8, %v5575_v33  ;;  %v5744_v20 = vadd.f32 %v5743_v46, %v5742_v29  ;;  %v5709_v26 = vmul.f32 %v5575_v33, %v5575_v33  ;;  %v5749_v11 = vsel %vm1485_vm8, %v5708_v31, 0.0 }
 0x284   : > { %v5745_v19 = vsel %vm1485_vm8, %v5706_v53, 0.0  ;;  %5605 = vst.msk [vmem:[%s9070_s23 + $0x48] sm:$0xff] %vm1485_vm8, %v5573_v58  ;;  %v5645_v15 = vsel %vm1485_vm8, %v5573_v58, 0.0  ;;  %v5707_v48 = vmul.f32 %v5573_v58, %v5573_v58  ;;  %v6752_v4 = vpop.f32.mrb[12].mxu0 }
 0x285   : > { %v5646_v18 = vadd.f32 %v5645_v15, %v5644_v43  ;;  %v6784_v0 = vadd.f32 %v6752_v4, %v9052_v38  ;;  %v5446_v16 = vpop.f32.mrb[13].mxu0  ;;  %v5746_v2 = vadd.f32 %v5745_v19, %v5744_v20  ;;  %v5649_v38 = vsel %vm1485_vm8, %v5575_v33, 0.0 }
 0x286   : > { %v5747_v45 = vsel %vm1485_vm8, %v5707_v48, 0.0  ;;  %v6785_v22 = vadd.f32 %v5446_v16, %v9054_v28  ;;  %v6753_v57 = vpop.f32.mrb[14].mxu0  ;;  %v5751_v7 = vsel %vm1485_vm8, %v5709_v26, 0.0 }
 0x287   : > { %v5648_v3 = vadd.f32 %v5647_v50, %v5646_v18  ;;  %v5578_v27 = vadd.f32 %v6784_v0, %v9063_v10  ;;  %v6786_v30 = vadd.f32 %v6753_v57, %v9056_v41  ;;  %v5449_v1 = vpop.f32.mrb[15].mxu0  ;;  %v5748_v12 = vadd.f32 %v5747_v45, %v5746_v2 }
 0x288   : > { %v5576_v23 = vadd.f32 %v6785_v22, %v9063_v10  ;;  %v6787_v61 = vadd.f32 %v5449_v1, %v9058_v52 }
 0x289   : > { %5610 = vst.msk [vmem:[%s9070_s23 + $0x70] sm:$0xff] %vm1485_vm8, %v5578_v27  ;;  %v5650_v28 = vadd.f32 %v5649_v38, %v5648_v3  ;;  %v5579_v32 = vadd.f32 %v6786_v30, %v9063_v10  ;;  %v5750_v55 = vadd.f32 %v5749_v11, %v5748_v12  ;;  %v5712_v9 = vmul.f32 %v5578_v27, %v5578_v27 }
 0x28a   : > { %5608 = vst.msk [vmem:[%s9070_s23 + $0x60] sm:$0xff] %vm1485_vm8, %v5576_v23  ;;  %v5651_v41 = vsel %vm1485_vm8, %v5576_v23, 0.0  ;;  %v5710_v14 = vmul.f32 %v5576_v23, %v5576_v23  ;;  %v5577_v39 = vadd.f32 %v6787_v61, %v9063_v10  ;;  %v5655_v8 = vsel %vm1485_vm8, %v5578_v27, 0.0 }
 0x28b   : > { %v5652_v52 = vadd.f32 %v5651_v41, %v5650_v28  ;;  %5611 = vst.msk [vmem:[%s9070_s23 + $0x78] sm:$0xff] %vm1485_vm8, %v5579_v32  ;;  %v5752_v42 = vadd.f32 %v5751_v7, %v5750_v55  ;;  %v5713_v36 = vmul.f32 %v5579_v32, %v5579_v32  ;;  %v5657_v44 = vsel %vm1485_vm8, %v5579_v32, 0.0 }
 0x28c   : > { %v5753_v47 = vsel %vm1485_vm8, %v5710_v14, 0.0  ;;  %5609 = vst.msk [vmem:[%s9070_s23 + $0x68] sm:$0xff] %vm1485_vm8, %v5577_v39  ;;  %v5653_v21 = vsel %vm1485_vm8, %v5577_v39, 0.0  ;;  %v5711_v56 = vmul.f32 %v5577_v39, %v5577_v39  ;;  %v6756_v35 = vpop.f32.mrb[16].mxu0  ;;  %v5757_v53 = vsel %vm1485_vm8, %v5712_v9, 0.0 }
 0x28d   : > { %v6620_v54 = vpop.f32.mrb[16].mxu1  ;;  %v5654_v49 = vadd.f32 %v5653_v21, %v5652_v52  ;;  %v5462_v34 = vpop.f32.mrb[17].mxu0  ;;  %v5754_v40 = vadd.f32 %v5753_v47, %v5752_v42  ;;  %v5759_v4 = vsel %vm1485_vm8, %v5713_v36, 0.0 }
 0x28e   : > { %v3437_v17 = vpop.f32.mrb[17].mxu1  ;;  %v6788_v62 = vadd.f32 %v6756_v35, %v6620_v54  ;;  %v5755_v59 = vsel %vm1485_vm8, %v5711_v56, 0.0  ;;  %v6757_v37 = vpop.f32.mrb[18].mxu0 }
 0x28f   : > { %v6621_v25 = vpop.f32.mrb[18].mxu1  ;;  %v6789_v60 = vadd.f32 %v5462_v34, %v3437_v17  ;;  %v5656_v24 = vadd.f32 %v5655_v8, %v5654_v49  ;;  %v5465_v63 = vpop.f32.mrb[19].mxu0  ;;  %v5756_v33 = vadd.f32 %v5755_v59, %v5754_v40 }
 0x290   : > { %v3440_v6 = vpop.f32.mrb[19].mxu1  ;;  %v5582_v13 = vadd.f32 %v6788_v62, %v9063_v10  ;;  %v6790_v5 = vadd.f32 %v6757_v37, %v6621_v25 }
 0x291   : > { %v5580_v29 = vadd.f32 %v6789_v60, %v9063_v10  ;;  %v6791_v51 = vadd.f32 %v5465_v63, %v3440_v6  ;;  %v5658_v58 = vadd.f32 %v5657_v44, %v5656_v24  ;;  %v5758_v43 = vadd.f32 %v5757_v53, %v5756_v33 }
 0x292   : > { %5614 = vst.msk [vmem:[%s9070_s23 + $0x90] sm:$0xff] %vm1485_vm8, %v5582_v13  ;;  %v5583_v46 = vadd.f32 %v6790_v5, %v9063_v10  ;;  %v5716_v57 = vmul.f32 %v5582_v13, %v5582_v13  ;;  %v5663_v1 = vsel %vm1485_vm8, %v5582_v13, 0.0 }
 0x293   : > { %5612 = vst.msk [vmem:[%s9070_s23 + $0x80] sm:$0xff] %vm1485_vm8, %v5580_v29  ;;  %v5659_v20 = vsel %vm1485_vm8, %v5580_v29, 0.0  ;;  %v5714_v19 = vmul.f32 %v5580_v29, %v5580_v29  ;;  %v5581_v15 = vadd.f32 %v6791_v51, %v9063_v10  ;;  %v5760_v0 = vadd.f32 %v5759_v4, %v5758_v43 }
 0x294   : > { %v5660_v31 = vadd.f32 %v5659_v20, %v5658_v58  ;;  %5615 = vst.msk [vmem:[%s9070_s23 + $0x98] sm:$0xff] %vm1485_vm8, %v5583_v46  ;;  %v6760_v45 = vpop.f32.mrb[20].mxu0  ;;  %v5717_v11 = vmul.f32 %v5583_v46, %v5583_v46  ;;  %v5665_v14 = vsel %vm1485_vm8, %v5583_v46, 0.0  ;;  %v5765_v52 = vsel %vm1485_vm8, %v5716_v57, 0.0 }
 0x295   : > { %v6624_v48 = vpop.f32.mrb[20].mxu1  ;;  %v5761_v16 = vsel %vm1485_vm8, %v5714_v19, 0.0  ;;  %5613 = vst.msk [vmem:[%s9070_s23 + $0x88] sm:$0xff] %vm1485_vm8, %v5581_v15  ;;  %v5661_v50 = vsel %vm1485_vm8, %v5581_v15, 0.0  ;;  %v5715_v2 = vmul.f32 %v5581_v15, %v5581_v15  ;;  %v5478_v27 = vpop.f32.mrb[21].mxu0 }
 0x296   : > { %v3453_v18 = vpop.f32.mrb[21].mxu1  ;;  %v5662_v26 = vadd.f32 %v5661_v50, %v5660_v31  ;;  %v6792_v3 = vadd.f32 %v6760_v45, %v6624_v48  ;;  %v5762_v38 = vadd.f32 %v5761_v16, %v5760_v0  ;;  %v6761_v61 = vpop.f32.mrb[22].mxu0  ;;  %v5767_v9 = vsel %vm1485_vm8, %v5717_v11, 0.0 }
 0x297   : > { %v6625_v22 = vpop.f32.mrb[22].mxu1  ;;  %v5763_v12 = vsel %vm1485_vm8, %v5715_v2, 0.0  ;;  %v6793_v23 = vadd.f32 %v5478_v27, %v3453_v18  ;;  %v5481_v41 = vpop.f32.mrb[23].mxu0 }
 0x298   : > { %v3456_v30 = vpop.f32.mrb[23].mxu1  ;;  %v5664_v28 = vadd.f32 %v5663_v1, %v5662_v26  ;;  %v5586_v32 = vadd.f32 %v6792_v3, %v9063_v10  ;;  %v6794_v55 = vadd.f32 %v6761_v61, %v6625_v22  ;;  %v5764_v39 = vadd.f32 %v5763_v12, %v5762_v38 }
 0x299   : > { %v5584_v54 = vadd.f32 %v6793_v23, %v9063_v10  ;;  %v6795_v7 = vadd.f32 %v5481_v41, %v3456_v30 }
 0x29a   : > { %5618 = vst.msk [vmem:[%s9070_s23 + $0xb0] sm:$0xff] %vm1485_vm8, %v5586_v32  ;;  %v5666_v17 = vadd.f32 %v5665_v14, %v5664_v28  ;;  %v5587_v42 = vadd.f32 %v6794_v55, %v9063_v10  ;;  %v5766_v47 = vadd.f32 %v5765_v52, %v5764_v39  ;;  %v5720_v37 = vmul.f32 %v5586_v32, %v5586_v32 }
 0x29b   : > { %5616 = vst.msk [vmem:[%s9070_s23 + $0xa0] sm:$0xff] %vm1485_vm8, %v5584_v54  ;;  %v5667_v21 = vsel %vm1485_vm8, %v5584_v54, 0.0  ;;  %v5718_v56 = vmul.f32 %v5584_v54, %v5584_v54  ;;  %v5585_v35 = vadd.f32 %v6795_v7, %v9063_v10  ;;  %v5671_v63 = vsel %vm1485_vm8, %v5586_v32, 0.0 }
 0x29c   : > { %v5668_v49 = vadd.f32 %v5667_v21, %v5666_v17  ;;  %5619 = vst.msk [vmem:[%s9070_s23 + $0xb8] sm:$0xff] %vm1485_vm8, %v5587_v42  ;;  %v5768_v34 = vadd.f32 %v5767_v9, %v5766_v47  ;;  %v6764_v59 = vpop.f32.mrb[24].mxu0  ;;  %v5721_v53 = vmul.f32 %v5587_v42, %v5587_v42  ;;  %v5673_v19 = vsel %vm1485_vm8, %v5587_v42, 0.0 }
 0x29d   : > { %v6628_v25 = vpop.f32.mrb[24].mxu1  ;;  %v5769_v6 = vsel %vm1485_vm8, %v5718_v56, 0.0  ;;  %5617 = vst.msk [vmem:[%s9070_s23 + $0xa8] sm:$0xff] %vm1485_vm8, %v5585_v35  ;;  %v5669_v8 = vsel %vm1485_vm8, %v5585_v35, 0.0  ;;  %v5719_v40 = vmul.f32 %v5585_v35, %v5585_v35  ;;  %v5494_v13 = vpop.f32.mrb[25].mxu0  ;;  %v5773_v31 = vsel %vm1485_vm8, %v5720_v37, 0.0 }
 0x29e   : > { %v3469_v62 = vpop.f32.mrb[25].mxu1  ;;  %v5670_v36 = vadd.f32 %v5669_v8, %v5668_v49  ;;  %v6796_v24 = vadd.f32 %v6764_v59, %v6628_v25  ;;  %v5770_v44 = vadd.f32 %v5769_v6, %v5768_v34  ;;  %v6765_v51 = vpop.f32.mrb[26].mxu0  ;;  %v5775_v57 = vsel %vm1485_vm8, %v5721_v53, 0.0 }
 0x29f   : > { %v6629_v60 = vpop.f32.mrb[26].mxu1  ;;  %v5771_v33 = vsel %vm1485_vm8, %v5719_v40, 0.0  ;;  %v6797_v29 = vadd.f32 %v5494_v13, %v3469_v62  ;;  %v5497_v20 = vpop.f32.mrb[27].mxu0 }
 0x2a0   : > { %v3472_v5 = vpop.f32.mrb[27].mxu1  ;;  %v5672_v58 = vadd.f32 %v5671_v63, %v5670_v36  ;;  %v5590_v46 = vadd.f32 %v6796_v24, %v9063_v10  ;;  %v6798_v43 = vadd.f32 %v6765_v51, %v6629_v60  ;;  %v5772_v15 = vadd.f32 %v5771_v33, %v5770_v44 }
 0x2a1   : > { %v5588_v48 = vadd.f32 %v6797_v29, %v9063_v10  ;;  %v6799_v4 = vadd.f32 %v5497_v20, %v3472_v5 }
 0x2a2   : > { %5622 = vst.msk [vmem:[%s9070_s23 + $0xd0] sm:$0xff] %vm1485_vm8, %v5590_v46  ;;  %v5674_v18 = vadd.f32 %v5673_v19, %v5672_v58  ;;  %v5591_v0 = vadd.f32 %v6798_v43, %v9063_v10  ;;  %v5774_v16 = vadd.f32 %v5773_v31, %v5772_v15  ;;  %v5724_v61 = vmul.f32 %v5590_v46, %v5590_v46 }
 0x2a3   : > { %5620 = vst.msk [vmem:[%s9070_s23 + $0xc0] sm:$0xff] %vm1485_vm8, %v5588_v48  ;;  %v5675_v50 = vsel %vm1485_vm8, %v5588_v48, 0.0  ;;  %v5722_v2 = vmul.f32 %v5588_v48, %v5588_v48  ;;  %v5589_v45 = vadd.f32 %v6799_v4, %v9063_v10  ;;  %v5679_v41 = vsel %vm1485_vm8, %v5590_v46, 0.0 }
 0x2a4   : > { %v5676_v26 = vadd.f32 %v5675_v50, %v5674_v18  ;;  %5623 = vst.msk [vmem:[%s9070_s23 + $0xd8] sm:$0xff] %vm1485_vm8, %v5591_v0  ;;  %v5776_v27 = vadd.f32 %v5775_v57, %v5774_v16  ;;  %v6768_v12 = vpop.f32.mrb[28].mxu0  ;;  %v5725_v52 = vmul.f32 %v5591_v0, %v5591_v0  ;;  %v5681_v56 = vsel %vm1485_vm8, %v5591_v0, 0.0 }
 0x2a5   : > { %v6632_v22 = vpop.f32.mrb[28].mxu1  ;;  %v5777_v30 = vsel %vm1485_vm8, %v5722_v2, 0.0  ;;  %5621 = vst.msk [vmem:[%s9070_s23 + $0xc8] sm:$0xff] %vm1485_vm8, %v5589_v45  ;;  %v5677_v1 = vsel %vm1485_vm8, %v5589_v45, 0.0  ;;  %v5723_v38 = vmul.f32 %v5589_v45, %v5589_v45  ;;  %v5510_v32 = vpop.f32.mrb[29].mxu0  ;;  %v5781_v49 = vsel %vm1485_vm8, %v5724_v61, 0.0 }
 0x2a6   : > { %v3485_v3 = vpop.f32.mrb[29].mxu1  ;;  %v5678_v11 = vadd.f32 %v5677_v1, %v5676_v26  ;;  %v6800_v28 = vadd.f32 %v6768_v12, %v6632_v22  ;;  %v5778_v14 = vadd.f32 %v5777_v30, %v5776_v27  ;;  %v6769_v7 = vpop.f32.mrb[30].mxu0  ;;  %v5783_v60 = vsel %vm1485_vm8, %v5725_v52, 0.0 }
 0x2a7   : > { %v6633_v23 = vpop.f32.mrb[30].mxu1  ;;  %v5779_v39 = vsel %vm1485_vm8, %v5723_v38, 0.0  ;;  %v6801_v54 = vadd.f32 %v5510_v32, %v3485_v3  ;;  %v5513_v21 = vpop.f32.mrb[31].mxu0 }
 0x2a8   : > { %v3488_v55 = vpop.f32.mrb[31].mxu1  ;;  %v5680_v17 = vadd.f32 %v5679_v41, %v5678_v11  ;;  %v5594_v42 = vadd.f32 %v6800_v28, %v9063_v10  ;;  %v6802_v47 = vadd.f32 %v6769_v7, %v6633_v23  ;;  %v5780_v35 = vadd.f32 %v5779_v39, %v5778_v14 }
 0x2a9   : > { %v5592_v25 = vadd.f32 %v6801_v54, %v9063_v10  ;;  %v6803_v9 = vadd.f32 %v5513_v21, %v3488_v55 }
 0x2aa   : > { %5626 = vst.msk [vmem:[%s9070_s23 + $0xf0] sm:$0xff] %vm1485_vm8, %v5594_v42  ;;  %v5682_v62 = vadd.f32 %v5681_v56, %v5680_v17  ;;  %v5595_v34 = vadd.f32 %v6802_v47, %v9063_v10  ;;  %v5782_v6 = vadd.f32 %v5781_v49, %v5780_v35  ;;  %v5728_v63 = vmul.f32 %v5594_v42, %v5594_v42 }
 0x2ab   : > { %5624 = vst.msk [vmem:[%s9070_s23 + $0xe0] sm:$0xff] %vm1485_vm8, %v5592_v25  ;;  %v5683_v8 = vsel %vm1485_vm8, %v5592_v25, 0.0  ;;  %v5726_v40 = vmul.f32 %v5592_v25, %v5592_v25  ;;  %v5593_v59 = vadd.f32 %v6803_v9, %v9063_v10  ;;  %v5687_v33 = vsel %vm1485_vm8, %v5594_v42, 0.0 }
 0x2ac   : > { %v5684_v37 = vadd.f32 %v5683_v8, %v5682_v62  ;;  %5627 = vst.msk [vmem:[%s9070_s23 + $0xf8] sm:$0xff] %vm1485_vm8, %v5595_v34  ;;  %v5784_v36 = vadd.f32 %v5783_v60, %v5782_v6  ;;  %v5729_v51 = vmul.f32 %v5595_v34, %v5595_v34  ;;  %v5689_v58 = vsel %vm1485_vm8, %v5595_v34, 0.0 }
 0x2ad   : > { %v5785_v24 = vsel %vm1485_vm8, %v5726_v40, 0.0  ;;  %5625 = vst.msk [vmem:[%s9070_s23 + $0xe8] sm:$0xff] %vm1485_vm8, %v5593_v59  ;;  %v5685_v13 = vsel %vm1485_vm8, %v5593_v59, 0.0  ;;  %v5727_v5 = vmul.f32 %v5593_v59, %v5593_v59  ;;  %v5789_v43 = vsel %vm1485_vm8, %v5728_v63, 0.0 }
 0x2ae   : > { %v5686_v44 = vadd.f32 %v5685_v13, %v5684_v37  ;;  %v5786_v29 = vadd.f32 %v5785_v24, %v5784_v36  ;;  %v5791_v15 = vsel %vm1485_vm8, %v5729_v51, 0.0 }
 0x2af   : > { %v5787_v10 = vsel %vm1485_vm8, %v5727_v5, 0.0 }
 0x2b0   : > { %v5688_v53 = vadd.f32 %v5687_v33, %v5686_v44  ;;  %v5788_v46 = vadd.f32 %v5787_v10, %v5786_v29 }
 0x2b2   : > { %v5690_v20 = vadd.f32 %v5689_v58, %v5688_v53  ;;  %v5790_v19 = vadd.f32 %v5789_v43, %v5788_v46 }
 0x2b4   : > { %v5691_v48 = vrot.slane %v5690_v20, 4  ;;  %v5792_v4 = vadd.f32 %v5791_v15, %v5790_v19 }
 0x2b6   : > { %v5692_v31 = vadd.f32 %v5691_v48, %v5690_v20  ;;  %v5793_v18 = vrot.slane %v5792_v4, 4 }
 0x2b8   : > { %v5693_v0 = vrot.slane %v5692_v31, 2  ;;  %v5794_v16 = vadd.f32 %v5793_v18, %v5792_v4 }
 0x2ba   : > { %v5694_v50 = vadd.f32 %v5693_v0, %v5692_v31  ;;  %v5795_v2 = vrot.slane %v5794_v16, 2 }
 0x2bc   : > { %v5695_v45 = vrot.slane %v5694_v50, 1  ;;  %v5796_v22 = vadd.f32 %v5795_v2, %v5794_v16 }
 0x2be   : > { %v5696_v57 = vadd.f32 %v5695_v45, %v5694_v50  ;;  %v5797_v26 = vrot.slane %v5796_v22, 1 }
 0x2c0   : > { %5697 = vst.msk [vmem:[%s262_s26] sm:$0x1] %vm409_vm2, %v5696_v57  ;;  %v5798_v3 = vadd.f32 %v5797_v26, %v5796_v22 }
 0x2c2   : > { %5799 = vst.msk [vmem:[%s262_s26 + $0x1] sm:$0x1] %vm409_vm2, %v5798_v3 }
 0x2c3 PF: > { %s17_s21 = sadd.s32 1, %s7146_s21  }
 0x2c4   : > { %p14_p4 = scmp.ge.s32.totalorder %s17_s21, 4  }
 0x2c6   :  { %16 = sbr.rel (!%p14_p4) target bundleno = 1 (0x1), region = 92 }

</bundles_post_ra>
